<compile_context>
chip_gen: v5e
topology: v5e:2x2
jax: 0.10.0
libtpu: 0.0.40
codegen_flags: <defaults>
</compile_context>

<pallas_src>
import functools

import jax
import jax.numpy as jnp
from jax.experimental import pallas as pl
from jax.experimental.pallas import tpu as pltpu


# ---------------------------------------------------------------------------
# Fused kernel: conv1 + bias + relu + conv2 + bias + residual
# ---------------------------------------------------------------------------
def _resblock_kernel(x_ref, w1_ref, b1_ref, w2_ref, b2_ref, out_ref, pad_ref,
                     *, NB, H, WC, KH):
    """Processes NB batch elements per grid step.

    x_ref:   (NB, H, WC)         f32 lane-dense activations (WC = W*C)
    w*_ref:  (KH, WC, WC)        bf16 width-banded conv weights (VMEM resident)
    b*_ref:  (1, WC)             f32 bias pre-tiled across W
    out_ref: (NB, H, WC)         f32
    pad_ref: (NB, H + 2*ph, WC)  bf16 scratch, vertical (row) halo only
    """
    ph = KH // 2

    # Zero only the halo border rows.  Unconditional on purpose: it is just
    # 2*ph rows of bf16 stores per step, and gating on program_id(0)==0 would
    # be wrong when the batch axis is parallel-split across TensorCores (v7x).
    zrows = jnp.zeros((ph, WC), pad_ref.dtype)

    def conv(w_ref, b_ref, b):
        # KH bf16 MXU matmuls, f32 accumulation; horizontal "same" padding is
        # encoded in the banded weight, vertical padding in the zero halo rows.
        acc = jnp.dot(pad_ref[b, 0:H, :], w_ref[0],
                      preferred_element_type=jnp.float32)
        for kh in range(1, KH):
            acc = acc + jnp.dot(pad_ref[b, kh:kh + H, :], w_ref[kh],
                                preferred_element_type=jnp.float32)
        return acc + b_ref[...]

    for b in range(NB):
        pad_ref[b, 0:ph, :] = zrows
        pad_ref[b, ph + H:ph + H + ph, :] = zrows

        x = x_ref[b]                                       # (H, WC) f32
        # conv1 + bias + ReLU; intermediate lives only in VMEM (bf16).
        pad_ref[b, ph:ph + H, :] = x.astype(pad_ref.dtype)
        h = jnp.maximum(conv(w1_ref, b1_ref, b), 0.0)
        # conv2 + bias + residual (residual uses the original f32 x).
        pad_ref[b, ph:ph + H, :] = h.astype(pad_ref.dtype)
        out_ref[b] = (conv(w2_ref, b2_ref, b) + x).astype(out_ref.dtype)


# ---------------------------------------------------------------------------
# One-time parameter preparation (hoisted out of the forward hot path)
# ---------------------------------------------------------------------------
def _band_weight(w_hwio, W):
    """(KH, KW, Cin, Cout) conv weight -> (KH, W*Cin, W*Cout) banded bf16.

    M[kh, wi*Cin+ci, wo*Cout+co] = w[kh, wi-wo+pw, ci, co]  if 0 <= wi-wo+pw < KW.
    """
    KH, KW, Cin, Cout = w_hwio.shape
    pw = KW // 2
    wi = jnp.arange(W)[:, None]
    wo = jnp.arange(W)[None, :]
    kw = wi - wo + pw                                       # (W, W)
    valid = (kw >= 0) & (kw < KW)
    blocks = w_hwio[:, jnp.clip(kw, 0, KW - 1)]             # (KH, W, W, Cin, Cout)
    blocks = blocks * valid[None, :, :, None, None].astype(w_hwio.dtype)
    banded = blocks.transpose(0, 1, 3, 2, 4).reshape(KH, W * Cin, W * Cout)
    return banded.astype(jnp.bfloat16)


def prepare_resblock_params(params, W):
    """One-time prep: banded bf16 weights + lane-dense f32 biases."""
    (w1, b1), (w2, b2) = params
    C = w1.shape[2]
    return (_band_weight(w1, W),
            jnp.tile(b1, W).reshape(1, W * C).astype(jnp.float32),
            _band_weight(w2, W),
            jnp.tile(b2, W).reshape(1, W * C).astype(jnp.float32))


def _default_batch_block(N):
    """Whole batch per grid step on single-TC chips (v5e/v6e) to amortize the
    per-step overhead; one sample per step elsewhere (v7x: 2 TCs want a >=2-way
    parallel grid)."""
    try:
        kind = jax.devices()[0].device_kind.lower()
    except Exception:
        return 1
    single_tc = any(t in kind for t in
                    ("v5 lite", "v5litepod", "v5e", "v6 lite", "v6e"))
    return N if single_tc else 1


# ---------------------------------------------------------------------------
# Lane-dense fast path: x is (N, H, W*C), NHWC flattened, f32.
# ---------------------------------------------------------------------------
def resblock_apply(x_ld, prepared, *, batch_block=None):
    w1b, b1t, w2b, b2t = prepared
    N, H, WC = x_ld.shape
    KH = w1b.shape[0]
    ph = KH // 2

    NB = batch_block if batch_block is not None else _default_batch_block(N)
    assert N % NB == 0, (N, NB)

    kernel = functools.partial(_resblock_kernel, NB=NB, H=H, WC=WC, KH=KH)

    flops = 2 * 2 * N * KH * H * WC * WC                   # two banded convs
    bytes_accessed = (4 * 2 * N * H * WC                   # x in + y out (f32)
                      + 2 * 2 * KH * WC * WC               # bf16 banded weights
                      + 4 * 2 * WC)                        # biases

    return pl.pallas_call(
        kernel,
        out_shape=jax.ShapeDtypeStruct((N, H, WC), x_ld.dtype),
        grid=(N // NB,),
        in_specs=[
            pl.BlockSpec((NB, H, WC), lambda n: (n, 0, 0)),
            # Weights / biases never change across grid steps: keep a single
            # whole-array VMEM copy instead of a double-buffered block stream.
            pl.BlockSpec(memory_space=pltpu.MemorySpace.VMEM),
            pl.BlockSpec(memory_space=pltpu.MemorySpace.VMEM),
            pl.BlockSpec(memory_space=pltpu.MemorySpace.VMEM),
            pl.BlockSpec(memory_space=pltpu.MemorySpace.VMEM),
        ],
        out_specs=pl.BlockSpec((NB, H, WC), lambda n: (n, 0, 0)),
        scratch_shapes=[
            pltpu.VMEM((NB, H + 2 * ph, WC), jnp.bfloat16),  # row-halo buffer
        ],
        compiler_params=pltpu.CompilerParams(
            dimension_semantics=("parallel",),
            # Explicit scoped-VMEM budget (above v5e's 16 MiB default, well
            # inside v7x's 64 MiB physical); revisit alongside any row tiling.
            vmem_limit_bytes=32 * 1024 * 1024),
        cost_estimate=pl.CostEstimate(
            flops=flops, transcendentals=0, bytes_accessed=bytes_accessed),
    )(x_ld, w1b, b1t, w2b, b2t)


# ---------------------------------------------------------------------------
# Public wrapper: NCHW in / NCHW out (matches the PyTorch module).
# NOTE: the NCHW<->NHWC transposes are XLA-side passes over x and y; callers
# that already hold NHWC activations should use resblock_apply directly.
# ---------------------------------------------------------------------------
def resblock_forward(x_nchw, prepared, *, batch_block=None):
    N, C, H, W = x_nchw.shape
    x_ld = jnp.transpose(x_nchw, (0, 2, 3, 1)).reshape(N, H, W * C)
    y_ld = resblock_apply(x_ld, prepared, batch_block=batch_block)
    return jnp.transpose(y_ld.reshape(N, H, W, C), (0, 3, 1, 2))


# ---------------------------------------------------------------------------
# Parameters (PyTorch Conv2d default init, deterministic)
# ---------------------------------------------------------------------------
def init_resblock_params(key, in_channels, kernel_size=3):
    def conv_params(key, cin, cout, k):
        kw_key, kb_key = jax.random.split(key)
        bound = 1.0 / jnp.sqrt(cin * k * k)
        w = jax.random.uniform(kw_key, (k, k, cin, cout), jnp.float32,
                               -bound, bound)
        b = jax.random.uniform(kb_key, (cout,), jnp.float32, -bound, bound)
        return w, b

    k1, k2 = jax.random.split(key)
    return (conv_params(k1, in_channels, in_channels, kernel_size),
            conv_params(k2, in_channels, in_channels, kernel_size))


# ---------------------------------------------------------------------------
# Pure-JAX reference (lax conv, f32) for the correctness check
# ---------------------------------------------------------------------------
def _conv_ref(x_nhwc, w, b):
    y = jax.lax.conv_general_dilated(
        x_nhwc, w, window_strides=(1, 1), padding="SAME",
        dimension_numbers=("NHWC", "HWIO", "NHWC"))
    return y + b


def resblock_ref(x_nchw, params):
    (w1, b1), (w2, b2) = params
    x = jnp.transpose(x_nchw, (0, 2, 3, 1))
    h = jax.nn.relu(_conv_ref(x, w1, b1))
    y = _conv_ref(h, w2, b2) + x
    return jnp.transpose(y, (0, 3, 1, 2))


# ---------------------------------------------------------------------------
if __name__ == "__main__":
    key = jax.random.PRNGKey(0)
    xkey, pkey = jax.random.split(key)

    N, C, H, W = 2, 32, 16, 16          # NCHW, as in the PyTorch module
    kernel_size = 3

    x = jax.random.normal(xkey, (N, C, H, W), jnp.float32)
    params = init_resblock_params(pkey, C, kernel_size)
    prepared = prepare_resblock_params(params, W)       # one-time weight prep

    out = jax.block_until_ready(resblock_forward(x, prepared))
    ref = jax.block_until_ready(resblock_ref(x, params))

    assert out.shape == (N, C, H, W), out.shape
    # bf16 MXU datapath (f32 accumulation + f32 epilogue) -> loosened tolerance
    # vs the pure-f32 lax.conv reference.
    max_err = float(jnp.max(jnp.abs(out - ref)))
    assert jnp.allclose(out, ref, atol=5e-2, rtol=5e-2), max_err

    print("KERNEL_OK")
</pallas_src>

<mosaic_0001>
module attributes {stable_mosaic.version = 11 : i64} {
  func.func @_resblock_kernel(%arg0: i32, %arg1: memref<1x16x512xf32, #tpu.memory_space<vmem>>, %arg2: memref<3x512x512xbf16, #tpu.memory_space<vmem>>, %arg3: memref<1x512xf32, #tpu.memory_space<vmem>>, %arg4: memref<3x512x512xbf16, #tpu.memory_space<vmem>>, %arg5: memref<1x512xf32, #tpu.memory_space<vmem>>, %arg6: memref<1x16x512xf32, #tpu.memory_space<vmem>>, %arg7: memref<1x18x512xbf16, #tpu.memory_space<vmem>>) attributes {dimension_semantics = [#tpu.dimension_semantics<parallel>], iteration_bounds = array<i64: 2>, scalar_prefetch = 0 : i64, scratch_operands = 1 : i64, tpu.core_type = #tpu.core_type<tc>, window_params = [{transform_indices = @transform_0, window_bounds = array<i64: 1, 16, 512>}, {pipeline_mode = #tpu.pipeline_mode<synchronous>, transform_indices = @transform_1, window_bounds = array<i64: 3, 512, 512>}, {pipeline_mode = #tpu.pipeline_mode<synchronous>, transform_indices = @transform_2, window_bounds = array<i64: 1, 512>}, {pipeline_mode = #tpu.pipeline_mode<synchronous>, transform_indices = @transform_3, window_bounds = array<i64: 3, 512, 512>}, {pipeline_mode = #tpu.pipeline_mode<synchronous>, transform_indices = @transform_4, window_bounds = array<i64: 1, 512>}, {transform_indices = @transform_5, window_bounds = array<i64: 1, 16, 512>}]} {
    %cst = arith.constant 0.000000e+00 : bf16
    %0 = vector.broadcast %cst : bf16 to vector<1x512xbf16>
    %c0 = arith.constant 0 : index
    %c0_0 = arith.constant 0 : index
    %c0_1 = arith.constant 0 : index
    %1 = vector.load %arg7[%c0, %c0_0, %c0_1] : memref<1x18x512xbf16, #tpu.memory_space<vmem>>, vector<1x1x512xbf16>
    %2 = vector.shape_cast %1 : vector<1x1x512xbf16> to vector<1x512xbf16>
    %3 = vector.shape_cast %0 : vector<1x512xbf16> to vector<1x1x512xbf16>
    tpu.vector_store %arg7[%c0, %c0_0, %c0_1], %3 {strides = array<i32>} : memref<1x18x512xbf16, #tpu.memory_space<vmem>>, vector<1x1x512xbf16>,
    %c0_2 = arith.constant 0 : index
    %c17 = arith.constant 17 : index
    %c0_3 = arith.constant 0 : index
    %4 = vector.load %arg7[%c0_2, %c17, %c0_3] : memref<1x18x512xbf16, #tpu.memory_space<vmem>>, vector<1x1x512xbf16>
    %5 = vector.shape_cast %4 : vector<1x1x512xbf16> to vector<1x512xbf16>
    %6 = vector.shape_cast %0 : vector<1x512xbf16> to vector<1x1x512xbf16>
    tpu.vector_store %arg7[%c0_2, %c17, %c0_3], %6 {strides = array<i32>} : memref<1x18x512xbf16, #tpu.memory_space<vmem>>, vector<1x1x512xbf16>,
    %c0_4 = arith.constant 0 : index
    %c0_5 = arith.constant 0 : index
    %c0_6 = arith.constant 0 : index
    %7 = vector.load %arg1[%c0_4, %c0_5, %c0_6] : memref<1x16x512xf32, #tpu.memory_space<vmem>>, vector<1x16x512xf32>
    %8 = vector.shape_cast %7 : vector<1x16x512xf32> to vector<16x512xf32>
    %9 = arith.truncf %8 : vector<16x512xf32> to vector<16x512xbf16>
    %c0_7 = arith.constant 0 : index
    %c1 = arith.constant 1 : index
    %c0_8 = arith.constant 0 : index
    %10 = vector.load %arg7[%c0_7, %c1, %c0_8] : memref<1x18x512xbf16, #tpu.memory_space<vmem>>, vector<1x16x512xbf16>
    %11 = vector.shape_cast %10 : vector<1x16x512xbf16> to vector<16x512xbf16>
    %12 = vector.shape_cast %9 : vector<16x512xbf16> to vector<1x16x512xbf16>
    tpu.vector_store %arg7[%c0_7, %c1, %c0_8], %12 {strides = array<i32>} : memref<1x18x512xbf16, #tpu.memory_space<vmem>>, vector<1x16x512xbf16>,
    %c0_9 = arith.constant 0 : index
    %c0_10 = arith.constant 0 : index
    %c0_11 = arith.constant 0 : index
    %13 = vector.load %arg7[%c0_9, %c0_10, %c0_11] : memref<1x18x512xbf16, #tpu.memory_space<vmem>>, vector<1x16x512xbf16>
    %14 = vector.shape_cast %13 : vector<1x16x512xbf16> to vector<16x512xbf16>
    %c0_12 = arith.constant 0 : index
    %c0_13 = arith.constant 0 : index
    %c0_14 = arith.constant 0 : index
    %15 = vector.load %arg2[%c0_12, %c0_13, %c0_14] : memref<3x512x512xbf16, #tpu.memory_space<vmem>>, vector<1x512x512xbf16>
    %16 = vector.shape_cast %15 : vector<1x512x512xbf16> to vector<512x512xbf16>
    %cst_15 = arith.constant dense<0.000000e+00> : vector<16x512xf32>
    %17 = tpu.matmul %14, %16, %cst_15 {dimension_numbers = #tpu.dot_dimension_numbers<[1], [0], [0], [1], [0, 0, 1, 1], [], []>} : vector<16x512xbf16>, vector<512x512xbf16>, vector<16x512xf32> -> vector<16x512xf32>
    %c0_16 = arith.constant 0 : index
    %c1_17 = arith.constant 1 : index
    %c0_18 = arith.constant 0 : index
    %18 = vector.load %arg7[%c0_16, %c1_17, %c0_18] : memref<1x18x512xbf16, #tpu.memory_space<vmem>>, vector<1x16x512xbf16>
    %19 = vector.shape_cast %18 : vector<1x16x512xbf16> to vector<16x512xbf16>
    %c1_19 = arith.constant 1 : index
    %c0_20 = arith.constant 0 : index
    %c0_21 = arith.constant 0 : index
    %20 = vector.load %arg2[%c1_19, %c0_20, %c0_21] : memref<3x512x512xbf16, #tpu.memory_space<vmem>>, vector<1x512x512xbf16>
    %21 = vector.shape_cast %20 : vector<1x512x512xbf16> to vector<512x512xbf16>
    %cst_22 = arith.constant dense<0.000000e+00> : vector<16x512xf32>
    %22 = tpu.matmul %19, %21, %cst_22 {dimension_numbers = #tpu.dot_dimension_numbers<[1], [0], [0], [1], [0, 0, 1, 1], [], []>} : vector<16x512xbf16>, vector<512x512xbf16>, vector<16x512xf32> -> vector<16x512xf32>
    %23 = arith.addf %17, %22 : vector<16x512xf32>
    %c0_23 = arith.constant 0 : index
    %c2 = arith.constant 2 : index
    %c0_24 = arith.constant 0 : index
    %24 = vector.load %arg7[%c0_23, %c2, %c0_24] : memref<1x18x512xbf16, #tpu.memory_space<vmem>>, vector<1x16x512xbf16>
    %25 = vector.shape_cast %24 : vector<1x16x512xbf16> to vector<16x512xbf16>
    %c2_25 = arith.constant 2 : index
    %c0_26 = arith.constant 0 : index
    %c0_27 = arith.constant 0 : index
    %26 = vector.load %arg2[%c2_25, %c0_26, %c0_27] : memref<3x512x512xbf16, #tpu.memory_space<vmem>>, vector<1x512x512xbf16>
    %27 = vector.shape_cast %26 : vector<1x512x512xbf16> to vector<512x512xbf16>
    %cst_28 = arith.constant dense<0.000000e+00> : vector<16x512xf32>
    %28 = tpu.matmul %25, %27, %cst_28 {dimension_numbers = #tpu.dot_dimension_numbers<[1], [0], [0], [1], [0, 0, 1, 1], [], []>} : vector<16x512xbf16>, vector<512x512xbf16>, vector<16x512xf32> -> vector<16x512xf32>
    %29 = arith.addf %23, %28 : vector<16x512xf32>
    %c0_29 = arith.constant 0 : index
    %c0_30 = arith.constant 0 : index
    %30 = vector.load %arg3[%c0_29, %c0_30] : memref<1x512xf32, #tpu.memory_space<vmem>>, vector<1x512xf32>
    %31 = vector.broadcast %30 : vector<1x512xf32> to vector<16x512xf32>
    %32 = arith.addf %29, %31 : vector<16x512xf32>
    %cst_31 = arith.constant 0.000000e+00 : f32
    %33 = vector.broadcast %cst_31 : f32 to vector<16x512xf32>
    %34 = arith.maximumf %32, %33 : vector<16x512xf32>
    %35 = arith.truncf %34 : vector<16x512xf32> to vector<16x512xbf16>
    %c0_32 = arith.constant 0 : index
    %c1_33 = arith.constant 1 : index
    %c0_34 = arith.constant 0 : index
    %36 = vector.load %arg7[%c0_32, %c1_33, %c0_34] : memref<1x18x512xbf16, #tpu.memory_space<vmem>>, vector<1x16x512xbf16>
    %37 = vector.shape_cast %36 : vector<1x16x512xbf16> to vector<16x512xbf16>
    %38 = vector.shape_cast %35 : vector<16x512xbf16> to vector<1x16x512xbf16>
    tpu.vector_store %arg7[%c0_32, %c1_33, %c0_34], %38 {strides = array<i32>} : memref<1x18x512xbf16, #tpu.memory_space<vmem>>, vector<1x16x512xbf16>,
    %c0_35 = arith.constant 0 : index
    %c0_36 = arith.constant 0 : index
    %c0_37 = arith.constant 0 : index
    %39 = vector.load %arg7[%c0_35, %c0_36, %c0_37] : memref<1x18x512xbf16, #tpu.memory_space<vmem>>, vector<1x16x512xbf16>
    %40 = vector.shape_cast %39 : vector<1x16x512xbf16> to vector<16x512xbf16>
    %c0_38 = arith.constant 0 : index
    %c0_39 = arith.constant 0 : index
    %c0_40 = arith.constant 0 : index
    %41 = vector.load %arg4[%c0_38, %c0_39, %c0_40] : memref<3x512x512xbf16, #tpu.memory_space<vmem>>, vector<1x512x512xbf16>
    %42 = vector.shape_cast %41 : vector<1x512x512xbf16> to vector<512x512xbf16>
    %cst_41 = arith.constant dense<0.000000e+00> : vector<16x512xf32>
    %43 = tpu.matmul %40, %42, %cst_41 {dimension_numbers = #tpu.dot_dimension_numbers<[1], [0], [0], [1], [0, 0, 1, 1], [], []>} : vector<16x512xbf16>, vector<512x512xbf16>, vector<16x512xf32> -> vector<16x512xf32>
    %c0_42 = arith.constant 0 : index
    %c1_43 = arith.constant 1 : index
    %c0_44 = arith.constant 0 : index
    %44 = vector.load %arg7[%c0_42, %c1_43, %c0_44] : memref<1x18x512xbf16, #tpu.memory_space<vmem>>, vector<1x16x512xbf16>
    %45 = vector.shape_cast %44 : vector<1x16x512xbf16> to vector<16x512xbf16>
    %c1_45 = arith.constant 1 : index
    %c0_46 = arith.constant 0 : index
    %c0_47 = arith.constant 0 : index
    %46 = vector.load %arg4[%c1_45, %c0_46, %c0_47] : memref<3x512x512xbf16, #tpu.memory_space<vmem>>, vector<1x512x512xbf16>
    %47 = vector.shape_cast %46 : vector<1x512x512xbf16> to vector<512x512xbf16>
    %cst_48 = arith.constant dense<0.000000e+00> : vector<16x512xf32>
    %48 = tpu.matmul %45, %47, %cst_48 {dimension_numbers = #tpu.dot_dimension_numbers<[1], [0], [0], [1], [0, 0, 1, 1], [], []>} : vector<16x512xbf16>, vector<512x512xbf16>, vector<16x512xf32> -> vector<16x512xf32>
    %49 = arith.addf %43, %48 : vector<16x512xf32>
    %c0_49 = arith.constant 0 : index
    %c2_50 = arith.constant 2 : index
    %c0_51 = arith.constant 0 : index
    %50 = vector.load %arg7[%c0_49, %c2_50, %c0_51] : memref<1x18x512xbf16, #tpu.memory_space<vmem>>, vector<1x16x512xbf16>
    %51 = vector.shape_cast %50 : vector<1x16x512xbf16> to vector<16x512xbf16>
    %c2_52 = arith.constant 2 : index
    %c0_53 = arith.constant 0 : index
    %c0_54 = arith.constant 0 : index
    %52 = vector.load %arg4[%c2_52, %c0_53, %c0_54] : memref<3x512x512xbf16, #tpu.memory_space<vmem>>, vector<1x512x512xbf16>
    %53 = vector.shape_cast %52 : vector<1x512x512xbf16> to vector<512x512xbf16>
    %cst_55 = arith.constant dense<0.000000e+00> : vector<16x512xf32>
    %54 = tpu.matmul %51, %53, %cst_55 {dimension_numbers = #tpu.dot_dimension_numbers<[1], [0], [0], [1], [0, 0, 1, 1], [], []>} : vector<16x512xbf16>, vector<512x512xbf16>, vector<16x512xf32> -> vector<16x512xf32>
    %55 = arith.addf %49, %54 : vector<16x512xf32>
    %c0_56 = arith.constant 0 : index
    %c0_57 = arith.constant 0 : index
    %56 = vector.load %arg5[%c0_56, %c0_57] : memref<1x512xf32, #tpu.memory_space<vmem>>, vector<1x512xf32>
    %57 = vector.broadcast %56 : vector<1x512xf32> to vector<16x512xf32>
    %58 = arith.addf %55, %57 : vector<16x512xf32>
    %59 = arith.addf %58, %8 : vector<16x512xf32>
    %c0_58 = arith.constant 0 : index
    %c0_59 = arith.constant 0 : index
    %c0_60 = arith.constant 0 : index
    %60 = vector.load %arg6[%c0_58, %c0_59, %c0_60] : memref<1x16x512xf32, #tpu.memory_space<vmem>>, vector<1x16x512xf32>
    %61 = vector.shape_cast %60 : vector<1x16x512xf32> to vector<16x512xf32>
    %62 = vector.shape_cast %59 : vector<16x512xf32> to vector<1x16x512xf32>
    tpu.vector_store %arg6[%c0_58, %c0_59, %c0_60], %62 {strides = array<i32>} : memref<1x16x512xf32, #tpu.memory_space<vmem>>, vector<1x16x512xf32>,
    return
  }
  func.func @transform_0(%arg0: i32) -> (i32, i32, i32) {
    %c0_i32 = arith.constant 0 : i32
    %c0_i32_0 = arith.constant 0 : i32
    %c0_i32_1 = arith.constant 0 : i32
    return %arg0, %c0_i32, %c0_i32_0 : i32, i32, i32
  }
  func.func @transform_1(%arg0: i32) -> (i32, i32, i32) {
    %c0_i32 = arith.constant 0 : i32
    %c0_i32_0 = arith.constant 0 : i32
    %c0_i32_1 = arith.constant 0 : i32
    %c0_i32_2 = arith.constant 0 : i32
    return %c0_i32, %c0_i32_0, %c0_i32_1 : i32, i32, i32
  }
  func.func @transform_2(%arg0: i32) -> (i32, i32) {
    %c0_i32 = arith.constant 0 : i32
    %c0_i32_0 = arith.constant 0 : i32
    %c0_i32_1 = arith.constant 0 : i32
    return %c0_i32, %c0_i32_0 : i32, i32
  }
  func.func @transform_3(%arg0: i32) -> (i32, i32, i32) {
    %c0_i32 = arith.constant 0 : i32
    %c0_i32_0 = arith.constant 0 : i32
    %c0_i32_1 = arith.constant 0 : i32
    %c0_i32_2 = arith.constant 0 : i32
    return %c0_i32, %c0_i32_0, %c0_i32_1 : i32, i32, i32
  }
  func.func @transform_4(%arg0: i32) -> (i32, i32) {
    %c0_i32 = arith.constant 0 : i32
    %c0_i32_0 = arith.constant 0 : i32
    %c0_i32_1 = arith.constant 0 : i32
    return %c0_i32, %c0_i32_0 : i32, i32
  }
  func.func @transform_5(%arg0: i32) -> (i32, i32, i32) {
    %c0_i32 = arith.constant 0 : i32
    %c0_i32_0 = arith.constant 0 : i32
    %c0_i32_1 = arith.constant 0 : i32
    return %arg0, %c0_i32, %c0_i32_0 : i32, i32, i32
  }
}

</mosaic_0001>

<bundles_post_ra>
// kernel: tpu_custom_call.1
= control target key start
LH: loop header
LB: loop body
LE: loop exit
PB: predicated region body
PF: predicated region fallthrough
CT: control target
= control target key end

     0   :  { %10 = vsyncpa [#allocation4], 0  ;;  %s11972_s0 = inlined_call_operand.hbm [shape: f32[2,16,512], index: 0, kind: input, shape index: {}]   ;;  %s11973_s1 = inlined_call_operand.hbm [shape: bf16[3,512,512], index: 1, kind: input, shape index: {}]   ;;  %s11974_s2 = inlined_call_operand.hbm [shape: f32[1,512], index: 2, kind: input, shape index: {}]   ;;  %s11975_s3 = inlined_call_operand.hbm [shape: bf16[3,512,512], index: 3, kind: input, shape index: {}]   ;;  %s11976_s4 = inlined_call_operand.hbm [shape: f32[1,512], index: 4, kind: input, shape index: {}]   ;;  %s11977_s5 = inlined_call_operand.hbm [shape: f32[2,16,512], index: 5, kind: output, shape index: {}]  }
   0x1   :  { %12 = vsyncpa [#allocation4 + $0x1], 0 }
   0x2   :  { %13 = vsyncpa [#allocation7], 0 }
   0x3   :  { %14 = vsyncpa [#allocation10], 0 }
   0x4   :  { %15 = vsyncpa [#allocation5], 0 }
   0x5   :  { %17 = vsyncpa [#allocation5 + $0x1], 0  ;;  %s11087_s18 = smov 0   ;;  %s11089_s19 = smov 0  }
   0x6   :  { %s11091_s20 = smov 0   ;;  %s11093_s21 = smov 0  }
   0x7 LB: > { %s11108_s22 = sadd.s32 4294967295, %s11045_s21   ;;  %s6855_s23 = sadd.s32 4294967294, %s11045_s21   ;;  %s11045_s21 = sphi %s11093_s21, %s12000_s21   ;;  %s11041_s20 = sphi %s11091_s20, %s11999_s20   ;;  %s11037_s19 = sphi %s11089_s19, %s11998_s19   ;;  %s11033_s18 = sphi %s11087_s18, %s11997_s18  }
   0x8   : > { %p43_p0 = scmp.ne.s32.totalorder %s11037_s19, %s11033_s18  ;;  %p44_p1 = scmp.eq.s32.totalorder %s11108_s22, 0 }
   0x9   : > { %p151_p2 = scmp.eq.s32.totalorder %s11108_s22, 1  ;;  %p157_p3 = scmp.eq.s32.totalorder %s6855_s23, 1 }
   0xa   : > { %p11117_p4 = por %p44_p1, %p43_p0  ;;  %p6856_p5 = scmp.ge.s32.totalorder %s11045_s21, 1 }
   0xb   : > { %p11122_p6 = por %p157_p3, %p43_p0  ;;  %p164_p7 = scmp.lt.s32.totalorder %s11045_s21, 3 }
   0xc   : > { %s175_s28 = sshll.u32 %s11973_s1, 4  ;;  %s11047_s30 = smov [#allocation6]   ;;  %s176_s28 = int_to_ptr.hbm [resolvable:$true] %s175_s28 }
   0xd   : > { %p11130_p8 = pnand %p6856_p5, %p164_p7  ;;  %s177_s6 = sshll.u32 %s11047_s30, 4  ;;  %s178_s6 = int_to_ptr.vmem [resolvable:$true] %s177_s6 }
   0xe   : > { %s201_s10 = sshll.u32 %s11975_s3, 4  ;;  %s11048_s11 = smov 256   ;;  %s202_s10 = int_to_ptr.hbm [resolvable:$true] %s201_s10 }
   0xf   : > { %p10739_p9 = pneg %p11130_p8  ;;  %s11049_s12 = smov 16  }
  0x10   : > { %s11050_s13 = smov [#allocation9]   ;;  %s190_s17 = sshll.u32 %s11974_s2, 4  ;;  %s191_s17 = int_to_ptr.hbm [resolvable:$true] %s190_s17 }
  0x11   : > { %p11138_p10 = pnand %p10739_p9, %p44_p1  ;;  %s203_s14 = sshll.u32 %s11050_s13, 4  ;;  %s204_s14 = int_to_ptr.vmem [resolvable:$true] %s203_s14 }
  0x12   : > { %s216_s27 = sshll.u32 %s11976_s4, 4  ;;  %s11161_s9 = sadd.s32 1, %s11045_s21   ;;  %s217_s27 = int_to_ptr.hbm [resolvable:$true] %s216_s27 }
  0x13   : > { %10742 = dma.hbm_to_vmem [thread:$0]  (!%p11138_p10), %s176_s28, 49152, %s178_s6, [#allocation7], %s11048_s11, %s11048_s11, %s11049_s12  }
  0x14   : > { %10748 = dma.hbm_to_vmem [thread:$0]  (!%p11138_p10), %s202_s10, 49152, %s204_s14, [#allocation10], %s11048_s11, %s11048_s11, %s11049_s12  }
  0x15   : > { %s11051_s28 = smov [#allocation8]   ;;  %s11052_s6 = smov [#allocation11]  }
  0x16   : > { %s192_s30 = sshll.u32 %s11051_s28, 4  ;;  %s218_s8 = sshll.u32 %s11052_s6, 4  ;;  %s193_s30 = int_to_ptr.vmem [resolvable:$true] %s192_s30  ;;  %s219_s8 = int_to_ptr.vmem [resolvable:$true] %s218_s8 }
  0x17   : > { %10745 = dma.hbm_to_vmem [thread:$0]  (!%p11138_p10), %s191_s17, 64, %s193_s30, [#allocation7]  }
  0x18   : > { %10751 = dma.hbm_to_vmem [thread:$0]  (!%p11138_p10), %s217_s27, 64, %s219_s8, [#allocation10]  }
  0x19   : > { %s30_s10 = sadd.s32 1, %s11041_s20  ;;  %s27_s11 = ssub.s32 %s11045_s21, %s11161_s9 }
  0x1a   : > { %p37_p12 = scmp.ne.s32.totalorder %s11041_s20, %s11037_s19  ;;  %p28_p13 = scmp.eq.s32.totalorder %s27_s11, 0 }
  0x1b   : > { %p38_p0 = scmp.eq.s32.totalorder %s11045_s21, 0  ;;  %p10764_p5 = scmp.lt.s32.totalorder %s11045_s21, 2 }
  0x1c   : > { %p11171_p3 = por %p151_p2, %p37_p12  ;;  %s229_s14 = sand.u32 1, %s11041_s20  }
  0x1d   : > { %s11177_s13 = scalar_select %p28_p13, %s11041_s20, %s30_s10  }
  0x1e   : > { %p39_p7 = por %p38_p0, %p37_p12  ;;  %s6862_s7 = sshll.u32 %s229_s14, 6 }
  0x1f   : > { %s9949_s15 = sshll.u32 %s11045_s21, 6  ;;  %s233_s26 = scalar_lea.vmem [#allocation3], %s6862_s7 }
  0x20   : > { %s238_s23 = scalar_lea.hbm %s11972_s0, %s9949_s15  ;;  %s241_s27 = sshll.u32 %s233_s26, 4  ;;  %s242_s27 = int_to_ptr.vmem [resolvable:$true] %s241_s27 }
  0x21   : > { %s239_s28 = sshll.u32 %s238_s23, 4  ;;  %p11184_p2 = pnand %p10764_p5, %p39_p7  ;;  %s240_s28 = int_to_ptr.hbm [resolvable:$true] %s239_s28 }
  0x22   : > { %s230_s6 = scalar_lea.sflag [#allocation4], %s229_s14  ;;  %s10941_s8 = sshra.s32 %s240_s28, 4  ;;  %s10942_s8 = int_to_ptr.hbm [resolvable:$true] %s10941_s8 }
  0x23   : > { %s10943_s10 = scalar_lea.hbm %s10942_s8, 64  ;;  %p10945_p10 = pneg %p11184_p2 }
  0x24   : > { %p10944_p9 = scmp.ne.s32.totalorder %s10942_s8, %s10943_s10  ;;  %s10948_s15 = scalar_lea.hbm %s11972_s0, 128 }
  0x25   : > { %p10949_p0 = scmp.lt.s32.totalorder %s10942_s8, %s11972_s0  ;;  %p10950_p5 = scmp.lt.s32.totalorder %s10948_s15, %s10943_s10 }
  0x26   : > { %p10946_p12 = pnand %p10945_p10, %p10944_p9 }
  0x27   : > { %p10951_p7 = por %p10950_p5, %p10949_p0 }
  0x28   : > { %p10947_p13 = pneg %p10946_p12 }
  0x2a   : > { %p10952_p11 = pnand %p10951_p7, %p10947_p13 }
  0x2c   : > { %10955 = shalt.err (!%p10952_p11)
}
  0x2d   : > { %s11053_s14 = smov 512   ;;  %s11054_s23 = smov 32  }
  0x2e   : > { %10755 = dma.hbm_to_vmem [thread:$0]  (!%p11184_p2), %s240_s28, 1024, %s242_s27, %s230_s6, %s11053_s14, %s11053_s14, %s11054_s23  }
  0x2f   : > { %253 = sbr.rel (%p11130_p8) target bundleno = 1102 (0x44e), region = 40  ;;  %s11201_s26 = sand.u32 (!%p11130_p8), 1, %s11037_s19  }
  0x30   : > { %s6866_s8 = sshll.u32 (!%p11130_p8), %s11201_s26, 6  ;;  %s256_s10 = scalar_lea.sflag (!%p11130_p8), [#allocation4], %s11201_s26 }
  0x31   : > { %s11207_s11 = scalar_lea.vmem (!%p11130_p8), [#allocation3], %s6866_s8 }
  0x34   : > { %11016 = dma.done.wait (%p11117_p4), %s256_s10, 1024  }
  0x35   : > { %11018 = vsyncadd (%p11117_p4), %s256_s10, 4294966272 }
  0x36   : > { %11020 = dma.done.wait (%p44_p1), [#allocation7], 49216  }
  0x37   : > { %11022 = vsyncadd (%p44_p1), [#allocation7], 4294918080 }
  0x38   : > { %11024 = dma.done.wait (%p44_p1), [#allocation10], 49216  }
  0x39   : > { %11026 = vsyncadd (%p44_p1), [#allocation10], 4294918080  ;;  %v6986_v0 = vld [vmem:[#allocation6 + $0x4e0] sm:$0xf]  ;;  %v10108_v1 = vld [vmem:[#allocation6 + $0x4ec] sm:$0xf0] }
  0x3a   : > { %v7114_v2 = vld [vmem:[#allocation6 + $0x5e0] sm:$0xf]  ;;  %v6987_v3 = vor.u32 %v10108_v1, %v6986_v0  ;;  %v10140_v4 = vld [vmem:[#allocation6 + $0x5ec] sm:$0xf0]  ;;  %vm308_vm0 = vcmask 1040384   ;;  %vm311_vm1 = vcmask 1044484  }
  0x3b   : > { %v7242_v5 = vld [vmem:[#allocation6 + $0x6e0] sm:$0xf]  ;;  %v10172_v6 = vld [vmem:[#allocation6 + $0x6ec] sm:$0xf0]  ;;  %v7115_v7 = vor.u32 %v10140_v4, %v7114_v2  ;;  %vm309_vm2 = vsmask.f32 256 }
  0x3c   : > { %v7243_v8 = vor.u32 %v10172_v6, %v7242_v5  ;;  %v7370_v9 = vld [vmem:[#allocation6 + $0x7e0] sm:$0xf]  ;;  %v10204_v10 = vld [vmem:[#allocation6 + $0x7ec] sm:$0xf0]  ;;  %1387 = vmatpush.bf16.msra.mxu0 %v6987_v3  ;;  %vm312_vm3 = vsmask.f32 4352  ;;  %vm310_vm4 = vmand %vm308_vm0, %vm309_vm2 }
  0x3d   : > { %v6970_v11 = vld [vmem:[#allocation6 + $0x4c0] sm:$0xf]  ;;  %v7371_v12 = vor.u32 %v10204_v10, %v7370_v9  ;;  %v10104_v13 = vld [vmem:[#allocation6 + $0x4cc] sm:$0xf0]  ;;  %1401 = vmatpush.bf16.msra.mxu1 %v7115_v7  ;;  %vm321_vm5 = vsmask.f32 7938  ;;  %vm313_vm6 = vmand %vm311_vm1, %vm312_vm3 }
  0x3e   : > { %v7098_v14 = vld [vmem:[#allocation6 + $0x5c0] sm:$0xf]  ;;  %v10136_v15 = vld [vmem:[#allocation6 + $0x5cc] sm:$0xf0]  ;;  %1415 = vmatpush.bf16.msra.mxu2 %v7243_v8  ;;  %v6971_v16 = vor.u32 %v10104_v13, %v6970_v11  ;;  %vm323_vm7 = vsmask.f32 7954  ;;  %vm11247_vm8 = vmor %vm313_vm6, %vm310_vm4 }
  0x3f   : > { %v7099_v17 = vor.u32 %v10136_v15, %v7098_v14  ;;  %v7226_v18 = vld [vmem:[#allocation6 + $0x6c0] sm:$0xf]  ;;  %v10168_v19 = vld [vmem:[#allocation6 + $0x6cc] sm:$0xf0]  ;;  %1429 = vmatpush.bf16.msra.mxu3 %v7371_v12  ;;  %vm11269_vm9 = vmand %vm308_vm0, %vm321_vm5  ;;  %vm386_vm11 = vcmask 1043456   ;;  %vm388_vm13 = vcmask 1047556  }
  0x40   : > { %v7354_v20 = vld [vmem:[#allocation6 + $0x7c0] sm:$0xf]  ;;  %v7227_v21 = vor.u32 %v10168_v19, %v7226_v18  ;;  %v10200_v22 = vld [vmem:[#allocation6 + $0x7cc] sm:$0xf0]  ;;  %1388 = vmatpush.bf16.msra.mxu0 %v6971_v16  ;;  %vm11289_vm10 = vmand %vm311_vm1, %vm323_vm7  ;;  %vm344_vm14 = vsmask.f32 4368 }
  0x41   : > { %v6954_v23 = vld [vmem:[#allocation6 + $0x4a0] sm:$0xf]  ;;  %v10100_v24 = vld [vmem:[#allocation6 + $0x4ac] sm:$0xf0]  ;;  %v7355_v25 = vor.u32 %v10200_v22, %v7354_v20  ;;  %1402 = vmatpush.bf16.msra.mxu1 %v7099_v17  ;;  %vm325_vm12 = vmor %vm11289_vm10, %vm11269_vm9  ;;  %vm2620_vm4 = vcmask 1046528   ;;  %s11911_s24 = scalar_lea.vmem [#allocation12], %s6866_s8 }
  0x42   : > { %v7082_v26 = vld [vmem:[#allocation6 + $0x5a0] sm:$0xf]  ;;  %v10132_v27 = vld [vmem:[#allocation6 + $0x5ac] sm:$0xf0]  ;;  %v6955_v29 = vor.u32 %v10100_v24, %v6954_v23  ;;  %1416 = vmatpush.bf16.msra.mxu2 %v7227_v21  ;;  %vm11318_vm15 = vmand %vm386_vm11, %vm321_vm5  ;;  %s10718_s29 = sshll.u32 %s11108_s22, 6  ;;  %s6741_s6 = sshll.u32 %s11911_s24, 4  ;;  %s6742_s6 = int_to_ptr.vmem [resolvable:$true] %s6741_s6 }
  0x43   : > { %v7210_v28 = vld [vmem:[#allocation6 + $0x6a0] sm:$0xf]  ;;  %v10164_v30 = vld [vmem:[#allocation6 + $0x6ac] sm:$0xf0]  ;;  %v7083_v33 = vor.u32 %v10132_v27, %v7082_v26  ;;  %1430 = vmatpush.bf16.msra.mxu3 %v7355_v25  ;;  %vm389_vm0 = vmand %vm388_vm13, %vm323_vm7  ;;  %s6740_s30 = scalar_lea.hbm %s11977_s5, %s10718_s29  ;;  %s6729_s22 = scalar_lea.sflag [#allocation5], %s11201_s26 }
  0x44   : > { %v7338_v31 = vld [vmem:[#allocation6 + $0x7a0] sm:$0xf]  ;;  %v10196_v32 = vld [vmem:[#allocation6 + $0x7ac] sm:$0xf0]  ;;  %v7211_v34 = vor.u32 %v10164_v30, %v7210_v28  ;;  %1389 = vmatpush.bf16.msra.mxu0 %v6955_v29  ;;  %v10106_v28 = vld [vmem:[#allocation6 + $0x4e4] sm:$0xf] }
  0x45   : > { %v6938_v35 = vld [vmem:[#allocation6 + $0x480] sm:$0xf]  ;;  %v10096_v36 = vld [vmem:[#allocation6 + $0x48c] sm:$0xf0]  ;;  %v7339_v38 = vor.u32 %v10196_v32, %v7338_v31  ;;  %1403 = vmatpush.bf16.msra.mxu1 %v7083_v33  ;;  %v6988_v29 = vld [vmem:[#allocation6 + $0x4f0] sm:$0xf0] }
  0x46   : > { %v7066_v37 = vld [vmem:[#allocation6 + $0x580] sm:$0xf]  ;;  %v10128_v39 = vld [vmem:[#allocation6 + $0x58c] sm:$0xf0]  ;;  %v6939_v44 = vor.u32 %v10096_v36, %v6938_v35  ;;  %1417 = vmatpush.bf16.msra.mxu2 %v7211_v34  ;;  %v10138_v30 = vld [vmem:[#allocation6 + $0x5e4] sm:$0xf] }
  0x47   : > { %v7194_v40 = vld [vmem:[#allocation6 + $0x680] sm:$0xf]  ;;  %v10160_v41 = vld [vmem:[#allocation6 + $0x68c] sm:$0xf0]  ;;  %v7067_v45 = vor.u32 %v10128_v39, %v7066_v37  ;;  %1431 = vmatpush.bf16.msra.mxu3 %v7339_v38  ;;  %v7116_v32 = vld [vmem:[#allocation6 + $0x5f0] sm:$0xf0] }
  0x48   : > { %v7322_v42 = vld [vmem:[#allocation6 + $0x780] sm:$0xf]  ;;  %v10192_v43 = vld [vmem:[#allocation6 + $0x78c] sm:$0xf0]  ;;  %v7195_v46 = vor.u32 %v10160_v41, %v7194_v40  ;;  %1390 = vmatpush.bf16.msra.mxu0 %v6939_v44  ;;  %v10170_v33 = vld [vmem:[#allocation6 + $0x6e4] sm:$0xf]  ;;  %v6991_v40 = vor.u32 %v10106_v28, %v6988_v29  ;;  %v7119_v41 = vor.u32 %v10138_v30, %v7116_v32 }
  0x49   : > { %v6922_v47 = vld [vmem:[#allocation6 + $0x460] sm:$0xf]  ;;  %v10092_v48 = vld [vmem:[#allocation6 + $0x46c] sm:$0xf0]  ;;  %v7323_v50 = vor.u32 %v10192_v43, %v7322_v42  ;;  %1404 = vmatpush.bf16.msra.mxu1 %v7067_v45  ;;  %v7244_v34 = vld [vmem:[#allocation6 + $0x6f0] sm:$0xf0] }
  0x4a   : > { %v7050_v49 = vld [vmem:[#allocation6 + $0x560] sm:$0xf]  ;;  %v10124_v51 = vld [vmem:[#allocation6 + $0x56c] sm:$0xf0]  ;;  %v6923_v56 = vor.u32 %v10092_v48, %v6922_v47  ;;  %1418 = vmatpush.bf16.msra.mxu2 %v7195_v46  ;;  %v10202_v37 = vld [vmem:[#allocation6 + $0x7e4] sm:$0xf]  ;;  %v7247_v42 = vor.u32 %v10170_v33, %v7244_v34 }
  0x4b   : > { %v7178_v52 = vld [vmem:[#allocation6 + $0x660] sm:$0xf]  ;;  %v10156_v53 = vld [vmem:[#allocation6 + $0x66c] sm:$0xf0]  ;;  %v7051_v57 = vor.u32 %v10124_v51, %v7050_v49  ;;  %1432 = vmatpush.bf16.msra.mxu3 %v7323_v50  ;;  %v7372_v38 = vld [vmem:[#allocation6 + $0x7f0] sm:$0xf0] }
  0x4c   : > { %v7306_v54 = vld [vmem:[#allocation6 + $0x760] sm:$0xf]  ;;  %v10188_v55 = vld [vmem:[#allocation6 + $0x76c] sm:$0xf0]  ;;  %v7179_v58 = vor.u32 %v10156_v53, %v7178_v52  ;;  %1391 = vmatpush.bf16.msra.mxu0 %v6923_v56  ;;  %v10102_v43 = vld [vmem:[#allocation6 + $0x4c4] sm:$0xf]  ;;  %v7375_v46 = vor.u32 %v10202_v37, %v7372_v38 }
  0x4d   : > { %v6906_v59 = vld [vmem:[#allocation6 + $0x440] sm:$0xf]  ;;  %v10088_v60 = vld [vmem:[#allocation6 + $0x44c] sm:$0xf0]  ;;  %v7307_v62 = vor.u32 %v10188_v55, %v7306_v54  ;;  %1405 = vmatpush.bf16.msra.mxu1 %v7051_v57  ;;  %v6972_v44 = vld [vmem:[#allocation6 + $0x4d0] sm:$0xf0] }
  0x4e   : > { %v7034_v61 = vld [vmem:[#allocation6 + $0x540] sm:$0xf]  ;;  %v10120_v63 = vld [vmem:[#allocation6 + $0x54c] sm:$0xf0]  ;;  %v6907_v4 = vor.u32 %v10088_v60, %v6906_v59  ;;  %1419 = vmatpush.bf16.msra.mxu2 %v7179_v58  ;;  %v10134_v45 = vld [vmem:[#allocation6 + $0x5c4] sm:$0xf]  ;;  %v6975_v52 = vor.u32 %v10102_v43, %v6972_v44 }
  0x4f   : > { %v7162_v0 = vld [vmem:[#allocation6 + $0x640] sm:$0xf]  ;;  %v10152_v1 = vld [vmem:[#allocation6 + $0x64c] sm:$0xf0]  ;;  %v7035_v5 = vor.u32 %v10120_v63, %v7034_v61  ;;  %1433 = vmatpush.bf16.msra.mxu3 %v7307_v62  ;;  %v7100_v47 = vld [vmem:[#allocation6 + $0x5d0] sm:$0xf0] }
  0x50   : > { %v7290_v2 = vld [vmem:[#allocation6 + $0x740] sm:$0xf]  ;;  %v10184_v3 = vld [vmem:[#allocation6 + $0x74c] sm:$0xf0]  ;;  %v7163_v6 = vor.u32 %v10152_v1, %v7162_v0  ;;  %1392 = vmatpush.bf16.msra.mxu0 %v6907_v4  ;;  %v10166_v48 = vld [vmem:[#allocation6 + $0x6c4] sm:$0xf]  ;;  %v7103_v56 = vor.u32 %v10134_v45, %v7100_v47 }
  0x51   : > { %v6890_v7 = vld [vmem:[#allocation6 + $0x420] sm:$0xf]  ;;  %v10084_v8 = vld [vmem:[#allocation6 + $0x42c] sm:$0xf0]  ;;  %v7291_v10 = vor.u32 %v10184_v3, %v7290_v2  ;;  %1406 = vmatpush.bf16.msra.mxu1 %v7035_v5  ;;  %v7228_v49 = vld [vmem:[#allocation6 + $0x6d0] sm:$0xf0] }
  0x52   : > { %v7018_v9 = vld [vmem:[#allocation6 + $0x520] sm:$0xf]  ;;  %v10116_v11 = vld [vmem:[#allocation6 + $0x52c] sm:$0xf0]  ;;  %v6891_v16 = vor.u32 %v10084_v8, %v6890_v7  ;;  %1420 = vmatpush.bf16.msra.mxu2 %v7163_v6  ;;  %v10198_v50 = vld [vmem:[#allocation6 + $0x7c4] sm:$0xf]  ;;  %v7231_v57 = vor.u32 %v10166_v48, %v7228_v49 }
  0x53   : > { %v7146_v12 = vld [vmem:[#allocation6 + $0x620] sm:$0xf]  ;;  %v10148_v13 = vld [vmem:[#allocation6 + $0x62c] sm:$0xf0]  ;;  %v7019_v19 = vor.u32 %v10116_v11, %v7018_v9  ;;  %1434 = vmatpush.bf16.msra.mxu3 %v7291_v10  ;;  %v7356_v51 = vld [vmem:[#allocation6 + $0x7d0] sm:$0xf0] }
  0x54   : > { %v7274_v14 = vld [vmem:[#allocation6 + $0x720] sm:$0xf]  ;;  %v10180_v15 = vld [vmem:[#allocation6 + $0x72c] sm:$0xf0]  ;;  %v7147_v20 = vor.u32 %v10148_v13, %v7146_v12  ;;  %1393 = vmatpush.bf16.msra.mxu0 %v6891_v16  ;;  %v10098_v53 = vld [vmem:[#allocation6 + $0x4a4] sm:$0xf]  ;;  %v7359_v61 = vor.u32 %v10198_v50, %v7356_v51 }
  0x55   : > { %v6874_v17 = vld [vmem:[#allocation6 + $0x400] sm:$0xf]  ;;  %v10080_v18 = vld [vmem:[#allocation6 + $0x40c] sm:$0xf0]  ;;  %v7275_v24 = vor.u32 %v10180_v15, %v7274_v14  ;;  %1407 = vmatpush.bf16.msra.mxu1 %v7019_v19  ;;  %v6956_v54 = vld [vmem:[#allocation6 + $0x4b0] sm:$0xf0] }
  0x56   : > { %v7002_v21 = vld [vmem:[#allocation6 + $0x500] sm:$0xf]  ;;  %v10112_v22 = vld [vmem:[#allocation6 + $0x50c] sm:$0xf0]  ;;  %v6875_v31 = vor.u32 %v10080_v18, %v6874_v17  ;;  %1421 = vmatpush.bf16.msra.mxu2 %v7147_v20  ;;  %v10130_v55 = vld [vmem:[#allocation6 + $0x5a4] sm:$0xf]  ;;  %v6959_v4 = vor.u32 %v10098_v53, %v6956_v54 }
  0x57   : > { %v7130_v23 = vld [vmem:[#allocation6 + $0x600] sm:$0xf]  ;;  %v10144_v25 = vld [vmem:[#allocation6 + $0x60c] sm:$0xf0]  ;;  %v7003_v35 = vor.u32 %v10112_v22, %v7002_v21  ;;  %1435 = vmatpush.bf16.msra.mxu3 %v7275_v24  ;;  %v7084_v58 = vld [vmem:[#allocation6 + $0x5b0] sm:$0xf0] }
  0x58   : > { %v7258_v26 = vld [vmem:[#allocation6 + $0x700] sm:$0xf]  ;;  %v10176_v27 = vld [vmem:[#allocation6 + $0x70c] sm:$0xf0]  ;;  %v7131_v36 = vor.u32 %v10144_v25, %v7130_v23  ;;  %1394 = vmatpush.bf16.msra.mxu0 %v6875_v31  ;;  %v10162_v59 = vld [vmem:[#allocation6 + $0x6a4] sm:$0xf]  ;;  %v7087_v9 = vor.u32 %v10130_v55, %v7084_v58 }
  0x59   : > { %v7259_v39 = vor.u32 %v10176_v27, %v7258_v26  ;;  %1408 = vmatpush.bf16.msra.mxu1 %v7003_v35  ;;  %v7212_v60 = vld [vmem:[#allocation6 + $0x6b0] sm:$0xf0]  ;;  %v10194_v62 = vld [vmem:[#allocation6 + $0x7a4] sm:$0xf]  ;;  %v315_v11 = vld [vmem:[#allocation2 + $0x18] sm:$0x11] }
  0x5a   : > { %1422 = vmatpush.bf16.msra.mxu2 %v7131_v36  ;;  %v7340_v63 = vld [vmem:[#allocation6 + $0x7b0] sm:$0xf0]  ;;  %v11221_v0 = vld [vmem:[#allocation6 + $0x484] sm:$0xf]  ;;  %v7215_v10 = vor.u32 %v10162_v59, %v7212_v60  ;;  %v333_v20 = vld [vmem:[%s11207_s11 + $0x8] sm:$0xff]  ;;  %v316_v27 = vsel %vm11247_vm8, 0, %v315_v11 }
  0x5b   : > { %1436 = vmatpush.bf16.msra.mxu3 %v7259_v39  ;;  %v11223_v1 = vld [vmem:[#allocation6 + $0x490] sm:$0xf0]  ;;  %v11225_v2 = vld [vmem:[#allocation6 + $0x584] sm:$0xf]  ;;  %v7343_v13 = vor.u32 %v10194_v62, %v7340_v63  ;;  %v335_v30 = vld [vmem:[%s11207_s11 + $0x18] sm:$0xff]  ;;  %s6743_s7 = sshll.u32 %s6740_s30, 4  ;;  %s6744_s7 = int_to_ptr.hbm [resolvable:$true] %s6743_s7 }
  0x5c   : > { %1443 = vmatpush.bf16.msrb.mxu0 %v6991_v40  ;;  %v11227_v3 = vld [vmem:[#allocation6 + $0x590] sm:$0xf0]  ;;  %v11229_v5 = vld [vmem:[#allocation6 + $0x684] sm:$0xf]  ;;  %v6943_v16 = vor.u32 %v11221_v0, %v11223_v1  ;;  %317 = vst [vmem:[#allocation2 + $0x18] sm:$0x11] %v316_v27  ;;  %vm11339_vm1 = vmor %vm309_vm2, %vm344_vm14 }
  0x5d   : > { %1457 = vmatpush.bf16.msrb.mxu1 %v7119_v41  ;;  %v11231_v6 = vld [vmem:[#allocation6 + $0x690] sm:$0xf0]  ;;  %v11233_v7 = vld [vmem:[#allocation6 + $0x784] sm:$0xf]  ;;  %v7071_v22 = vor.u32 %v11225_v2, %v11227_v3  ;;  %v339_v40 = vld [vmem:[%s11207_s11 + $0x38] sm:$0xff]  ;;  %s10985_s15 = sshra.s32 %s6744_s7, 4  ;;  %s10986_s15 = int_to_ptr.hbm [resolvable:$true] %s10985_s15 }
  0x5e   : > { %1471 = vmatpush.bf16.msrb.mxu2 %v7247_v42  ;;  %v11235_v8 = vld [vmem:[#allocation6 + $0x790] sm:$0xf0]  ;;  %v332_v15 = vld [vmem:[%s11207_s11] sm:$0xff]  ;;  %v7199_v33 = vor.u32 %v11229_v5, %v11231_v6  ;;  %v337_v58 = vld [vmem:[%s11207_s11 + $0x28] sm:$0xff]  ;;  %vm694_vm2 = vsmask.f32 7424  ;;  %p10992_p11 = scmp.lt.s32.totalorder %s10986_s15, %s11977_s5 }
  0x5f   : > { %1485 = vmatpush.bf16.msrb.mxu3 %v7375_v46  ;;  %v318_v12 = vld [vmem:[#allocation2 + $0x20] sm:$0x11]  ;;  %v11243_v17 = vld [vmem:[#allocation6 + $0x464] sm:$0xf]  ;;  %v340_v32 = vpack.c.bf16 %v333_v20, %v332_v15  ;;  %v7327_v34 = vor.u32 %v11233_v7, %v11235_v8  ;;  %vm11352_vm3 = vmor %vm389_vm0, %vm11318_vm15  ;;  %s10987_s16 = scalar_lea.hbm %s10986_s15, 64  ;;  %s10991_s23 = scalar_lea.hbm %s11977_s5, 128 }
  0x60   : > { %1444 = vmatpush.bf16.msrb.mxu0 %v6975_v52  ;;  %v329_v14 = vld [vmem:[#allocation2] sm:$0x11]  ;;  %v11255_v23 = vld [vmem:[#allocation6 + $0x564] sm:$0xf]  ;;  %v319_v28 = vsel %vm11247_vm8, 0, %v318_v12  ;;  %p10988_p1 = scmp.ne.s32.totalorder %s10986_s15, %s10987_s16  ;;  %p10993_p2 = scmp.lt.s32.totalorder %s10991_s23, %s10987_s16 }
  0x61   : > { %1458 = vmatpush.bf16.msrb.mxu1 %v7103_v56  ;;  %v11245_v18 = vld [vmem:[#allocation6 + $0x470] sm:$0xf0]  ;;  %v11259_v25 = vld [vmem:[#allocation6 + $0x664] sm:$0xf]  ;;  %320 = vst [vmem:[#allocation2 + $0x20] sm:$0x11] %v319_v28 }
  0x62   : > { %1472 = vmatpush.bf16.msrb.mxu2 %v7231_v57  ;;  %v334_v21 = vld [vmem:[%s11207_s11 + $0x10] sm:$0xff]  ;;  %v11279_v35 = vld [vmem:[#allocation6 + $0x764] sm:$0xf]  ;;  %v347_v45 = vshrl.u32 %v340_v32, 16  ;;  %v350_v46 = vshll.u32 %v340_v32, 16  ;;  %v330_v49 = vsel %vm325_vm12, 0, %v329_v14  ;;  %v6927_v53 = vor.u32 %v11243_v17, %v11245_v18  ;;  %p10989_p4 = pnand %p10988_p1, %p11171_p3  ;;  %p10994_p9 = por %p10993_p2, %p10992_p11 }
  0x63   : > { %1486 = vmatpush.bf16.msrb.mxu3 %v7359_v61  ;;  %v11257_v24 = vld [vmem:[#allocation6 + $0x570] sm:$0xf0]  ;;  %v11283_v37 = vld [vmem:[#allocation6 + $0x444] sm:$0xf]  ;;  %v341_v41 = vpack.c.bf16 %v335_v30, %v334_v21  ;;  %331 = vst [vmem:[#allocation2] sm:$0x11] %v330_v49 }
  0x64   : > { %1445 = vmatpush.bf16.msrb.mxu0 %v6959_v4  ;;  %v11261_v26 = vld [vmem:[#allocation6 + $0x670] sm:$0xf0]  ;;  %v11294_v42 = vld [vmem:[#allocation6 + $0x544] sm:$0xf]  ;;  %v11314_v54 = vrot.slane %v347_v45, 7  ;;  %v7055_v59 = vor.u32 %v11255_v23, %v11257_v24  ;;  %v391_v21 = vld [vmem:[#allocation2 + $0x18] sm:$0xff]  ;;  %p10990_p8 = pneg %p10989_p4 }
  0x65   : > { %v338_v31 = vld [vmem:[%s11207_s11 + $0x30] sm:$0xff]  ;;  %1459 = vmatpush.bf16.msrb.mxu1 %v7087_v9  ;;  %v11302_v47 = vld [vmem:[#allocation6 + $0x644] sm:$0xf]  ;;  %v354_v50 = vshrl.u32 %v341_v41, 16  ;;  %v357_v51 = vshll.u32 %v341_v41, 16  ;;  %v7183_v60 = vor.u32 %v11259_v25, %v11261_v26 }
  0x66   : > { %1473 = vmatpush.bf16.msrb.mxu2 %v7215_v10  ;;  %v11281_v36 = vld [vmem:[#allocation6 + $0x770] sm:$0xf0]  ;;  %v343_v44 = vpack.c.bf16 %v339_v40, %v338_v31  ;;  %v336_v52 = vld [vmem:[%s11207_s11 + $0x20] sm:$0xff]  ;;  %v352_v4 = vor.u32 %v350_v46, %v11314_v54  ;;  %v326_v15 = vld [vmem:[#allocation2 + $0x8] sm:$0x11]  ;;  %p10995_p10 = pnand %p10994_p9, %p10990_p8 }
  0x67   : > { %v11285_v38 = vld [vmem:[#allocation6 + $0x450] sm:$0xf0]  ;;  %1487 = vmatpush.bf16.msrb.mxu3 %v7343_v13  ;;  %v11327_v61 = vld [vmem:[#allocation6 + $0x744] sm:$0xf]  ;;  %v356_v63 = vrot.slane %v354_v50, 7  ;;  %v342_v0 = vpack.c.bf16 %v337_v58, %v336_v52  ;;  %v7311_v1 = vor.u32 %v11279_v35, %v11281_v36  ;;  %v327_v23 = vsel %vm325_vm12, 0, %v326_v15 }
  0x68   : > { %v11296_v43 = vld [vmem:[#allocation6 + $0x550] sm:$0xf0]  ;;  %1446 = vmatpush.bf16.msrb.mxu0 %v6943_v16  ;;  %v371_v55 = vshrl.u32 %v343_v44, 16  ;;  %v374_v56 = vshll.u32 %v343_v44, 16  ;;  %v6911_v2 = vor.u32 %v11283_v37, %v11285_v38  ;;  %v11344_v6 = vld [vmem:[#allocation6 + $0x424] sm:$0xf]  ;;  %v392_v25 = vsel %vm11352_vm3, %v352_v4, %v391_v21 }
  0x69   : > { %v11304_v48 = vld [vmem:[#allocation6 + $0x650] sm:$0xf0]  ;;  %1460 = vmatpush.bf16.msrb.mxu1 %v7071_v22  ;;  %v7039_v8 = vor.u32 %v11294_v42, %v11296_v43  ;;  %v359_v9 = vor.u32 %v357_v51, %v356_v63  ;;  %v369_v10 = vrot.slane %v356_v63, 4  ;;  %v11356_v12 = vld [vmem:[#allocation6 + $0x524] sm:$0xf]  ;;  %v362_v16 = vshrl.u32 %v342_v0, 16 }
  0x6a   : > { %1474 = vmatpush.bf16.msrb.mxu2 %v7199_v33  ;;  %v11329_v62 = vld [vmem:[#allocation6 + $0x750] sm:$0xf0]  ;;  %v373_v5 = vrot.slane %v371_v55, 7  ;;  %v11360_v14 = vld [vmem:[#allocation6 + $0x624] sm:$0xf]  ;;  %v7167_v17 = vor.u32 %v11302_v47, %v11304_v48  ;;  %v365_v28 = vshll.u32 %v342_v0, 16  ;;  %v674_v52 = vunpack.c.l.b16 %v392_v25 }
  0x6b   : > { %1488 = vmatpush.bf16.msrb.mxu3 %v7327_v34  ;;  %v11346_v7 = vld [vmem:[#allocation6 + $0x430] sm:$0xf0]  ;;  %v7295_v24 = vor.u32 %v11327_v61, %v11329_v62  ;;  %328 = vst [vmem:[#allocation2 + $0x8] sm:$0x11] %v327_v23  ;;  %v364_v27 = vrot.slane %v362_v16, 7  ;;  %v360_v33 = vrot.slane %v11314_v54, 4 }
  0x6c   : > { %v11358_v13 = vld [vmem:[#allocation6 + $0x530] sm:$0xf0]  ;;  %1447 = vmatpush.bf16.msrb.mxu0 %v6927_v53  ;;  %v376_v18 = vor.u32 %v374_v56, %v373_v5  ;;  %v379_v20 = vrot.slane %v373_v5, 4  ;;  %393 = vst [vmem:[#allocation2 + $0x18] sm:$0xff] %v392_v25  ;;  %v6895_v31 = vor.u32 %v11344_v6, %v11346_v7  ;;  %v10178_v32 = vld [vmem:[#allocation6 + $0x724] sm:$0xf]  ;;  %v675_v53 = vunpack.c.h.b16 %v392_v25 }
  0x6d   : > { %v7148_v22 = vld [vmem:[#allocation6 + $0x630] sm:$0xf0]  ;;  %1461 = vmatpush.bf16.msrb.mxu1 %v7055_v59  ;;  %v7023_v41 = vor.u32 %v11356_v12, %v11358_v13  ;;  %v367_v43 = vor.u32 %v365_v28, %v364_v27  ;;  %v10078_v44 = vld [vmem:[#allocation6 + $0x404] sm:$0xf]  ;;  %v378_v48 = vrot.slane %v364_v27, 4 }
  0x6e   : > { %1475 = vmatpush.bf16.msrb.mxu2 %v7183_v60  ;;  %v394_v26 = vld [vmem:[#allocation2 + $0x20] sm:$0xff]  ;;  %v11375_v30 = vsel %vm11339_vm1, %v369_v10, %v376_v18  ;;  %v7151_v42 = vor.u32 %v11360_v14, %v7148_v22  ;;  %v10110_v49 = vld [vmem:[#allocation6 + $0x504] sm:$0xf]  ;;  %v7250_v21 = vld [vmem:[#allocation6 + $0x6e8] sm:$0xf] }
  0x6f   : > { %1489 = vmatpush.bf16.msrb.mxu3 %v7311_v1  ;;  %v395_v29 = vsel %vm11352_vm3, %v359_v9, %v394_v26  ;;  %v402_v34 = vld [vmem:[#allocation2] sm:$0x11]  ;;  %v680_v36 = vunpack.c.l.b16 %v11375_v30  ;;  %v681_v38 = vunpack.c.h.b16 %v11375_v30  ;;  %v11399_v51 = vsel %vm11339_vm1, %v360_v33, %v367_v43  ;;  %v10142_v55 = vld [vmem:[#allocation6 + $0x604] sm:$0xf]  ;;  %v7378_v25 = vld [vmem:[#allocation6 + $0x7e8] sm:$0xf] }
  0x70   : > { %396 = vst [vmem:[#allocation2 + $0x20] sm:$0xff] %v395_v29  ;;  %v676_v35 = vunpack.c.l.b16 %v395_v29  ;;  %v677_v37 = vunpack.c.h.b16 %v395_v29  ;;  %v7276_v39 = vld [vmem:[#allocation6 + $0x730] sm:$0xf0]  ;;  %1448 = vmatpush.bf16.msrb.mxu0 %v6911_v2  ;;  %v403_v40 = vsel %vm11247_vm8, %v379_v20, %v402_v34  ;;  %v10174_v58 = vld [vmem:[#allocation6 + $0x704] sm:$0xf]  ;;  %v678_v63 = vunpack.c.l.b16 %v11399_v51 }
  0x71   : > { %v6876_v45 = vld [vmem:[#allocation6 + $0x410] sm:$0xf0]  ;;  %1462 = vmatpush.bf16.msrb.mxu1 %v7039_v8  ;;  %404 = vst [vmem:[#allocation2] sm:$0x11] %v403_v40  ;;  %v7279_v50 = vor.u32 %v10178_v32, %v7276_v39  ;;  %v679_v0 = vunpack.c.h.b16 %v11399_v51  ;;  %v10205_v26 = vld [vmem:[#allocation6 + $0x7f4] sm:$0xf0] }
  0x72   : > { %1476 = vmatpush.bf16.msrb.mxu2 %v7167_v17  ;;  %v11391_v46 = vpack.c.b16 %v680_v36, %v676_v35  ;;  %v11395_v47 = vpack.c.b16 %v681_v38, %v677_v37  ;;  %v7004_v54 = vld [vmem:[#allocation6 + $0x510] sm:$0xf0]  ;;  %v6879_v57 = vor.u32 %v10078_v44, %v6876_v45  ;;  %v399_v62 = vld [vmem:[#allocation2 + $0x8] sm:$0x11]  ;;  %v11409_v5 = vpack.c.b16 %v678_v63, %v674_v52  ;;  %v6994_v45 = vld [vmem:[#allocation6 + $0x4e8] sm:$0xf] }
  0x73   : > { %1490 = vmatpush.bf16.msrb.mxu3 %v7295_v24  ;;  %v7132_v56 = vld [vmem:[#allocation6 + $0x610] sm:$0xf0]  ;;  %v400_v1 = vsel %vm11247_vm8, %v378_v48, %v399_v62  ;;  %v7007_v2 = vor.u32 %v10110_v49, %v7004_v54  ;;  %v11413_v6 = vpack.c.b16 %v679_v0, %v675_v53  ;;  %v10173_v24 = vld [vmem:[#allocation6 + $0x6f4] sm:$0xf0]  ;;  %v7122_v49 = vld [vmem:[#allocation6 + $0x5e8] sm:$0xf] }
  0x74   : > { %v7260_v59 = vld [vmem:[#allocation6 + $0x710] sm:$0xf0]  ;;  %v722_v60 = vshll.u32 %v11391_v46, 16  ;;  %v734_v61 = vshll.u32 %v11395_v47, 16  ;;  %1449 = vmatpush.bf16.msrb.mxu0 %v6895_v31  ;;  %v7135_v4 = vor.u32 %v10142_v55, %v7132_v56  ;;  %401 = vst [vmem:[#allocation2 + $0x8] sm:$0x11] %v400_v1 }
  0x75   : > { %1463 = vmatpush.bf16.msrb.mxu1 %v7023_v41  ;;  %v7263_v7 = vor.u32 %v10174_v58, %v7260_v59  ;;  %v720_v9 = vshrl.u32 %v11391_v46, 16  ;;  %v732_v12 = vshrl.u32 %v11395_v47, 16  ;;  %v698_v16 = vshll.u32 %v11409_v5, 16  ;;  %v10109_v48 = vld [vmem:[#allocation6 + $0x4f4] sm:$0xf0] }
  0x76   : > { %1477 = vmatpush.bf16.msrb.mxu2 %v7151_v42  ;;  %v724_v10 = vrot.slane %v722_v60, 1  ;;  %v736_v13 = vrot.slane %v734_v61, 1  ;;  %v710_v17 = vshll.u32 %v11413_v6, 16  ;;  %v696_v31 = vshrl.u32 %v11409_v5, 16  ;;  %v10141_v53 = vld [vmem:[#allocation6 + $0x5f4] sm:$0xf0] }
  0x77   : > { %1491 = vmatpush.bf16.msrb.mxu3 %v7279_v50  ;;  %v708_v32 = vshrl.u32 %v11413_v6, 16  ;;  %v700_v34 = vrot.slane %v698_v16, 1  ;;  %v7251_v41 = vor.u32 %v10173_v24, %v7250_v21  ;;  %v7379_v42 = vor.u32 %v10205_v26, %v7378_v25  ;;  %v7234_v54 = vld [vmem:[#allocation6 + $0x6c8] sm:$0xf]  ;;  %v10169_v55 = vld [vmem:[#allocation6 + $0x6d4] sm:$0xf0] }
  0x78   : > { %v538_v8 = vld [vmem:[#allocation2] sm:$0x11]  ;;  %1450 = vmatpush.bf16.msrb.mxu0 %v6879_v57  ;;  %v725_v22 = vor.u32 %v724_v10, %v720_v9  ;;  %v737_v23 = vor.u32 %v736_v13, %v732_v12  ;;  %v712_v37 = vrot.slane %v710_v17, 1  ;;  %v7362_v60 = vld [vmem:[#allocation6 + $0x7c8] sm:$0xf]  ;;  %v7235_v12 = vor.u32 %v10169_v55, %v7234_v54 }
  0x79   : > { %v684_v14 = vunpack.c.l.b16 %v538_v8  ;;  %v685_v15 = vunpack.c.h.b16 %v538_v8  ;;  %1464 = vmatpush.bf16.msrb.mxu1 %v7007_v2  ;;  %v701_v56 = vor.u32 %v700_v34, %v696_v31  ;;  %v10201_v61 = vld [vmem:[#allocation6 + $0x7d4] sm:$0xf0]  ;;  %v6995_v2 = vor.u32 %v10109_v48, %v6994_v45  ;;  %v7106_v9 = vld [vmem:[#allocation6 + $0x5c8] sm:$0xf]  ;;  %v10475_v11 = vld [vmem:[#allocation9 + $0x46c] sm:$0xf] }
  0x7a   : > { %1478 = vmatpush.bf16.msrb.mxu2 %v7135_v4  ;;  %v713_v58 = vor.u32 %v712_v37, %v708_v32  ;;  %v7123_v4 = vor.u32 %v10141_v53, %v7122_v49  ;;  %v10105_v8 = vld [vmem:[#allocation6 + $0x4d4] sm:$0xf0]  ;;  %v7363_v13 = vor.u32 %v10201_v61, %v7362_v60  ;;  %v7346_v21 = vld [vmem:[#allocation6 + $0x7a8] sm:$0xf] }
  0x7b   : > { %1492 = vmatpush.bf16.msrb.mxu3 %v7263_v7  ;;  %v11419_v18 = vpack.c.b16 %v684_v14, %v684_v14  ;;  %v11421_v20 = vpack.c.b16 %v685_v15, %v685_v15  ;;  %v537_v29 = vld [vmem:[#allocation2 + $0x8] sm:$0x11]  ;;  %v6978_v7 = vld [vmem:[#allocation6 + $0x4c8] sm:$0xf] }
  0x7c   : > { %v682_v33 = vunpack.c.l.b16 %v537_v29  ;;  %v683_v35 = vunpack.c.h.b16 %v537_v29  ;;  %v10137_v10 = vld [vmem:[#allocation6 + $0x5d4] sm:$0xf0]  ;;  %v7218_v14 = vld [vmem:[#allocation6 + $0x6a8] sm:$0xf] }
  0x7d   : > { %v727_v27 = vshll.u32 %v11419_v18, 16  ;;  %v739_v28 = vshll.u32 %v11421_v20, 16  ;;  %v10165_v17 = vld [vmem:[#allocation6 + $0x6b4] sm:$0xf0]  ;;  %v7107_v24 = vor.u32 %v10137_v10, %v7106_v9  ;;  %v6962_v25 = vld [vmem:[#allocation6 + $0x4a8] sm:$0xf] }
  0x7e   : > { %v11427_v43 = vpack.c.b16 %v682_v33, %v682_v33  ;;  %v11429_v44 = vpack.c.b16 %v683_v35, %v683_v35  ;;  %v10101_v26 = vld [vmem:[#allocation6 + $0x4b4] sm:$0xf0]  ;;  %v7219_v29 = vor.u32 %v10165_v17, %v7218_v14  ;;  %v7202_v32 = vld [vmem:[#allocation6 + $0x688] sm:$0xf] }
  0x7f   : > { %v729_v39 = vrot.slane %v727_v27, 1  ;;  %v741_v40 = vrot.slane %v739_v28, 1  ;;  %v7090_v27 = vld [vmem:[#allocation6 + $0x5a8] sm:$0xf]  ;;  %v10133_v28 = vld [vmem:[#allocation6 + $0x5b4] sm:$0xf0]  ;;  %v6963_v37 = vor.u32 %v10101_v26, %v6962_v25 }
  0x80   : > { %v703_v57 = vshll.u32 %v11427_v43, 16  ;;  %v715_v59 = vshll.u32 %v11429_v44, 16  ;;  %v10161_v33 = vld [vmem:[#allocation6 + $0x694] sm:$0xf0]  ;;  %v7330_v34 = vld [vmem:[#allocation6 + $0x788] sm:$0xf] }
  0x81   : > { %v11432_v50 = vsel %vm694_vm2, %v725_v22, %v729_v39  ;;  %v11435_v52 = vsel %vm694_vm2, %v737_v23, %v741_v40  ;;  %v10197_v22 = vld [vmem:[#allocation6 + $0x7b4] sm:$0xf0]  ;;  %v6979_v23 = vor.u32 %v10105_v8, %v6978_v7  ;;  %v7091_v39 = vor.u32 %v10133_v28, %v7090_v27  ;;  %v6946_v40 = vld [vmem:[#allocation6 + $0x488] sm:$0xf] }
  0x82   : > { %1423 = vmatmul.bf16.vlgmr.msra.gmra.mxu2 %v11432_v50  ;;  %1437 = vmatmul.bf16.vlgmr.msra.gmra.mxu3 %v11435_v52  ;;  %v705_v62 = vrot.slane %v703_v57, 1  ;;  %v717_v1 = vrot.slane %v715_v59, 1  ;;  %v7347_v31 = vor.u32 %v10197_v22, %v7346_v21  ;;  %v10193_v35 = vld [vmem:[#allocation6 + $0x794] sm:$0xf0]  ;;  %v7203_v48 = vor.u32 %v10161_v33, %v7202_v32  ;;  %v7186_v53 = vld [vmem:[#allocation6 + $0x668] sm:$0xf] }
  0x83   : > { %1527 = vmatpush.bf16.msra.mxu2 %v7251_v41  ;;  %1541 = vmatpush.bf16.msra.mxu3 %v7379_v42  ;;  %v10097_v41 = vld [vmem:[#allocation6 + $0x494] sm:$0xf0]  ;;  %v7074_v42 = vld [vmem:[#allocation6 + $0x588] sm:$0xf]  ;;  %v7331_v49 = vor.u32 %v10193_v35, %v7330_v34 }
  0x84   : > { %v11442_v15 = vsel %vm694_vm2, %v701_v56, %v705_v62  ;;  %v11445_v16 = vsel %vm694_vm2, %v713_v58, %v717_v1  ;;  %v10129_v45 = vld [vmem:[#allocation6 + $0x594] sm:$0xf0]  ;;  %v7314_v55 = vld [vmem:[#allocation6 + $0x768] sm:$0xf]  ;;  %v6947_v57 = vor.u32 %v10097_v41, %v6946_v40 }
  0x85   : > { %1395 = vmatmul.bf16.vlgmr.msra.gmra.mxu0 %v11442_v15  ;;  %1409 = vmatmul.bf16.vlgmr.msra.gmra.mxu1 %v11445_v16  ;;  %v10157_v54 = vld [vmem:[#allocation6 + $0x674] sm:$0xf0]  ;;  %v7075_v58 = vor.u32 %v10129_v45, %v7074_v42  ;;  %v6930_v59 = vld [vmem:[#allocation6 + $0x468] sm:$0xf]  ;;  %v10171_v45 = vld [vmem:[#allocation6 + $0x6ec] sm:$0xf] }
  0x86   : > { %1499 = vmatpush.bf16.msra.mxu0 %v6995_v2  ;;  %1513 = vmatpush.bf16.msra.mxu1 %v7123_v4  ;;  %v10189_v56 = vld [vmem:[#allocation6 + $0x774] sm:$0xf0]  ;;  %v7058_v61 = vld [vmem:[#allocation6 + $0x568] sm:$0xf]  ;;  %v7187_v1 = vor.u32 %v10157_v54, %v7186_v53  ;;  %v7380_v53 = vld [vmem:[#allocation6 + $0x7f8] sm:$0xf0] }
  0x87   : > { %1528 = vmatpush.bf16.msra.mxu2 %v7235_v12  ;;  %1542 = vmatpush.bf16.msra.mxu3 %v7363_v13  ;;  %v10093_v60 = vld [vmem:[#allocation6 + $0x474] sm:$0xf0]  ;;  %v7315_v2 = vor.u32 %v10189_v56, %v7314_v55  ;;  %v7170_v4 = vld [vmem:[#allocation6 + $0x648] sm:$0xf] }
  0x88   : > { %v10125_v62 = vld [vmem:[#allocation6 + $0x574] sm:$0xf0]  ;;  %v7298_v8 = vld [vmem:[#allocation6 + $0x748] sm:$0xf]  ;;  %v6931_v10 = vor.u32 %v10093_v60, %v6930_v59 }
  0x89   : > { %v10153_v7 = vld [vmem:[#allocation6 + $0x654] sm:$0xf0]  ;;  %v7059_v12 = vor.u32 %v10125_v62, %v7058_v61  ;;  %v6914_v13 = vld [vmem:[#allocation6 + $0x448] sm:$0xf]  ;;  %v10107_v62 = vld [vmem:[#allocation6 + $0x4ec] sm:$0xf] }
  0x8a   : > { %1500 = vmatpush.bf16.msra.mxu0 %v6979_v23  ;;  %1514 = vmatpush.bf16.msra.mxu1 %v7107_v24  ;;  %v10185_v9 = vld [vmem:[#allocation6 + $0x754] sm:$0xf0]  ;;  %v7042_v17 = vld [vmem:[#allocation6 + $0x548] sm:$0xf]  ;;  %v7171_v22 = vor.u32 %v10153_v7, %v7170_v4  ;;  %v7124_v4 = vld [vmem:[#allocation6 + $0x5f8] sm:$0xf0] }
  0x8b   : > { %1529 = vmatpush.bf16.msra.mxu2 %v7219_v29  ;;  %1543 = vmatpush.bf16.msra.mxu3 %v7347_v31  ;;  %v10089_v14 = vld [vmem:[#allocation6 + $0x454] sm:$0xf0]  ;;  %v7299_v23 = vor.u32 %v10185_v9, %v7298_v8  ;;  %v7154_v24 = vld [vmem:[#allocation6 + $0x628] sm:$0xf]  ;;  %v10167_v9 = vld [vmem:[#allocation6 + $0x6cc] sm:$0xf] }
  0x8c   : > { %v10121_v21 = vld [vmem:[#allocation6 + $0x554] sm:$0xf0]  ;;  %v7282_v26 = vld [vmem:[#allocation6 + $0x728] sm:$0xf]  ;;  %v6915_v28 = vor.u32 %v10089_v14, %v6914_v13  ;;  %v7364_v13 = vld [vmem:[#allocation6 + $0x7d8] sm:$0xf0] }
  0x8d   : > { %v10149_v25 = vld [vmem:[#allocation6 + $0x634] sm:$0xf0]  ;;  %v7043_v29 = vor.u32 %v10121_v21, %v7042_v17  ;;  %v6898_v31 = vld [vmem:[#allocation6 + $0x428] sm:$0xf] }
  0x8e   : > { %1501 = vmatpush.bf16.msra.mxu0 %v6963_v37  ;;  %1515 = vmatpush.bf16.msra.mxu1 %v7091_v39  ;;  %v10181_v27 = vld [vmem:[#allocation6 + $0x734] sm:$0xf0]  ;;  %v7026_v33 = vld [vmem:[#allocation6 + $0x528] sm:$0xf]  ;;  %v7155_v35 = vor.u32 %v10149_v25, %v7154_v24  ;;  %v6980_v24 = vld [vmem:[#allocation6 + $0x4d8] sm:$0xf0] }
  0x8f   : > { %1530 = vmatpush.bf16.msra.mxu2 %v7203_v48  ;;  %1544 = vmatpush.bf16.msra.mxu3 %v7331_v49  ;;  %v10085_v32 = vld [vmem:[#allocation6 + $0x434] sm:$0xf0]  ;;  %v7283_v37 = vor.u32 %v10181_v27, %v7282_v26  ;;  %v7138_v39 = vld [vmem:[#allocation6 + $0x608] sm:$0xf]  ;;  %v7252_v48 = vld [vmem:[#allocation6 + $0x6f8] sm:$0xf0] }
  0x90   : > { %v10117_v34 = vld [vmem:[#allocation6 + $0x534] sm:$0xf0]  ;;  %v7266_v41 = vld [vmem:[#allocation6 + $0x708] sm:$0xf]  ;;  %v10203_v49 = vld [vmem:[#allocation6 + $0x7ec] sm:$0xf]  ;;  %v6899_v54 = vor.u32 %v10085_v32, %v6898_v31  ;;  %v7255_v7 = vor.u32 %v10171_v45, %v7252_v48 }
  0x91   : > { %v10145_v40 = vld [vmem:[#allocation6 + $0x614] sm:$0xf0]  ;;  %v7027_v55 = vor.u32 %v10117_v34, %v7026_v33  ;;  %v6882_v56 = vld [vmem:[#allocation6 + $0x408] sm:$0xf]  ;;  %v7383_v8 = vor.u32 %v10203_v49, %v7380_v53  ;;  %v10135_v25 = vld [vmem:[#allocation6 + $0x5cc] sm:$0xf] }
  0x92   : > { %1479 = vmatmul.bf16.vlgmr.msrb.gmra.mxu2 %v11432_v50  ;;  %1493 = vmatmul.bf16.vlgmr.msrb.gmra.mxu3 %v11435_v52  ;;  %v10177_v42 = vld [vmem:[#allocation6 + $0x714] sm:$0xf0]  ;;  %v7139_v60 = vor.u32 %v10145_v40, %v7138_v39  ;;  %v7108_v26 = vld [vmem:[#allocation6 + $0x5d8] sm:$0xf0]  ;;  %v10195_v32 = vld [vmem:[#allocation6 + $0x7ac] sm:$0xf] }
  0x93   : > { %1502 = vmatpush.bf16.msra.mxu0 %v6947_v57  ;;  %1516 = vmatpush.bf16.msra.mxu1 %v7075_v58  ;;  %v10081_v57 = vld [vmem:[#allocation6 + $0x414] sm:$0xf0]  ;;  %v7010_v58 = vld [vmem:[#allocation6 + $0x508] sm:$0xf]  ;;  %v7267_v61 = vor.u32 %v10177_v42, %v7266_v41  ;;  %v7220_v31 = vld [vmem:[#allocation6 + $0x6b8] sm:$0xf0] }
  0x94   : > { %1531 = vmatpush.bf16.msra.mxu2 %v7187_v1  ;;  %1545 = vmatpush.bf16.msra.mxu3 %v7315_v2  ;;  %v10113_v59 = vld [vmem:[#allocation6 + $0x514] sm:$0xf0]  ;;  %v6996_v1 = vld [vmem:[#allocation6 + $0x4f8] sm:$0xf0]  ;;  %v10139_v2 = vld [vmem:[#allocation6 + $0x5ec] sm:$0xf]  ;;  %v6883_v14 = vor.u32 %v10081_v57, %v6882_v56 }
  0x95   : > { %1451 = vmatmul.bf16.vlgmr.msrb.gmra.mxu0 %v11442_v15  ;;  %1465 = vmatmul.bf16.vlgmr.msrb.gmra.mxu1 %v11445_v16  ;;  %v7011_v17 = vor.u32 %v10113_v59, %v7010_v58  ;;  %v6999_v21 = vor.u32 %v10107_v62, %v6996_v1  ;;  %v7348_v33 = vld [vmem:[#allocation6 + $0x7b8] sm:$0xf0]  ;;  %v10131_v40 = vld [vmem:[#allocation6 + $0x5ac] sm:$0xf] }
  0x96   : > { %v6964_v39 = vld [vmem:[#allocation6 + $0x4b8] sm:$0xf0]  ;;  %v7351_v45 = vor.u32 %v10195_v32, %v7348_v33  ;;  %v10159_v48 = vld [vmem:[#allocation6 + $0x68c] sm:$0xf] }
  0x97   : > { %1503 = vmatpush.bf16.msra.mxu0 %v6931_v10  ;;  %1517 = vmatpush.bf16.msra.mxu1 %v7059_v12  ;;  %v7236_v10 = vld [vmem:[#allocation6 + $0x6d8] sm:$0xf0]  ;;  %v10199_v12 = vld [vmem:[#allocation6 + $0x7cc] sm:$0xf] }
  0x98   : > { %1532 = vmatpush.bf16.msra.mxu2 %v7171_v22  ;;  %1546 = vmatpush.bf16.msra.mxu3 %v7299_v23  ;;  %v7127_v22 = vor.u32 %v10139_v2, %v7124_v4  ;;  %v10103_v23 = vld [vmem:[#allocation6 + $0x4cc] sm:$0xf]  ;;  %v7239_v27 = vor.u32 %v10167_v9, %v7236_v10  ;;  %v7092_v41 = vld [vmem:[#allocation6 + $0x5b8] sm:$0xf0] }
  0x99   : > { %v6983_v34 = vor.u32 %v10103_v23, %v6980_v24  ;;  %v7204_v49 = vld [vmem:[#allocation6 + $0x698] sm:$0xf0]  ;;  %v10191_v53 = vld [vmem:[#allocation6 + $0x78c] sm:$0xf]  ;;  %v7095_v56 = vor.u32 %v10131_v40, %v7092_v41 }
  0x9a   : > { %v10095_v57 = vld [vmem:[#allocation6 + $0x48c] sm:$0xf]  ;;  %v6948_v58 = vld [vmem:[#allocation6 + $0x498] sm:$0xf0] }
  0x9b   : > { %1504 = vmatpush.bf16.msra.mxu0 %v6915_v28  ;;  %1518 = vmatpush.bf16.msra.mxu1 %v7043_v29  ;;  %v7367_v28 = vor.u32 %v10199_v12, %v7364_v13  ;;  %v10163_v29 = vld [vmem:[#allocation6 + $0x6ac] sm:$0xf]  ;;  %v7188_v2 = vld [vmem:[#allocation6 + $0x678] sm:$0xf0] }
  0x9c   : > { %1533 = vmatpush.bf16.msra.mxu2 %v7155_v35  ;;  %1547 = vmatpush.bf16.msra.mxu3 %v7283_v37  ;;  %v7111_v35 = vor.u32 %v10135_v25, %v7108_v26  ;;  %v10099_v37 = vld [vmem:[#allocation6 + $0x4ac] sm:$0xf]  ;;  %v7223_v42 = vor.u32 %v10163_v29, %v7220_v31  ;;  %v6932_v12 = vld [vmem:[#allocation6 + $0x478] sm:$0xf0] }
  0x9d   : > { %v10127_v59 = vld [vmem:[#allocation6 + $0x58c] sm:$0xf]  ;;  %v7172_v23 = vld [vmem:[#allocation6 + $0x658] sm:$0xf0] }
  0x9e   : > { %v10155_v1 = vld [vmem:[#allocation6 + $0x66c] sm:$0xf]  ;;  %v7300_v25 = vld [vmem:[#allocation6 + $0x758] sm:$0xf0] }
  0x9f   : > { %1505 = vmatpush.bf16.msra.mxu0 %v6899_v54  ;;  %1519 = vmatpush.bf16.msra.mxu1 %v7027_v55  ;;  %v7332_v54 = vld [vmem:[#allocation6 + $0x798] sm:$0xf0]  ;;  %v6967_v55 = vor.u32 %v10099_v37, %v6964_v39  ;;  %v10187_v4 = vld [vmem:[#allocation6 + $0x76c] sm:$0xf] }
  0xa0   : > { %1534 = vmatpush.bf16.msra.mxu2 %v7139_v60  ;;  %1548 = vmatpush.bf16.msra.mxu3 %v7267_v61  ;;  %v7076_v60 = vld [vmem:[#allocation6 + $0x598] sm:$0xf0]  ;;  %v7207_v61 = vor.u32 %v10159_v48, %v7204_v49  ;;  %v7335_v62 = vor.u32 %v10191_v53, %v7332_v54  ;;  %v10091_v10 = vld [vmem:[#allocation6 + $0x46c] sm:$0xf] }
  0xa1   : > { %v7079_v9 = vor.u32 %v10127_v59, %v7076_v60  ;;  %v10123_v13 = vld [vmem:[#allocation6 + $0x56c] sm:$0xf]  ;;  %v6935_v26 = vor.u32 %v10091_v10, %v6932_v12  ;;  %v6916_v29 = vld [vmem:[#allocation6 + $0x458] sm:$0xf0]  ;;  %v7754_v60 = vld [vmem:[#allocation6 + $0x2e0] sm:$0xf] }
  0xa2   : > { %v10183_v24 = vld [vmem:[#allocation6 + $0x74c] sm:$0xf]  ;;  %v7044_v32 = vld [vmem:[#allocation6 + $0x558] sm:$0xf0] }
  0xa3   : > { %1506 = vmatpush.bf16.msra.mxu0 %v6883_v14  ;;  %1520 = vmatpush.bf16.msra.mxu1 %v7011_v17  ;;  %v7060_v14 = vld [vmem:[#allocation6 + $0x578] sm:$0xf0]  ;;  %v7191_v17 = vor.u32 %v10155_v1, %v7188_v2  ;;  %v10119_v31 = vld [vmem:[#allocation6 + $0x54c] sm:$0xf]  ;;  %v10076_v1 = vld [vmem:[#allocation6 + $0x3ec] sm:$0xf0] }
  0xa4   : > { %1583 = vmatpush.bf16.msrb.mxu2 %v7255_v7  ;;  %1597 = vmatpush.bf16.msrb.mxu3 %v7383_v8  ;;  %v7316_v7 = vld [vmem:[#allocation6 + $0x778] sm:$0xf0]  ;;  %v6951_v8 = vor.u32 %v10095_v57, %v6948_v58  ;;  %v10179_v39 = vld [vmem:[#allocation6 + $0x72c] sm:$0xf] }
  0xa5   : > { %1535 = vmatmul.bf16.vlgmr.msra.gmra.mxu2 %v11432_v50  ;;  %1549 = vmatmul.bf16.vlgmr.msra.gmra.mxu3 %v11435_v52  ;;  %v7156_v37 = vld [vmem:[#allocation6 + $0x638] sm:$0xf0]  ;;  %v10115_v49 = vld [vmem:[#allocation6 + $0x52c] sm:$0xf] }
  0xa6   : > { %1507 = vmatmul.bf16.vlgmr.msra.gmra.mxu0 %v11442_v15  ;;  %1521 = vmatmul.bf16.vlgmr.msra.gmra.mxu1 %v11445_v16  ;;  %v7284_v40 = vld [vmem:[#allocation6 + $0x738] sm:$0xf0]  ;;  %v10175_v58 = vld [vmem:[#allocation6 + $0x70c] sm:$0xf] }
  0xa7   : > { %1555 = vmatpush.bf16.msrb.mxu0 %v6999_v21  ;;  %1569 = vmatpush.bf16.msrb.mxu1 %v7127_v22  ;;  %v7319_v21 = vor.u32 %v10187_v4, %v7316_v7  ;;  %v10151_v22 = vld [vmem:[#allocation6 + $0x64c] sm:$0xf]  ;;  %v6900_v48 = vld [vmem:[#allocation6 + $0x438] sm:$0xf0] }
  0xa8   : > { %1584 = vmatpush.bf16.msrb.mxu2 %v7239_v27  ;;  %1598 = vmatpush.bf16.msrb.mxu3 %v7367_v28  ;;  %v7063_v27 = vor.u32 %v10123_v13, %v7060_v14  ;;  %v10087_v28 = vld [vmem:[#allocation6 + $0x44c] sm:$0xf]  ;;  %v7175_v33 = vor.u32 %v10151_v22, %v7172_v23  ;;  %v7028_v53 = vld [vmem:[#allocation6 + $0x538] sm:$0xf0]  ;;  %v7498_v14 = vld [vmem:[#allocation6 + $0xe0] sm:$0xf] }
  0xa9   : > { %v6919_v41 = vor.u32 %v10087_v28, %v6916_v29  ;;  %v7140_v57 = vld [vmem:[#allocation6 + $0x618] sm:$0xf0]  ;;  %v7031_v4 = vor.u32 %v10115_v49, %v7028_v53  ;;  %v10079_v7 = vld [vmem:[#allocation6 + $0x40c] sm:$0xf]  ;;  %v10012_v22 = vld [vmem:[#allocation6 + $0x1ec] sm:$0xf0] }
  0xaa   : > { %v7268_v59 = vld [vmem:[#allocation6 + $0x718] sm:$0xf0]  ;;  %v10072_v28 = vld [vmem:[#allocation6 + $0x3cc] sm:$0xf0] }
  0xab   : > { %1556 = vmatpush.bf16.msrb.mxu0 %v6983_v34  ;;  %1570 = vmatpush.bf16.msrb.mxu1 %v7111_v35  ;;  %v7303_v34 = vor.u32 %v10183_v24, %v7300_v25  ;;  %v10147_v35 = vld [vmem:[#allocation6 + $0x62c] sm:$0xf]  ;;  %v7012_v10 = vld [vmem:[#allocation6 + $0x518] sm:$0xf0]  ;;  %v7271_v13 = vor.u32 %v10175_v58, %v7268_v59  ;;  %v7738_v25 = vld [vmem:[#allocation6 + $0x2c0] sm:$0xf] }
  0xac   : > { %1585 = vmatpush.bf16.msrb.mxu2 %v7223_v42  ;;  %1599 = vmatpush.bf16.msrb.mxu3 %v7351_v45  ;;  %v7047_v42 = vor.u32 %v10119_v31, %v7044_v32  ;;  %v10083_v45 = vld [vmem:[#allocation6 + $0x42c] sm:$0xf]  ;;  %v7159_v54 = vor.u32 %v10147_v35, %v7156_v37  ;;  %v9976_v35 = vld [vmem:[#allocation6 + $0xcc] sm:$0xf0]  ;;  %v7610_v37 = vld [vmem:[#allocation6 + $0x1c0] sm:$0xf] }
  0xad   : > { %v6903_v2 = vor.u32 %v10083_v45, %v6900_v48  ;;  %v10036_v45 = vld [vmem:[#allocation6 + $0x2ac] sm:$0xf0]  ;;  %v7850_v48 = vld [vmem:[#allocation6 + $0x3a0] sm:$0xf] }
  0xae   : > { %v10068_v49 = vld [vmem:[#allocation6 + $0x3ac] sm:$0xf0] }
  0xaf   : > { %1557 = vmatpush.bf16.msrb.mxu0 %v6967_v55  ;;  %1571 = vmatpush.bf16.msrb.mxu1 %v7095_v56  ;;  %v7287_v55 = vor.u32 %v10179_v39, %v7284_v40  ;;  %v10143_v56 = vld [vmem:[#allocation6 + $0x60c] sm:$0xf]  ;;  %v10008_v39 = vld [vmem:[#allocation6 + $0x1cc] sm:$0xf0] }
  0xb0   : > { %1586 = vmatpush.bf16.msrb.mxu2 %v7207_v61  ;;  %1600 = vmatpush.bf16.msrb.mxu3 %v7335_v62  ;;  %v10044_v61 = vld [vmem:[#allocation6 + $0x2ec] sm:$0xf0]  ;;  %v7882_v62 = vld [vmem:[#allocation6 + $0x3e0] sm:$0xf]  ;;  %v7143_v12 = vor.u32 %v10143_v56, %v7140_v57 }
  0xb1   : > { %v7755_v23 = vor.u32 %v10044_v61, %v7754_v60  ;;  %v7883_v24 = vor.u32 %v10076_v1, %v7882_v62  ;;  %v9972_v56 = vld [vmem:[#allocation6 + $0xac] sm:$0xf0]  ;;  %v7594_v57 = vld [vmem:[#allocation6 + $0x1a0] sm:$0xf]  ;;  %v7851_v60 = vor.u32 %v10068_v49, %v7850_v48 }
  0xb2   : > { %v10004_v58 = vld [vmem:[#allocation6 + $0x1ac] sm:$0xf0]  ;;  %v7706_v61 = vld [vmem:[#allocation6 + $0x280] sm:$0xf] }
  0xb3   : > { %1558 = vmatpush.bf16.msrb.mxu0 %v6951_v8  ;;  %1572 = vmatpush.bf16.msrb.mxu1 %v7079_v9  ;;  %v6884_v8 = vld [vmem:[#allocation6 + $0x418] sm:$0xf0]  ;;  %v10111_v9 = vld [vmem:[#allocation6 + $0x50c] sm:$0xf]  ;;  %v10032_v62 = vld [vmem:[#allocation6 + $0x28c] sm:$0xf0] }
  0xb4   : > { %1587 = vmatpush.bf16.msrb.mxu2 %v7191_v17  ;;  %1601 = vmatpush.bf16.msrb.mxu3 %v7319_v21  ;;  %v9980_v17 = vld [vmem:[#allocation6 + $0xec] sm:$0xf0]  ;;  %v7626_v21 = vld [vmem:[#allocation6 + $0x1e0] sm:$0xf]  ;;  %v6887_v29 = vor.u32 %v10079_v7, %v6884_v8  ;;  %v7015_v31 = vor.u32 %v10111_v9, %v7012_v10  ;;  %v7595_v7 = vor.u32 %v10004_v58, %v7594_v57 }
  0xb5   : > { %v7499_v32 = vor.u32 %v9980_v17, %v7498_v14  ;;  %v7834_v1 = vld [vmem:[#allocation6 + $0x380] sm:$0xf]  ;;  %v9968_v9 = vld [vmem:[#allocation6 + $0x8c] sm:$0xf0] }
  0xb6   : > { %v7450_v8 = vld [vmem:[#allocation6 + $0x80] sm:$0xf]  ;;  %v10020_v48 = vld [vmem:[#allocation6 + $0x22c] sm:$0xf0] }
  0xb7   : > { %1559 = vmatpush.bf16.msrb.mxu0 %v6935_v26  ;;  %1573 = vmatpush.bf16.msrb.mxu1 %v7063_v27  ;;  %v10040_v26 = vld [vmem:[#allocation6 + $0x2cc] sm:$0xf0]  ;;  %v7866_v27 = vld [vmem:[#allocation6 + $0x3c0] sm:$0xf] }
  0xb8   : > { %1588 = vmatpush.bf16.msrb.mxu2 %v7175_v33  ;;  %1602 = vmatpush.bf16.msrb.mxu3 %v7303_v34  ;;  %v7627_v33 = vor.u32 %v10012_v22, %v7626_v21  ;;  %v7482_v34 = vld [vmem:[#allocation6 + $0xc0] sm:$0xf]  ;;  %v7739_v40 = vor.u32 %v10040_v26, %v7738_v25  ;;  %v9996_v25 = vld [vmem:[#allocation6 + $0x16c] sm:$0xf0] }
  0xb9   : > { %v7483_v53 = vor.u32 %v9976_v35, %v7482_v34  ;;  %v7578_v10 = vld [vmem:[#allocation6 + $0x180] sm:$0xf]  ;;  %v9956_v57 = vld [vmem:[#allocation6 + $0x2c] sm:$0xf0] }
  0xba   : > { %v7690_v17 = vld [vmem:[#allocation6 + $0x260] sm:$0xf] }
  0xbb   : > { %1560 = vmatpush.bf16.msrb.mxu0 %v6919_v41  ;;  %1574 = vmatpush.bf16.msrb.mxu1 %v7047_v42  ;;  %v7867_v41 = vor.u32 %v10072_v28, %v7866_v27  ;;  %v7722_v42 = vld [vmem:[#allocation6 + $0x2a0] sm:$0xf] }
  0xbc   : > { %1589 = vmatpush.bf16.msrb.mxu2 %v7159_v54  ;;  %1603 = vmatpush.bf16.msrb.mxu3 %v7287_v55  ;;  %v7611_v54 = vor.u32 %v10008_v39, %v7610_v37  ;;  %v7466_v55 = vld [vmem:[#allocation6 + $0xa0] sm:$0xf]  ;;  %v7723_v59 = vor.u32 %v10036_v45, %v7722_v42  ;;  %v9960_v37 = vld [vmem:[#allocation6 + $0x4c] sm:$0xf0] }
  0xbd   : > { %v7818_v21 = vld [vmem:[#allocation6 + $0x360] sm:$0xf] }
  0xbe   : > { %v7434_v22 = vld [vmem:[#allocation6 + $0x60] sm:$0xf] }
  0xbf   : > { %1561 = vmatpush.bf16.msrb.mxu0 %v6903_v2  ;;  %1575 = vmatpush.bf16.msrb.mxu1 %v7031_v4  ;;  %v10064_v2 = vld [vmem:[#allocation6 + $0x38c] sm:$0xf0]  ;;  %v7467_v4 = vor.u32 %v9972_v56, %v7466_v55  ;;  %v7674_v28 = vld [vmem:[#allocation6 + $0x240] sm:$0xf] }
  0xc0   : > { %1590 = vmatpush.bf16.msrb.mxu2 %v7143_v12  ;;  %1604 = vmatpush.bf16.msrb.mxu3 %v7271_v13  ;;  %v10000_v12 = vld [vmem:[#allocation6 + $0x18c] sm:$0xf0]  ;;  %v7707_v13 = vor.u32 %v10032_v62, %v7706_v61  ;;  %v7835_v14 = vor.u32 %v10064_v2, %v7834_v1  ;;  %v7418_v35 = vld [vmem:[#allocation6 + $0x40] sm:$0xf] }
  0xc1   : > { %v7546_v39 = vld [vmem:[#allocation6 + $0x140] sm:$0xf]  ;;  %v10016_v1 = vld [vmem:[#allocation6 + $0x20c] sm:$0xf0] }
  0xc2   : > { %v7658_v45 = vld [vmem:[#allocation6 + $0x220] sm:$0xf] }
  0xc3   : > { %1562 = vmatpush.bf16.msrb.mxu0 %v6887_v29  ;;  %1576 = vmatpush.bf16.msrb.mxu1 %v7015_v31  ;;  %v10024_v29 = vld [vmem:[#allocation6 + $0x24c] sm:$0xf0]  ;;  %v7802_v31 = vld [vmem:[#allocation6 + $0x340] sm:$0xf] }
  0xc4   : > { %2283 = vmatpush.bf16.msra.mxu2 %v7755_v23  ;;  %2297 = vmatpush.bf16.msra.mxu3 %v7883_v24  ;;  %v9964_v23 = vld [vmem:[#allocation6 + $0x6c] sm:$0xf0]  ;;  %v7562_v24 = vld [vmem:[#allocation6 + $0x160] sm:$0xf] }
  0xc5   : > { %1591 = vmatmul.bf16.vlgmr.msrb.gmra.mxu2 %v11432_v50  ;;  %1605 = vmatmul.bf16.vlgmr.msrb.gmra.mxu3 %v11435_v52  ;;  %v10060_v50 = vld [vmem:[#allocation6 + $0x36c] sm:$0xf0]  ;;  %v7579_v52 = vor.u32 %v10000_v12, %v7578_v10  ;;  %v7563_v34 = vor.u32 %v9996_v25, %v7562_v24  ;;  %v7786_v49 = vld [vmem:[#allocation6 + $0x320] sm:$0xf]  ;;  %v7884_v10 = vld [vmem:[#allocation6 + $0x3f0] sm:$0xf0] }
  0xc6   : > { %1563 = vmatmul.bf16.vlgmr.msrb.gmra.mxu0 %v11442_v15  ;;  %1577 = vmatmul.bf16.vlgmr.msrb.gmra.mxu1 %v11445_v16  ;;  %v10028_v15 = vld [vmem:[#allocation6 + $0x26c] sm:$0xf0]  ;;  %v7451_v16 = vor.u32 %v9968_v9, %v7450_v8  ;;  %v7819_v27 = vor.u32 %v10060_v50, %v7818_v21  ;;  %v7402_v56 = vld [vmem:[#allocation6 + $0x20] sm:$0xf]  ;;  %v7756_v8 = vld [vmem:[#allocation6 + $0x2f0] sm:$0xf0] }
  0xc7   : > { %2255 = vmatpush.bf16.msra.mxu0 %v7499_v32  ;;  %2269 = vmatpush.bf16.msra.mxu1 %v7627_v33  ;;  %v7691_v26 = vor.u32 %v10028_v15, %v7690_v17  ;;  %v10056_v32 = vld [vmem:[#allocation6 + $0x34c] sm:$0xf0]  ;;  %v7435_v33 = vor.u32 %v9964_v23, %v7434_v22  ;;  %v7530_v58 = vld [vmem:[#allocation6 + $0x120] sm:$0xf]  ;;  %v10074_v9 = vld [vmem:[#allocation6 + $0x3e4] sm:$0xf]  ;;  %v7403_v12 = vor.u32 %v9956_v57, %v7402_v56 }
  0xc8   : > { %2284 = vmatpush.bf16.msra.mxu2 %v7739_v40  ;;  %2298 = vmatpush.bf16.msra.mxu3 %v7867_v41  ;;  %v9992_v40 = vld [vmem:[#allocation6 + $0x14c] sm:$0xf0]  ;;  %v7675_v41 = vor.u32 %v10024_v29, %v7674_v28  ;;  %v7803_v42 = vor.u32 %v10056_v32, %v7802_v31  ;;  %v7642_v62 = vld [vmem:[#allocation6 + $0x200] sm:$0xf]  ;;  %v7500_v22 = vld [vmem:[#allocation6 + $0xf0] sm:$0xf0] }
  0xc9   : > { %v7547_v55 = vor.u32 %v9992_v40, %v7546_v39  ;;  %v7770_v2 = vld [vmem:[#allocation6 + $0x300] sm:$0xf]  ;;  %v9952_v17 = vld [vmem:[#allocation6 + $0xc] sm:$0xf0]  ;;  %v7643_v50 = vor.u32 %v10016_v1, %v7642_v62  ;;  %v10010_v23 = vld [vmem:[#allocation6 + $0x1e4] sm:$0xf] }
  0xca   : > { %v7514_v15 = vld [vmem:[#allocation6 + $0x100] sm:$0xf]  ;;  %v9984_v21 = vld [vmem:[#allocation6 + $0x10c] sm:$0xf0]  ;;  %v7628_v24 = vld [vmem:[#allocation6 + $0x1f0] sm:$0xf0] }
  0xcb   : > { %2256 = vmatpush.bf16.msra.mxu0 %v7483_v53  ;;  %2270 = vmatpush.bf16.msra.mxu1 %v7611_v54  ;;  %v10052_v53 = vld [vmem:[#allocation6 + $0x32c] sm:$0xf0]  ;;  %v7419_v54 = vor.u32 %v9960_v37, %v7418_v35  ;;  %v7515_v28 = vor.u32 %v9984_v21, %v7514_v15  ;;  %v9974_v29 = vld [vmem:[#allocation6 + $0xc4] sm:$0xf]  ;;  %v7868_v37 = vld [vmem:[#allocation6 + $0x3d0] sm:$0xf0] }
  0xcc   : > { %2285 = vmatpush.bf16.msra.mxu2 %v7723_v59  ;;  %2299 = vmatpush.bf16.msra.mxu3 %v7851_v60  ;;  %v9988_v59 = vld [vmem:[#allocation6 + $0x12c] sm:$0xf0]  ;;  %v7659_v60 = vor.u32 %v10020_v48, %v7658_v45  ;;  %v7787_v61 = vor.u32 %v10052_v53, %v7786_v49  ;;  %v10038_v31 = vld [vmem:[#allocation6 + $0x2c4] sm:$0xf]  ;;  %v7484_v39 = vld [vmem:[#allocation6 + $0xd0] sm:$0xf0] }
  0xcd   : > { %v10070_v35 = vld [vmem:[#allocation6 + $0x3c4] sm:$0xf]  ;;  %v7487_v53 = vor.u32 %v9974_v29, %v7484_v39  ;;  %v7852_v57 = vld [vmem:[#allocation6 + $0x3b0] sm:$0xf0] }
  0xce   : > { %v10006_v40 = vld [vmem:[#allocation6 + $0x1c4] sm:$0xf]  ;;  %v7871_v45 = vor.u32 %v10070_v35, %v7868_v37  ;;  %v7676_v35 = vld [vmem:[#allocation6 + $0x250] sm:$0xf0] }
  0xcf   : > { %2257 = vmatpush.bf16.msra.mxu0 %v7467_v4  ;;  %2271 = vmatpush.bf16.msra.mxu1 %v7595_v7  ;;  %v10048_v4 = vld [vmem:[#allocation6 + $0x30c] sm:$0xf0]  ;;  %v10042_v7 = vld [vmem:[#allocation6 + $0x2e4] sm:$0xf]  ;;  %v7804_v39 = vld [vmem:[#allocation6 + $0x350] sm:$0xf0] }
  0xd0   : > { %2286 = vmatpush.bf16.msra.mxu2 %v7707_v13  ;;  %2300 = vmatpush.bf16.msra.mxu3 %v7835_v14  ;;  %v7531_v13 = vor.u32 %v9988_v59, %v7530_v58  ;;  %v7386_v14 = vld [vmem:[#allocation6] sm:$0xf]  ;;  %v7759_v25 = vor.u32 %v10042_v7, %v7756_v8  ;;  %v9970_v48 = vld [vmem:[#allocation6 + $0xa4] sm:$0xf]  ;;  %v7468_v58 = vld [vmem:[#allocation6 + $0xb0] sm:$0xf0] }
  0xd1   : > { %v10034_v49 = vld [vmem:[#allocation6 + $0x2a4] sm:$0xf]  ;;  %v7708_v8 = vld [vmem:[#allocation6 + $0x290] sm:$0xf0] }
  0xd2   : > { %v10066_v56 = vld [vmem:[#allocation6 + $0x3a4] sm:$0xf] }
  0xd3   : > { %2258 = vmatpush.bf16.msra.mxu0 %v7451_v16  ;;  %2272 = vmatpush.bf16.msra.mxu1 %v7579_v52  ;;  %v7771_v16 = vor.u32 %v10048_v4, %v7770_v2  ;;  %v9978_v52 = vld [vmem:[#allocation6 + $0xe4] sm:$0xf]  ;;  %v7855_v62 = vor.u32 %v10066_v56, %v7852_v57  ;;  %v7471_v4 = vor.u32 %v9970_v48, %v7468_v58  ;;  %v7660_v56 = vld [vmem:[#allocation6 + $0x230] sm:$0xf0] }
  0xd4   : > { %2287 = vmatpush.bf16.msra.mxu2 %v7691_v26  ;;  %2301 = vmatpush.bf16.msra.mxu3 %v7819_v27  ;;  %v7887_v26 = vor.u32 %v10074_v9, %v7884_v10  ;;  %v7387_v27 = vor.u32 %v9952_v17, %v7386_v14  ;;  %v7503_v32 = vor.u32 %v9978_v52, %v7500_v22  ;;  %v10002_v59 = vld [vmem:[#allocation6 + $0x1a4] sm:$0xf]  ;;  %v7836_v10 = vld [vmem:[#allocation6 + $0x390] sm:$0xf0] }
  0xd5   : > { %v9966_v1 = vld [vmem:[#allocation6 + $0x84] sm:$0xf]  ;;  %v7580_v14 = vld [vmem:[#allocation6 + $0x190] sm:$0xf0] }
  0xd6   : > { %v10030_v2 = vld [vmem:[#allocation6 + $0x284] sm:$0xf]  ;;  %v7692_v22 = vld [vmem:[#allocation6 + $0x270] sm:$0xf0] }
  0xd7   : > { %2259 = vmatpush.bf16.msra.mxu0 %v7435_v33  ;;  %2273 = vmatpush.bf16.msra.mxu1 %v7563_v34  ;;  %v7631_v33 = vor.u32 %v10010_v23, %v7628_v24  ;;  %v7740_v34 = vld [vmem:[#allocation6 + $0x2d0] sm:$0xf0]  ;;  %v10062_v9 = vld [vmem:[#allocation6 + $0x384] sm:$0xf]  ;;  %v7711_v17 = vor.u32 %v10030_v2, %v7708_v8 }
  0xd8   : > { %2288 = vmatpush.bf16.msra.mxu2 %v7675_v41  ;;  %2302 = vmatpush.bf16.msra.mxu3 %v7803_v42  ;;  %v7612_v41 = vld [vmem:[#allocation6 + $0x1d0] sm:$0xf0]  ;;  %v7743_v42 = vor.u32 %v10038_v31, %v7740_v34  ;;  %v7839_v15 = vor.u32 %v10062_v9, %v7836_v10  ;;  %v9962_v21 = vld [vmem:[#allocation6 + $0x64] sm:$0xf] }
  0xd9   : > { %v10058_v23 = vld [vmem:[#allocation6 + $0x364] sm:$0xf]  ;;  %v7820_v24 = vld [vmem:[#allocation6 + $0x370] sm:$0xf0] }
  0xda   : > { %v7823_v29 = vor.u32 %v10058_v23, %v7820_v24  ;;  %v9958_v31 = vld [vmem:[#allocation6 + $0x44] sm:$0xf]  ;;  %v7788_v58 = vld [vmem:[#allocation6 + $0x330] sm:$0xf0]  ;;  %v10045_v24 = vld [vmem:[#allocation6 + $0x2f4] sm:$0xf0] }
  0xdb   : > { %2260 = vmatpush.bf16.msra.mxu0 %v7419_v54  ;;  %2274 = vmatpush.bf16.msra.mxu1 %v7547_v55  ;;  %v7615_v54 = vor.u32 %v10006_v40, %v7612_v41  ;;  %v7724_v55 = vld [vmem:[#allocation6 + $0x2b0] sm:$0xf0]  ;;  %v10054_v37 = vld [vmem:[#allocation6 + $0x344] sm:$0xf] }
  0xdc   : > { %2289 = vmatpush.bf16.msra.mxu2 %v7659_v60  ;;  %2303 = vmatpush.bf16.msra.mxu3 %v7787_v61  ;;  %v7596_v60 = vld [vmem:[#allocation6 + $0x1b0] sm:$0xf0]  ;;  %v7727_v61 = vor.u32 %v10034_v49, %v7724_v55  ;;  %v9990_v41 = vld [vmem:[#allocation6 + $0x144] sm:$0xf]  ;;  %v7807_v48 = vor.u32 %v10054_v37, %v7804_v39  ;;  %v7618_v37 = vld [vmem:[#allocation6 + $0x1c8] sm:$0xf] }
  0xdd   : > { %v7599_v7 = vor.u32 %v10002_v59, %v7596_v60  ;;  %v7420_v40 = vld [vmem:[#allocation6 + $0x50] sm:$0xf0]  ;;  %v9954_v49 = vld [vmem:[#allocation6 + $0x24] sm:$0xf]  ;;  %v10009_v39 = vld [vmem:[#allocation6 + $0x1d4] sm:$0xf0] }
  0xde   : > { %v10050_v57 = vld [vmem:[#allocation6 + $0x324] sm:$0xf]  ;;  %v7404_v59 = vld [vmem:[#allocation6 + $0x30] sm:$0xf0] }
  0xdf   : > { %2261 = vmatpush.bf16.msra.mxu0 %v7403_v12  ;;  %2275 = vmatpush.bf16.msra.mxu1 %v7531_v13  ;;  %v7452_v12 = vld [vmem:[#allocation6 + $0x90] sm:$0xf0]  ;;  %v9998_v13 = vld [vmem:[#allocation6 + $0x184] sm:$0xf]  ;;  %v7407_v9 = vor.u32 %v9954_v49, %v7404_v59  ;;  %v7619_v49 = vor.u32 %v10009_v39, %v7618_v37  ;;  %v7730_v59 = vld [vmem:[#allocation6 + $0x2a8] sm:$0xf] }
  0xe0   : > { %2290 = vmatpush.bf16.msra.mxu2 %v7643_v50  ;;  %2304 = vmatpush.bf16.msra.mxu3 %v7771_v16  ;;  %v10026_v50 = vld [vmem:[#allocation6 + $0x264] sm:$0xf]  ;;  %v7455_v16 = vor.u32 %v9966_v1, %v7452_v12  ;;  %v7583_v52 = vor.u32 %v9998_v13, %v7580_v14  ;;  %v7791_v1 = vor.u32 %v10050_v57, %v7788_v58  ;;  %v7644_v12 = vld [vmem:[#allocation6 + $0x210] sm:$0xf0]  ;;  %v7602_v57 = vld [vmem:[#allocation6 + $0x1a8] sm:$0xf] }
  0xe1   : > { %v9986_v60 = vld [vmem:[#allocation6 + $0x124] sm:$0xf]  ;;  %v7772_v14 = vld [vmem:[#allocation6 + $0x310] sm:$0xf0]  ;;  %v10005_v58 = vld [vmem:[#allocation6 + $0x1b4] sm:$0xf0] }
  0xe2   : > { %v9950_v2 = vld [vmem:[#allocation6 + $0x4] sm:$0xf] }
  0xe3   : > { %2262 = vmatpush.bf16.msra.mxu0 %v7387_v27  ;;  %2276 = vmatpush.bf16.msra.mxu1 %v7515_v28  ;;  %v7564_v27 = vld [vmem:[#allocation6 + $0x170] sm:$0xf0]  ;;  %v7695_v28 = vor.u32 %v10026_v50, %v7692_v22  ;;  %v10014_v8 = vld [vmem:[#allocation6 + $0x204] sm:$0xf]  ;;  %v7634_v50 = vld [vmem:[#allocation6 + $0x1e8] sm:$0xf] }
  0xe4   : > { %2339 = vmatpush.bf16.msrb.mxu2 %v7759_v25  ;;  %2353 = vmatpush.bf16.msrb.mxu3 %v7887_v26  ;;  %v7436_v25 = vld [vmem:[#allocation6 + $0x70] sm:$0xf0]  ;;  %v9994_v26 = vld [vmem:[#allocation6 + $0x164] sm:$0xf]  ;;  %v7647_v22 = vor.u32 %v10014_v8, %v7644_v12  ;;  %v10001_v12 = vld [vmem:[#allocation6 + $0x194] sm:$0xf0] }
  0xe5   : > { %2291 = vmatmul.bf16.vlgmr.msra.gmra.mxu2 %v11391_v46  ;;  %2305 = vmatmul.bf16.vlgmr.msra.gmra.mxu3 %v11395_v47  ;;  %v7567_v34 = vor.u32 %v9994_v26, %v7564_v27  ;;  %v10046_v13 = vld [vmem:[#allocation6 + $0x304] sm:$0xf]  ;;  %v10077_v26 = vld [vmem:[#allocation6 + $0x3f4] sm:$0xf0] }
  0xe6   : > { %2263 = vmatmul.bf16.vlgmr.msra.gmra.mxu0 %v11409_v5  ;;  %2277 = vmatmul.bf16.vlgmr.msra.gmra.mxu1 %v11413_v6  ;;  %v7775_v23 = vor.u32 %v10046_v13, %v7772_v14  ;;  %v7714_v13 = vld [vmem:[#allocation6 + $0x288] sm:$0xf]  ;;  %v10033_v14 = vld [vmem:[#allocation6 + $0x294] sm:$0xf0] }
  0xe7   : > { %2311 = vmatpush.bf16.msrb.mxu0 %v7503_v32  ;;  %2325 = vmatpush.bf16.msrb.mxu1 %v7631_v33  ;;  %v10022_v32 = vld [vmem:[#allocation6 + $0x244] sm:$0xf]  ;;  %v7439_v33 = vor.u32 %v9962_v21, %v7436_v25  ;;  %v9981_v21 = vld [vmem:[#allocation6 + $0xf4] sm:$0xf0]  ;;  %v7890_v25 = vld [vmem:[#allocation6 + $0x3e8] sm:$0xf] }
  0xe8   : > { %2340 = vmatpush.bf16.msrb.mxu2 %v7743_v42  ;;  %2354 = vmatpush.bf16.msrb.mxu3 %v7871_v45  ;;  %v7548_v42 = vld [vmem:[#allocation6 + $0x150] sm:$0xf0]  ;;  %v7679_v45 = vor.u32 %v10022_v32, %v7676_v35  ;;  %v7490_v32 = vld [vmem:[#allocation6 + $0xc8] sm:$0xf]  ;;  %v7891_v35 = vor.u32 %v10077_v26, %v7890_v25  ;;  %v7715_v26 = vor.u32 %v10033_v14, %v7714_v13  ;;  %v10021_v13 = vld [vmem:[#allocation6 + $0x234] sm:$0xf0] }
  0xe9   : > { %v7551_v55 = vor.u32 %v9990_v41, %v7548_v42  ;;  %v10041_v41 = vld [vmem:[#allocation6 + $0x2d4] sm:$0xf0]  ;;  %v7874_v42 = vld [vmem:[#allocation6 + $0x3c8] sm:$0xf] }
  0xea   : > { %v7794_v14 = vld [vmem:[#allocation6 + $0x328] sm:$0xf] }
  0xeb   : > { %2312 = vmatpush.bf16.msrb.mxu0 %v7487_v53  ;;  %2326 = vmatpush.bf16.msrb.mxu1 %v7615_v54  ;;  %v10018_v53 = vld [vmem:[#allocation6 + $0x224] sm:$0xf]  ;;  %v7423_v54 = vor.u32 %v9958_v31, %v7420_v40  ;;  %v7746_v40 = vld [vmem:[#allocation6 + $0x2c8] sm:$0xf] }
  0xec   : > { %2341 = vmatpush.bf16.msrb.mxu2 %v7727_v61  ;;  %2355 = vmatpush.bf16.msrb.mxu3 %v7855_v62  ;;  %v7532_v61 = vld [vmem:[#allocation6 + $0x130] sm:$0xf0]  ;;  %v7663_v62 = vor.u32 %v10018_v53, %v7660_v56  ;;  %v7474_v53 = vld [vmem:[#allocation6 + $0xa8] sm:$0xf] }
  0xed   : > { %v7535_v10 = vor.u32 %v9986_v60, %v7532_v61  ;;  %v10037_v60 = vld [vmem:[#allocation6 + $0x2b4] sm:$0xf0]  ;;  %v7858_v61 = vld [vmem:[#allocation6 + $0x3a8] sm:$0xf] }
  0xee   : > { %v7731_v8 = vor.u32 %v10037_v60, %v7730_v59 }
  0xef   : > { %2313 = vmatpush.bf16.msrb.mxu0 %v7471_v4  ;;  %2327 = vmatpush.bf16.msrb.mxu1 %v7599_v7  ;;  %v7388_v4 = vld [vmem:[#allocation6 + $0x10] sm:$0xf0]  ;;  %v9982_v7 = vld [vmem:[#allocation6 + $0x104] sm:$0xf] }
  0xf0   : > { %2342 = vmatpush.bf16.msrb.mxu2 %v7711_v17  ;;  %2356 = vmatpush.bf16.msrb.mxu3 %v7839_v15  ;;  %v7516_v17 = vld [vmem:[#allocation6 + $0x110] sm:$0xf0]  ;;  %v7506_v15 = vld [vmem:[#allocation6 + $0xe8] sm:$0xf]  ;;  %v7391_v27 = vor.u32 %v9950_v2, %v7388_v4  ;;  %v7603_v2 = vor.u32 %v10005_v58, %v7602_v57  ;;  %v10057_v58 = vld [vmem:[#allocation6 + $0x354] sm:$0xf0] }
  0xf1   : > { %v7458_v4 = vld [vmem:[#allocation6 + $0x88] sm:$0xf] }
  0xf2   : > { %v7810_v57 = vld [vmem:[#allocation6 + $0x348] sm:$0xf] }
  0xf3   : > { %2314 = vmatpush.bf16.msrb.mxu0 %v7455_v16  ;;  %2328 = vmatpush.bf16.msrb.mxu1 %v7583_v52  ;;  %v10013_v16 = vld [vmem:[#allocation6 + $0x1f4] sm:$0xf0]  ;;  %v7762_v52 = vld [vmem:[#allocation6 + $0x2e8] sm:$0xf] }
  0xf4   : > { %2343 = vmatpush.bf16.msrb.mxu2 %v7695_v28  ;;  %2357 = vmatpush.bf16.msrb.mxu3 %v7823_v29  ;;  %v7519_v28 = vor.u32 %v9982_v7, %v7516_v17  ;;  %v7507_v29 = vor.u32 %v9981_v21, %v7506_v15  ;;  %v7635_v31 = vor.u32 %v10013_v16, %v7634_v50  ;;  %v9969_v7 = vld [vmem:[#allocation6 + $0x94] sm:$0xf0]  ;;  %v7842_v17 = vld [vmem:[#allocation6 + $0x388] sm:$0xf] }
  0xf5   : > { %v10065_v15 = vld [vmem:[#allocation6 + $0x394] sm:$0xf0]  ;;  %v7459_v16 = vor.u32 %v9969_v7, %v7458_v4  ;;  %v7811_v7 = vor.u32 %v10057_v58, %v7810_v57  ;;  %v9975_v58 = vld [vmem:[#allocation6 + $0xcc] sm:$0xf] }
  0xf7   : > { %2315 = vmatpush.bf16.msrb.mxu0 %v7439_v33  ;;  %2329 = vmatpush.bf16.msrb.mxu1 %v7567_v34  ;;  %v9977_v33 = vld [vmem:[#allocation6 + $0xd4] sm:$0xf0]  ;;  %v7763_v34 = vor.u32 %v10045_v24, %v7762_v52 }
  0xf8   : > { %2344 = vmatpush.bf16.msrb.mxu2 %v7679_v45  ;;  %2358 = vmatpush.bf16.msrb.mxu3 %v7807_v48  ;;  %v10073_v45 = vld [vmem:[#allocation6 + $0x3d4] sm:$0xf0]  ;;  %v7491_v48 = vor.u32 %v9977_v33, %v7490_v32 }
  0xf9   : > { %v7875_v56 = vor.u32 %v10073_v45, %v7874_v42  ;;  %v10029_v33 = vld [vmem:[#allocation6 + $0x274] sm:$0xf0] }
  0xfa   : > { %v9961_v42 = vld [vmem:[#allocation6 + $0x54] sm:$0xf0] }
  0xfb   : > { %2316 = vmatpush.bf16.msrb.mxu0 %v7423_v54  ;;  %2330 = vmatpush.bf16.msrb.mxu1 %v7551_v55  ;;  %v9973_v54 = vld [vmem:[#allocation6 + $0xb4] sm:$0xf0]  ;;  %v7747_v55 = vor.u32 %v10041_v41, %v7746_v40  ;;  %v7426_v41 = vld [vmem:[#allocation6 + $0x48] sm:$0xf] }
  0xfc   : > { %2345 = vmatpush.bf16.msrb.mxu2 %v7663_v62  ;;  %2359 = vmatpush.bf16.msrb.mxu3 %v7791_v1  ;;  %v10069_v62 = vld [vmem:[#allocation6 + $0x3b4] sm:$0xf0]  ;;  %v7475_v1 = vor.u32 %v9973_v54, %v7474_v53  ;;  %v7554_v53 = vld [vmem:[#allocation6 + $0x148] sm:$0xf] }
  0xfd   : > { %v9993_v54 = vld [vmem:[#allocation6 + $0x154] sm:$0xf0] }
  0xff   : > { %2317 = vmatpush.bf16.msrb.mxu0 %v7407_v9  ;;  %2331 = vmatpush.bf16.msrb.mxu1 %v7535_v10  ;;  %v7859_v9 = vor.u32 %v10069_v62, %v7858_v61  ;;  %v7586_v10 = vld [vmem:[#allocation6 + $0x188] sm:$0xf]  ;;  %v7427_v61 = vor.u32 %v9961_v42, %v7426_v41  ;;  %v7555_v62 = vor.u32 %v9993_v54, %v7554_v53  ;;  %v10075_v41 = vld [vmem:[#allocation6 + $0x3ec] sm:$0xf]  ;;  %v7892_v42 = vld [vmem:[#allocation6 + $0x3f8] sm:$0xf0] }
 0x100   : > { %2346 = vmatpush.bf16.msrb.mxu2 %v7647_v22  ;;  %2360 = vmatpush.bf16.msrb.mxu3 %v7775_v23  ;;  %v7587_v52 = vor.u32 %v10001_v12, %v7586_v10  ;;  %v7442_v22 = vld [vmem:[#allocation6 + $0x68] sm:$0xf]  ;;  %v9965_v23 = vld [vmem:[#allocation6 + $0x74] sm:$0xf0] }
 0x101   : > { %v7443_v39 = vor.u32 %v9965_v23, %v7442_v22  ;;  %v7666_v10 = vld [vmem:[#allocation6 + $0x228] sm:$0xf]  ;;  %v9985_v23 = vld [vmem:[#allocation6 + $0x114] sm:$0xf0] }
 0x102   : > { %v1396_v21 = vpop.f32.mrf.mxu0  ;;  %v1410_v50 = vpop.f32.mrf.mxu1  ;;  %v7522_v22 = vld [vmem:[#allocation6 + $0x108] sm:$0xf] }
 0x103   : > { %2318 = vmatpush.bf16.msrb.mxu0 %v7391_v27  ;;  %2332 = vmatpush.bf16.msrb.mxu1 %v7519_v28  ;;  %v1411_v24 = vadd.f32 %v1410_v50, %v1396_v21  ;;  %v7843_v27 = vor.u32 %v10065_v15, %v7842_v17  ;;  %v7570_v28 = vld [vmem:[#allocation6 + $0x168] sm:$0xf]  ;;  %v10053_v17 = vld [vmem:[#allocation6 + $0x334] sm:$0xf0] }
 0x104   : > { %2395 = vmatpush.bf16.msra.mxu2 %v7763_v34  ;;  %2409 = vmatpush.bf16.msra.mxu3 %v7891_v35  ;;  %v7826_v34 = vld [vmem:[#allocation6 + $0x368] sm:$0xf]  ;;  %v10061_v35 = vld [vmem:[#allocation6 + $0x374] sm:$0xf0] }
 0x105   : > { %2347 = vmatmul.bf16.vlgmr.msrb.gmra.mxu2 %v11391_v46  ;;  %2361 = vmatmul.bf16.vlgmr.msrb.gmra.mxu3 %v11395_v47  ;;  %v1424_v25 = vpop.f32.mrf.mxu2  ;;  %v1438_v32 = vpop.f32.mrf.mxu3  ;;  %v7394_v15 = vld [vmem:[#allocation6 + $0x8] sm:$0xf] }
 0x106   : > { %2319 = vmatmul.bf16.vlgmr.msrb.gmra.mxu0 %v11409_v5  ;;  %2333 = vmatmul.bf16.vlgmr.msrb.gmra.mxu1 %v11413_v6  ;;  %v1425_v37 = vadd.f32 %v1424_v25, %v1411_v24  ;;  %v7667_v24 = vor.u32 %v10021_v13, %v7666_v10  ;;  %v7795_v25 = vor.u32 %v10053_v17, %v7794_v14  ;;  %v7748_v10 = vld [vmem:[#allocation6 + $0x2d8] sm:$0xf0]  ;;  %v10071_v13 = vld [vmem:[#allocation6 + $0x3cc] sm:$0xf] }
 0x107   : > { %2367 = vmatpush.bf16.msra.mxu0 %v7507_v29  ;;  %2381 = vmatpush.bf16.msra.mxu1 %v7635_v31  ;;  %v9997_v29 = vld [vmem:[#allocation6 + $0x174] sm:$0xf0]  ;;  %v7698_v31 = vld [vmem:[#allocation6 + $0x268] sm:$0xf]  ;;  %v7876_v14 = vld [vmem:[#allocation6 + $0x3d8] sm:$0xf0] }
 0x108   : > { %2396 = vmatpush.bf16.msra.mxu2 %v7747_v55  ;;  %2410 = vmatpush.bf16.msra.mxu3 %v7875_v56  ;;  %v7571_v40 = vor.u32 %v9997_v29, %v7570_v28  ;;  %v11469_v45 = vadd.f32 %v1438_v32, %v1425_v37  ;;  %v7682_v55 = vld [vmem:[#allocation6 + $0x248] sm:$0xf]  ;;  %v10025_v56 = vld [vmem:[#allocation6 + $0x254] sm:$0xf0]  ;;  %v7508_v32 = vld [vmem:[#allocation6 + $0xf8] sm:$0xf0] }
 0x109   : > { %v7683_v4 = vor.u32 %v10025_v56, %v7682_v55  ;;  %v7778_v28 = vld [vmem:[#allocation6 + $0x308] sm:$0xf]  ;;  %v10049_v29 = vld [vmem:[#allocation6 + $0x314] sm:$0xf0] }
 0x10a   : > { %v11471_v59 = vpop.f32.mrf.mxu0  ;;  %v11473_v60 = vpop.f32.mrf.mxu1  ;;  %v7779_v54 = vor.u32 %v10049_v29, %v7778_v28  ;;  %v7732_v28 = vld [vmem:[#allocation6 + $0x2b8] sm:$0xf0]  ;;  %v10067_v29 = vld [vmem:[#allocation6 + $0x3ac] sm:$0xf] }
 0x10b   : > { %2368 = vmatpush.bf16.msra.mxu0 %v7491_v48  ;;  %2382 = vmatpush.bf16.msra.mxu1 %v7619_v49  ;;  %v7699_v48 = vor.u32 %v10029_v33, %v7698_v31  ;;  %v7827_v49 = vor.u32 %v10061_v35, %v7826_v34  ;;  %v9979_v31 = vld [vmem:[#allocation6 + $0xec] sm:$0xf]  ;;  %v7636_v34 = vld [vmem:[#allocation6 + $0x1f8] sm:$0xf0] }
 0x10c   : > { %2397 = vmatpush.bf16.msra.mxu2 %v7731_v8  ;;  %2411 = vmatpush.bf16.msra.mxu3 %v7859_v9  ;;  %v7538_v8 = vld [vmem:[#allocation6 + $0x128] sm:$0xf]  ;;  %v9989_v9 = vld [vmem:[#allocation6 + $0x134] sm:$0xf0]  ;;  %v10011_v33 = vld [vmem:[#allocation6 + $0x1ec] sm:$0xf]  ;;  %v7511_v56 = vor.u32 %v9979_v31, %v7508_v32 }
 0x10d   : > { %v11475_v12 = vpop.f32.mrf.mxu2  ;;  %v11477_v21 = vpop.f32.mrf.mxu3  ;;  %v10043_v35 = vld [vmem:[#allocation6 + $0x2ec] sm:$0xf]  ;;  %v7639_v57 = vor.u32 %v10011_v33, %v7636_v34  ;;  %v7860_v31 = vld [vmem:[#allocation6 + $0x3b8] sm:$0xf0] }
 0x10f   : > { %2369 = vmatpush.bf16.msra.mxu0 %v7475_v1  ;;  %2383 = vmatpush.bf16.msra.mxu1 %v7603_v2  ;;  %v7410_v1 = vld [vmem:[#allocation6 + $0x28] sm:$0xf]  ;;  %v9957_v2 = vld [vmem:[#allocation6 + $0x34] sm:$0xf0] }
 0x110   : > { %2398 = vmatpush.bf16.msra.mxu2 %v7715_v26  ;;  %2412 = vmatpush.bf16.msra.mxu3 %v7843_v27  ;;  %v7411_v50 = vor.u32 %v9957_v2, %v7410_v1  ;;  %v7650_v26 = vld [vmem:[#allocation6 + $0x208] sm:$0xf]  ;;  %v10017_v27 = vld [vmem:[#allocation6 + $0x214] sm:$0xf0]  ;;  %v7895_v2 = vor.u32 %v10075_v41, %v7892_v42  ;;  %v7863_v41 = vor.u32 %v10067_v29, %v7860_v31  ;;  %v9999_v42 = vld [vmem:[#allocation6 + $0x18c] sm:$0xf] }
 0x111   : > { %v7651_v53 = vor.u32 %v10017_v27, %v7650_v26  ;;  %v7604_v26 = vld [vmem:[#allocation6 + $0x1b8] sm:$0xf0]  ;;  %v10035_v27 = vld [vmem:[#allocation6 + $0x2ac] sm:$0xf] }
 0x112   : > { %v10023_v29 = vld [vmem:[#allocation6 + $0x24c] sm:$0xf]  ;;  %v7684_v31 = vld [vmem:[#allocation6 + $0x258] sm:$0xf0] }
 0x113   : > { %2370 = vmatpush.bf16.msra.mxu0 %v7459_v16  ;;  %2384 = vmatpush.bf16.msra.mxu1 %v7587_v52  ;;  %v7539_v16 = vor.u32 %v9989_v9, %v7538_v8  ;;  %v9953_v52 = vld [vmem:[#allocation6 + $0x14] sm:$0xf0]  ;;  %v10039_v8 = vld [vmem:[#allocation6 + $0x2cc] sm:$0xf] }
 0x114   : > { %2399 = vmatpush.bf16.msra.mxu2 %v7699_v48  ;;  %2413 = vmatpush.bf16.msra.mxu3 %v7827_v49  ;;  %v7395_v37 = vor.u32 %v9953_v52, %v7394_v15  ;;  %v1452_v48 = vpop.f32.mrf.mxu0  ;;  %v1466_v49 = vpop.f32.mrf.mxu1  ;;  %v9971_v52 = vld [vmem:[#allocation6 + $0xac] sm:$0xf] }
 0x115   : > { %v1467_v55 = vadd.f32 %v1466_v49, %v1452_v48  ;;  %v1494_v17 = vpop.f32.mrf.mxu3  ;;  %v7588_v48 = vld [vmem:[#allocation6 + $0x198] sm:$0xf0]  ;;  %v10031_v49 = vld [vmem:[#allocation6 + $0x28c] sm:$0xf] }
 0x117   : > { %2371 = vmatpush.bf16.msra.mxu0 %v7443_v39  ;;  %2385 = vmatpush.bf16.msra.mxu1 %v7571_v40  ;;  %v7523_v39 = vor.u32 %v9985_v23, %v7522_v22  ;;  %v7764_v40 = vld [vmem:[#allocation6 + $0x2f8] sm:$0xf0]  ;;  %v7751_v23 = vor.u32 %v10039_v8, %v7748_v10  ;;  %v10027_v8 = vld [vmem:[#allocation6 + $0x26c] sm:$0xf] }
 0x118   : > { %2400 = vmatpush.bf16.msra.mxu2 %v7683_v4  ;;  %2414 = vmatpush.bf16.msra.mxu3 %v7811_v7  ;;  %v7767_v1 = vor.u32 %v10043_v35, %v7764_v40  ;;  %v10007_v4 = vld [vmem:[#allocation6 + $0x1cc] sm:$0xf]  ;;  %v7620_v7 = vld [vmem:[#allocation6 + $0x1d8] sm:$0xf0]  ;;  %v7735_v40 = vor.u32 %v10035_v27, %v7732_v28 }
 0x119   : > { %v7476_v22 = vld [vmem:[#allocation6 + $0xb8] sm:$0xf0]  ;;  %v10059_v10 = vld [vmem:[#allocation6 + $0x36c] sm:$0xf] }
 0x11a   : > { %v7479_v34 = vor.u32 %v9971_v52, %v7476_v22  ;;  %v9959_v22 = vld [vmem:[#allocation6 + $0x4c] sm:$0xf]  ;;  %v7556_v28 = vld [vmem:[#allocation6 + $0x158] sm:$0xf0] }
 0x11b   : > { %2372 = vmatpush.bf16.msra.mxu0 %v7427_v61  ;;  %2386 = vmatpush.bf16.msra.mxu1 %v7555_v62  ;;  %v7492_v61 = vld [vmem:[#allocation6 + $0xd8] sm:$0xf0]  ;;  %v1480_v62 = vpop.f32.mrf.mxu2  ;;  %v9991_v27 = vld [vmem:[#allocation6 + $0x14c] sm:$0xf] }
 0x11c   : > { %2401 = vmatpush.bf16.msra.mxu2 %v7667_v24  ;;  %2415 = vmatpush.bf16.msra.mxu3 %v7795_v25  ;;  %v1481_v9 = vadd.f32 %v1480_v62, %v1467_v55  ;;  %v7879_v24 = vor.u32 %v10071_v13, %v7876_v14  ;;  %v10003_v25 = vld [vmem:[#allocation6 + $0x1ac] sm:$0xf]  ;;  %v11485_v32 = vpop.f32.mrf.mxu0  ;;  %v11487_v33 = vpop.f32.mrf.mxu1  ;;  %v7844_v55 = vld [vmem:[#allocation6 + $0x398] sm:$0xf0] }
 0x11d   : > { %v7607_v35 = vor.u32 %v10003_v25, %v7604_v26  ;;  %v7444_v62 = vld [vmem:[#allocation6 + $0x78] sm:$0xf0]  ;;  %v11491_v14 = vpop.f32.mrf.mxu3 }
 0x11e   : > { %v11479_v15 = vadd.f32 %v1494_v17, %v1481_v9  ;;  %v7700_v9 = vld [vmem:[#allocation6 + $0x278] sm:$0xf0] }
 0x11f   : > { %2373 = vmatpush.bf16.msra.mxu0 %v7411_v50  ;;  %2387 = vmatpush.bf16.msra.mxu1 %v7539_v16  ;;  %v7495_v50 = vor.u32 %v9975_v58, %v7492_v61  ;;  %v7623_v16 = vor.u32 %v10007_v4, %v7620_v7  ;;  %v9963_v61 = vld [vmem:[#allocation6 + $0x6c] sm:$0xf]  ;;  %v7572_v7 = vld [vmem:[#allocation6 + $0x178] sm:$0xf0]  ;;  %v7703_v25 = vor.u32 %v10027_v8, %v7700_v9 }
 0x120   : > { %2402 = vmatpush.bf16.msra.mxu2 %v7651_v53  ;;  %2416 = vmatpush.bf16.msra.mxu3 %v7779_v54  ;;  %v7716_v53 = vld [vmem:[#allocation6 + $0x298] sm:$0xf0]  ;;  %v10063_v54 = vld [vmem:[#allocation6 + $0x38c] sm:$0xf] }
 0x121   : > { %v9995_v4 = vld [vmem:[#allocation6 + $0x16c] sm:$0xf]  ;;  %v7828_v13 = vld [vmem:[#allocation6 + $0x378] sm:$0xf0] }
 0x122   : > { %v7575_v52 = vor.u32 %v9995_v4, %v7572_v7  ;;  %v7831_v26 = vor.u32 %v10059_v10, %v7828_v13  ;;  %v7396_v9 = vld [vmem:[#allocation6 + $0x18] sm:$0xf0]  ;;  %v9983_v10 = vld [vmem:[#allocation6 + $0x10c] sm:$0xf] }
 0x123   : > { %2374 = vmatpush.bf16.msra.mxu0 %v7395_v37  ;;  %2388 = vmatpush.bf16.msra.mxu1 %v7523_v39  ;;  %v9967_v37 = vld [vmem:[#allocation6 + $0x8c] sm:$0xf]  ;;  %v7460_v39 = vld [vmem:[#allocation6 + $0x98] sm:$0xf0]  ;;  %v11489_v58 = vpop.f32.mrf.mxu2 }
 0x124   : > { %2451 = vmatpush.bf16.msrb.mxu2 %v7767_v1  ;;  %2465 = vmatpush.bf16.msrb.mxu3 %v7895_v2  ;;  %v7719_v1 = vor.u32 %v10031_v49, %v7716_v53  ;;  %v7847_v2 = vor.u32 %v10063_v54, %v7844_v55  ;;  %v1508_v17 = vpop.f32.mrf.mxu0  ;;  %v9987_v53 = vld [vmem:[#allocation6 + $0x12c] sm:$0xf]  ;;  %v7540_v54 = vld [vmem:[#allocation6 + $0x138] sm:$0xf0] }
 0x125   : > { %2403 = vmatmul.bf16.vlgmr.msra.gmra.mxu2 %v11391_v46  ;;  %2417 = vmatmul.bf16.vlgmr.msra.gmra.mxu3 %v11395_v47  ;;  %v10019_v55 = vld [vmem:[#allocation6 + $0x22c] sm:$0xf]  ;;  %v7543_v8 = vor.u32 %v9987_v53, %v7540_v54  ;;  %v7524_v13 = vld [vmem:[#allocation6 + $0x118] sm:$0xf0] }
 0x126   : > { %2375 = vmatmul.bf16.vlgmr.msra.gmra.mxu0 %v11409_v5  ;;  %2389 = vmatmul.bf16.vlgmr.msra.gmra.mxu1 %v11413_v6 }
 0x127   : > { %2423 = vmatpush.bf16.msrb.mxu0 %v7511_v56  ;;  %2437 = vmatpush.bf16.msrb.mxu1 %v7639_v57  ;;  %v7463_v56 = vor.u32 %v9967_v37, %v7460_v39  ;;  %v7591_v57 = vor.u32 %v9999_v42, %v7588_v48  ;;  %v7559_v39 = vor.u32 %v9991_v27, %v7556_v28  ;;  %v10268_v27 = vld [vmem:[#allocation6 + $0x9ec] sm:$0xf0]  ;;  %v8266_v28 = vld [vmem:[#allocation6 + $0xae0] sm:$0xf] }
 0x128   : > { %2452 = vmatpush.bf16.msrb.mxu2 %v7751_v23  ;;  %2466 = vmatpush.bf16.msrb.mxu3 %v7879_v24  ;;  %v7428_v23 = vld [vmem:[#allocation6 + $0x58] sm:$0xf0]  ;;  %v7687_v48 = vor.u32 %v10023_v29, %v7684_v31  ;;  %v7527_v31 = vor.u32 %v9983_v10, %v7524_v13 }
 0x129   : > { %v7431_v37 = vor.u32 %v9959_v22, %v7428_v23  ;;  %v10047_v22 = vld [vmem:[#allocation6 + $0x30c] sm:$0xf]  ;;  %v7780_v23 = vld [vmem:[#allocation6 + $0x318] sm:$0xf0] }
 0x12b   : > { %2424 = vmatpush.bf16.msrb.mxu0 %v7495_v50  ;;  %2438 = vmatpush.bf16.msrb.mxu1 %v7623_v16  ;;  %v1522_v50 = vpop.f32.mrf.mxu1  ;;  %v7447_v16 = vor.u32 %v9963_v61, %v7444_v62  ;;  %v1536_v42 = vpop.f32.mrf.mxu2  ;;  %v10051_v61 = vld [vmem:[#allocation6 + $0x32c] sm:$0xf]  ;;  %v7796_v62 = vld [vmem:[#allocation6 + $0x338] sm:$0xf0] }
 0x12c   : > { %2453 = vmatpush.bf16.msrb.mxu2 %v7735_v40  ;;  %2467 = vmatpush.bf16.msrb.mxu3 %v7863_v41  ;;  %v1523_v24 = vadd.f32 %v1522_v50, %v1508_v17  ;;  %v9955_v40 = vld [vmem:[#allocation6 + $0x2c] sm:$0xf]  ;;  %v7412_v41 = vld [vmem:[#allocation6 + $0x38] sm:$0xf0]  ;;  %v7799_v50 = vor.u32 %v10051_v61, %v7796_v62  ;;  %v10296_v61 = vld [vmem:[#allocation6 + $0xacc] sm:$0xf0] }
 0x12d   : > { %v7415_v7 = vor.u32 %v9955_v40, %v7412_v41  ;;  %v7783_v40 = vor.u32 %v10047_v22, %v7780_v23  ;;  %v8378_v62 = vld [vmem:[#allocation6 + $0xbc0] sm:$0xf]  ;;  %v10324_v23 = vld [vmem:[#allocation6 + $0xbac] sm:$0xf0] }
 0x12e   : > { %v8362_v22 = vld [vmem:[#allocation6 + $0xba0] sm:$0xf] }
 0x12f   : > { %2425 = vmatpush.bf16.msrb.mxu0 %v7479_v34  ;;  %2439 = vmatpush.bf16.msrb.mxu1 %v7607_v35  ;;  %v10055_v34 = vld [vmem:[#allocation6 + $0x34c] sm:$0xf]  ;;  %v7812_v35 = vld [vmem:[#allocation6 + $0x358] sm:$0xf0] }
 0x130   : > { %2454 = vmatpush.bf16.msrb.mxu2 %v7719_v1  ;;  %2468 = vmatpush.bf16.msrb.mxu3 %v7847_v2  ;;  %v7815_v49 = vor.u32 %v10055_v34, %v7812_v35  ;;  %v1550_v1 = vpop.f32.mrf.mxu3  ;;  %v9951_v2 = vld [vmem:[#allocation6 + $0xc] sm:$0xf]  ;;  %v10300_v34 = vld [vmem:[#allocation6 + $0xaec] sm:$0xf0]  ;;  %v8394_v35 = vld [vmem:[#allocation6 + $0xbe0] sm:$0xf] }
 0x131   : > { %v7399_v29 = vor.u32 %v9951_v2, %v7396_v9  ;;  %v8267_v53 = vor.u32 %v10300_v34, %v8266_v28  ;;  %v10228_v9 = vld [vmem:[#allocation6 + $0x8ac] sm:$0xf0]  ;;  %v7962_v28 = vld [vmem:[#allocation6 + $0x880] sm:$0xf] }
 0x132   : > { %v10256_v34 = vld [vmem:[#allocation6 + $0x98c] sm:$0xf0] }
 0x133   : > { %2426 = vmatpush.bf16.msrb.mxu0 %v7463_v56  ;;  %2440 = vmatpush.bf16.msrb.mxu1 %v7591_v57  ;;  %v1537_v56 = vadd.f32 %v1536_v42, %v1523_v24  ;;  %v7668_v57 = vld [vmem:[#allocation6 + $0x238] sm:$0xf0]  ;;  %v8010_v24 = vld [vmem:[#allocation6 + $0x8e0] sm:$0xf] }
 0x134   : > { %2455 = vmatpush.bf16.msrb.mxu2 %v7703_v25  ;;  %2469 = vmatpush.bf16.msrb.mxu3 %v7831_v26  ;;  %v7671_v17 = vor.u32 %v10019_v55, %v7668_v57  ;;  %v10236_v25 = vld [vmem:[#allocation6 + $0x8ec] sm:$0xf0]  ;;  %v8138_v26 = vld [vmem:[#allocation6 + $0x9e0] sm:$0xf] }
 0x135   : > { %v11493_v4 = vadd.f32 %v1550_v1, %v1537_v56  ;;  %v8011_v41 = vor.u32 %v10236_v25, %v8010_v24  ;;  %v8139_v42 = vor.u32 %v10268_v27, %v8138_v26  ;;  %v8122_v55 = vld [vmem:[#allocation6 + $0x9c0] sm:$0xf]  ;;  %v10264_v56 = vld [vmem:[#allocation6 + $0x9cc] sm:$0xf0]  ;;  %v11497_v24 = vpop.f32.mrf.mxu0  ;;  %v11499_v25 = vpop.f32.mrf.mxu1 }
 0x136   : > { %v8250_v57 = vld [vmem:[#allocation6 + $0xac0] sm:$0xf]  ;;  %v10328_v1 = vld [vmem:[#allocation6 + $0xbcc] sm:$0xf0] }
 0x137   : > { %2427 = vmatpush.bf16.msrb.mxu0 %v7447_v16  ;;  %2441 = vmatpush.bf16.msrb.mxu1 %v7575_v52  ;;  %v10015_v16 = vld [vmem:[#allocation6 + $0x20c] sm:$0xf]  ;;  %v7652_v52 = vld [vmem:[#allocation6 + $0x218] sm:$0xf0]  ;;  %v8251_v10 = vor.u32 %v10296_v61, %v8250_v57  ;;  %v8379_v13 = vor.u32 %v10328_v1, %v8378_v62  ;;  %v10284_v61 = vld [vmem:[#allocation6 + $0xa6c] sm:$0xf0] }
 0x138   : > { %2456 = vmatpush.bf16.msrb.mxu2 %v7687_v48  ;;  %2470 = vmatpush.bf16.msrb.mxu3 %v7815_v49  ;;  %v7994_v48 = vld [vmem:[#allocation6 + $0x8c0] sm:$0xf]  ;;  %v10232_v49 = vld [vmem:[#allocation6 + $0x8cc] sm:$0xf0]  ;;  %v11505_v57 = vpop.f32.mrf.mxu3 }
 0x139   : > { %v7995_v2 = vor.u32 %v10232_v49, %v7994_v48  ;;  %v10220_v48 = vld [vmem:[#allocation6 + $0x86c] sm:$0xf0]  ;;  %v8330_v62 = vld [vmem:[#allocation6 + $0xb60] sm:$0xf] }
 0x13a   : > { %v10316_v1 = vld [vmem:[#allocation6 + $0xb6c] sm:$0xf0] }
 0x13b   : > { %2428 = vmatpush.bf16.msrb.mxu0 %v7431_v37  ;;  %2442 = vmatpush.bf16.msrb.mxu1 %v7559_v39  ;;  %v10332_v37 = vld [vmem:[#allocation6 + $0xbec] sm:$0xf0]  ;;  %v7655_v39 = vor.u32 %v10015_v16, %v7652_v52  ;;  %v8234_v16 = vld [vmem:[#allocation6 + $0xaa0] sm:$0xf] }
 0x13c   : > { %2457 = vmatpush.bf16.msrb.mxu2 %v7671_v17  ;;  %2471 = vmatpush.bf16.msrb.mxu3 %v7799_v50  ;;  %v8395_v54 = vor.u32 %v10332_v37, %v8394_v35  ;;  %v8106_v17 = vld [vmem:[#allocation6 + $0x9a0] sm:$0xf]  ;;  %v10260_v50 = vld [vmem:[#allocation6 + $0x9ac] sm:$0xf0] }
 0x13d   : > { %v10292_v52 = vld [vmem:[#allocation6 + $0xaac] sm:$0xf0]  ;;  %v8107_v27 = vor.u32 %v10260_v50, %v8106_v17  ;;  %v8218_v35 = vld [vmem:[#allocation6 + $0xa80] sm:$0xf] }
 0x13e   : > { %v10288_v37 = vld [vmem:[#allocation6 + $0xa8c] sm:$0xf0]  ;;  %v8058_v50 = vld [vmem:[#allocation6 + $0x940] sm:$0xf] }
 0x13f   : > { %2429 = vmatpush.bf16.msrb.mxu0 %v7415_v7  ;;  %2443 = vmatpush.bf16.msrb.mxu1 %v7543_v8  ;;  %v8123_v7 = vor.u32 %v10264_v56, %v8122_v55  ;;  %v7978_v8 = vld [vmem:[#allocation6 + $0x8a0] sm:$0xf]  ;;  %v8219_v49 = vor.u32 %v10288_v37, %v8218_v35  ;;  %v10252_v55 = vld [vmem:[#allocation6 + $0x96c] sm:$0xf0] }
 0x140   : > { %2458 = vmatpush.bf16.msrb.mxu2 %v7655_v39  ;;  %2472 = vmatpush.bf16.msrb.mxu3 %v7783_v40  ;;  %v7979_v26 = vor.u32 %v10228_v9, %v7978_v8  ;;  %v8346_v39 = vld [vmem:[#allocation6 + $0xb80] sm:$0xf]  ;;  %v10320_v40 = vld [vmem:[#allocation6 + $0xb8c] sm:$0xf0] }
 0x141   : > { %v8202_v56 = vld [vmem:[#allocation6 + $0xa60] sm:$0xf]  ;;  %v10216_v17 = vld [vmem:[#allocation6 + $0x84c] sm:$0xf0] }
 0x143   : > { %2430 = vmatpush.bf16.msrb.mxu0 %v7399_v29  ;;  %2444 = vmatpush.bf16.msrb.mxu1 %v7527_v31  ;;  %v10224_v29 = vld [vmem:[#allocation6 + $0x88c] sm:$0xf0]  ;;  %v8090_v31 = vld [vmem:[#allocation6 + $0x980] sm:$0xf] }
 0x144   : > { %3305 = vmatpush.bf16.msra.mxu2 %v8267_v53  ;;  %3319 = vmatpush.bf16.msra.mxu3 %v8395_v54  ;;  %v8347_v53 = vor.u32 %v10320_v40, %v8346_v39  ;;  %v8074_v54 = vld [vmem:[#allocation6 + $0x960] sm:$0xf]  ;;  %v10244_v40 = vld [vmem:[#allocation6 + $0x92c] sm:$0xf0] }
 0x145   : > { %2459 = vmatmul.bf16.vlgmr.msrb.gmra.mxu2 %v11391_v46  ;;  %2473 = vmatmul.bf16.vlgmr.msrb.gmra.mxu3 %v11395_v47  ;;  %v8235_v46 = vor.u32 %v10292_v52, %v8234_v16  ;;  %v7963_v47 = vor.u32 %v10224_v29, %v7962_v28  ;;  %v8203_v16 = vor.u32 %v10284_v61, %v8202_v56  ;;  %v8314_v28 = vld [vmem:[#allocation6 + $0xb40] sm:$0xf]  ;;  %v10312_v29 = vld [vmem:[#allocation6 + $0xb4c] sm:$0xf0] }
 0x146   : > { %2431 = vmatmul.bf16.vlgmr.msrb.gmra.mxu0 %v11409_v5  ;;  %2445 = vmatmul.bf16.vlgmr.msrb.gmra.mxu1 %v11413_v6  ;;  %v8363_v5 = vor.u32 %v10324_v23, %v8362_v22  ;;  %v8091_v6 = vor.u32 %v10256_v34, %v8090_v31  ;;  %v8331_v52 = vor.u32 %v10316_v1, %v8330_v62  ;;  %v10248_v22 = vld [vmem:[#allocation6 + $0x94c] sm:$0xf0]  ;;  %v8186_v23 = vld [vmem:[#allocation6 + $0xa40] sm:$0xf]  ;;  %v2479_v34 = vld [vmem:[#allocation2 + $0x18] sm:$0xee] }
 0x147   : > { %3277 = vmatpush.bf16.msra.mxu0 %v8011_v41  ;;  %3291 = vmatpush.bf16.msra.mxu1 %v8139_v42  ;;  %v11503_v41 = vpop.f32.mrf.mxu2  ;;  %v7946_v42 = vld [vmem:[#allocation6 + $0x860] sm:$0xf]  ;;  %v8059_v37 = vor.u32 %v10248_v22, %v8058_v50  ;;  %v10208_v1 = vld [vmem:[#allocation6 + $0x80c] sm:$0xf0] }
 0x148   : > { %3306 = vmatpush.bf16.msra.mxu2 %v8251_v10  ;;  %3320 = vmatpush.bf16.msra.mxu3 %v8379_v13  ;;  %v7947_v9 = vor.u32 %v10220_v48, %v7946_v42  ;;  %v8075_v10 = vor.u32 %v10252_v55, %v8074_v54  ;;  %v7930_v13 = vld [vmem:[#allocation6 + $0x840] sm:$0xf]  ;;  %v10308_v55 = vld [vmem:[#allocation6 + $0xb2c] sm:$0xf0]  ;;  %v1606_v56 = vpop.f32.mrf.mxu3 }
 0x149   : > { %v7931_v35 = vor.u32 %v10216_v17, %v7930_v13  ;;  %v8042_v39 = vld [vmem:[#allocation6 + $0x920] sm:$0xf]  ;;  %v10240_v13 = vld [vmem:[#allocation6 + $0x90c] sm:$0xf0] }
 0x14a   : > { %v8298_v54 = vld [vmem:[#allocation6 + $0xb20] sm:$0xf]  ;;  %v10304_v22 = vld [vmem:[#allocation6 + $0xb0c] sm:$0xf0] }
 0x14b   : > { %3278 = vmatpush.bf16.msra.mxu0 %v7995_v2  ;;  %3292 = vmatpush.bf16.msra.mxu1 %v8123_v7  ;;  %v1564_v2 = vpop.f32.mrf.mxu0  ;;  %v1578_v7 = vpop.f32.mrf.mxu1  ;;  %v7898_v62 = vld [vmem:[#allocation6 + $0x800] sm:$0xf] }
 0x14c   : > { %3307 = vmatpush.bf16.msra.mxu2 %v8235_v46  ;;  %3321 = vmatpush.bf16.msra.mxu3 %v8363_v5  ;;  %v1579_v8 = vadd.f32 %v1578_v7, %v1564_v2  ;;  %v7914_v46 = vld [vmem:[#allocation6 + $0x820] sm:$0xf]  ;;  %v10212_v5 = vld [vmem:[#allocation6 + $0x82c] sm:$0xf0] }
 0x14d   : > { %v8026_v2 = vld [vmem:[#allocation6 + $0x900] sm:$0xf]  ;;  %v7915_v50 = vor.u32 %v10212_v5, %v7914_v46 }
 0x14e   : > { %v8154_v17 = vld [vmem:[#allocation6 + $0xa00] sm:$0xf] }
 0x14f   : > { %3279 = vmatpush.bf16.msra.mxu0 %v7979_v26  ;;  %3293 = vmatpush.bf16.msra.mxu1 %v8107_v27  ;;  %v2480_v26 = vld [vmem:[#allocation2 + $0x20] sm:$0xee]  ;;  %v1592_v31 = vpop.f32.mrf.mxu2 }
 0x150   : > { %3308 = vmatpush.bf16.msra.mxu2 %v8219_v49  ;;  %3322 = vmatpush.bf16.msra.mxu3 %v8347_v53  ;;  %v10280_v27 = vld [vmem:[#allocation6 + $0xa4c] sm:$0xf0]  ;;  %v2614_v42 = vunpack.c.l.b16 %v2480_v26  ;;  %v8315_v49 = vor.u32 %v10312_v29, %v8314_v28  ;;  %v2615_v61 = vunpack.c.h.b16 %v2480_v26  ;;  %v8299_v28 = vor.u32 %v10308_v55, %v8298_v54  ;;  %v8012_v29 = vld [vmem:[#allocation6 + $0x8f0] sm:$0xf0] }
 0x151   : > { %v8187_v48 = vor.u32 %v10280_v27, %v8186_v23  ;;  %v10276_v53 = vld [vmem:[#allocation6 + $0xa2c] sm:$0xf0]  ;;  %v10234_v23 = vld [vmem:[#allocation6 + $0x8e4] sm:$0xf]  ;;  %v7996_v54 = vld [vmem:[#allocation6 + $0x8d0] sm:$0xf0] }
 0x152   : > { %v2618_v26 = vpack.c.b16 %v680_v36, %v2614_v42  ;;  %v10298_v36 = vld [vmem:[#allocation6 + $0xae4] sm:$0xf]  ;;  %v8015_v42 = vor.u32 %v10234_v23, %v8012_v29 }
 0x153   : > { %3280 = vmatpush.bf16.msra.mxu0 %v7963_v47  ;;  %3294 = vmatpush.bf16.msra.mxu1 %v8091_v6  ;;  %v8170_v47 = vld [vmem:[#allocation6 + $0xa20] sm:$0xf]  ;;  %v1593_v6 = vadd.f32 %v1592_v31, %v1579_v8  ;;  %v10272_v8 = vld [vmem:[#allocation6 + $0xa0c] sm:$0xf0]  ;;  %v10266_v31 = vld [vmem:[#allocation6 + $0x9e4] sm:$0xf] }
 0x154   : > { %3309 = vmatpush.bf16.msra.mxu2 %v8203_v16  ;;  %3323 = vmatpush.bf16.msra.mxu3 %v8331_v52  ;;  %v8043_v16 = vor.u32 %v10244_v40, %v8042_v39  ;;  %v8282_v52 = vld [vmem:[#allocation6 + $0xb00] sm:$0xf]  ;;  %v8171_v27 = vor.u32 %v10276_v53, %v8170_v47  ;;  %v8155_v39 = vor.u32 %v10272_v8, %v8154_v17  ;;  %v8268_v40 = vld [vmem:[#allocation6 + $0xaf0] sm:$0xf0]  ;;  %v2627_v30 = vrot.slane %v2618_v26, 1  ;;  %v11521_v17 = vpop.f32.mrf.mxu0 }
 0x155   : > { %v11507_v7 = vadd.f32 %v1606_v56, %v1593_v6  ;;  %v2619_v6 = vpack.c.b16 %v681_v38, %v2615_v61  ;;  %v8283_v47 = vor.u32 %v10304_v22, %v8282_v52  ;;  %v8396_v53 = vld [vmem:[#allocation6 + $0xbf0] sm:$0xf0]  ;;  %v2628_v38 = vrot.slane %v11419_v18, 1  ;;  %v10326_v8 = vld [vmem:[#allocation6 + $0xbc4] sm:$0xf] }
 0x156   : > { %v2622_v56 = vrot.slane %v11427_v43, 1  ;;  %v8252_v18 = vld [vmem:[#allocation6 + $0xad0] sm:$0xf0]  ;;  %v10226_v26 = vld [vmem:[#allocation6 + $0x8a4] sm:$0xf] }
 0x157   : > { %3281 = vmatpush.bf16.msra.mxu0 %v7947_v9  ;;  %3295 = vmatpush.bf16.msra.mxu1 %v8075_v10  ;;  %v2612_v9 = vunpack.c.l.b16 %v2479_v34  ;;  %v2613_v10 = vunpack.c.h.b16 %v2479_v34  ;;  %v8140_v34 = vld [vmem:[#allocation6 + $0x9f0] sm:$0xf0]  ;;  %v2630_v51 = vrot.slane %v2619_v6, 1  ;;  %v11526_v43 = vsel %vm2620_vm4, %v2627_v30, %v2628_v38  ;;  %v10290_v6 = vld [vmem:[#allocation6 + $0xaa4] sm:$0xf] }
 0x158   : > { %3310 = vmatpush.bf16.msra.mxu2 %v8187_v48  ;;  %3324 = vmatpush.bf16.msra.mxu3 %v8315_v49  ;;  %v8143_v48 = vor.u32 %v10266_v31, %v8140_v34  ;;  %v10330_v49 = vld [vmem:[#allocation6 + $0xbe4] sm:$0xf]  ;;  %v8108_v34 = vld [vmem:[#allocation6 + $0x9b0] sm:$0xf0] }
 0x159   : > { %v2616_v46 = vpack.c.b16 %v678_v63, %v2612_v9  ;;  %v2617_v5 = vpack.c.b16 %v679_v0, %v2613_v10  ;;  %v2631_v63 = vrot.slane %v11421_v20, 1  ;;  %v10230_v0 = vld [vmem:[#allocation6 + $0x8c4] sm:$0xf]  ;;  %v8124_v10 = vld [vmem:[#allocation6 + $0x9d0] sm:$0xf0] }
 0x15a   : > { %v10262_v9 = vld [vmem:[#allocation6 + $0x9c4] sm:$0xf]  ;;  %v8380_v20 = vld [vmem:[#allocation6 + $0xbd0] sm:$0xf0] }
 0x15b   : > { %3282 = vmatpush.bf16.msra.mxu0 %v7931_v35  ;;  %3296 = vmatpush.bf16.msra.mxu1 %v8059_v37  ;;  %v7899_v35 = vor.u32 %v10208_v1, %v7898_v62  ;;  %v8027_v37 = vor.u32 %v10240_v13, %v8026_v2  ;;  %v2621_v55 = vrot.slane %v2616_v46, 1  ;;  %v2624_v61 = vrot.slane %v2617_v5, 1  ;;  %v10294_v13 = vld [vmem:[#allocation6 + $0xac4] sm:$0xf]  ;;  %v8236_v46 = vld [vmem:[#allocation6 + $0xab0] sm:$0xf0] }
 0x15c   : > { %3311 = vmatpush.bf16.msra.mxu2 %v8171_v27  ;;  %3325 = vmatpush.bf16.msra.mxu3 %v8299_v28  ;;  %v2625_v62 = vrot.slane %v11429_v44, 1  ;;  %v8271_v1 = vor.u32 %v10298_v36, %v8268_v40  ;;  %v8399_v2 = vor.u32 %v10330_v49, %v8396_v53  ;;  %v11529_v44 = vsel %vm2620_vm4, %v2630_v51, %v2631_v63  ;;  %v7980_v27 = vld [vmem:[#allocation6 + $0x8b0] sm:$0xf0]  ;;  %v10258_v31 = vld [vmem:[#allocation6 + $0x9a4] sm:$0xf] }
 0x15d   : > { %v8127_v52 = vor.u32 %v10262_v9, %v8124_v10  ;;  %v11532_v22 = vsel %vm2620_vm4, %v2621_v55, %v2622_v56  ;;  %v8255_v28 = vor.u32 %v10294_v13, %v8252_v18  ;;  %v8383_v29 = vor.u32 %v10326_v8, %v8380_v20  ;;  %v10322_v5 = vld [vmem:[#allocation6 + $0xba4] sm:$0xf]  ;;  %v8092_v30 = vld [vmem:[#allocation6 + $0x990] sm:$0xf0] }
 0x15e   : > { %v11535_v23 = vsel %vm2620_vm4, %v2624_v61, %v2625_v62  ;;  %v7983_v36 = vor.u32 %v10226_v26, %v7980_v27  ;;  %v8111_v40 = vor.u32 %v10258_v31, %v8108_v34  ;;  %v10254_v53 = vld [vmem:[#allocation6 + $0x984] sm:$0xf]  ;;  %v8220_v51 = vld [vmem:[#allocation6 + $0xa90] sm:$0xf0] }
 0x15f   : > { %3283 = vmatpush.bf16.msra.mxu0 %v7915_v50  ;;  %3297 = vmatpush.bf16.msra.mxu1 %v8043_v16  ;;  %v11523_v50 = vpop.f32.mrf.mxu1  ;;  %v7999_v16 = vor.u32 %v10230_v0, %v7996_v54  ;;  %v10286_v38 = vld [vmem:[#allocation6 + $0xa84] sm:$0xf]  ;;  %v8348_v0 = vld [vmem:[#allocation6 + $0xb90] sm:$0xf0]  ;;  %v8095_v56 = vor.u32 %v10254_v53, %v8092_v30 }
 0x160   : > { %3312 = vmatpush.bf16.msra.mxu2 %v8155_v39  ;;  %3326 = vmatpush.bf16.msra.mxu3 %v8283_v47  ;;  %v11543_v39 = vpop.f32.mrf.mxu3  ;;  %v10222_v47 = vld [vmem:[#allocation6 + $0x884] sm:$0xf]  ;;  %v8223_v9 = vor.u32 %v10286_v38, %v8220_v51  ;;  %v8076_v18 = vld [vmem:[#allocation6 + $0x970] sm:$0xf0] }
 0x161   : > { %v10318_v63 = vld [vmem:[#allocation6 + $0xb84] sm:$0xf]  ;;  %v8204_v20 = vld [vmem:[#allocation6 + $0xa70] sm:$0xf0] }
 0x162   : > { %v10218_v62 = vld [vmem:[#allocation6 + $0x864] sm:$0xf]  ;;  %v8351_v10 = vor.u32 %v10318_v63, %v8348_v0  ;;  %v7932_v31 = vld [vmem:[#allocation6 + $0x850] sm:$0xf0] }
 0x163   : > { %3284 = vmatpush.bf16.msra.mxu0 %v7899_v35  ;;  %3298 = vmatpush.bf16.msra.mxu1 %v8027_v37  ;;  %v8364_v35 = vld [vmem:[#allocation6 + $0xbb0] sm:$0xf0]  ;;  %v11541_v37 = vpop.f32.mrf.mxu2  ;;  %v2264_v54 = vpop.f32.mrf.mxu0  ;;  %v10250_v13 = vld [vmem:[#allocation6 + $0x964] sm:$0xf] }
 0x164   : > { %3361 = vmatpush.bf16.msrb.mxu2 %v8271_v1  ;;  %3375 = vmatpush.bf16.msrb.mxu3 %v8399_v2  ;;  %v8367_v49 = vor.u32 %v10322_v5, %v8364_v35  ;;  %v7948_v1 = vld [vmem:[#allocation6 + $0x870] sm:$0xf0]  ;;  %v2265_v2 = vadd.f32 %v2264_v54, %v11469_v45  ;;  %v10282_v8 = vld [vmem:[#allocation6 + $0xa64] sm:$0xf] }
 0x165   : > { %3313 = vmatmul.bf16.vlgmr.msra.gmra.mxu2 %v11526_v43  ;;  %3327 = vmatmul.bf16.vlgmr.msra.gmra.mxu3 %v11529_v44  ;;  %v7951_v27 = vor.u32 %v10218_v62, %v7948_v1  ;;  %v8207_v34 = vor.u32 %v10282_v8, %v8204_v20  ;;  %v10246_v5 = vld [vmem:[#allocation6 + $0x944] sm:$0xf]  ;;  %v8060_v35 = vld [vmem:[#allocation6 + $0x950] sm:$0xf0] }
 0x166   : > { %3285 = vmatmul.bf16.vlgmr.msra.gmra.mxu0 %v11532_v22  ;;  %3299 = vmatmul.bf16.vlgmr.msra.gmra.mxu1 %v11535_v23  ;;  %v8063_v30 = vor.u32 %v10246_v5, %v8060_v35  ;;  %v10210_v38 = vld [vmem:[#allocation6 + $0x824] sm:$0xf]  ;;  %v7916_v51 = vld [vmem:[#allocation6 + $0x830] sm:$0xf0]  ;;  %v10301_v35 = vld [vmem:[#allocation6 + $0xaf4] sm:$0xf0] }
 0x167   : > { %3333 = vmatpush.bf16.msrb.mxu0 %v8015_v42  ;;  %3347 = vmatpush.bf16.msrb.mxu1 %v8143_v48  ;;  %v7964_v42 = vld [vmem:[#allocation6 + $0x890] sm:$0xf0]  ;;  %v8239_v48 = vor.u32 %v10290_v6, %v8236_v46  ;;  %v2278_v61 = vpop.f32.mrf.mxu1  ;;  %v10242_v54 = vld [vmem:[#allocation6 + $0x924] sm:$0xf] }
 0x168   : > { %3362 = vmatpush.bf16.msrb.mxu2 %v8255_v28  ;;  %3376 = vmatpush.bf16.msrb.mxu3 %v8383_v29  ;;  %v7967_v55 = vor.u32 %v10222_v47, %v7964_v42  ;;  %v2279_v26 = vadd.f32 %v2278_v61, %v2265_v2  ;;  %v8079_v28 = vor.u32 %v10250_v13, %v8076_v18  ;;  %v10214_v29 = vld [vmem:[#allocation6 + $0x844] sm:$0xf]  ;;  %v2306_v46 = vpop.f32.mrf.mxu3  ;;  %v8188_v47 = vld [vmem:[#allocation6 + $0xa50] sm:$0xf0] }
 0x169   : > { %v10310_v42 = vld [vmem:[#allocation6 + $0xb44] sm:$0xf]  ;;  %v7935_v53 = vor.u32 %v10214_v29, %v7932_v31  ;;  %v8172_v61 = vld [vmem:[#allocation6 + $0xa30] sm:$0xf0]  ;;  %v8018_v29 = vld [vmem:[#allocation6 + $0x8e8] sm:$0xf] }
 0x16a   : > { %v10306_v62 = vld [vmem:[#allocation6 + $0xb24] sm:$0xf]  ;;  %v8300_v1 = vld [vmem:[#allocation6 + $0xb30] sm:$0xf0]  ;;  %v10237_v31 = vld [vmem:[#allocation6 + $0x8f4] sm:$0xf0] }
 0x16b   : > { %3334 = vmatpush.bf16.msrb.mxu0 %v7999_v16  ;;  %3348 = vmatpush.bf16.msrb.mxu1 %v8127_v52  ;;  %v10314_v16 = vld [vmem:[#allocation6 + $0xb64] sm:$0xf]  ;;  %v8332_v52 = vld [vmem:[#allocation6 + $0xb70] sm:$0xf0]  ;;  %v2292_v45 = vpop.f32.mrf.mxu2 }
 0x16c   : > { %3363 = vmatpush.bf16.msrb.mxu2 %v8239_v48  ;;  %3377 = vmatpush.bf16.msrb.mxu3 %v8367_v49  ;;  %v8335_v6 = vor.u32 %v10314_v16, %v8332_v52  ;;  %v8316_v48 = vld [vmem:[#allocation6 + $0xb50] sm:$0xf0]  ;;  %v10206_v2 = vld [vmem:[#allocation6 + $0x804] sm:$0xf]  ;;  %v8303_v16 = vor.u32 %v10306_v62, %v8300_v1  ;;  %v10329_v62 = vld [vmem:[#allocation6 + $0xbd4] sm:$0xf0]  ;;  %v11548_v1 = vpop.f32.mrf.mxu0 }
 0x16d   : > { %v8319_v0 = vor.u32 %v10310_v42, %v8316_v48  ;;  %v7900_v13 = vld [vmem:[#allocation6 + $0x810] sm:$0xf0]  ;;  %v10238_v18 = vld [vmem:[#allocation6 + $0x904] sm:$0xf]  ;;  %v8019_v48 = vor.u32 %v10237_v31, %v8018_v29  ;;  %v10325_v29 = vld [vmem:[#allocation6 + $0xbb4] sm:$0xf0] }
 0x16e   : > { %v8028_v8 = vld [vmem:[#allocation6 + $0x910] sm:$0xf0]  ;;  %v10270_v52 = vld [vmem:[#allocation6 + $0xa04] sm:$0xf] }
 0x16f   : > { %3335 = vmatpush.bf16.msrb.mxu0 %v7983_v36  ;;  %3349 = vmatpush.bf16.msrb.mxu1 %v8111_v40  ;;  %v10278_v36 = vld [vmem:[#allocation6 + $0xa44] sm:$0xf]  ;;  %v2293_v40 = vadd.f32 %v2292_v45, %v2279_v26  ;;  %v8156_v26 = vld [vmem:[#allocation6 + $0xa10] sm:$0xf0]  ;;  %v8274_v45 = vld [vmem:[#allocation6 + $0xae8] sm:$0xf]  ;;  %v8031_v5 = vor.u32 %v10238_v18, %v8028_v8 }
 0x170   : > { %3364 = vmatpush.bf16.msrb.mxu2 %v8223_v9  ;;  %3378 = vmatpush.bf16.msrb.mxu3 %v8351_v10  ;;  %v8191_v63 = vor.u32 %v10278_v36, %v8188_v47  ;;  %v7919_v9 = vor.u32 %v10210_v38, %v7916_v51  ;;  %v8402_v36 = vld [vmem:[#allocation6 + $0xbe8] sm:$0xf]  ;;  %v8159_v47 = vor.u32 %v10270_v52, %v8156_v26  ;;  %v10233_v38 = vld [vmem:[#allocation6 + $0x8d4] sm:$0xf0] }
 0x171   : > { %v11546_v49 = vadd.f32 %v2306_v46, %v2293_v40  ;;  %v7903_v46 = vor.u32 %v10206_v2, %v7900_v13  ;;  %v10333_v40 = vld [vmem:[#allocation6 + $0xbf4] sm:$0xf0]  ;;  %v8275_v51 = vor.u32 %v10301_v35, %v8274_v45  ;;  %v11550_v2 = vpop.f32.mrf.mxu1  ;;  %v7986_v13 = vld [vmem:[#allocation6 + $0x8a8] sm:$0xf] }
 0x172   : > { %v10229_v18 = vld [vmem:[#allocation6 + $0x8b4] sm:$0xf0]  ;;  %v8242_v26 = vld [vmem:[#allocation6 + $0xaa8] sm:$0xf] }
 0x173   : > { %3336 = vmatpush.bf16.msrb.mxu0 %v7967_v55  ;;  %3350 = vmatpush.bf16.msrb.mxu1 %v8095_v56  ;;  %v8044_v55 = vld [vmem:[#allocation6 + $0x930] sm:$0xf0]  ;;  %v10274_v56 = vld [vmem:[#allocation6 + $0xa24] sm:$0xf]  ;;  %v10261_v52 = vld [vmem:[#allocation6 + $0x9b4] sm:$0xf0]  ;;  %v7987_v31 = vor.u32 %v10229_v18, %v7986_v13 }
 0x174   : > { %3365 = vmatpush.bf16.msrb.mxu2 %v8207_v34  ;;  %3379 = vmatpush.bf16.msrb.mxu3 %v8335_v6  ;;  %v8047_v10 = vor.u32 %v10242_v54, %v8044_v55  ;;  %v8175_v20 = vor.u32 %v10274_v56, %v8172_v61  ;;  %v8146_v34 = vld [vmem:[#allocation6 + $0x9e8] sm:$0xf]  ;;  %v10269_v6 = vld [vmem:[#allocation6 + $0x9f4] sm:$0xf0] }
 0x175   : > { %v10265_v54 = vld [vmem:[#allocation6 + $0x9d4] sm:$0xf0]  ;;  %v8258_v55 = vld [vmem:[#allocation6 + $0xac8] sm:$0xf] }
 0x176   : > { %v10297_v56 = vld [vmem:[#allocation6 + $0xad4] sm:$0xf0]  ;;  %v8386_v61 = vld [vmem:[#allocation6 + $0xbc8] sm:$0xf] }
 0x177   : > { %3337 = vmatpush.bf16.msrb.mxu0 %v7951_v27  ;;  %3351 = vmatpush.bf16.msrb.mxu1 %v8079_v28  ;;  %v10302_v27 = vld [vmem:[#allocation6 + $0xb04] sm:$0xf]  ;;  %v8284_v28 = vld [vmem:[#allocation6 + $0xb10] sm:$0xf0]  ;;  %v8259_v8 = vor.u32 %v10297_v56, %v8258_v55  ;;  %v10225_v45 = vld [vmem:[#allocation6 + $0x894] sm:$0xf0] }
 0x178   : > { %3366 = vmatpush.bf16.msrb.mxu2 %v8191_v63  ;;  %3380 = vmatpush.bf16.msrb.mxu3 %v8319_v0  ;;  %v8287_v42 = vor.u32 %v10302_v27, %v8284_v28  ;;  %v8403_v63 = vor.u32 %v10333_v40, %v8402_v36  ;;  %v8130_v0 = vld [vmem:[#allocation6 + $0x9c8] sm:$0xf]  ;;  %v10293_v27 = vld [vmem:[#allocation6 + $0xab4] sm:$0xf0] }
 0x179   : > { %v8370_v28 = vld [vmem:[#allocation6 + $0xba8] sm:$0xf]  ;;  %v10257_v40 = vld [vmem:[#allocation6 + $0x994] sm:$0xf0] }
 0x17a   : > { %v8371_v35 = vor.u32 %v10325_v29, %v8370_v28  ;;  %v8098_v36 = vld [vmem:[#allocation6 + $0x988] sm:$0xf]  ;;  %v10221_v56 = vld [vmem:[#allocation6 + $0x874] sm:$0xf0] }
 0x17b   : > { %3338 = vmatpush.bf16.msrb.mxu0 %v7935_v53  ;;  %3352 = vmatpush.bf16.msrb.mxu1 %v8063_v30  ;;  %v8147_v53 = vor.u32 %v10269_v6, %v8146_v34  ;;  %v8002_v30 = vld [vmem:[#allocation6 + $0x8c8] sm:$0xf] }
 0x17c   : > { %3367 = vmatpush.bf16.msrb.mxu2 %v8175_v20  ;;  %3381 = vmatpush.bf16.msrb.mxu3 %v8303_v16  ;;  %v8387_v20 = vor.u32 %v10329_v62, %v8386_v61  ;;  %v8114_v16 = vld [vmem:[#allocation6 + $0x9a8] sm:$0xf] }
 0x17d   : > { %v8115_v34 = vor.u32 %v10261_v52, %v8114_v16  ;;  %v7970_v6 = vld [vmem:[#allocation6 + $0x888] sm:$0xf]  ;;  %v10317_v16 = vld [vmem:[#allocation6 + $0xb74] sm:$0xf0] }
 0x17e   : > { %v7954_v55 = vld [vmem:[#allocation6 + $0x868] sm:$0xf] }
 0x17f   : > { %3339 = vmatpush.bf16.msrb.mxu0 %v7919_v9  ;;  %3353 = vmatpush.bf16.msrb.mxu1 %v8047_v10  ;;  %v8003_v9 = vor.u32 %v10233_v38, %v8002_v30  ;;  %v8131_v10 = vor.u32 %v10265_v54, %v8130_v0  ;;  %v10321_v30 = vld [vmem:[#allocation6 + $0xb94] sm:$0xf0]  ;;  %v8099_v0 = vor.u32 %v10257_v40, %v8098_v36  ;;  %v8210_v13 = vld [vmem:[#allocation6 + $0xa68] sm:$0xf] }
 0x180   : > { %3368 = vmatpush.bf16.msrb.mxu2 %v8159_v47  ;;  %3382 = vmatpush.bf16.msrb.mxu3 %v8287_v42  ;;  %v8226_v47 = vld [vmem:[#allocation6 + $0xa88] sm:$0xf]  ;;  %v11558_v42 = vpop.f32.mrf.mxu3  ;;  %v7955_v52 = vor.u32 %v10221_v56, %v7954_v55  ;;  %v10281_v36 = vld [vmem:[#allocation6 + $0xa54] sm:$0xf0] }
 0x181   : > { %v8322_v40 = vld [vmem:[#allocation6 + $0xb48] sm:$0xf]  ;;  %v10245_v55 = vld [vmem:[#allocation6 + $0x934] sm:$0xf0] }
 0x182   : > { %v8178_v56 = vld [vmem:[#allocation6 + $0xa28] sm:$0xf] }
 0x183   : > { %3340 = vmatpush.bf16.msrb.mxu0 %v7903_v46  ;;  %3354 = vmatpush.bf16.msrb.mxu1 %v8031_v5  ;;  %v11556_v46 = vpop.f32.mrf.mxu2  ;;  %v8243_v5 = vor.u32 %v10293_v27, %v8242_v26  ;;  %v2320_v38 = vpop.f32.mrf.mxu0  ;;  %v7938_v26 = vld [vmem:[#allocation6 + $0x848] sm:$0xf]  ;;  %v10217_v27 = vld [vmem:[#allocation6 + $0x854] sm:$0xf0] }
 0x184   : > { %3417 = vmatpush.bf16.msra.mxu2 %v8275_v51  ;;  %3431 = vmatpush.bf16.msra.mxu3 %v8403_v63  ;;  %v2321_v51 = vadd.f32 %v2320_v38, %v11479_v15  ;;  %v7971_v63 = vor.u32 %v10225_v45, %v7970_v6  ;;  %v2334_v54 = vpop.f32.mrf.mxu1  ;;  %v10249_v6 = vld [vmem:[#allocation6 + $0x954] sm:$0xf0]  ;;  %v8194_v45 = vld [vmem:[#allocation6 + $0xa48] sm:$0xf] }
 0x185   : > { %3369 = vmatmul.bf16.vlgmr.msrb.gmra.mxu2 %v11526_v43  ;;  %3383 = vmatmul.bf16.vlgmr.msrb.gmra.mxu3 %v11529_v44  ;;  %v7922_v38 = vld [vmem:[#allocation6 + $0x828] sm:$0xf] }
 0x186   : > { %3341 = vmatmul.bf16.vlgmr.msrb.gmra.mxu0 %v11532_v22  ;;  %3355 = vmatmul.bf16.vlgmr.msrb.gmra.mxu1 %v11535_v23  ;;  %v2335_v18 = vadd.f32 %v2334_v54, %v2321_v51  ;;  %v10213_v51 = vld [vmem:[#allocation6 + $0x834] sm:$0xf0]  ;;  %v8050_v54 = vld [vmem:[#allocation6 + $0x928] sm:$0xf] }
 0x187   : > { %3389 = vmatpush.bf16.msra.mxu0 %v8019_v48  ;;  %3403 = vmatpush.bf16.msra.mxu1 %v8147_v53  ;;  %v10289_v48 = vld [vmem:[#allocation6 + $0xa94] sm:$0xf0]  ;;  %v8354_v53 = vld [vmem:[#allocation6 + $0xb88] sm:$0xf] }
 0x188   : > { %3418 = vmatpush.bf16.msra.mxu2 %v8259_v8  ;;  %3432 = vmatpush.bf16.msra.mxu3 %v8387_v20  ;;  %v8227_v61 = vor.u32 %v10289_v48, %v8226_v47  ;;  %v8355_v62 = vor.u32 %v10321_v30, %v8354_v53  ;;  %v10285_v8 = vld [vmem:[#allocation6 + $0xa74] sm:$0xf0]  ;;  %v8338_v20 = vld [vmem:[#allocation6 + $0xb68] sm:$0xf]  ;;  %v7939_v53 = vor.u32 %v10217_v27, %v7938_v26 }
 0x189   : > { %v8211_v28 = vor.u32 %v10285_v8, %v8210_v13  ;;  %v8339_v29 = vor.u32 %v10317_v16, %v8338_v20  ;;  %v10313_v47 = vld [vmem:[#allocation6 + $0xb54] sm:$0xf0]  ;;  %v7923_v13 = vor.u32 %v10213_v51, %v7922_v38  ;;  %v8034_v20 = vld [vmem:[#allocation6 + $0x908] sm:$0xf] }
 0x18a   : > { %v10209_v8 = vld [vmem:[#allocation6 + $0x814] sm:$0xf0]  ;;  %v8162_v26 = vld [vmem:[#allocation6 + $0xa08] sm:$0xf] }
 0x18b   : > { %3390 = vmatpush.bf16.msra.mxu0 %v8003_v9  ;;  %3404 = vmatpush.bf16.msra.mxu1 %v8131_v10  ;;  %v8082_v9 = vld [vmem:[#allocation6 + $0x968] sm:$0xf]  ;;  %v10253_v10 = vld [vmem:[#allocation6 + $0x974] sm:$0xf0] }
 0x18c   : > { %3419 = vmatpush.bf16.msra.mxu2 %v8243_v5  ;;  %3433 = vmatpush.bf16.msra.mxu3 %v8371_v35  ;;  %v8083_v15 = vor.u32 %v10253_v10, %v8082_v9  ;;  %v2362_v35 = vpop.f32.mrf.mxu3  ;;  %v10309_v9 = vld [vmem:[#allocation6 + $0xb34] sm:$0xf0]  ;;  %v7906_v10 = vld [vmem:[#allocation6 + $0x808] sm:$0xf] }
 0x18d   : > { %v10241_v16 = vld [vmem:[#allocation6 + $0x914] sm:$0xf0] }
 0x18e   : > { %v10273_v27 = vld [vmem:[#allocation6 + $0xa14] sm:$0xf0] }
 0x18f   : > { %3391 = vmatpush.bf16.msra.mxu0 %v7987_v31  ;;  %3405 = vmatpush.bf16.msra.mxu1 %v8115_v34  ;;  %v2348_v31 = vpop.f32.mrf.mxu2  ;;  %v8066_v34 = vld [vmem:[#allocation6 + $0x948] sm:$0xf] }
 0x190   : > { %3420 = vmatpush.bf16.msra.mxu2 %v8227_v61  ;;  %3434 = vmatpush.bf16.msra.mxu3 %v8355_v62  ;;  %v2349_v5 = vadd.f32 %v2348_v31, %v2335_v18  ;;  %v8067_v30 = vor.u32 %v10249_v6, %v8066_v34  ;;  %v10277_v61 = vld [vmem:[#allocation6 + $0xa34] sm:$0xf0]  ;;  %v8306_v62 = vld [vmem:[#allocation6 + $0xb28] sm:$0xf]  ;;  %v8051_v18 = vor.u32 %v10245_v55, %v8050_v54  ;;  %v10235_v31 = vld [vmem:[#allocation6 + $0x8ec] sm:$0xf] }
 0x191   : > { %v8020_v34 = vld [vmem:[#allocation6 + $0x8f8] sm:$0xf0]  ;;  %v10267_v6 = vld [vmem:[#allocation6 + $0x9ec] sm:$0xf] }
 0x192   : > { %v11561_v48 = vadd.f32 %v2362_v35, %v2349_v5  ;;  %v10299_v5 = vld [vmem:[#allocation6 + $0xaec] sm:$0xf]  ;;  %v7907_v35 = vor.u32 %v10209_v8, %v7906_v10  ;;  %v8023_v51 = vor.u32 %v10235_v31, %v8020_v34  ;;  %v8004_v54 = vld [vmem:[#allocation6 + $0x8d8] sm:$0xf0]  ;;  %v11563_v8 = vpop.f32.mrf.mxu0 }
 0x193   : > { %3392 = vmatpush.bf16.msra.mxu0 %v7971_v63  ;;  %3406 = vmatpush.bf16.msra.mxu1 %v8099_v0  ;;  %v8195_v63 = vor.u32 %v10281_v36, %v8194_v45  ;;  %v8323_v0 = vor.u32 %v10313_v47, %v8322_v40  ;;  %v8148_v45 = vld [vmem:[#allocation6 + $0x9f8] sm:$0xf0]  ;;  %v8035_v36 = vor.u32 %v10241_v16, %v8034_v20  ;;  %v10331_v47 = vld [vmem:[#allocation6 + $0xbec] sm:$0xf]  ;;  %v11565_v20 = vpop.f32.mrf.mxu1 }
 0x194   : > { %3421 = vmatpush.bf16.msra.mxu2 %v8211_v28  ;;  %3435 = vmatpush.bf16.msra.mxu3 %v8339_v29  ;;  %v8290_v28 = vld [vmem:[#allocation6 + $0xb08] sm:$0xf]  ;;  %v10305_v29 = vld [vmem:[#allocation6 + $0xb14] sm:$0xf0]  ;;  %v8276_v40 = vld [vmem:[#allocation6 + $0xaf8] sm:$0xf0] }
 0x195   : > { %v8291_v38 = vor.u32 %v10305_v29, %v8290_v28  ;;  %v8279_v55 = vor.u32 %v10299_v5, %v8276_v40  ;;  %v8260_v10 = vld [vmem:[#allocation6 + $0xad8] sm:$0xf0]  ;;  %v10259_v29 = vld [vmem:[#allocation6 + $0x9ac] sm:$0xf] }
 0x196   : > { %v8116_v31 = vld [vmem:[#allocation6 + $0x9b8] sm:$0xf0]  ;;  %v10291_v34 = vld [vmem:[#allocation6 + $0xaac] sm:$0xf] }
 0x197   : > { %3393 = vmatpush.bf16.msra.mxu0 %v7955_v52  ;;  %3407 = vmatpush.bf16.msra.mxu1 %v8083_v15  ;;  %v8179_v52 = vor.u32 %v10277_v61, %v8178_v56  ;;  %v8307_v15 = vor.u32 %v10309_v9, %v8306_v62  ;;  %v10263_v61 = vld [vmem:[#allocation6 + $0x9cc] sm:$0xf]  ;;  %v8132_v62 = vld [vmem:[#allocation6 + $0x9d8] sm:$0xf0] }
 0x198   : > { %3422 = vmatpush.bf16.msra.mxu2 %v8195_v63  ;;  %3436 = vmatpush.bf16.msra.mxu3 %v8323_v0  ;;  %v8151_v63 = vor.u32 %v10267_v6, %v8148_v45  ;;  %v10231_v0 = vld [vmem:[#allocation6 + $0x8cc] sm:$0xf]  ;;  %v8244_v6 = vld [vmem:[#allocation6 + $0xab8] sm:$0xf0] }
 0x199   : > { %v10295_v9 = vld [vmem:[#allocation6 + $0xacc] sm:$0xf]  ;;  %v8007_v16 = vor.u32 %v10231_v0, %v8004_v54  ;;  %v8372_v5 = vld [vmem:[#allocation6 + $0xbb8] sm:$0xf0]  ;;  %v11573_v54 = vpop.f32.mrf.mxu3 }
 0x19a   : > { %v10323_v45 = vld [vmem:[#allocation6 + $0xbac] sm:$0xf] }
 0x19b   : > { %3394 = vmatpush.bf16.msra.mxu0 %v7939_v53  ;;  %3408 = vmatpush.bf16.msra.mxu1 %v8067_v30  ;;  %v8404_v53 = vld [vmem:[#allocation6 + $0xbf8] sm:$0xf0]  ;;  %v8163_v30 = vor.u32 %v10273_v27, %v8162_v26  ;;  %v8263_v27 = vor.u32 %v10295_v9, %v8260_v10  ;;  %v10223_v40 = vld [vmem:[#allocation6 + $0x88c] sm:$0xf] }
 0x19c   : > { %3423 = vmatpush.bf16.msra.mxu2 %v8179_v52  ;;  %3437 = vmatpush.bf16.msra.mxu3 %v8307_v15  ;;  %v8407_v56 = vor.u32 %v10331_v47, %v8404_v53  ;;  %v8135_v52 = vor.u32 %v10263_v61, %v8132_v62  ;;  %v10227_v15 = vld [vmem:[#allocation6 + $0x8ac] sm:$0xf]  ;;  %v7988_v26 = vld [vmem:[#allocation6 + $0x8b8] sm:$0xf0]  ;;  %v11571_v53 = vpop.f32.mrf.mxu2 }
 0x19d   : > { %v7972_v47 = vld [vmem:[#allocation6 + $0x898] sm:$0xf0]  ;;  %v10287_v0 = vld [vmem:[#allocation6 + $0xa8c] sm:$0xf] }
 0x19e   : > { %v8356_v61 = vld [vmem:[#allocation6 + $0xb98] sm:$0xf0]  ;;  %v7975_v10 = vor.u32 %v10223_v40, %v7972_v47 }
 0x19f   : > { %3395 = vmatpush.bf16.msra.mxu0 %v7923_v13  ;;  %3409 = vmatpush.bf16.msra.mxu1 %v8051_v18  ;;  %v10327_v13 = vld [vmem:[#allocation6 + $0xbcc] sm:$0xf]  ;;  %v8388_v18 = vld [vmem:[#allocation6 + $0xbd8] sm:$0xf0] }
 0x1a0   : > { %3424 = vmatpush.bf16.msra.mxu2 %v8163_v30  ;;  %3438 = vmatpush.bf16.msra.mxu3 %v8291_v38  ;;  %v8391_v28 = vor.u32 %v10327_v13, %v8388_v18  ;;  %v8247_v30 = vor.u32 %v10291_v34, %v8244_v6  ;;  %v8375_v38 = vor.u32 %v10323_v45, %v8372_v5  ;;  %v8212_v34 = vld [vmem:[#allocation6 + $0xa78] sm:$0xf0]  ;;  %v10315_v6 = vld [vmem:[#allocation6 + $0xb6c] sm:$0xf] }
 0x1a1   : > { %v8340_v45 = vld [vmem:[#allocation6 + $0xb78] sm:$0xf0] }
 0x1a2   : > { %v8343_v47 = vor.u32 %v10315_v6, %v8340_v45 }
 0x1a3   : > { %3396 = vmatpush.bf16.msra.mxu0 %v7907_v35  ;;  %3410 = vmatpush.bf16.msra.mxu1 %v8035_v36  ;;  %v7991_v35 = vor.u32 %v10227_v15, %v7988_v26  ;;  %v8119_v36 = vor.u32 %v10259_v29, %v8116_v31  ;;  %v2376_v62 = vpop.f32.mrf.mxu0  ;;  %v2390_v18 = vpop.f32.mrf.mxu1  ;;  %v10283_v29 = vld [vmem:[#allocation6 + $0xa6c] sm:$0xf] }
 0x1a4   : > { %3473 = vmatpush.bf16.msrb.mxu2 %v8279_v55  ;;  %3487 = vmatpush.bf16.msrb.mxu3 %v8407_v56  ;;  %v8228_v55 = vld [vmem:[#allocation6 + $0xa98] sm:$0xf0]  ;;  %v10319_v56 = vld [vmem:[#allocation6 + $0xb8c] sm:$0xf]  ;;  %v2377_v9 = vadd.f32 %v2376_v62, %v11493_v4  ;;  %v8215_v40 = vor.u32 %v10283_v29, %v8212_v34 }
 0x1a5   : > { %3425 = vmatmul.bf16.vlgmr.msra.gmra.mxu2 %v11526_v43  ;;  %3439 = vmatmul.bf16.vlgmr.msra.gmra.mxu3 %v11529_v44  ;;  %v8231_v15 = vor.u32 %v10287_v0, %v8228_v55  ;;  %v8359_v26 = vor.u32 %v10319_v56, %v8356_v61  ;;  %v8196_v56 = vld [vmem:[#allocation6 + $0xa58] sm:$0xf0]  ;;  %v10311_v61 = vld [vmem:[#allocation6 + $0xb4c] sm:$0xf] }
 0x1a6   : > { %3397 = vmatmul.bf16.vlgmr.msra.gmra.mxu0 %v11532_v22  ;;  %3411 = vmatmul.bf16.vlgmr.msra.gmra.mxu1 %v11535_v23  ;;  %v2391_v31 = vadd.f32 %v2390_v18, %v2377_v9  ;;  %v8324_v62 = vld [vmem:[#allocation6 + $0xb58] sm:$0xf0]  ;;  %v10211_v18 = vld [vmem:[#allocation6 + $0x82c] sm:$0xf] }
 0x1a7   : > { %3445 = vmatpush.bf16.msrb.mxu0 %v8023_v51  ;;  %3459 = vmatpush.bf16.msrb.mxu1 %v8151_v63  ;;  %v10255_v51 = vld [vmem:[#allocation6 + $0x98c] sm:$0xf]  ;;  %v8100_v63 = vld [vmem:[#allocation6 + $0x998] sm:$0xf0] }
 0x1a8   : > { %3474 = vmatpush.bf16.msrb.mxu2 %v8263_v27  ;;  %3488 = vmatpush.bf16.msrb.mxu3 %v8391_v28  ;;  %v8103_v13 = vor.u32 %v10255_v51, %v8100_v63  ;;  %v10251_v27 = vld [vmem:[#allocation6 + $0x96c] sm:$0xf]  ;;  %v8084_v28 = vld [vmem:[#allocation6 + $0x978] sm:$0xf0]  ;;  %v2418_v55 = vpop.f32.mrf.mxu3 }
 0x1a9   : > { %v8087_v4 = vor.u32 %v10251_v27, %v8084_v28  ;;  %v8068_v51 = vld [vmem:[#allocation6 + $0x958] sm:$0xf0]  ;;  %v10279_v63 = vld [vmem:[#allocation6 + $0xa4c] sm:$0xf] }
 0x1aa   : > { %v8052_v27 = vld [vmem:[#allocation6 + $0x938] sm:$0xf0]  ;;  %v10275_v28 = vld [vmem:[#allocation6 + $0xa2c] sm:$0xf] }
 0x1ab   : > { %3446 = vmatpush.bf16.msrb.mxu0 %v8007_v16  ;;  %3460 = vmatpush.bf16.msrb.mxu1 %v8135_v52  ;;  %v10219_v16 = vld [vmem:[#allocation6 + $0x86c] sm:$0xf]  ;;  %v7956_v52 = vld [vmem:[#allocation6 + $0x878] sm:$0xf0] }
 0x1ac   : > { %3475 = vmatpush.bf16.msrb.mxu2 %v8247_v30  ;;  %3489 = vmatpush.bf16.msrb.mxu3 %v8375_v38  ;;  %v7959_v5 = vor.u32 %v10219_v16, %v7956_v52  ;;  %v2404_v30 = vpop.f32.mrf.mxu2  ;;  %v10247_v38 = vld [vmem:[#allocation6 + $0x94c] sm:$0xf]  ;;  %v7924_v16 = vld [vmem:[#allocation6 + $0x838] sm:$0xf0]  ;;  %v8199_v52 = vor.u32 %v10279_v63, %v8196_v56 }
 0x1ad   : > { %v2405_v0 = vadd.f32 %v2404_v30, %v2391_v31  ;;  %v8180_v29 = vld [vmem:[#allocation6 + $0xa38] sm:$0xf0]  ;;  %v10307_v31 = vld [vmem:[#allocation6 + $0xb2c] sm:$0xf]  ;;  %v7927_v6 = vor.u32 %v10211_v18, %v7924_v16 }
 0x1ae   : > { %v8308_v34 = vld [vmem:[#allocation6 + $0xb38] sm:$0xf0]  ;;  %v10271_v30 = vld [vmem:[#allocation6 + $0xa0c] sm:$0xf] }
 0x1af   : > { %3447 = vmatpush.bf16.msrb.mxu0 %v7991_v35  ;;  %3461 = vmatpush.bf16.msrb.mxu1 %v8119_v36  ;;  %v10215_v35 = vld [vmem:[#allocation6 + $0x84c] sm:$0xf]  ;;  %v7940_v36 = vld [vmem:[#allocation6 + $0x858] sm:$0xf0]  ;;  %v11576_v9 = vadd.f32 %v2418_v55, %v2405_v0 }
 0x1b0   : > { %3476 = vmatpush.bf16.msrb.mxu2 %v8231_v15  ;;  %3490 = vmatpush.bf16.msrb.mxu3 %v8359_v26  ;;  %v8327_v15 = vor.u32 %v10311_v61, %v8324_v62  ;;  %v10243_v26 = vld [vmem:[#allocation6 + $0x92c] sm:$0xf]  ;;  %v8292_v63 = vld [vmem:[#allocation6 + $0xb18] sm:$0xf0]  ;;  %v11578_v62 = vpop.f32.mrf.mxu0  ;;  %v11588_v18 = vpop.f32.mrf.mxu3 }
 0x1b1   : > { %v8055_v45 = vor.u32 %v10243_v26, %v8052_v27 }
 0x1b3   : > { %3448 = vmatpush.bf16.msrb.mxu0 %v7975_v10  ;;  %3462 = vmatpush.bf16.msrb.mxu1 %v8103_v13  ;;  %v7943_v10 = vor.u32 %v10215_v35, %v7940_v36  ;;  %v8071_v13 = vor.u32 %v10247_v38, %v8068_v51  ;;  %v8183_v35 = vor.u32 %v10275_v28, %v8180_v29  ;;  %v8164_v38 = vld [vmem:[#allocation6 + $0xa18] sm:$0xf0]  ;;  %v10303_v51 = vld [vmem:[#allocation6 + $0xb0c] sm:$0xf] }
 0x1b4   : > { %3477 = vmatpush.bf16.msrb.mxu2 %v8215_v40  ;;  %3491 = vmatpush.bf16.msrb.mxu3 %v8343_v47  ;;  %v8311_v36 = vor.u32 %v10307_v31, %v8308_v34  ;;  %v10239_v40 = vld [vmem:[#allocation6 + $0x90c] sm:$0xf]  ;;  %v8036_v47 = vld [vmem:[#allocation6 + $0x918] sm:$0xf0]  ;;  %v8167_v56 = vor.u32 %v10271_v30, %v8164_v38  ;;  %v8295_v61 = vor.u32 %v10303_v51, %v8292_v63  ;;  %v8650_v34 = vld [vmem:[#allocation9 + $0x5e0] sm:$0xf] }
 0x1b5   : > { %v8039_v55 = vor.u32 %v10239_v40, %v8036_v47  ;;  %v8490_v40 = vld [vmem:[#allocation9 + $0x4a0] sm:$0xf]  ;;  %v10484_v47 = vld [vmem:[#allocation9 + $0x4ac] sm:$0xf0] }
 0x1b6   : > { %v8618_v30 = vld [vmem:[#allocation9 + $0x5a0] sm:$0xf]  ;;  %v10516_v38 = vld [vmem:[#allocation9 + $0x5ac] sm:$0xf0]  ;;  %v8491_v51 = vor.u32 %v10484_v47, %v8490_v40 }
 0x1b7   : > { %3449 = vmatpush.bf16.msrb.mxu0 %v7959_v5  ;;  %3463 = vmatpush.bf16.msrb.mxu1 %v8087_v4  ;;  %v10207_v5 = vld [vmem:[#allocation6 + $0x80c] sm:$0xf]  ;;  %v7908_v4 = vld [vmem:[#allocation6 + $0x818] sm:$0xf0]  ;;  %v8619_v63 = vor.u32 %v10516_v38, %v8618_v30  ;;  %v8426_v47 = vld [vmem:[#allocation9 + $0x420] sm:$0xf] }
 0x1b8   : > { %3478 = vmatpush.bf16.msrb.mxu2 %v8199_v52  ;;  %3492 = vmatpush.bf16.msrb.mxu3 %v8327_v15  ;;  %v7911_v0 = vor.u32 %v10207_v5, %v7908_v4  ;;  %v8634_v4 = vld [vmem:[#allocation9 + $0x5c0] sm:$0xf]  ;;  %v10468_v30 = vld [vmem:[#allocation9 + $0x42c] sm:$0xf0] }
 0x1b9   : > { %v8554_v38 = vld [vmem:[#allocation9 + $0x520] sm:$0xf] }
 0x1bb   : > { %3450 = vmatpush.bf16.msrb.mxu0 %v7943_v10  ;;  %3464 = vmatpush.bf16.msrb.mxu1 %v8071_v13  ;;  %v11580_v10 = vpop.f32.mrf.mxu1  ;;  %v11586_v13 = vpop.f32.mrf.mxu2 }
 0x1bc   : > { %3479 = vmatpush.bf16.msrb.mxu2 %v8183_v35  ;;  %3493 = vmatpush.bf16.msrb.mxu3 %v8311_v36  ;;  %v10520_v35 = vld [vmem:[#allocation9 + $0x5cc] sm:$0xf0] }
 0x1bf   : > { %3451 = vmatpush.bf16.msrb.mxu0 %v7927_v6  ;;  %3465 = vmatpush.bf16.msrb.mxu1 %v8055_v45  ;;  %v10524_v6 = vld [vmem:[#allocation9 + $0x5ec] sm:$0xf0] }
 0x1c0   : > { %3480 = vmatpush.bf16.msrb.mxu2 %v8167_v56  ;;  %3494 = vmatpush.bf16.msrb.mxu3 %v8295_v61  ;;  %v10488_v45 = vld [vmem:[#allocation9 + $0x4cc] sm:$0xf0]  ;;  %v8651_v5 = vor.u32 %v10524_v6, %v8650_v34  ;;  %v8602_v56 = vld [vmem:[#allocation9 + $0x580] sm:$0xf] }
 0x1c3   : > { %3452 = vmatpush.bf16.msrb.mxu0 %v7911_v0  ;;  %3466 = vmatpush.bf16.msrb.mxu1 %v8039_v55  ;;  %v2432_v16 = vpop.f32.mrf.mxu0  ;;  %v2446_v15 = vpop.f32.mrf.mxu1  ;;  %v8474_v0 = vld [vmem:[#allocation9 + $0x480] sm:$0xf]  ;;  %v10480_v55 = vld [vmem:[#allocation9 + $0x48c] sm:$0xf0] }
 0x1c4   : > { %3481 = vmatmul.bf16.vlgmr.msrb.gmra.mxu2 %v11526_v43  ;;  %3495 = vmatmul.bf16.vlgmr.msrb.gmra.mxu3 %v11529_v44  ;;  %v2433_v52 = vadd.f32 %v2432_v16, %v11507_v7  ;;  %v8506_v44 = vld [vmem:[#allocation9 + $0x4c0] sm:$0xf]  ;;  %v8635_v7 = vor.u32 %v10520_v35, %v8634_v4  ;;  %v8475_v61 = vor.u32 %v10480_v55, %v8474_v0  ;;  %v10512_v16 = vld [vmem:[#allocation9 + $0x58c] sm:$0xf0] }
 0x1c5   : > { %v8507_v36 = vor.u32 %v10488_v45, %v8506_v44  ;;  %v8442_v44 = vld [vmem:[#allocation9 + $0x440] sm:$0xf]  ;;  %v10472_v45 = vld [vmem:[#allocation9 + $0x44c] sm:$0xf0] }
 0x1c6   : > { %3453 = vmatmul.bf16.vlgmr.msrb.gmra.mxu0 %v11532_v22  ;;  %3467 = vmatmul.bf16.vlgmr.msrb.gmra.mxu1 %v11535_v23  ;;  %v2447_v26 = vadd.f32 %v2446_v15, %v2433_v52  ;;  %v8522_v22 = vld [vmem:[#allocation9 + $0x4e0] sm:$0xf]  ;;  %v10492_v23 = vld [vmem:[#allocation9 + $0x4ec] sm:$0xf0]  ;;  %v8603_v52 = vor.u32 %v10512_v16, %v8602_v56  ;;  %v8443_v4 = vor.u32 %v10472_v45, %v8442_v44  ;;  %v10522_v44 = vld [vmem:[#allocation9 + $0x5e4] sm:$0xf] }
 0x1c7   : > { %v8523_v43 = vor.u32 %v10492_v23, %v8522_v22  ;;  %4587 = vmatpush.bf16.msra.mxu1 %v8651_v5  ;;  %v10508_v23 = vld [vmem:[#allocation9 + $0x56c] sm:$0xf0]  ;;  %v8570_v5 = vld [vmem:[#allocation9 + $0x540] sm:$0xf]  ;;  %v8652_v45 = vld [vmem:[#allocation9 + $0x5f0] sm:$0xf0] }
 0x1c8   : > { %v2460_v27 = vpop.f32.mrf.mxu2  ;;  %v2474_v29 = vpop.f32.mrf.mxu3  ;;  %v10504_v35 = vld [vmem:[#allocation9 + $0x54c] sm:$0xf0] }
 0x1c9   : > { %v2461_v28 = vadd.f32 %v2460_v27, %v2447_v26  ;;  %4573 = vmatpush.bf16.msra.mxu0 %v8523_v43  ;;  %v8458_v27 = vld [vmem:[#allocation9 + $0x460] sm:$0xf]  ;;  %v10464_v16 = vld [vmem:[#allocation9 + $0x40c] sm:$0xf0] }
 0x1cb   : > { %v11591_v31 = vadd.f32 %v2474_v29, %v2461_v28  ;;  %4588 = vmatpush.bf16.msra.mxu1 %v8635_v7  ;;  %v11593_v15 = vpop.f32.mrf.mxu0  ;;  %v11595_v26 = vpop.f32.mrf.mxu1  ;;  %v10476_v28 = vld [vmem:[#allocation9 + $0x46c] sm:$0xf0]  ;;  %v8586_v29 = vld [vmem:[#allocation9 + $0x560] sm:$0xf] }
 0x1cc   : > { %v8459_v22 = vor.u32 %v10476_v28, %v8458_v27  ;;  %v8587_v34 = vor.u32 %v10508_v23, %v8586_v29  ;;  %v10496_v28 = vld [vmem:[#allocation9 + $0x50c] sm:$0xf0]  ;;  %v10490_v29 = vld [vmem:[#allocation9 + $0x4e4] sm:$0xf] }
 0x1cd   : > { %4574 = vmatpush.bf16.msra.mxu0 %v8507_v36  ;;  %v8571_v36 = vor.u32 %v10504_v35, %v8570_v5  ;;  %v8655_v5 = vor.u32 %v10522_v44, %v8652_v45 }
 0x1cf   : > { %4589 = vmatpush.bf16.msra.mxu1 %v8619_v63  ;;  %v10500_v63 = vld [vmem:[#allocation9 + $0x52c] sm:$0xf0] }
 0x1d0   : > { %v11597_v43 = vpop.f32.mrf.mxu2  ;;  %v11599_v6 = vpop.f32.mrf.mxu3  ;;  %v8555_v0 = vor.u32 %v10500_v63, %v8554_v38  ;;  %v10518_v63 = vld [vmem:[#allocation9 + $0x5c4] sm:$0xf] }
 0x1d1   : > { %4575 = vmatpush.bf16.msra.mxu0 %v8491_v51  ;;  %v8427_v51 = vor.u32 %v10468_v30, %v8426_v47  ;;  %v10486_v47 = vld [vmem:[#allocation9 + $0x4c4] sm:$0xf]  ;;  %v8508_v30 = vld [vmem:[#allocation9 + $0x4d0] sm:$0xf0] }
 0x1d3   : > { %4590 = vmatpush.bf16.msra.mxu1 %v8603_v52  ;;  %v8538_v52 = vld [vmem:[#allocation9 + $0x500] sm:$0xf] }
 0x1d4   : > { %v8539_v23 = vor.u32 %v10496_v28, %v8538_v52  ;;  %v8492_v28 = vld [vmem:[#allocation9 + $0x4b0] sm:$0xf0] }
 0x1d5   : > { %4576 = vmatpush.bf16.msra.mxu0 %v8475_v61  ;;  %v8410_v61 = vld [vmem:[#allocation9 + $0x400] sm:$0xf] }
 0x1d6   : > { %v8411_v27 = vor.u32 %v10464_v16, %v8410_v61  ;;  %v1469_v16 = vadd.f32 %v11487_v33, %v11485_v32  ;;  %v10478_v33 = vld [vmem:[#allocation9 + $0x484] sm:$0xf] }
 0x1d7   : > { %4591 = vmatpush.bf16.msra.mxu1 %v8587_v34 }
 0x1d9   : > { %4577 = vmatpush.bf16.msra.mxu0 %v8459_v22  ;;  %v8524_v22 = vld [vmem:[#allocation9 + $0x4f0] sm:$0xf0] }
 0x1da   : > { %v8527_v34 = vor.u32 %v10490_v29, %v8524_v22 }
 0x1db   : > { %4592 = vmatpush.bf16.msra.mxu1 %v8571_v36 }
 0x1dd   : > { %4578 = vmatpush.bf16.msra.mxu0 %v8443_v4  ;;  %v1413_v4 = vadd.f32 %v11473_v60, %v11471_v59  ;;  %v10514_v59 = vld [vmem:[#allocation9 + $0x5a4] sm:$0xf] }
 0x1df   : > { %4593 = vmatpush.bf16.msra.mxu1 %v8555_v0  ;;  %v8636_v0 = vld [vmem:[#allocation9 + $0x5d0] sm:$0xf0]  ;;  %v1427_v52 = vadd.f32 %v11475_v12, %v1413_v4 }
 0x1e0   : > { %v8639_v61 = vor.u32 %v10518_v63, %v8636_v0  ;;  %v8476_v12 = vld [vmem:[#allocation9 + $0x490] sm:$0xf0] }
 0x1e1   : > { %4579 = vmatpush.bf16.msra.mxu0 %v8427_v51  ;;  %v8511_v51 = vor.u32 %v10486_v47, %v8508_v30  ;;  %v1441_v44 = vadd.f32 %v11477_v21, %v1427_v52  ;;  %v8479_v47 = vor.u32 %v10478_v33, %v8476_v12  ;;  %v8604_v30 = vld [vmem:[#allocation9 + $0x590] sm:$0xf0]  ;;  %v10474_v21 = vld [vmem:[#allocation9 + $0x464] sm:$0xf] }
 0x1e3   : > { %v3286_v7 = vpop.f32.mrf.mxu0  ;;  %v3300_v40 = vpop.f32.mrf.mxu1  ;;  %4594 = vmatpush.bf16.msra.mxu1 %v8539_v23 }
 0x1e4   : > { %v3301_v38 = vadd.f32 %v3300_v40, %v3286_v7  ;;  %v1483_v40 = vadd.f32 %v11489_v58, %v1469_v16  ;;  %v10506_v16 = vld [vmem:[#allocation9 + $0x564] sm:$0xf] }
 0x1e5   : > { %4580 = vmatpush.bf16.msra.mxu0 %v8411_v27  ;;  %v10482_v27 = vld [vmem:[#allocation9 + $0x4a4] sm:$0xf] }
 0x1e6   : > { %v8495_v23 = vor.u32 %v10482_v27, %v8492_v28  ;;  %v1497_v58 = vadd.f32 %v11491_v14, %v1483_v40 }
 0x1e7   : > { %4643 = vmatpush.bf16.msrb.mxu1 %v8655_v5  ;;  %v10510_v5 = vld [vmem:[#allocation9 + $0x584] sm:$0xf] }
 0x1e8   : > { %v3314_v55 = vpop.f32.mrf.mxu2  ;;  %v3328_v56 = vpop.f32.mrf.mxu3  ;;  %v8607_v0 = vor.u32 %v10510_v5, %v8604_v30  ;;  %v2323_v52 = vadd.f32 %v11563_v8, %v1497_v58  ;;  %v10502_v5 = vld [vmem:[#allocation9 + $0x544] sm:$0xf] }
 0x1e9   : > { %4629 = vmatpush.bf16.msrb.mxu0 %v8527_v34  ;;  %v3315_v60 = vadd.f32 %v3314_v55, %v3301_v38  ;;  %v8620_v34 = vld [vmem:[#allocation9 + $0x5b0] sm:$0xf0]  ;;  %v2267_v55 = vadd.f32 %v11548_v1, %v1441_v44  ;;  %v11609_v38 = vld [vmem:[#allocation8] sm:$0xf]  ;;  %v10498_v58 = vld [vmem:[#allocation9 + $0x524] sm:$0xf] }
 0x1ea   : > { %v8623_v7 = vor.u32 %v10514_v59, %v8620_v34  ;;  %v3511_v27 = vperm.slane %v11609_v38, 0  ;;  %v3512_v40 = vperm.slane %v11609_v38, 1 }
 0x1eb   : > { %v3288_v35 = vpop.f32.mrf.mxu0  ;;  %v3302_v36 = vpop.f32.mrf.mxu1  ;;  %4644 = vmatpush.bf16.msrb.mxu1 %v8639_v61  ;;  %v3329_v4 = vadd.f32 %v3328_v56, %v3315_v60  ;;  %v8460_v61 = vld [vmem:[#allocation9 + $0x470] sm:$0xf0] }
 0x1ec   : > { %v8463_v59 = vor.u32 %v10474_v21, %v8460_v61  ;;  %v8588_v60 = vld [vmem:[#allocation9 + $0x570] sm:$0xf0] }
 0x1ed   : > { %4630 = vmatpush.bf16.msrb.mxu0 %v8511_v51  ;;  %v3303_v51 = vadd.f32 %v3302_v36, %v3288_v35  ;;  %v3501_v56 = vadd.f32 %v3329_v4, %v11546_v49  ;;  %v2281_v35 = vadd.f32 %v11550_v2, %v2267_v55  ;;  %v8591_v14 = vor.u32 %v10506_v16, %v8588_v60  ;;  %v10470_v49 = vld [vmem:[#allocation9 + $0x444] sm:$0xf]  ;;  %v8572_v2 = vld [vmem:[#allocation9 + $0x550] sm:$0xf0] }
 0x1ee   : > { %v8575_v30 = vor.u32 %v10502_v5, %v8572_v2  ;;  %v8412_v60 = vld [vmem:[#allocation9 + $0x410] sm:$0xf0] }
 0x1ef   : > { %4645 = vmatpush.bf16.msrb.mxu1 %v8623_v7  ;;  %v2295_v34 = vadd.f32 %v11556_v46, %v2281_v35  ;;  %v3519_v33 = vadd.f32 %v3511_v27, %v3501_v56  ;;  %v10494_v35 = vld [vmem:[#allocation9 + $0x504] sm:$0xf] }
 0x1f0   : > { %v3316_v29 = vpop.f32.mrf.mxu2  ;;  %v3330_v22 = vpop.f32.mrf.mxu3 }
 0x1f1   : > { %4631 = vmatpush.bf16.msrb.mxu0 %v8495_v23  ;;  %v3317_v36 = vadd.f32 %v3316_v29, %v3303_v51  ;;  %v2309_v46 = vadd.f32 %v11558_v42, %v2295_v34  ;;  %v10556_v34 = vld [vmem:[#allocation9 + $0x6ec] sm:$0xf0] }
 0x1f3   : > { %4646 = vmatpush.bf16.msrb.mxu1 %v8607_v0  ;;  %v3331_v29 = vadd.f32 %v3330_v22, %v3317_v36  ;;  %v8428_v0 = vld [vmem:[#allocation9 + $0x430] sm:$0xf0] }
 0x1f5   : > { %4632 = vmatpush.bf16.msrb.mxu0 %v8479_v47  ;;  %v3505_v22 = vadd.f32 %v3331_v29, %v2309_v46  ;;  %v8762_v29 = vld [vmem:[#allocation9 + $0x6c0] sm:$0xf] }
 0x1f7   : > { %4647 = vmatpush.bf16.msrb.mxu1 %v8591_v14  ;;  %v8778_v14 = vld [vmem:[#allocation9 + $0x6e0] sm:$0xf] }
 0x1f9   : > { %4633 = vmatpush.bf16.msrb.mxu0 %v8463_v59 }
 0x1fb   : > { %4648 = vmatpush.bf16.msrb.mxu1 %v8575_v30  ;;  %v10584_v30 = vld [vmem:[#allocation9 + $0x7cc] sm:$0xf0] }
 0x203   : > { %v3342_v45 = vpop.f32.mrf.mxu0  ;;  %v3356_v32 = vpop.f32.mrf.mxu1 }
 0x204   : > { %v3357_v63 = vadd.f32 %v3356_v32, %v3342_v45  ;;  %v8444_v45 = vld [vmem:[#allocation9 + $0x450] sm:$0xf0]  ;;  %v2337_v32 = vadd.f32 %v11565_v20, %v2323_v52  ;;  %v3527_v20 = vmax.f32 %v3519_v33, 0.0  ;;  %v8779_v33 = vor.u32 %v10556_v34, %v8778_v14  ;;  %v10576_v14 = vld [vmem:[#allocation9 + $0x78c] sm:$0xf0] }
 0x205   : > { %v8447_v12 = vor.u32 %v10470_v49, %v8444_v45  ;;  %v8556_v52 = vld [vmem:[#allocation9 + $0x530] sm:$0xf0]  ;;  %v8906_v45 = vld [vmem:[#allocation9 + $0x7e0] sm:$0xf] }
 0x206   : > { %v2351_v55 = vadd.f32 %v11571_v53, %v2337_v32  ;;  %v10462_v53 = vld [vmem:[#allocation9 + $0x404] sm:$0xf]  ;;  %v10588_v32 = vld [vmem:[#allocation9 + $0x7ec] sm:$0xf0]  ;;  %4601 = vmatpush.bf16.msra.mxu2 %v8779_v33 }
 0x207   : > { %4634 = vmatpush.bf16.msrb.mxu0 %v8447_v12  ;;  %v8415_v36 = vor.u32 %v10462_v53, %v8412_v60  ;;  %v8907_v12 = vor.u32 %v10588_v32, %v8906_v45  ;;  %v8858_v53 = vld [vmem:[#allocation9 + $0x780] sm:$0xf]  ;;  %v10540_v32 = vld [vmem:[#allocation9 + $0x66c] sm:$0xf0] }
 0x208   : > { %v3370_v28 = vpop.f32.mrf.mxu2  ;;  %v3384_v1 = vpop.f32.mrf.mxu3  ;;  %v8859_v34 = vor.u32 %v10576_v14, %v8858_v53  ;;  %v8714_v45 = vld [vmem:[#allocation9 + $0x660] sm:$0xf]  ;;  %v8658_v14 = vld [vmem:[#allocation9 + $0x5e8] sm:$0xf] }
 0x209   : > { %v3371_v23 = vadd.f32 %v3370_v28, %v3357_v63  ;;  %v10466_v63 = vld [vmem:[#allocation9 + $0x424] sm:$0xf]  ;;  %v8559_v28 = vor.u32 %v10498_v58, %v8556_v52  ;;  %4615 = vmatpush.bf16.msra.mxu3 %v8907_v12  ;;  %v8874_v52 = vld [vmem:[#allocation9 + $0x7a0] sm:$0xf] }
 0x20a   : > { %v8431_v16 = vor.u32 %v10466_v63, %v8428_v0  ;;  %v10812_v0 = vld [vmem:[#allocation2 + $0x18] sm:$0xff] }
 0x20b   : > { %v3385_v7 = vadd.f32 %v3384_v1, %v3371_v23  ;;  %v3344_v8 = vpop.f32.mrf.mxu0  ;;  %v3358_v44 = vpop.f32.mrf.mxu1  ;;  %v2365_v1 = vadd.f32 %v11573_v54, %v2351_v55  ;;  %4649 = vmatpush.bf16.msrb.mxu1 %v8559_v28  ;;  %v8540_v23 = vld [vmem:[#allocation9 + $0x510] sm:$0xf0] }
 0x20c   : > { %v3359_v47 = vadd.f32 %v3358_v44, %v3344_v8  ;;  %4635 = vmatpush.bf16.msrb.mxu0 %v8431_v16  ;;  %v8543_v49 = vor.u32 %v10494_v35, %v8540_v23 }
 0x20d   : > { %v3502_v4 = vadd.f32 %v3385_v7, %v11561_v48  ;;  %v3523_v7 = vadd.f32 %v3511_v27, %v3505_v22  ;;  %v10580_v22 = vld [vmem:[#allocation9 + $0x7ac] sm:$0xf0] }
 0x20f   : > { %v3520_v51 = vadd.f32 %v3512_v40, %v3502_v4  ;;  %4650 = vmatpush.bf16.msrb.mxu1 %v8543_v49  ;;  %v10552_v4 = vld [vmem:[#allocation9 + $0x6cc] sm:$0xf0]  ;;  %v3531_v46 = vmax.f32 %v3523_v7, 0.0 }
 0x210   : > { %v3372_v21 = vpop.f32.mrf.mxu2  ;;  %v3386_v61 = vpop.f32.mrf.mxu3  ;;  %4636 = vmatpush.bf16.msrb.mxu0 %v8415_v36 }
 0x211   : > { %v3528_v56 = vmax.f32 %v3520_v51, 0.0  ;;  %v3373_v48 = vadd.f32 %v3372_v21, %v3359_v47  ;;  %v8890_v47 = vld [vmem:[#allocation9 + $0x7c0] sm:$0xf]  ;;  %v8763_v51 = vor.u32 %v10552_v4, %v8762_v29  ;;  %v10548_v21 = vld [vmem:[#allocation9 + $0x6ac] sm:$0xf0] }
 0x212   : > { %v8891_v63 = vor.u32 %v10584_v30, %v8890_v47  ;;  %v8698_v30 = vld [vmem:[#allocation9 + $0x640] sm:$0xf] }
 0x213   : > { %v3535_v42 = vpack.c.bf16 %v3528_v56, %v3527_v20  ;;  %v3387_v59 = vadd.f32 %v3386_v61, %v3373_v48  ;;  %4602 = vmatpush.bf16.msra.mxu2 %v8763_v51  ;;  %v8875_v56 = vor.u32 %v10580_v22, %v8874_v52  ;;  %v10568_v51 = vld [vmem:[#allocation9 + $0x74c] sm:$0xf0]  ;;  %v8682_v22 = vld [vmem:[#allocation9 + $0x620] sm:$0xf] }
 0x214   : > { %4616 = vmatpush.bf16.msra.mxu3 %v8891_v63 }
 0x215   : > { %v3540_v8 = vshrl.u32 %v3535_v42, 16  ;;  %v3506_v44 = vadd.f32 %v3387_v59, %v2365_v1  ;;  %v3543_v5 = vshll.u32 %v3535_v42, 16  ;;  %v3586_v1 = vld [vmem:[#allocation2 + $0x8] sm:$0x11]  ;;  %v8730_v42 = vld [vmem:[#allocation9 + $0x680] sm:$0xf] }
 0x216   : > { %v10544_v59 = vld [vmem:[#allocation9 + $0x68c] sm:$0xf0] }
 0x217   : > { %v3542_v54 = vrot.slane %v3540_v8, 7  ;;  %v3524_v2 = vadd.f32 %v3512_v40, %v3506_v44  ;;  %v8746_v40 = vld [vmem:[#allocation9 + $0x6a0] sm:$0xf]  ;;  %v8731_v23 = vor.u32 %v10544_v59, %v8730_v42  ;;  %v10564_v59 = vld [vmem:[#allocation9 + $0x72c] sm:$0xf0] }
 0x218   : > { %v8747_v16 = vor.u32 %v10548_v21, %v8746_v40  ;;  %4617 = vmatpush.bf16.msra.mxu3 %v8875_v56  ;;  %v10532_v56 = vld [vmem:[#allocation9 + $0x62c] sm:$0xf0] }
 0x219   : > { %v3545_v27 = vor.u32 %v3543_v5, %v3542_v54  ;;  %v3532_v55 = vmax.f32 %v3524_v2, 0.0  ;;  %v3553_v60 = vrot.slane %v3542_v54, 4  ;;  %v8715_v54 = vor.u32 %v10540_v32, %v8714_v45  ;;  %v8842_v5 = vld [vmem:[#allocation9 + $0x760] sm:$0xf]  ;;  %v10572_v2 = vld [vmem:[#allocation9 + $0x76c] sm:$0xf0] }
 0x21a   : > { %4603 = vmatpush.bf16.msra.mxu2 %v8747_v16  ;;  %v8843_v29 = vor.u32 %v10572_v2, %v8842_v5  ;;  %v8683_v42 = vor.u32 %v10532_v56, %v8682_v22  ;;  %v10528_v5 = vld [vmem:[#allocation9 + $0x60c] sm:$0xf0]  ;;  %v10489_v22 = vld [vmem:[#allocation9 + $0x4d4] sm:$0xf0]  ;;  %v8642_v56 = vld [vmem:[#allocation9 + $0x5c8] sm:$0xf] }
 0x21b   : > { %v3579_v58 = vsel %vm11352_vm3, %v3545_v27, %v10812_v0  ;;  %v3537_v20 = vpack.c.bf16 %v3532_v55, %v3531_v46  ;;  %v10536_v46 = vld [vmem:[#allocation9 + $0x64c] sm:$0xf0]  ;;  %v8826_v55 = vld [vmem:[#allocation9 + $0x740] sm:$0xf] }
 0x21c   : > { %3580 = vst [vmem:[#allocation2 + $0x18] sm:$0xff] %v3579_v58  ;;  %4618 = vmatpush.bf16.msra.mxu3 %v8859_v34  ;;  %v3861_v33 = vunpack.c.l.b16 %v3579_v58  ;;  %v3862_v12 = vunpack.c.h.b16 %v3579_v58  ;;  %v8699_v27 = vor.u32 %v10536_v46, %v8698_v30  ;;  %v8827_v58 = vor.u32 %v10568_v51, %v8826_v55  ;;  %v10525_v34 = vld [vmem:[#allocation9 + $0x5f4] sm:$0xf0]  ;;  %v8794_v51 = vld [vmem:[#allocation9 + $0x700] sm:$0xf] }
 0x21d   : > { %v3555_v61 = vshrl.u32 %v3537_v20, 16  ;;  %v3558_v28 = vshll.u32 %v3537_v20, 16  ;;  %v8659_v46 = vor.u32 %v10525_v34, %v8658_v14  ;;  %v10586_v34 = vld [vmem:[#allocation9 + $0x7e4] sm:$0xf] }
 0x21e   : > { %4604 = vmatpush.bf16.msra.mxu2 %v8731_v23 }
 0x21f   : > { %v3557_v48 = vrot.slane %v3555_v61, 7 }
 0x220   : > { %4619 = vmatpush.bf16.msra.mxu3 %v8843_v29 }
 0x221   : > { %v3560_v35 = vor.u32 %v3558_v28, %v3557_v48  ;;  %v3571_v36 = vrot.slane %v3557_v48, 4  ;;  %v8810_v48 = vld [vmem:[#allocation9 + $0x720] sm:$0xf]  ;;  %v8530_v28 = vld [vmem:[#allocation9 + $0x4e8] sm:$0xf] }
 0x222   : > { %4605 = vmatpush.bf16.msra.mxu2 %v8715_v54  ;;  %v8811_v32 = vor.u32 %v10564_v59, %v8810_v48  ;;  %v8666_v54 = vld [vmem:[#allocation9 + $0x600] sm:$0xf]  ;;  %v10521_v48 = vld [vmem:[#allocation9 + $0x5d4] sm:$0xf0]  ;;  %v10554_v59 = vld [vmem:[#allocation9 + $0x6e4] sm:$0xf] }
 0x223   : > { %v11627_v7 = vsel %vm11339_vm1, %v3553_v60, %v3560_v35  ;;  %v3587_v8 = vsel %vm11247_vm8, %v3571_v36, %v3586_v1  ;;  %v11643_v20 = vld [vmem:[#allocation2 + $0x18] sm:$0xee]  ;;  %v11645_v40 = vpop.f32.mrf.mxu0  ;;  %v11647_v21 = vpop.f32.mrf.mxu1  ;;  %v10493_v1 = vld [vmem:[#allocation9 + $0x4f4] sm:$0xf0]  ;;  %v8667_v55 = vor.u32 %v10528_v5, %v8666_v54 }
 0x224   : > { %v3865_v44 = vunpack.c.l.b16 %v11627_v7  ;;  %v3866_v49 = vunpack.c.h.b16 %v11627_v7  ;;  %3588 = vst [vmem:[#allocation2 + $0x8] sm:$0x11] %v3587_v8  ;;  %4620 = vmatpush.bf16.msra.mxu3 %v8827_v58  ;;  %v5798_v53 = vunpack.c.l.b16 %v11643_v20  ;;  %v8531_v30 = vor.u32 %v10493_v1, %v8530_v28  ;;  %v8780_v28 = vld [vmem:[#allocation9 + $0x6f0] sm:$0xf0]  ;;  %v8610_v7 = vld [vmem:[#allocation9 + $0x588] sm:$0xf] }
 0x226   : > { %v11635_v4 = vpack.c.b16 %v3865_v44, %v3861_v33  ;;  %v11639_v47 = vpack.c.b16 %v3866_v49, %v3862_v12  ;;  %4606 = vmatpush.bf16.msra.mxu2 %v8699_v27  ;;  %v8514_v27 = vld [vmem:[#allocation9 + $0x4c8] sm:$0xf] }
 0x227   : > { %v8515_v5 = vor.u32 %v10489_v22, %v8514_v27 }
 0x228   : > { %v3884_v63 = vshll.u32 %v11635_v4, 16  ;;  %v3896_v0 = vshll.u32 %v11639_v47, 16  ;;  %v3882_v8 = vshrl.u32 %v11635_v4, 16  ;;  %v3894_v45 = vshrl.u32 %v11639_v47, 16  ;;  %v11658_v2 = vpop.f32.mrf.mxu2  ;;  %v11660_v29 = vpop.f32.mrf.mxu3  ;;  %4621 = vmatpush.bf16.msra.mxu3 %v8811_v32  ;;  %v8908_v32 = vld [vmem:[#allocation9 + $0x7f0] sm:$0xf0] }
 0x229   : > { %v8911_v54 = vor.u32 %v10586_v34, %v8908_v32  ;;  %v10481_v32 = vld [vmem:[#allocation9 + $0x494] sm:$0xf0] }
 0x22a   : > { %v3886_v35 = vrot.slane %v3884_v63, 1  ;;  %v3898_v23 = vrot.slane %v3896_v0, 1  ;;  %4607 = vmatpush.bf16.msra.mxu2 %v8683_v42  ;;  %v10560_v63 = vld [vmem:[#allocation9 + $0x70c] sm:$0xf0]  ;;  %v5802_v0 = vpack.c.b16 %v3865_v44, %v5798_v53  ;;  %v5799_v44 = vunpack.c.h.b16 %v11643_v20 }
 0x22b   : > { %v3724_v61 = vld [vmem:[#allocation2 + $0x8] sm:$0x11]  ;;  %v8795_v42 = vor.u32 %v10560_v63, %v8794_v51  ;;  %v1525_v53 = vadd.f32 %v11499_v25, %v11497_v24  ;;  %v8643_v20 = vor.u32 %v10521_v48, %v8642_v56  ;;  %v10550_v51 = vld [vmem:[#allocation9 + $0x6c4] sm:$0xf]  ;;  %v3413_v63 = vadd.f32 %v11647_v21, %v11645_v40  ;;  %v8482_v56 = vld [vmem:[#allocation9 + $0x488] sm:$0xf] }
 0x22c   : > { %v3869_v16 = vunpack.c.l.b16 %v3724_v61  ;;  %v3870_v52 = vunpack.c.h.b16 %v3724_v61  ;;  %v3887_v58 = vor.u32 %v3886_v35, %v3882_v8  ;;  %v11673_v35 = vpop.f32.mrf.mxu0  ;;  %v8498_v8 = vld [vmem:[#allocation9 + $0x4a8] sm:$0xf]  ;;  %v5806_v24 = vrot.slane %v5802_v0, 1  ;;  %v10546_v40 = vld [vmem:[#allocation9 + $0x6a4] sm:$0xf] }
 0x22d   : > { %4622 = vmatpush.bf16.msra.mxu3 %v8795_v42  ;;  %v1539_v27 = vadd.f32 %v11503_v41, %v1525_v53  ;;  %v8748_v21 = vld [vmem:[#allocation9 + $0x6b0] sm:$0xf0]  ;;  %v10578_v48 = vld [vmem:[#allocation9 + $0x7a4] sm:$0xf] }
 0x22e   : > { %v11650_v60 = vpack.c.b16 %v3869_v16, %v3869_v16  ;;  %v11652_v36 = vpack.c.b16 %v3870_v52, %v3870_v52  ;;  %v3899_v16 = vor.u32 %v3898_v23, %v3894_v45  ;;  %4608 = vmatpush.bf16.msra.mxu2 %v8667_v55  ;;  %v11675_v23 = vpop.f32.mrf.mxu1  ;;  %v10485_v45 = vld [vmem:[#allocation9 + $0x4b4] sm:$0xf0]  ;;  %v8876_v42 = vld [vmem:[#allocation9 + $0x7b0] sm:$0xf0]  ;;  %v8751_v41 = vor.u32 %v10546_v40, %v8748_v21  ;;  %v10570_v40 = vld [vmem:[#allocation9 + $0x764] sm:$0xf] }
 0x22f   : > { %v10517_v55 = vld [vmem:[#allocation9 + $0x5b4] sm:$0xf0]  ;;  %v8499_v0 = vor.u32 %v10485_v45, %v8498_v8  ;;  %v1553_v8 = vadd.f32 %v11505_v57, %v1539_v27  ;;  %v3415_v57 = vadd.f32 %v11675_v23, %v11673_v35  ;;  %v8716_v27 = vld [vmem:[#allocation9 + $0x670] sm:$0xf0]  ;;  %v8450_v23 = vld [vmem:[#allocation9 + $0x448] sm:$0xf] }
 0x230   : > { %v3889_v33 = vshll.u32 %v11650_v60, 16  ;;  %v3901_v12 = vshll.u32 %v11652_v36, 16  ;;  %v5807_v25 = vrot.slane %v11650_v60, 1  ;;  %v1581_v60 = vadd.f32 %v11523_v50, %v11521_v17  ;;  %v11690_v34 = vpop.f32.mrf.mxu3  ;;  %v8844_v21 = vld [vmem:[#allocation9 + $0x770] sm:$0xf0] }
 0x231   : > { %4671 = vmatpush.bf16.msrb.mxu3 %v8911_v54  ;;  %v8879_v17 = vor.u32 %v10578_v48, %v8876_v42  ;;  %v5810_v53 = vrot.slane %v11652_v36, 1  ;;  %v10542_v54 = vld [vmem:[#allocation9 + $0x684] sm:$0xf]  ;;  %v2379_v36 = vadd.f32 %v11578_v62, %v1553_v8  ;;  %v10473_v42 = vld [vmem:[#allocation9 + $0x454] sm:$0xf0] }
 0x232   : > { %v3891_v61 = vrot.slane %v3889_v33, 1  ;;  %v3903_v52 = vrot.slane %v3901_v12, 1  ;;  %v8626_v33 = vld [vmem:[#allocation9 + $0x5a8] sm:$0xf]  ;;  %v8783_v12 = vor.u32 %v10554_v59, %v8780_v28  ;;  %v3428_v28 = vpop.f32.mrf.mxu2  ;;  %v1595_v45 = vadd.f32 %v11541_v37, %v1581_v60  ;;  %v10477_v37 = vld [vmem:[#allocation9 + $0x474] sm:$0xf0] }
 0x233   : > { %v8627_v22 = vor.u32 %v10517_v55, %v8626_v33 }
 0x234   : > { %v11665_v1 = vsel %vm694_vm2, %v3887_v58, %v3891_v61  ;;  %v11668_v14 = vsel %vm694_vm2, %v3899_v16, %v3903_v52  ;;  %4657 = vmatpush.bf16.msrb.mxu2 %v8783_v12  ;;  %v8764_v58 = vld [vmem:[#allocation9 + $0x6d0] sm:$0xf0]  ;;  %v10582_v61 = vld [vmem:[#allocation9 + $0x7c4] sm:$0xf]  ;;  %v1609_v60 = vadd.f32 %v11543_v39, %v1595_v45  ;;  %v3514_v45 = vperm.slane %v11609_v38, 3 }
 0x235   : > { %4581 = vmatmul.bf16.vlgmr.msra.gmra.mxu0 %v11665_v1  ;;  %4595 = vmatmul.bf16.vlgmr.msra.gmra.mxu1 %v11668_v14  ;;  %v8892_v16 = vld [vmem:[#allocation9 + $0x7d0] sm:$0xf0]  ;;  %v8767_v52 = vor.u32 %v10550_v51, %v8764_v58  ;;  %v8466_v51 = vld [vmem:[#allocation9 + $0x468] sm:$0xf]  ;;  %v10509_v58 = vld [vmem:[#allocation9 + $0x574] sm:$0xf0] }
 0x236   : > { %4685 = vmatpush.bf16.msra.mxu0 %v8531_v30  ;;  %4699 = vmatpush.bf16.msra.mxu1 %v8659_v46  ;;  %v8895_v59 = vor.u32 %v10582_v61, %v8892_v16  ;;  %v11683_v30 = vsel %vm2620_vm4, %v5806_v24, %v5807_v25  ;;  %v5803_v46 = vpack.c.b16 %v3866_v49, %v5799_v44  ;;  %v10513_v49 = vld [vmem:[#allocation9 + $0x594] sm:$0xf0]  ;;  %v10574_v24 = vld [vmem:[#allocation9 + $0x784] sm:$0xf] }
 0x237   : > { %v3427_v44 = vadd.f32 %v11658_v2, %v3413_v63  ;;  %v8611_v55 = vor.u32 %v10513_v49, %v8610_v7  ;;  %v8860_v2 = vld [vmem:[#allocation9 + $0x790] sm:$0xf0]  ;;  %v8594_v63 = vld [vmem:[#allocation9 + $0x568] sm:$0xf]  ;;  %v8467_v62 = vor.u32 %v10477_v37, %v8466_v51  ;;  %v10505_v7 = vld [vmem:[#allocation9 + $0x554] sm:$0xf0] }
 0x238   : > { %4658 = vmatpush.bf16.msrb.mxu2 %v8767_v52  ;;  %4672 = vmatpush.bf16.msrb.mxu3 %v8895_v59  ;;  %v5809_v50 = vrot.slane %v5803_v46, 1  ;;  %v8863_v59 = vor.u32 %v10574_v24, %v8860_v2  ;;  %v10538_v46 = vld [vmem:[#allocation9 + $0x664] sm:$0xf]  ;;  %v8595_v35 = vor.u32 %v10509_v58, %v8594_v63  ;;  %v8562_v51 = vld [vmem:[#allocation9 + $0x528] sm:$0xf] }
 0x239   : > { %v3441_v16 = vadd.f32 %v11660_v29, %v3427_v44  ;;  %v8719_v49 = vor.u32 %v10538_v46, %v8716_v27  ;;  %v10501_v24 = vld [vmem:[#allocation9 + $0x534] sm:$0xf0]  ;;  %v10530_v63 = vld [vmem:[#allocation9 + $0x624] sm:$0xf]  ;;  %v8684_v58 = vld [vmem:[#allocation9 + $0x630] sm:$0xf0] }
 0x23a   : > { %4686 = vmatpush.bf16.msra.mxu0 %v8515_v5  ;;  %4700 = vmatpush.bf16.msra.mxu1 %v8643_v20  ;;  %v8732_v5 = vld [vmem:[#allocation9 + $0x690] sm:$0xf0]  ;;  %v8483_v20 = vor.u32 %v10481_v32, %v8482_v56  ;;  %v11697_v25 = vsel %vm2620_vm4, %v5809_v50, %v5810_v53  ;;  %v3429_v56 = vadd.f32 %v3428_v28, %v3415_v57  ;;  %v8578_v32 = vld [vmem:[#allocation9 + $0x548] sm:$0xf]  ;;  %v10534_v50 = vld [vmem:[#allocation9 + $0x644] sm:$0xf] }
 0x23b   : > { %v8735_v61 = vor.u32 %v10542_v54, %v8732_v5  ;;  %v3503_v39 = vadd.f32 %v3441_v16, %v11576_v9  ;;  %v8700_v53 = vld [vmem:[#allocation9 + $0x650] sm:$0xf0]  ;;  %v8451_v9 = vor.u32 %v10473_v42, %v8450_v23  ;;  %v10469_v54 = vld [vmem:[#allocation9 + $0x434] sm:$0xf0]  ;;  %v8418_v16 = vld [vmem:[#allocation9 + $0x408] sm:$0xf] }
 0x23c   : > { %4659 = vmatpush.bf16.msrb.mxu2 %v8751_v41  ;;  %4673 = vmatpush.bf16.msrb.mxu3 %v8879_v17  ;;  %v3513_v41 = vperm.slane %v11609_v38, 2  ;;  %v8847_v17 = vor.u32 %v10570_v40, %v8844_v21  ;;  %v8828_v28 = vld [vmem:[#allocation9 + $0x750] sm:$0xf0]  ;;  %v8703_v2 = vor.u32 %v10534_v50, %v8700_v53  ;;  %v8546_v40 = vld [vmem:[#allocation9 + $0x508] sm:$0xf] }
 0x23d   : > { %v10497_v21 = vld [vmem:[#allocation9 + $0x514] sm:$0xf0]  ;;  %v10491_v23 = vld [vmem:[#allocation9 + $0x4ec] sm:$0xf]  ;;  %v8796_v50 = vld [vmem:[#allocation9 + $0x710] sm:$0xf0] }
 0x23e   : > { %4687 = vmatpush.bf16.msra.mxu0 %v8499_v0  ;;  %4701 = vmatpush.bf16.msra.mxu1 %v8627_v22  ;;  %v2393_v0 = vadd.f32 %v11580_v10, %v2379_v36  ;;  %v2435_v22 = vadd.f32 %v11593_v15, %v1609_v60  ;;  %v10566_v15 = vld [vmem:[#allocation9 + $0x744] sm:$0xf]  ;;  %v3521_v36 = vadd.f32 %v3513_v41, %v3503_v39 }
 0x23f   : > { %v8831_v37 = vor.u32 %v10566_v15, %v8828_v28  ;;  %v8563_v60 = vor.u32 %v10501_v24, %v8562_v51  ;;  %v8547_v15 = vor.u32 %v10497_v21, %v8546_v40  ;;  %v8612_v40 = vld [vmem:[#allocation9 + $0x598] sm:$0xf0] }
 0x240   : > { %4660 = vmatpush.bf16.msrb.mxu2 %v8735_v61  ;;  %4674 = vmatpush.bf16.msrb.mxu3 %v8863_v59  ;;  %v2407_v10 = vadd.f32 %v11586_v13, %v2393_v0  ;;  %v2449_v5 = vadd.f32 %v11595_v26, %v2435_v22  ;;  %v8812_v59 = vld [vmem:[#allocation9 + $0x730] sm:$0xf0]  ;;  %v10523_v0 = vld [vmem:[#allocation9 + $0x5ec] sm:$0xf]  ;;  %v3529_v22 = vmax.f32 %v3521_v36, 0.0 }
 0x242   : > { %4688 = vmatpush.bf16.msra.mxu0 %v8483_v20  ;;  %4702 = vmatpush.bf16.msra.mxu1 %v8611_v55  ;;  %v3443_v20 = vadd.f32 %v11690_v34, %v3429_v56  ;;  %v2421_v61 = vadd.f32 %v11588_v18, %v2407_v10  ;;  %v2463_v26 = vadd.f32 %v11597_v43, %v2449_v5  ;;  %v8532_v18 = vld [vmem:[#allocation9 + $0x4f8] sm:$0xf0]  ;;  %v10519_v5 = vld [vmem:[#allocation9 + $0x5cc] sm:$0xf] }
 0x243   : > { %v3454_v33 = vpop.f32.mrf.mxu0  ;;  %v3468_v12 = vpop.f32.mrf.mxu1  ;;  %v8687_v43 = vor.u32 %v10530_v63, %v8684_v58  ;;  %v8500_v63 = vld [vmem:[#allocation9 + $0x4b8] sm:$0xf0] }
 0x244   : > { %v3469_v52 = vadd.f32 %v3468_v12, %v3454_v33  ;;  %v8579_v33 = vor.u32 %v10505_v7, %v8578_v32  ;;  %v8434_v12 = vld [vmem:[#allocation9 + $0x428] sm:$0xf]  ;;  %4661 = vmatpush.bf16.msrb.mxu2 %v8719_v49  ;;  %4675 = vmatpush.bf16.msrb.mxu3 %v8847_v17  ;;  %v10526_v32 = vld [vmem:[#allocation9 + $0x604] sm:$0xf]  ;;  %v2477_v7 = vadd.f32 %v11599_v6, %v2463_v26 }
 0x245   : > { %4637 = vmatmul.bf16.vlgmr.msrb.gmra.mxu0 %v11665_v1  ;;  %4651 = vmatmul.bf16.vlgmr.msrb.gmra.mxu1 %v11668_v14  ;;  %v8435_v34 = vor.u32 %v10469_v54, %v8434_v12  ;;  %v10558_v17 = vld [vmem:[#allocation9 + $0x704] sm:$0xf]  ;;  %v8516_v12 = vld [vmem:[#allocation9 + $0x4d8] sm:$0xf0] }
 0x246   : > { %4689 = vmatpush.bf16.msra.mxu0 %v8467_v62  ;;  %4703 = vmatpush.bf16.msra.mxu1 %v8595_v35  ;;  %v3507_v62 = vadd.f32 %v3443_v20, %v2421_v61  ;;  %v8644_v20 = vld [vmem:[#allocation9 + $0x5d8] sm:$0xf0] }
 0x247   : > { %v3482_v29 = vpop.f32.mrf.mxu2  ;;  %v3496_v48 = vpop.f32.mrf.mxu3 }
 0x248   : > { %v3483_v44 = vadd.f32 %v3482_v29, %v3469_v52  ;;  %v10562_v52 = vld [vmem:[#allocation9 + $0x724] sm:$0xf]  ;;  %4662 = vmatpush.bf16.msrb.mxu2 %v8703_v2  ;;  %4676 = vmatpush.bf16.msrb.mxu3 %v8831_v37  ;;  %v3525_v28 = vadd.f32 %v3513_v41, %v3507_v62  ;;  %v3581_v41 = vld [vmem:[#allocation2 + $0x20] sm:$0xff] }
 0x249   : > { %v8815_v42 = vor.u32 %v10562_v52, %v8812_v59  ;;  %v10483_v37 = vld [vmem:[#allocation9 + $0x4ac] sm:$0xf] }
 0x24a   : > { %v3497_v8 = vadd.f32 %v3496_v48, %v3483_v44  ;;  %4690 = vmatpush.bf16.msra.mxu0 %v8451_v9  ;;  %4704 = vmatpush.bf16.msra.mxu1 %v8579_v33  ;;  %v8660_v48 = vld [vmem:[#allocation9 + $0x5f8] sm:$0xf0]  ;;  %v8668_v44 = vld [vmem:[#allocation9 + $0x610] sm:$0xf0]  ;;  %v10487_v33 = vld [vmem:[#allocation9 + $0x4cc] sm:$0xf]  ;;  %v8503_v52 = vor.u32 %v10483_v37, %v8500_v63 }
 0x24b   : > { %v3456_v13 = vpop.f32.mrf.mxu0  ;;  %v3470_v55 = vpop.f32.mrf.mxu1  ;;  %v8663_v9 = vor.u32 %v10523_v0, %v8660_v48  ;;  %v8519_v36 = vor.u32 %v10487_v33, %v8516_v12  ;;  %v3533_v58 = vmax.f32 %v3525_v28, 0.0  ;;  %v8468_v0 = vld [vmem:[#allocation9 + $0x478] sm:$0xf0]  ;;  %v10467_v33 = vld [vmem:[#allocation9 + $0x42c] sm:$0xf] }
 0x24c   : > { %v3504_v57 = vadd.f32 %v3497_v8, %v11591_v31  ;;  %v3471_v27 = vadd.f32 %v3470_v55, %v3456_v13  ;;  %v10465_v31 = vld [vmem:[#allocation9 + $0x414] sm:$0xf0]  ;;  %v8535_v8 = vor.u32 %v10491_v23, %v8532_v18  ;;  %4663 = vmatpush.bf16.msrb.mxu2 %v8687_v43  ;;  %4677 = vmatpush.bf16.msrb.mxu3 %v8815_v42  ;;  %v8596_v48 = vld [vmem:[#allocation9 + $0x578] sm:$0xf0]  ;;  %v10364_v37 = vld [vmem:[#allocation9 + $0xec] sm:$0xf0] }
 0x24d   : > { %v8419_v39 = vor.u32 %v10465_v31, %v8418_v16  ;;  %v8671_v13 = vor.u32 %v10526_v32, %v8668_v44  ;;  %v8799_v55 = vor.u32 %v10558_v17, %v8796_v50  ;;  %v8628_v16 = vld [vmem:[#allocation9 + $0x5b8] sm:$0xf0]  ;;  %v10511_v31 = vld [vmem:[#allocation9 + $0x58c] sm:$0xf] }
 0x24e   : > { %v3522_v46 = vadd.f32 %v3514_v45, %v3504_v57  ;;  %4691 = vmatpush.bf16.msra.mxu0 %v8435_v34  ;;  %4705 = vmatpush.bf16.msra.mxu1 %v8563_v60  ;;  %v8647_v57 = vor.u32 %v10519_v5, %v8644_v20  ;;  %v10515_v34 = vld [vmem:[#allocation9 + $0x5ac] sm:$0xf]  ;;  %v8615_v18 = vor.u32 %v10511_v31, %v8612_v40  ;;  %v8452_v44 = vld [vmem:[#allocation9 + $0x458] sm:$0xf0]  ;;  %v8914_v31 = vld [vmem:[#allocation9 + $0x7e8] sm:$0xf] }
 0x24f   : > { %v3484_v35 = vpop.f32.mrf.mxu2  ;;  %v3498_v49 = vpop.f32.mrf.mxu3  ;;  %v8631_v59 = vor.u32 %v10515_v34, %v8628_v16  ;;  %v8436_v12 = vld [vmem:[#allocation9 + $0x438] sm:$0xf0]  ;;  %v10463_v5 = vld [vmem:[#allocation9 + $0x40c] sm:$0xf]  ;;  %v10589_v40 = vld [vmem:[#allocation9 + $0x7f4] sm:$0xf0] }
 0x250   : > { %v3530_v56 = vmax.f32 %v3522_v46, 0.0  ;;  %v3485_v29 = vadd.f32 %v3484_v35, %v3471_v27  ;;  %4664 = vmatpush.bf16.msrb.mxu2 %v8671_v13  ;;  %4678 = vmatpush.bf16.msrb.mxu3 %v8799_v55  ;;  %v10479_v46 = vld [vmem:[#allocation9 + $0x48c] sm:$0xf]  ;;  %v8484_v27 = vld [vmem:[#allocation9 + $0x498] sm:$0xf0] }
 0x251   : > { %v3589_v35 = vld [vmem:[#allocation2] sm:$0x11]  ;;  %v8487_v23 = vor.u32 %v10479_v46, %v8484_v27  ;;  %v8420_v20 = vld [vmem:[#allocation9 + $0x418] sm:$0xf0] }
 0x252   : > { %v3536_v53 = vpack.c.bf16 %v3530_v56, %v3529_v22  ;;  %v3499_v10 = vadd.f32 %v3498_v49, %v3485_v29  ;;  %4692 = vmatpush.bf16.msra.mxu0 %v8419_v39  ;;  %4706 = vmatpush.bf16.msra.mxu1 %v8547_v15  ;;  %v10507_v29 = vld [vmem:[#allocation9 + $0x56c] sm:$0xf]  ;;  %v8548_v55 = vld [vmem:[#allocation9 + $0x518] sm:$0xf0]  ;;  %v8423_v16 = vor.u32 %v10463_v5, %v8420_v20  ;;  %v9002_v20 = vld [vmem:[#allocation9 + $0xa0] sm:$0xf] }
 0x253   : > { %v8599_v49 = vor.u32 %v10507_v29, %v8596_v48  ;;  %v10471_v39 = vld [vmem:[#allocation9 + $0x44c] sm:$0xf]  ;;  %v8915_v48 = vor.u32 %v10589_v40, %v8914_v31 }
 0x254   : > { %v3547_v54 = vshrl.u32 %v3536_v53, 16  ;;  %v3508_v6 = vadd.f32 %v3499_v10, %v2477_v7  ;;  %v3550_v24 = vshll.u32 %v3536_v53, 16  ;;  %v8471_v7 = vor.u32 %v10475_v11, %v8468_v0  ;;  %v10503_v53 = vld [vmem:[#allocation9 + $0x54c] sm:$0xf]  ;;  %v8580_v10 = vld [vmem:[#allocation9 + $0x558] sm:$0xf0] }
 0x255   : > { %4693 = vmatmul.bf16.vlgmr.msra.gmra.mxu0 %v11665_v1  ;;  %4707 = vmatmul.bf16.vlgmr.msra.gmra.mxu1 %v11668_v14  ;;  %v10495_v13 = vld [vmem:[#allocation9 + $0x50c] sm:$0xf] }
 0x256   : > { %v3549_v51 = vrot.slane %v3547_v54, 7  ;;  %v3526_v2 = vadd.f32 %v3514_v45, %v3508_v6  ;;  %4741 = vmatpush.bf16.msrb.mxu0 %v8535_v8  ;;  %4755 = vmatpush.bf16.msrb.mxu1 %v8663_v9  ;;  %v8455_v8 = vor.u32 %v10471_v39, %v8452_v44  ;;  %v8583_v9 = vor.u32 %v10503_v53, %v8580_v10  ;;  %v10499_v54 = vld [vmem:[#allocation9 + $0x52c] sm:$0xf]  ;;  %v8564_v6 = vld [vmem:[#allocation9 + $0x538] sm:$0xf0] }
 0x257   : > { %v8770_v10 = vld [vmem:[#allocation9 + $0x6c8] sm:$0xf] }
 0x258   : > { %v3552_v61 = vor.u32 %v3550_v24, %v3549_v51  ;;  %v3534_v26 = vmax.f32 %v3526_v2, 0.0  ;;  %v3562_v43 = vrot.slane %v3549_v51, 4  ;;  %v8439_v2 = vor.u32 %v10467_v33, %v8436_v12 }
 0x25a   : > { %v3582_v38 = vsel %vm11352_vm3, %v3552_v61, %v3581_v41  ;;  %v3538_v45 = vpack.c.bf16 %v3534_v26, %v3533_v58  ;;  %4742 = vmatpush.bf16.msrb.mxu0 %v8519_v36  ;;  %4756 = vmatpush.bf16.msrb.mxu1 %v8647_v57  ;;  %v8567_v41 = vor.u32 %v10499_v54, %v8564_v6  ;;  %v9034_v57 = vld [vmem:[#allocation9 + $0xe0] sm:$0xf]  ;;  %v10396_v26 = vld [vmem:[#allocation9 + $0x1ec] sm:$0xf0] }
 0x25b   : > { %3583 = vst [vmem:[#allocation2 + $0x20] sm:$0xff] %v3582_v38  ;;  %v3863_v15 = vunpack.c.l.b16 %v3582_v38  ;;  %v3864_v3 = vunpack.c.h.b16 %v3582_v38  ;;  %v9162_v61 = vld [vmem:[#allocation9 + $0x1e0] sm:$0xf]  ;;  %v8551_v38 = vor.u32 %v10495_v13, %v8548_v55  ;;  %v10356_v13 = vld [vmem:[#allocation9 + $0xac] sm:$0xf0] }
 0x25c   : > { %v3564_v60 = vshrl.u32 %v3538_v45, 16  ;;  %v3567_v62 = vshll.u32 %v3538_v45, 16  ;;  %v8786_v45 = vld [vmem:[#allocation9 + $0x6e8] sm:$0xf]  ;;  %v9130_v55 = vld [vmem:[#allocation9 + $0x1a0] sm:$0xf] }
 0x25e   : > { %v3566_v21 = vrot.slane %v3564_v60, 7  ;;  %4743 = vmatpush.bf16.msrb.mxu0 %v8503_v52  ;;  %4757 = vmatpush.bf16.msrb.mxu1 %v8631_v59  ;;  %v10557_v52 = vld [vmem:[#allocation9 + $0x6f4] sm:$0xf0] }
 0x25f   : > { %v8787_v29 = vor.u32 %v10557_v52, %v8786_v45 }
 0x260   : > { %v3569_v22 = vor.u32 %v3567_v62, %v3566_v21  ;;  %v3572_v56 = vrot.slane %v3566_v21, 4  ;;  %v9035_v21 = vor.u32 %v10364_v37, %v9034_v57  ;;  %v9163_v62 = vor.u32 %v10396_v26, %v9162_v61  ;;  %v8986_v26 = vld [vmem:[#allocation9 + $0x80] sm:$0xf] }
 0x262   : > { %v11732_v42 = vsel %vm11339_vm1, %v3562_v43, %v3569_v22  ;;  %v3590_v32 = vsel %vm11247_vm8, %v3572_v56, %v3589_v35  ;;  %4744 = vmatpush.bf16.msrb.mxu0 %v8487_v23  ;;  %4758 = vmatpush.bf16.msrb.mxu1 %v8615_v18  ;;  %v5666_v34 = vld [vmem:[#allocation2 + $0x20] sm:$0xee]  ;;  %v9018_v35 = vld [vmem:[#allocation9 + $0xc0] sm:$0xf] }
 0x263   : > { %v3867_v17 = vunpack.c.l.b16 %v11732_v42  ;;  %v3868_v50 = vunpack.c.h.b16 %v11732_v42  ;;  %3591 = vst [vmem:[#allocation2] sm:$0x11] %v3590_v32  ;;  %v5800_v23 = vunpack.c.l.b16 %v5666_v34  ;;  %v5801_v18 = vunpack.c.h.b16 %v5666_v34  ;;  %v10360_v56 = vld [vmem:[#allocation9 + $0xcc] sm:$0xf0]  ;;  %v9146_v32 = vld [vmem:[#allocation9 + $0x1c0] sm:$0xf] }
 0x264   : > { %v10352_v34 = vld [vmem:[#allocation9 + $0x8c] sm:$0xf0] }
 0x265   : > { %v11740_v28 = vpack.c.b16 %v3867_v17, %v3863_v15  ;;  %v11744_v19 = vpack.c.b16 %v3868_v50, %v3864_v3  ;;  %v10553_v15 = vld [vmem:[#allocation9 + $0x6d4] sm:$0xf0]  ;;  %v8898_v3 = vld [vmem:[#allocation9 + $0x7c8] sm:$0xf]  ;;  %v5804_v33 = vpack.c.b16 %v3867_v17, %v5800_v23  ;;  %v5805_v12 = vpack.c.b16 %v3868_v50, %v5801_v18  ;;  %v10388_v17 = vld [vmem:[#allocation9 + $0x1ac] sm:$0xf0] }
 0x266   : > { %4745 = vmatpush.bf16.msrb.mxu0 %v8471_v7  ;;  %4759 = vmatpush.bf16.msrb.mxu1 %v8599_v49  ;;  %v10392_v7 = vld [vmem:[#allocation9 + $0x1cc] sm:$0xf0]  ;;  %v8771_v42 = vor.u32 %v10553_v15, %v8770_v10  ;;  %v9131_v61 = vor.u32 %v10388_v17, %v9130_v55  ;;  %v8987_v31 = vor.u32 %v10352_v34, %v8986_v26  ;;  %v8706_v10 = vld [vmem:[#allocation9 + $0x648] sm:$0xf]  ;;  %v10537_v15 = vld [vmem:[#allocation9 + $0x654] sm:$0xf0] }
 0x267   : > { %v3908_v51 = vshll.u32 %v11740_v28, 16  ;;  %v3920_v24 = vshll.u32 %v11744_v19, 16  ;;  %v3906_v11 = vshrl.u32 %v11740_v28, 16  ;;  %v3918_v43 = vshrl.u32 %v11744_v19, 16  ;;  %v10380_v23 = vld [vmem:[#allocation9 + $0x16c] sm:$0xf0] }
 0x268   : > { %v9147_v5 = vor.u32 %v10392_v7, %v9146_v32  ;;  %v5815_v37 = vrot.slane %v5805_v12, 1  ;;  %v8954_v32 = vld [vmem:[#allocation9 + $0x40] sm:$0xf]  ;;  %v10344_v7 = vld [vmem:[#allocation9 + $0x4c] sm:$0xf0]  ;;  %v8707_v55 = vor.u32 %v10537_v15, %v8706_v10 }
 0x269   : > { %v3910_v46 = vrot.slane %v3908_v51, 1  ;;  %v3922_v60 = vrot.slane %v3920_v24, 1  ;;  %v8754_v51 = vld [vmem:[#allocation9 + $0x6a8] sm:$0xf]  ;;  %v10549_v24 = vld [vmem:[#allocation9 + $0x6b4] sm:$0xf0] }
 0x26a   : > { %4746 = vmatpush.bf16.msrb.mxu0 %v8455_v8  ;;  %4760 = vmatpush.bf16.msrb.mxu1 %v8583_v9  ;;  %v3725_v36 = vld [vmem:[#allocation2] sm:$0x11]  ;;  %v10585_v8 = vld [vmem:[#allocation9 + $0x7d4] sm:$0xf0]  ;;  %v9019_v9 = vor.u32 %v10360_v56, %v9018_v35  ;;  %v9098_v35 = vld [vmem:[#allocation9 + $0x160] sm:$0xf] }
 0x26b   : > { %v3871_v63 = vunpack.c.l.b16 %v3725_v36  ;;  %v3872_v58 = vunpack.c.h.b16 %v3725_v36  ;;  %v3911_v49 = vor.u32 %v3910_v46, %v3906_v11  ;;  %v3923_v44 = vor.u32 %v3922_v60, %v3918_v43  ;;  %v10545_v46 = vld [vmem:[#allocation9 + $0x694] sm:$0xf0]  ;;  %v8938_v12 = vld [vmem:[#allocation9 + $0x20] sm:$0xf]  ;;  %v10362_v26 = vld [vmem:[#allocation9 + $0xe4] sm:$0xf] }
 0x26c   : > { %v8899_v50 = vor.u32 %v10585_v8, %v8898_v3  ;;  %v5812_v36 = vrot.slane %v5804_v33, 1  ;;  %v10577_v60 = vld [vmem:[#allocation9 + $0x794] sm:$0xf0]  ;;  %v8834_v3 = vld [vmem:[#allocation9 + $0x748] sm:$0xf] }
 0x26d   : > { %v11748_v59 = vpack.c.b16 %v3871_v63, %v3871_v63  ;;  %v11750_v27 = vpack.c.b16 %v3872_v58, %v3872_v58  ;;  %v9003_v58 = vor.u32 %v10356_v13, %v9002_v20  ;;  %v10541_v43 = vld [vmem:[#allocation9 + $0x674] sm:$0xf0]  ;;  %v9066_v20 = vld [vmem:[#allocation9 + $0x120] sm:$0xf]  ;;  %v10372_v13 = vld [vmem:[#allocation9 + $0x12c] sm:$0xf0] }
 0x26e   : > { %4747 = vmatpush.bf16.msrb.mxu0 %v8439_v2  ;;  %4761 = vmatpush.bf16.msrb.mxu1 %v8567_v41  ;;  %v8882_v2 = vld [vmem:[#allocation9 + $0x7a8] sm:$0xf]  ;;  %v10581_v41 = vld [vmem:[#allocation9 + $0x7b4] sm:$0xf0]  ;;  %v10547_v10 = vld [vmem:[#allocation9 + $0x6ac] sm:$0xf] }
 0x26f   : > { %v3913_v0 = vshll.u32 %v11748_v59, 16  ;;  %v3925_v22 = vshll.u32 %v11750_v27, 16  ;;  %v5813_v57 = vrot.slane %v11748_v59, 1  ;;  %v5816_v63 = vrot.slane %v11750_v27, 1  ;;  %v8738_v59 = vld [vmem:[#allocation9 + $0x688] sm:$0xf] }
 0x270   : > { %v8883_v52 = vor.u32 %v10581_v41, %v8882_v2  ;;  %v8866_v27 = vld [vmem:[#allocation9 + $0x788] sm:$0xf]  ;;  %v8739_v18 = vor.u32 %v10545_v46, %v8738_v59  ;;  %v10573_v56 = vld [vmem:[#allocation9 + $0x774] sm:$0xf0]  ;;  %v9067_v41 = vor.u32 %v10372_v13, %v9066_v20  ;;  %v10354_v15 = vld [vmem:[#allocation9 + $0xa4] sm:$0xf] }
 0x271   : > { %v3915_v39 = vrot.slane %v3913_v0, 1  ;;  %v3927_v53 = vrot.slane %v3925_v22, 1  ;;  %v11773_v45 = vsel %vm2620_vm4, %v5812_v36, %v5813_v57  ;;  %v8867_v11 = vor.u32 %v10577_v60, %v8866_v27  ;;  %v8722_v0 = vld [vmem:[#allocation9 + $0x668] sm:$0xf]  ;;  %v10569_v8 = vld [vmem:[#allocation9 + $0x754] sm:$0xf0] }
 0x272   : > { %4748 = vmatpush.bf16.msrb.mxu0 %v8423_v16  ;;  %4762 = vmatpush.bf16.msrb.mxu1 %v8551_v38  ;;  %v9114_v16 = vld [vmem:[#allocation9 + $0x180] sm:$0xf]  ;;  %v10384_v38 = vld [vmem:[#allocation9 + $0x18c] sm:$0xf0]  ;;  %v8850_v22 = vld [vmem:[#allocation9 + $0x768] sm:$0xf]  ;;  %v8835_v17 = vor.u32 %v10569_v8, %v8834_v3 }
 0x273   : > { %v11761_v54 = vsel %vm694_vm2, %v3911_v49, %v3915_v39  ;;  %v11764_v6 = vsel %vm694_vm2, %v3923_v44, %v3927_v53  ;;  %v9115_v40 = vor.u32 %v10384_v38, %v9114_v16  ;;  %v9082_v49 = vld [vmem:[#allocation9 + $0x140] sm:$0xf]  ;;  %v10376_v39 = vld [vmem:[#allocation9 + $0x14c] sm:$0xf0]  ;;  %v8723_v44 = vor.u32 %v10541_v43, %v8722_v0  ;;  %v9036_v38 = vld [vmem:[#allocation9 + $0xf0] sm:$0xf0] }
 0x274   : > { %4609 = vmatmul.bf16.vlgmr.msra.gmra.mxu2 %v11761_v54  ;;  %4623 = vmatmul.bf16.vlgmr.msra.gmra.mxu3 %v11764_v6  ;;  %v8851_v53 = vor.u32 %v10573_v56, %v8850_v22  ;;  %v9083_v33 = vor.u32 %v10376_v39, %v9082_v49  ;;  %v8922_v36 = vld [vmem:[#allocation9] sm:$0xf]  ;;  %v10336_v57 = vld [vmem:[#allocation9 + $0xc] sm:$0xf0]  ;;  %v8802_v59 = vld [vmem:[#allocation9 + $0x708] sm:$0xf] }
 0x275   : > { %4713 = vmatpush.bf16.msra.mxu2 %v8787_v29  ;;  %4727 = vmatpush.bf16.msra.mxu3 %v8915_v48  ;;  %v9099_v48 = vor.u32 %v10380_v23, %v9098_v35  ;;  %v10561_v46 = vld [vmem:[#allocation9 + $0x714] sm:$0xf0]  ;;  %v10555_v27 = vld [vmem:[#allocation9 + $0x6ec] sm:$0xf]  ;;  %v8923_v60 = vor.u32 %v10336_v57, %v8922_v36  ;;  %v9039_v35 = vor.u32 %v10362_v26, %v9036_v38  ;;  %v10358_v43 = vld [vmem:[#allocation9 + $0xc4] sm:$0xf] }
 0x276   : > { %5441 = vmatpush.bf16.msra.mxu0 %v9035_v21  ;;  %5455 = vmatpush.bf16.msra.mxu1 %v9163_v62  ;;  %v8970_v21 = vld [vmem:[#allocation9 + $0x60] sm:$0xf]  ;;  %v10348_v62 = vld [vmem:[#allocation9 + $0x6c] sm:$0xf0]  ;;  %v10551_v0 = vld [vmem:[#allocation9 + $0x6cc] sm:$0xf] }
 0x277   : > { %4749 = vmatmul.bf16.vlgmr.msrb.gmra.mxu0 %v11665_v1  ;;  %4763 = vmatmul.bf16.vlgmr.msrb.gmra.mxu1 %v11668_v14  ;;  %v11776_v1 = vsel %vm2620_vm4, %v5815_v37, %v5816_v63  ;;  %v8755_v14 = vor.u32 %v10549_v24, %v8754_v51  ;;  %v8971_v29 = vor.u32 %v10348_v62, %v8970_v21  ;;  %v8818_v51 = vld [vmem:[#allocation9 + $0x728] sm:$0xf]  ;;  %v10565_v24 = vld [vmem:[#allocation9 + $0x734] sm:$0xf0]  ;;  %v10587_v21 = vld [vmem:[#allocation9 + $0x7ec] sm:$0xf] }
 0x278   : > { %v8674_v37 = vld [vmem:[#allocation9 + $0x608] sm:$0xf]  ;;  %v10529_v63 = vld [vmem:[#allocation9 + $0x614] sm:$0xf0]  ;;  %v8819_v16 = vor.u32 %v10565_v24, %v8818_v51  ;;  %v8916_v62 = vld [vmem:[#allocation9 + $0x7f8] sm:$0xf0] }
 0x279   : > { %4714 = vmatpush.bf16.msra.mxu2 %v8771_v42  ;;  %4728 = vmatpush.bf16.msra.mxu3 %v8899_v50  ;;  %v8690_v42 = vld [vmem:[#allocation9 + $0x628] sm:$0xf]  ;;  %v10533_v50 = vld [vmem:[#allocation9 + $0x634] sm:$0xf0]  ;;  %v8919_v56 = vor.u32 %v10587_v21, %v8916_v62  ;;  %v10583_v49 = vld [vmem:[#allocation9 + $0x7cc] sm:$0xf] }
 0x27a   : > { %5442 = vmatpush.bf16.msra.mxu0 %v9019_v9  ;;  %5456 = vmatpush.bf16.msra.mxu1 %v9147_v5  ;;  %v8955_v9 = vor.u32 %v10344_v7, %v8954_v32  ;;  %v10340_v5 = vld [vmem:[#allocation9 + $0x2c] sm:$0xf0]  ;;  %v8691_v34 = vor.u32 %v10533_v50, %v8690_v42  ;;  %v9148_v32 = vld [vmem:[#allocation9 + $0x1d0] sm:$0xf0]  ;;  %v8772_v7 = vld [vmem:[#allocation9 + $0x6d8] sm:$0xf0] }
 0x27b   : > { %v8939_v2 = vor.u32 %v10340_v5, %v8938_v12  ;;  %v8900_v39 = vld [vmem:[#allocation9 + $0x7d8] sm:$0xf0]  ;;  %v8775_v3 = vor.u32 %v10551_v0, %v8772_v7  ;;  %v9132_v12 = vld [vmem:[#allocation9 + $0x1b0] sm:$0xf0]  ;;  %v10579_v20 = vld [vmem:[#allocation9 + $0x7ac] sm:$0xf] }
 0x27c   : > { %v8903_v8 = vor.u32 %v10583_v49, %v8900_v39  ;;  %v8756_v5 = vld [vmem:[#allocation9 + $0x6b8] sm:$0xf0]  ;;  %v10543_v42 = vld [vmem:[#allocation9 + $0x68c] sm:$0xf]  ;;  %v10350_v50 = vld [vmem:[#allocation9 + $0x84] sm:$0xf] }
 0x27d   : > { %4715 = vmatpush.bf16.msra.mxu2 %v8755_v14  ;;  %4729 = vmatpush.bf16.msra.mxu3 %v8883_v52  ;;  %v10394_v14 = vld [vmem:[#allocation9 + $0x1e4] sm:$0xf]  ;;  %v9164_v52 = vld [vmem:[#allocation9 + $0x1f0] sm:$0xf0]  ;;  %v8884_v13 = vld [vmem:[#allocation9 + $0x7b8] sm:$0xf0]  ;;  %v8759_v51 = vor.u32 %v10547_v10, %v8756_v5 }
 0x27e   : > { %5443 = vmatpush.bf16.msra.mxu0 %v9003_v58  ;;  %5457 = vmatpush.bf16.msra.mxu1 %v9131_v61  ;;  %v9050_v58 = vld [vmem:[#allocation9 + $0x100] sm:$0xf]  ;;  %v10368_v61 = vld [vmem:[#allocation9 + $0x10c] sm:$0xf0]  ;;  %v9167_v23 = vor.u32 %v10394_v14, %v9164_v52  ;;  %v8887_v24 = vor.u32 %v10579_v20, %v8884_v13  ;;  %v9116_v36 = vld [vmem:[#allocation9 + $0x190] sm:$0xf0] }
 0x27f   : > { %v8740_v57 = vld [vmem:[#allocation9 + $0x698] sm:$0xf0]  ;;  %v10539_v26 = vld [vmem:[#allocation9 + $0x66c] sm:$0xf]  ;;  %v8972_v14 = vld [vmem:[#allocation9 + $0x70] sm:$0xf0] }
 0x280   : > { %v10378_v52 = vld [vmem:[#allocation9 + $0x164] sm:$0xf]  ;;  %v10535_v21 = vld [vmem:[#allocation9 + $0x64c] sm:$0xf]  ;;  %v9084_v0 = vld [vmem:[#allocation9 + $0x150] sm:$0xf0] }
 0x281   : > { %4716 = vmatpush.bf16.msra.mxu2 %v8739_v18  ;;  %4730 = vmatpush.bf16.msra.mxu3 %v8867_v11  ;;  %v8675_v18 = vor.u32 %v10529_v63, %v8674_v37  ;;  %v8803_v11 = vor.u32 %v10561_v46, %v8802_v59  ;;  %v10575_v37 = vld [vmem:[#allocation9 + $0x78c] sm:$0xf]  ;;  %v8868_v63 = vld [vmem:[#allocation9 + $0x798] sm:$0xf0]  ;;  %v9100_v59 = vld [vmem:[#allocation9 + $0x170] sm:$0xf0] }
 0x282   : > { %5444 = vmatpush.bf16.msra.mxu0 %v8987_v31  ;;  %5458 = vmatpush.bf16.msra.mxu1 %v9115_v40  ;;  %v9051_v31 = vor.u32 %v10368_v61, %v9050_v58  ;;  %v8788_v40 = vld [vmem:[#allocation9 + $0x6f8] sm:$0xf0]  ;;  %v8871_v38 = vor.u32 %v10575_v37, %v8868_v63  ;;  %v10342_v62 = vld [vmem:[#allocation9 + $0x44] sm:$0xf]  ;;  %v9068_v10 = vld [vmem:[#allocation9 + $0x130] sm:$0xf0] }
 0x283   : > { %v8791_v22 = vor.u32 %v10555_v27, %v8788_v40  ;;  %v8724_v46 = vld [vmem:[#allocation9 + $0x678] sm:$0xf0]  ;;  %v10571_v27 = vld [vmem:[#allocation9 + $0x76c] sm:$0xf]  ;;  %v9103_v40 = vor.u32 %v10378_v52, %v9100_v59  ;;  %v10338_v7 = vld [vmem:[#allocation9 + $0x24] sm:$0xf] }
 0x284   : > { %4665 = vmatmul.bf16.vlgmr.msrb.gmra.mxu2 %v11761_v54  ;;  %4679 = vmatmul.bf16.vlgmr.msrb.gmra.mxu3 %v11764_v6  ;;  %v8676_v5 = vld [vmem:[#allocation9 + $0x618] sm:$0xf0]  ;;  %v10559_v20 = vld [vmem:[#allocation9 + $0x70c] sm:$0xf]  ;;  %v10334_v13 = vld [vmem:[#allocation9 + $0x4] sm:$0xf] }
 0x285   : > { %4717 = vmatpush.bf16.msra.mxu2 %v8723_v44  ;;  %4731 = vmatpush.bf16.msra.mxu3 %v8851_v53  ;;  %v9042_v37 = vld [vmem:[#allocation9 + $0xe8] sm:$0xf]  ;;  %v9274_v59 = vld [vmem:[#allocation9 + $0x2c0] sm:$0xf] }
 0x286   : > { %5445 = vmatpush.bf16.msra.mxu0 %v8971_v29  ;;  %5459 = vmatpush.bf16.msra.mxu1 %v9099_v48  ;;  %v9020_v29 = vld [vmem:[#allocation9 + $0xd0] sm:$0xf0]  ;;  %v10390_v48 = vld [vmem:[#allocation9 + $0x1c4] sm:$0xf] }
 0x287   : > { %v9023_v44 = vor.u32 %v10358_v43, %v9020_v29  ;;  %v9151_v53 = vor.u32 %v10390_v48, %v9148_v32  ;;  %v8708_v43 = vld [vmem:[#allocation9 + $0x658] sm:$0xf0]  ;;  %v10531_v32 = vld [vmem:[#allocation9 + $0x62c] sm:$0xf] }
 0x288   : > { %v8711_v49 = vor.u32 %v10535_v21, %v8708_v43  ;;  %v9026_v21 = vld [vmem:[#allocation9 + $0xc8] sm:$0xf]  ;;  %v10420_v43 = vld [vmem:[#allocation9 + $0x2ac] sm:$0xf0] }
 0x289   : > { %4718 = vmatpush.bf16.msra.mxu2 %v8707_v55  ;;  %4732 = vmatpush.bf16.msra.mxu3 %v8835_v17 }
 0x28a   : > { %5446 = vmatpush.bf16.msra.mxu0 %v8955_v9  ;;  %5460 = vmatpush.bf16.msra.mxu1 %v9083_v33  ;;  %v9004_v9 = vld [vmem:[#allocation9 + $0xb0] sm:$0xf0]  ;;  %v10386_v33 = vld [vmem:[#allocation9 + $0x1a4] sm:$0xf] }
 0x28b   : > { %v9007_v55 = vor.u32 %v10354_v15, %v9004_v9  ;;  %v9135_v17 = vor.u32 %v10386_v33, %v9132_v12  ;;  %v8692_v15 = vld [vmem:[#allocation9 + $0x638] sm:$0xf0]  ;;  %v10527_v12 = vld [vmem:[#allocation9 + $0x60c] sm:$0xf] }
 0x28d   : > { %4719 = vmatpush.bf16.msra.mxu2 %v8691_v34  ;;  %4733 = vmatpush.bf16.msra.mxu3 %v8819_v16  ;;  %v10346_v34 = vld [vmem:[#allocation9 + $0x64] sm:$0xf]  ;;  %v8743_v16 = vor.u32 %v10543_v42, %v8740_v57  ;;  %v8924_v42 = vld [vmem:[#allocation9 + $0x10] sm:$0xf0]  ;;  %v10460_v57 = vld [vmem:[#allocation9 + $0x3ec] sm:$0xf0] }
 0x28e   : > { %5447 = vmatpush.bf16.msra.mxu0 %v8939_v2  ;;  %5461 = vmatpush.bf16.msra.mxu1 %v9067_v41  ;;  %v8988_v2 = vld [vmem:[#allocation9 + $0x90] sm:$0xf0]  ;;  %v10382_v41 = vld [vmem:[#allocation9 + $0x184] sm:$0xf]  ;;  %v8927_v63 = vor.u32 %v10334_v13, %v8924_v42  ;;  %v10385_v13 = vld [vmem:[#allocation9 + $0x194] sm:$0xf0] }
 0x28f   : > { %v8991_v58 = vor.u32 %v10350_v50, %v8988_v2  ;;  %v9119_v61 = vor.u32 %v10382_v41, %v9116_v36  ;;  %v10366_v50 = vld [vmem:[#allocation9 + $0x104] sm:$0xf]  ;;  %v9290_v2 = vld [vmem:[#allocation9 + $0x2e0] sm:$0xf]  ;;  %v10428_v41 = vld [vmem:[#allocation9 + $0x2ec] sm:$0xf0] }
 0x290   : > { %v9418_v36 = vld [vmem:[#allocation9 + $0x3e0] sm:$0xf] }
 0x291   : > { %4720 = vmatpush.bf16.msra.mxu2 %v8675_v18  ;;  %4734 = vmatpush.bf16.msra.mxu3 %v8803_v11  ;;  %v8956_v18 = vld [vmem:[#allocation9 + $0x50] sm:$0xf0]  ;;  %v10374_v11 = vld [vmem:[#allocation9 + $0x144] sm:$0xf]  ;;  %v9419_v52 = vor.u32 %v10460_v57, %v9418_v36  ;;  %v10444_v36 = vld [vmem:[#allocation9 + $0x36c] sm:$0xf0] }
 0x292   : > { %5448 = vmatpush.bf16.msra.mxu0 %v8923_v60  ;;  %5462 = vmatpush.bf16.msra.mxu1 %v9051_v31  ;;  %v8852_v60 = vld [vmem:[#allocation9 + $0x778] sm:$0xf0]  ;;  %v8975_v31 = vor.u32 %v10346_v34, %v8972_v14  ;;  %v8959_v29 = vor.u32 %v10342_v62, %v8956_v18  ;;  %v9087_v48 = vor.u32 %v10374_v11, %v9084_v0  ;;  %v10397_v34 = vld [vmem:[#allocation9 + $0x1f4] sm:$0xf0]  ;;  %v9258_v0 = vld [vmem:[#allocation9 + $0x2a0] sm:$0xf] }
 0x293   : > { %v9291_v14 = vor.u32 %v10428_v41, %v9290_v2  ;;  %v10361_v62 = vld [vmem:[#allocation9 + $0xd4] sm:$0xf0]  ;;  %v9354_v41 = vld [vmem:[#allocation9 + $0x360] sm:$0xf]  ;;  %v8978_v57 = vld [vmem:[#allocation9 + $0x68] sm:$0xf] }
 0x294   : > { %4721 = vmatmul.bf16.vlgmr.msra.gmra.mxu2 %v11761_v54  ;;  %4735 = vmatmul.bf16.vlgmr.msra.gmra.mxu3 %v11764_v6 }
 0x295   : > { %4769 = vmatpush.bf16.msrb.mxu2 %v8791_v22  ;;  %4783 = vmatpush.bf16.msrb.mxu3 %v8919_v56  ;;  %v10567_v22 = vld [vmem:[#allocation9 + $0x74c] sm:$0xf]  ;;  %v8836_v56 = vld [vmem:[#allocation9 + $0x758] sm:$0xf0] }
 0x296   : > { %5497 = vmatpush.bf16.msrb.mxu0 %v9039_v35  ;;  %5511 = vmatpush.bf16.msrb.mxu1 %v9167_v23  ;;  %v8727_v35 = vor.u32 %v10539_v26, %v8724_v46  ;;  %v8855_v23 = vor.u32 %v10571_v27, %v8852_v60  ;;  %v8839_v39 = vor.u32 %v10567_v22, %v8836_v56  ;;  %v9170_v26 = vld [vmem:[#allocation9 + $0x1e8] sm:$0xf]  ;;  %v10424_v46 = vld [vmem:[#allocation9 + $0x2cc] sm:$0xf0] }
 0x297   : > { %5449 = vmatmul.bf16.vlgmr.msra.gmra.mxu0 %v11635_v4  ;;  %5463 = vmatmul.bf16.vlgmr.msra.gmra.mxu1 %v11639_v47  ;;  %v9171_v60 = vor.u32 %v10397_v34, %v9170_v26  ;;  %v9275_v18 = vor.u32 %v10424_v46, %v9274_v59  ;;  %v9027_v22 = vor.u32 %v10361_v62, %v9026_v21  ;;  %v9210_v34 = vld [vmem:[#allocation9 + $0x240] sm:$0xf]  ;;  %v10440_v59 = vld [vmem:[#allocation9 + $0x34c] sm:$0xf0]  ;;  %v8962_v46 = vld [vmem:[#allocation9 + $0x48] sm:$0xf] }
 0x298   : > { %v9355_v26 = vor.u32 %v10444_v36, %v9354_v41  ;;  %v10377_v21 = vld [vmem:[#allocation9 + $0x154] sm:$0xf0]  ;;  %v9044_v41 = vld [vmem:[#allocation9 + $0xf8] sm:$0xf0]  ;;  %v10395_v36 = vld [vmem:[#allocation9 + $0x1ec] sm:$0xf] }
 0x299   : > { %4770 = vmatpush.bf16.msrb.mxu2 %v8775_v3  ;;  %4784 = vmatpush.bf16.msrb.mxu3 %v8903_v8  ;;  %v10563_v3 = vld [vmem:[#allocation9 + $0x72c] sm:$0xf]  ;;  %v8820_v8 = vld [vmem:[#allocation9 + $0x738] sm:$0xf0] }
 0x29a   : > { %5498 = vmatpush.bf16.msrb.mxu0 %v9023_v44  ;;  %5512 = vmatpush.bf16.msrb.mxu1 %v9151_v53  ;;  %v8940_v44 = vld [vmem:[#allocation9 + $0x30] sm:$0xf0]  ;;  %v10370_v53 = vld [vmem:[#allocation9 + $0x124] sm:$0xf] }
 0x29b   : > { %v8943_v9 = vor.u32 %v10338_v7, %v8940_v44  ;;  %v9071_v33 = vor.u32 %v10370_v53, %v9068_v10  ;;  %v10357_v7 = vld [vmem:[#allocation9 + $0xb4] sm:$0xf0]  ;;  %v9259_v44 = vor.u32 %v10420_v43, %v9258_v0  ;;  %v9242_v10 = vld [vmem:[#allocation9 + $0x280] sm:$0xf] }
 0x29d   : > { %4771 = vmatpush.bf16.msrb.mxu2 %v8759_v51  ;;  %4785 = vmatpush.bf16.msrb.mxu3 %v8887_v24  ;;  %v9052_v51 = vld [vmem:[#allocation9 + $0x110] sm:$0xf0]  ;;  %v8804_v24 = vld [vmem:[#allocation9 + $0x718] sm:$0xf0] }
 0x29e   : > { %5499 = vmatpush.bf16.msrb.mxu0 %v9007_v55  ;;  %5513 = vmatpush.bf16.msrb.mxu1 %v9135_v17  ;;  %v8695_v55 = vor.u32 %v10531_v32, %v8692_v15  ;;  %v8823_v17 = vor.u32 %v10563_v3, %v8820_v8  ;;  %v9010_v32 = vld [vmem:[#allocation9 + $0xa8] sm:$0xf]  ;;  %v10416_v15 = vld [vmem:[#allocation9 + $0x28c] sm:$0xf0] }
 0x29f   : > { %v9011_v3 = vor.u32 %v10357_v7, %v9010_v32  ;;  %v9074_v32 = vld [vmem:[#allocation9 + $0x128] sm:$0xf]  ;;  %v10373_v7 = vld [vmem:[#allocation9 + $0x134] sm:$0xf0] }
 0x2a1   : > { %4772 = vmatpush.bf16.msrb.mxu2 %v8743_v16  ;;  %4786 = vmatpush.bf16.msrb.mxu3 %v8871_v38  ;;  %v8679_v16 = vor.u32 %v10527_v12, %v8676_v5  ;;  %v8807_v38 = vor.u32 %v10559_v20, %v8804_v24  ;;  %v10353_v5 = vld [vmem:[#allocation9 + $0x94] sm:$0xf0]  ;;  %v9122_v20 = vld [vmem:[#allocation9 + $0x188] sm:$0xf] }
 0x2a2   : > { %5500 = vmatpush.bf16.msrb.mxu0 %v8991_v58  ;;  %5514 = vmatpush.bf16.msrb.mxu1 %v9119_v61  ;;  %v9055_v58 = vor.u32 %v10366_v50, %v9052_v51  ;;  %v10365_v61 = vld [vmem:[#allocation9 + $0xf4] sm:$0xf0]  ;;  %v9226_v50 = vld [vmem:[#allocation9 + $0x260] sm:$0xf]  ;;  %v10412_v51 = vld [vmem:[#allocation9 + $0x26c] sm:$0xf0]  ;;  %v9123_v2 = vor.u32 %v10385_v13, %v9122_v20 }
 0x2a3   : > { %v9043_v27 = vor.u32 %v10365_v61, %v9042_v37  ;;  %v10349_v37 = vld [vmem:[#allocation9 + $0x74] sm:$0xf0]  ;;  %v9227_v61 = vor.u32 %v10412_v51, %v9226_v50  ;;  %v10426_v20 = vld [vmem:[#allocation9 + $0x2e4] sm:$0xf]  ;;  %v9292_v13 = vld [vmem:[#allocation9 + $0x2f0] sm:$0xf0] }
 0x2a4   : > { %v9420_v50 = vld [vmem:[#allocation9 + $0x3f0] sm:$0xf0]  ;;  %v10363_v51 = vld [vmem:[#allocation9 + $0xec] sm:$0xf] }
 0x2a5   : > { %4773 = vmatpush.bf16.msrb.mxu2 %v8727_v35  ;;  %4787 = vmatpush.bf16.msrb.mxu3 %v8855_v23  ;;  %v9154_v35 = vld [vmem:[#allocation9 + $0x1c8] sm:$0xf]  ;;  %v10393_v23 = vld [vmem:[#allocation9 + $0x1d4] sm:$0xf0] }
 0x2a6   : > { %5501 = vmatpush.bf16.msrb.mxu0 %v8975_v31  ;;  %5515 = vmatpush.bf16.msrb.mxu1 %v9103_v40  ;;  %v9402_v31 = vld [vmem:[#allocation9 + $0x3c0] sm:$0xf]  ;;  %v10456_v40 = vld [vmem:[#allocation9 + $0x3cc] sm:$0xf0]  ;;  %v9155_v56 = vor.u32 %v10393_v23, %v9154_v35 }
 0x2a7   : > { %v9403_v11 = vor.u32 %v10456_v40, %v9402_v31  ;;  %v10345_v31 = vld [vmem:[#allocation9 + $0x54] sm:$0xf0]  ;;  %v9090_v40 = vld [vmem:[#allocation9 + $0x148] sm:$0xf] }
 0x2a8   : > { %v8963_v0 = vor.u32 %v10345_v31, %v8962_v46  ;;  %v9091_v43 = vor.u32 %v10377_v21, %v9090_v40  ;;  %v9028_v46 = vld [vmem:[#allocation9 + $0xd8] sm:$0xf0] }
 0x2a9   : > { %4774 = vmatpush.bf16.msrb.mxu2 %v8711_v49  ;;  %4788 = vmatpush.bf16.msrb.mxu3 %v8839_v39  ;;  %v9138_v49 = vld [vmem:[#allocation9 + $0x1a8] sm:$0xf]  ;;  %v10389_v39 = vld [vmem:[#allocation9 + $0x1b4] sm:$0xf0] }
 0x2aa   : > { %5502 = vmatpush.bf16.msrb.mxu0 %v8959_v29  ;;  %5516 = vmatpush.bf16.msrb.mxu1 %v9087_v48  ;;  %v9386_v29 = vld [vmem:[#allocation9 + $0x3a0] sm:$0xf]  ;;  %v10452_v48 = vld [vmem:[#allocation9 + $0x3ac] sm:$0xf0]  ;;  %v9139_v8 = vor.u32 %v10389_v39, %v9138_v49 }
 0x2ab   : > { %v9387_v53 = vor.u32 %v10452_v48, %v9386_v29  ;;  %v8946_v29 = vld [vmem:[#allocation9 + $0x28] sm:$0xf]  ;;  %v10341_v48 = vld [vmem:[#allocation9 + $0x34] sm:$0xf0]  ;;  %v9178_v49 = vld [vmem:[#allocation9 + $0x200] sm:$0xf] }
 0x2ad   : > { %4775 = vmatpush.bf16.msrb.mxu2 %v8695_v55  ;;  %4789 = vmatpush.bf16.msrb.mxu3 %v8823_v17  ;;  %v9243_v17 = vor.u32 %v10416_v15, %v9242_v10  ;;  %v9306_v10 = vld [vmem:[#allocation9 + $0x300] sm:$0xf]  ;;  %v10432_v15 = vld [vmem:[#allocation9 + $0x30c] sm:$0xf0] }
 0x2ae   : > { %5503 = vmatpush.bf16.msrb.mxu0 %v8943_v9  ;;  %5517 = vmatpush.bf16.msrb.mxu1 %v9071_v33  ;;  %v10448_v9 = vld [vmem:[#allocation9 + $0x38c] sm:$0xf0] }
 0x2b1   : > { %4776 = vmatpush.bf16.msrb.mxu2 %v8679_v16  ;;  %4790 = vmatpush.bf16.msrb.mxu3 %v8807_v38  ;;  %v10408_v16 = vld [vmem:[#allocation9 + $0x24c] sm:$0xf0]  ;;  %v8979_v38 = vor.u32 %v10349_v37, %v8978_v57  ;;  %v9172_v57 = vld [vmem:[#allocation9 + $0x1f8] sm:$0xf0] }
 0x2b2   : > { %5504 = vmatpush.bf16.msrb.mxu0 %v8927_v63  ;;  %5518 = vmatpush.bf16.msrb.mxu1 %v9055_v58  ;;  %v4582_v33 = vpop.f32.mrf.mxu0  ;;  %v4596_v12 = vpop.f32.mrf.mxu1  ;;  %v9106_v63 = vld [vmem:[#allocation9 + $0x168] sm:$0xf]  ;;  %v10381_v58 = vld [vmem:[#allocation9 + $0x174] sm:$0xf0]  ;;  %v9211_v35 = vor.u32 %v10408_v16, %v9210_v34  ;;  %v9276_v34 = vld [vmem:[#allocation9 + $0x2d0] sm:$0xf0]  ;;  %v9047_v16 = vor.u32 %v10363_v51, %v9044_v41 }
 0x2b3   : > { %v11788_v55 = vadd.f32 %v4596_v12, %v4582_v33  ;;  %v10442_v41 = vld [vmem:[#allocation9 + $0x364] sm:$0xf] }
 0x2b4   : > { %4777 = vmatmul.bf16.vlgmr.msrb.gmra.mxu2 %v11761_v54  ;;  %4791 = vmatmul.bf16.vlgmr.msrb.gmra.mxu3 %v11764_v6  ;;  %v9370_v54 = vld [vmem:[#allocation9 + $0x380] sm:$0xf]  ;;  %v8994_v6 = vld [vmem:[#allocation9 + $0x88] sm:$0xf] }
 0x2b5   : > { %5469 = vmatpush.bf16.msra.mxu2 %v9291_v14  ;;  %5483 = vmatpush.bf16.msra.mxu3 %v9419_v52  ;;  %v9371_v42 = vor.u32 %v10448_v9, %v9370_v54  ;;  %v8995_v24 = vor.u32 %v10353_v5, %v8994_v6  ;;  %v9107_v14 = vor.u32 %v10381_v58, %v9106_v63  ;;  %v9338_v52 = vld [vmem:[#allocation9 + $0x340] sm:$0xf]  ;;  %v8930_v54 = vld [vmem:[#allocation9 + $0x8] sm:$0xf]  ;;  %v10337_v9 = vld [vmem:[#allocation9 + $0x14] sm:$0xf0] }
 0x2b6   : > { %5553 = vmatpush.bf16.msra.mxu0 %v9043_v27  ;;  %5567 = vmatpush.bf16.msra.mxu1 %v9171_v60  ;;  %v9339_v23 = vor.u32 %v10440_v59, %v9338_v52  ;;  %v9058_v6 = vld [vmem:[#allocation9 + $0x108] sm:$0xf]  ;;  %v10369_v5 = vld [vmem:[#allocation9 + $0x114] sm:$0xf0]  ;;  %v8931_v37 = vor.u32 %v10337_v9, %v8930_v54  ;;  %v9295_v58 = vor.u32 %v10426_v20, %v9292_v13  ;;  %v9404_v52 = vld [vmem:[#allocation9 + $0x3d0] sm:$0xf0] }
 0x2b7   : > { %5505 = vmatmul.bf16.vlgmr.msrb.gmra.mxu0 %v11635_v4  ;;  %5519 = vmatmul.bf16.vlgmr.msrb.gmra.mxu1 %v11639_v47  ;;  %v9059_v63 = vor.u32 %v10369_v5, %v9058_v6  ;;  %v10359_v59 = vld [vmem:[#allocation9 + $0xcc] sm:$0xf]  ;;  %v8996_v9 = vld [vmem:[#allocation9 + $0x98] sm:$0xf0] }
 0x2b8   : > { %v10351_v54 = vld [vmem:[#allocation9 + $0x8c] sm:$0xf] }
 0x2b9   : > { %5470 = vmatpush.bf16.msra.mxu2 %v9275_v18  ;;  %5484 = vmatpush.bf16.msra.mxu3 %v9403_v11  ;;  %v9194_v18 = vld [vmem:[#allocation9 + $0x220] sm:$0xf]  ;;  %v10404_v11 = vld [vmem:[#allocation9 + $0x22c] sm:$0xf0]  ;;  %v10383_v6 = vld [vmem:[#allocation9 + $0x18c] sm:$0xf] }
 0x2ba   : > { %5554 = vmatpush.bf16.msra.mxu0 %v9027_v22  ;;  %5568 = vmatpush.bf16.msra.mxu1 %v9155_v56  ;;  %v4584_v27 = vpop.f32.mrf.mxu0  ;;  %v4598_v60 = vpop.f32.mrf.mxu1  ;;  %v9322_v22 = vld [vmem:[#allocation9 + $0x320] sm:$0xf]  ;;  %v10436_v56 = vld [vmem:[#allocation9 + $0x32c] sm:$0xf0]  ;;  %v9195_v39 = vor.u32 %v10404_v11, %v9194_v18  ;;  %v9260_v18 = vld [vmem:[#allocation9 + $0x2b0] sm:$0xf0] }
 0x2bb   : > { %v11790_v62 = vadd.f32 %v4598_v60, %v4584_v27  ;;  %v10391_v27 = vld [vmem:[#allocation9 + $0x1cc] sm:$0xf]  ;;  %v9156_v60 = vld [vmem:[#allocation9 + $0x1d8] sm:$0xf0] }
 0x2bd   : > { %5471 = vmatpush.bf16.msra.mxu2 %v9259_v44  ;;  %5485 = vmatpush.bf16.msra.mxu3 %v9387_v53  ;;  %v9323_v44 = vor.u32 %v10436_v56, %v9322_v22  ;;  %v10400_v53 = vld [vmem:[#allocation9 + $0x20c] sm:$0xf0]  ;;  %v10450_v22 = vld [vmem:[#allocation9 + $0x3a4] sm:$0xf]  ;;  %v9388_v56 = vld [vmem:[#allocation9 + $0x3b0] sm:$0xf0] }
 0x2be   : > { %5555 = vmatpush.bf16.msra.mxu0 %v9011_v3  ;;  %5569 = vmatpush.bf16.msra.mxu1 %v9139_v8  ;;  %v8947_v3 = vor.u32 %v10341_v48, %v8946_v29  ;;  %v9075_v8 = vor.u32 %v10373_v7, %v9074_v32  ;;  %v10355_v29 = vld [vmem:[#allocation9 + $0xac] sm:$0xf]  ;;  %v9012_v48 = vld [vmem:[#allocation9 + $0xb8] sm:$0xf0] }
 0x2bf   : > { %v10387_v32 = vld [vmem:[#allocation9 + $0x1ac] sm:$0xf]  ;;  %v9140_v7 = vld [vmem:[#allocation9 + $0x1b8] sm:$0xf0] }
 0x2c1   : > { %5472 = vmatpush.bf16.msra.mxu2 %v9243_v17  ;;  %5486 = vmatpush.bf16.msra.mxu3 %v9371_v42  ;;  %v10458_v42 = vld [vmem:[#allocation9 + $0x3e4] sm:$0xf] }
 0x2c2   : > { %5556 = vmatpush.bf16.msra.mxu0 %v8995_v24  ;;  %5570 = vmatpush.bf16.msra.mxu1 %v9123_v2  ;;  %v4638_v33 = vpop.f32.mrf.mxu0  ;;  %v4652_v12 = vpop.f32.mrf.mxu1  ;;  %v9179_v24 = vor.u32 %v10400_v53, %v9178_v49  ;;  %v9307_v2 = vor.u32 %v10432_v15, %v9306_v10  ;;  %v9244_v53 = vld [vmem:[#allocation9 + $0x290] sm:$0xf0]  ;;  %v9015_v10 = vor.u32 %v10355_v29, %v9012_v48  ;;  %v10434_v29 = vld [vmem:[#allocation9 + $0x324] sm:$0xf] }
 0x2c3   : > { %v11792_v17 = vadd.f32 %v4652_v12, %v4638_v33  ;;  %v9143_v15 = vor.u32 %v10387_v32, %v9140_v7  ;;  %v9124_v33 = vld [vmem:[#allocation9 + $0x198] sm:$0xf0]  ;;  %v9324_v48 = vld [vmem:[#allocation9 + $0x330] sm:$0xf0]  ;;  %v10339_v32 = vld [vmem:[#allocation9 + $0x2c] sm:$0xf] }
 0x2c4   : > { %v8948_v7 = vld [vmem:[#allocation9 + $0x38] sm:$0xf0] }
 0x2c5   : > { %5473 = vmatpush.bf16.msra.mxu2 %v9227_v61  ;;  %5487 = vmatpush.bf16.msra.mxu3 %v9355_v26  ;;  %v9423_v61 = vor.u32 %v10458_v42, %v9420_v50  ;;  %v10422_v26 = vld [vmem:[#allocation9 + $0x2c4] sm:$0xf]  ;;  %v9228_v50 = vld [vmem:[#allocation9 + $0x270] sm:$0xf0] }
 0x2c6   : > { %5557 = vmatpush.bf16.msra.mxu0 %v8979_v38  ;;  %5571 = vmatpush.bf16.msra.mxu1 %v9107_v14  ;;  %v9175_v38 = vor.u32 %v10395_v36, %v9172_v57  ;;  %v10454_v14 = vld [vmem:[#allocation9 + $0x3c4] sm:$0xf]  ;;  %v9279_v21 = vor.u32 %v10422_v26, %v9276_v34  ;;  %v9356_v36 = vld [vmem:[#allocation9 + $0x370] sm:$0xf0]  ;;  %v10347_v57 = vld [vmem:[#allocation9 + $0x6c] sm:$0xf] }
 0x2c7   : > { %v10410_v42 = vld [vmem:[#allocation9 + $0x264] sm:$0xf]  ;;  %v9359_v26 = vor.u32 %v10442_v41, %v9356_v36  ;;  %v10620_v36 = vld [vmem:[#allocation9 + $0x8ec] sm:$0xf0] }
 0x2c8   : > { %v10406_v34 = vld [vmem:[#allocation9 + $0x244] sm:$0xf] }
 0x2c9   : > { %5474 = vmatpush.bf16.msra.mxu2 %v9211_v35  ;;  %5488 = vmatpush.bf16.msra.mxu3 %v9339_v23  ;;  %v9407_v35 = vor.u32 %v10454_v14, %v9404_v52  ;;  %v10418_v23 = vld [vmem:[#allocation9 + $0x2a4] sm:$0xf] }
 0x2ca   : > { %5558 = vmatpush.bf16.msra.mxu0 %v8963_v0  ;;  %5572 = vmatpush.bf16.msra.mxu1 %v9091_v43  ;;  %v4640_v31 = vpop.f32.mrf.mxu0  ;;  %v4654_v40 = vpop.f32.mrf.mxu1  ;;  %v9031_v0 = vor.u32 %v10359_v59, %v9028_v46  ;;  %v9159_v43 = vor.u32 %v10391_v27, %v9156_v60  ;;  %v9263_v49 = vor.u32 %v10418_v23, %v9260_v18  ;;  %v10438_v52 = vld [vmem:[#allocation9 + $0x344] sm:$0xf]  ;;  %v9340_v59 = vld [vmem:[#allocation9 + $0x350] sm:$0xf0]  ;;  %v10343_v46 = vld [vmem:[#allocation9 + $0x4c] sm:$0xf] }
 0x2cb   : > { %v11794_v11 = vadd.f32 %v4654_v40, %v4640_v31  ;;  %v8964_v27 = vld [vmem:[#allocation9 + $0x58] sm:$0xf0]  ;;  %v10375_v60 = vld [vmem:[#allocation9 + $0x14c] sm:$0xf]  ;;  %v9343_v23 = vor.u32 %v10438_v52, %v9340_v59  ;;  %v10402_v18 = vld [vmem:[#allocation9 + $0x224] sm:$0xf] }
 0x2cc   : > { %v9092_v31 = vld [vmem:[#allocation9 + $0x158] sm:$0xf0]  ;;  %v9410_v52 = vld [vmem:[#allocation9 + $0x3c8] sm:$0xf]  ;;  %v10457_v59 = vld [vmem:[#allocation9 + $0x3d4] sm:$0xf0] }
 0x2cd   : > { %5475 = vmatpush.bf16.msra.mxu2 %v9195_v39  ;;  %5489 = vmatpush.bf16.msra.mxu3 %v9323_v44  ;;  %v9391_v39 = vor.u32 %v10450_v22, %v9388_v56  ;;  %v10414_v44 = vld [vmem:[#allocation9 + $0x284] sm:$0xf]  ;;  %v8967_v22 = vor.u32 %v10343_v46, %v8964_v27  ;;  %v9095_v56 = vor.u32 %v10375_v60, %v9092_v31  ;;  %v9530_v46 = vld [vmem:[#allocation9 + $0x8c0] sm:$0xf]  ;;  %v10616_v27 = vld [vmem:[#allocation9 + $0x8cc] sm:$0xf0] }
 0x2ce   : > { %5559 = vmatpush.bf16.msra.mxu0 %v8947_v3  ;;  %5573 = vmatpush.bf16.msra.mxu1 %v9075_v8  ;;  %v10446_v3 = vld [vmem:[#allocation9 + $0x384] sm:$0xf]  ;;  %v9372_v8 = vld [vmem:[#allocation9 + $0x390] sm:$0xf0]  ;;  %v9247_v20 = vor.u32 %v10414_v44, %v9244_v53  ;;  %v9658_v60 = vld [vmem:[#allocation9 + $0x9c0] sm:$0xf] }
 0x2cf   : > { %v9375_v13 = vor.u32 %v10446_v3, %v9372_v8  ;;  %v10398_v44 = vld [vmem:[#allocation9 + $0x204] sm:$0xf]  ;;  %v9308_v8 = vld [vmem:[#allocation9 + $0x310] sm:$0xf0]  ;;  %v10648_v31 = vld [vmem:[#allocation9 + $0x9cc] sm:$0xf0] }
 0x2d0   : > { %v10430_v3 = vld [vmem:[#allocation9 + $0x304] sm:$0xf] }
 0x2d1   : > { %5476 = vmatpush.bf16.msra.mxu2 %v9179_v24  ;;  %5490 = vmatpush.bf16.msra.mxu3 %v9307_v2  ;;  %v8999_v24 = vor.u32 %v10351_v54, %v8996_v9  ;;  %v9127_v2 = vor.u32 %v10383_v6, %v9124_v33  ;;  %v8951_v54 = vor.u32 %v10339_v32, %v8948_v7  ;;  %v10335_v6 = vld [vmem:[#allocation9 + $0xc] sm:$0xf]  ;;  %v8932_v33 = vld [vmem:[#allocation9 + $0x18] sm:$0xf0]  ;;  %v9642_v32 = vld [vmem:[#allocation9 + $0x9a0] sm:$0xf] }
 0x2d2   : > { %5560 = vmatpush.bf16.msra.mxu0 %v8931_v37  ;;  %5574 = vmatpush.bf16.msra.mxu1 %v9059_v63  ;;  %v4694_v12 = vpop.f32.mrf.mxu0  ;;  %v4708_v5 = vpop.f32.mrf.mxu1  ;;  %v8980_v37 = vld [vmem:[#allocation9 + $0x78] sm:$0xf0]  ;;  %v10379_v63 = vld [vmem:[#allocation9 + $0x16c] sm:$0xf]  ;;  %v9311_v41 = vor.u32 %v10430_v3, %v9308_v8  ;;  %v10644_v7 = vld [vmem:[#allocation9 + $0x9ac] sm:$0xf0] }
 0x2d3   : > { %v11800_v51 = vadd.f32 %v4708_v5, %v4694_v12  ;;  %v10367_v12 = vld [vmem:[#allocation9 + $0x10c] sm:$0xf]  ;;  %v9060_v5 = vld [vmem:[#allocation9 + $0x118] sm:$0xf0]  ;;  %v9378_v3 = vld [vmem:[#allocation9 + $0x388] sm:$0xf] }
 0x2d4   : > { %5477 = vmatmul.bf16.vlgmr.msra.gmra.mxu2 %v11740_v28  ;;  %5491 = vmatmul.bf16.vlgmr.msra.gmra.mxu3 %v11744_v19  ;;  %v10449_v8 = vld [vmem:[#allocation9 + $0x394] sm:$0xf0] }
 0x2d5   : > { %5525 = vmatpush.bf16.msrb.mxu2 %v9295_v58  ;;  %5539 = vmatpush.bf16.msrb.mxu3 %v9423_v61  ;;  %v9108_v58 = vld [vmem:[#allocation9 + $0x178] sm:$0xf0]  ;;  %v9231_v61 = vor.u32 %v10410_v42, %v9228_v50  ;;  %v9426_v42 = vld [vmem:[#allocation9 + $0x3e8] sm:$0xf]  ;;  %v10461_v50 = vld [vmem:[#allocation9 + $0x3f4] sm:$0xf0] }
 0x2d6   : > { %5609 = vmatpush.bf16.msrb.mxu0 %v9047_v16  ;;  %5623 = vmatpush.bf16.msrb.mxu1 %v9175_v38  ;;  %v9212_v16 = vld [vmem:[#allocation9 + $0x250] sm:$0xf0]  ;;  %v8983_v38 = vor.u32 %v10347_v57, %v8980_v37  ;;  %v9111_v14 = vor.u32 %v10379_v63, %v9108_v58  ;;  %v9674_v57 = vld [vmem:[#allocation9 + $0x9e0] sm:$0xf]  ;;  %v10652_v37 = vld [vmem:[#allocation9 + $0x9ec] sm:$0xf0]  ;;  %v8935_v63 = vor.u32 %v10335_v6, %v8932_v33 }
 0x2d7   : > { %5561 = vmatmul.bf16.vlgmr.msra.gmra.mxu0 %v11635_v4  ;;  %5575 = vmatmul.bf16.vlgmr.msra.gmra.mxu1 %v11639_v47  ;;  %v9063_v58 = vor.u32 %v10367_v12, %v9060_v5  ;;  %v9626_v6 = vld [vmem:[#allocation9 + $0x980] sm:$0xf]  ;;  %v10640_v33 = vld [vmem:[#allocation9 + $0x98c] sm:$0xf0]  ;;  %v9379_v5 = vor.u32 %v10449_v8, %v9378_v3 }
 0x2d9   : > { %5526 = vmatpush.bf16.msrb.mxu2 %v9279_v21  ;;  %5540 = vmatpush.bf16.msrb.mxu3 %v9407_v35  ;;  %v9215_v35 = vor.u32 %v10406_v34, %v9212_v16  ;;  %v9282_v34 = vld [vmem:[#allocation9 + $0x2c8] sm:$0xf]  ;;  %v10425_v16 = vld [vmem:[#allocation9 + $0x2d4] sm:$0xf0] }
 0x2da   : > { %5610 = vmatpush.bf16.msrb.mxu0 %v9031_v0  ;;  %5624 = vmatpush.bf16.msrb.mxu1 %v9159_v43  ;;  %v4696_v40 = vpop.f32.mrf.mxu0  ;;  %v4710_v21 = vpop.f32.mrf.mxu1  ;;  %v9196_v0 = vld [vmem:[#allocation9 + $0x230] sm:$0xf0] }
 0x2db   : > { %v11802_v43 = vadd.f32 %v4710_v21, %v4696_v40  ;;  %v9199_v53 = vor.u32 %v10402_v18, %v9196_v0  ;;  %v9283_v40 = vor.u32 %v10425_v16, %v9282_v34  ;;  %v9411_v21 = vor.u32 %v10457_v59, %v9410_v52  ;;  %v9218_v16 = vld [vmem:[#allocation9 + $0x248] sm:$0xf] }
 0x2dc   : > { %v9531_v18 = vor.u32 %v10616_v27, %v9530_v46  ;;  %v9659_v0 = vor.u32 %v10648_v31, %v9658_v60  ;;  %v9346_v46 = vld [vmem:[#allocation9 + $0x348] sm:$0xf]  ;;  %v10441_v27 = vld [vmem:[#allocation9 + $0x354] sm:$0xf0]  ;;  %v9466_v60 = vld [vmem:[#allocation9 + $0x840] sm:$0xf] }
 0x2dd   : > { %5527 = vmatpush.bf16.msrb.mxu2 %v9263_v49  ;;  %5541 = vmatpush.bf16.msrb.mxu3 %v9391_v39  ;;  %v10371_v49 = vld [vmem:[#allocation9 + $0x12c] sm:$0xf]  ;;  %v9076_v39 = vld [vmem:[#allocation9 + $0x138] sm:$0xf0]  ;;  %v10600_v31 = vld [vmem:[#allocation9 + $0x84c] sm:$0xf0] }
 0x2de   : > { %5611 = vmatpush.bf16.msrb.mxu0 %v9015_v10  ;;  %5625 = vmatpush.bf16.msrb.mxu1 %v9143_v15  ;;  %v9327_v10 = vor.u32 %v10434_v29, %v9324_v48  ;;  %v9180_v15 = vld [vmem:[#allocation9 + $0x210] sm:$0xf0]  ;;  %v9079_v9 = vor.u32 %v10371_v49, %v9076_v39  ;;  %v9514_v29 = vld [vmem:[#allocation9 + $0x8a0] sm:$0xf]  ;;  %v10612_v48 = vld [vmem:[#allocation9 + $0x8ac] sm:$0xf0] }
 0x2e1   : > { %5528 = vmatpush.bf16.msrb.mxu2 %v9247_v20  ;;  %5542 = vmatpush.bf16.msrb.mxu3 %v9375_v13  ;;  %v9298_v20 = vld [vmem:[#allocation9 + $0x2e8] sm:$0xf]  ;;  %v10429_v13 = vld [vmem:[#allocation9 + $0x2f4] sm:$0xf0] }
 0x2e2   : > { %5612 = vmatpush.bf16.msrb.mxu0 %v8999_v24  ;;  %5626 = vmatpush.bf16.msrb.mxu1 %v9127_v2  ;;  %v9546_v24 = vld [vmem:[#allocation9 + $0x8e0] sm:$0xf]  ;;  %v9183_v2 = vor.u32 %v10398_v44, %v9180_v15  ;;  %v9250_v44 = vld [vmem:[#allocation9 + $0x288] sm:$0xf]  ;;  %v9643_v15 = vor.u32 %v10644_v7, %v9642_v32 }
 0x2e3   : > { %v9330_v7 = vld [vmem:[#allocation9 + $0x328] sm:$0xf] }
 0x2e5   : > { %5529 = vmatpush.bf16.msrb.mxu2 %v9231_v61  ;;  %5543 = vmatpush.bf16.msrb.mxu3 %v9359_v26  ;;  %v9299_v61 = vor.u32 %v10429_v13, %v9298_v20  ;;  %v9427_v26 = vor.u32 %v10461_v50, %v9426_v42  ;;  %v9234_v20 = vld [vmem:[#allocation9 + $0x268] sm:$0xf]  ;;  %v10413_v13 = vld [vmem:[#allocation9 + $0x274] sm:$0xf0] }
 0x2e6   : > { %5613 = vmatpush.bf16.msrb.mxu0 %v8983_v38  ;;  %5627 = vmatpush.bf16.msrb.mxu1 %v9111_v14  ;;  %v9547_v38 = vor.u32 %v10620_v36, %v9546_v24  ;;  %v9675_v14 = vor.u32 %v10652_v37, %v9674_v57  ;;  %v9627_v24 = vor.u32 %v10640_v33, %v9626_v6  ;;  %v9482_v36 = vld [vmem:[#allocation9 + $0x860] sm:$0xf]  ;;  %v10604_v57 = vld [vmem:[#allocation9 + $0x86c] sm:$0xf0]  ;;  %v10401_v6 = vld [vmem:[#allocation9 + $0x214] sm:$0xf0] }
 0x2e7   : > { %v9610_v37 = vld [vmem:[#allocation9 + $0x960] sm:$0xf]  ;;  %v9483_v52 = vor.u32 %v10604_v57, %v9482_v36  ;;  %v9314_v33 = vld [vmem:[#allocation9 + $0x308] sm:$0xf]  ;;  %v10459_v57 = vld [vmem:[#allocation9 + $0x3ec] sm:$0xf] }
 0x2e9   : > { %5530 = vmatpush.bf16.msrb.mxu2 %v9215_v35  ;;  %5544 = vmatpush.bf16.msrb.mxu3 %v9343_v23  ;;  %v9266_v35 = vld [vmem:[#allocation9 + $0x2a8] sm:$0xf]  ;;  %v10421_v23 = vld [vmem:[#allocation9 + $0x2b4] sm:$0xf0] }
 0x2ea   : > { %5614 = vmatpush.bf16.msrb.mxu0 %v8967_v22  ;;  %5628 = vmatpush.bf16.msrb.mxu1 %v9095_v56  ;;  %v9394_v22 = vld [vmem:[#allocation9 + $0x3a8] sm:$0xf]  ;;  %v10453_v56 = vld [vmem:[#allocation9 + $0x3b4] sm:$0xf0]  ;;  %v9267_v49 = vor.u32 %v10421_v23, %v9266_v35 }
 0x2eb   : > { %v9395_v39 = vor.u32 %v10453_v56, %v9394_v22  ;;  %v9347_v22 = vor.u32 %v10441_v27, %v9346_v46  ;;  %v9202_v56 = vld [vmem:[#allocation9 + $0x228] sm:$0xf]  ;;  %v9284_v46 = vld [vmem:[#allocation9 + $0x2d8] sm:$0xf0] }
 0x2ed   : > { %5531 = vmatpush.bf16.msrb.mxu2 %v9199_v53  ;;  %5545 = vmatpush.bf16.msrb.mxu3 %v9327_v10  ;;  %v10417_v53 = vld [vmem:[#allocation9 + $0x294] sm:$0xf0]  ;;  %v9515_v10 = vor.u32 %v10612_v48, %v9514_v29  ;;  %v9467_v48 = vor.u32 %v10600_v31, %v9466_v60  ;;  %v10455_v31 = vld [vmem:[#allocation9 + $0x3cc] sm:$0xf] }
 0x2ee   : > { %5615 = vmatpush.bf16.msrb.mxu0 %v8951_v54  ;;  %5629 = vmatpush.bf16.msrb.mxu1 %v9079_v9  ;;  %v9498_v54 = vld [vmem:[#allocation9 + $0x880] sm:$0xf]  ;;  %v10608_v9 = vld [vmem:[#allocation9 + $0x88c] sm:$0xf0]  ;;  %v9251_v12 = vor.u32 %v10417_v53, %v9250_v44  ;;  %v10405_v29 = vld [vmem:[#allocation9 + $0x234] sm:$0xf0] }
 0x2ef   : > { %v9499_v50 = vor.u32 %v10608_v9, %v9498_v54  ;;  %v10596_v44 = vld [vmem:[#allocation9 + $0x82c] sm:$0xf0]  ;;  %v9578_v53 = vld [vmem:[#allocation9 + $0x920] sm:$0xf]  ;;  %v9203_v54 = vor.u32 %v10405_v29, %v9202_v56  ;;  %v9660_v56 = vld [vmem:[#allocation9 + $0x9d0] sm:$0xf0] }
 0x2f1   : > { %5532 = vmatpush.bf16.msrb.mxu2 %v9183_v2  ;;  %5546 = vmatpush.bf16.msrb.mxu3 %v9311_v41  ;;  %v9362_v2 = vld [vmem:[#allocation9 + $0x368] sm:$0xf]  ;;  %v10445_v41 = vld [vmem:[#allocation9 + $0x374] sm:$0xf0] }
 0x2f2   : > { %5616 = vmatpush.bf16.msrb.mxu0 %v8935_v63  ;;  %5630 = vmatpush.bf16.msrb.mxu1 %v9063_v58  ;;  %v10636_v63 = vld [vmem:[#allocation9 + $0x96c] sm:$0xf0]  ;;  %v9363_v34 = vor.u32 %v10445_v41, %v9362_v2  ;;  %v10427_v2 = vld [vmem:[#allocation9 + $0x2ec] sm:$0xf]  ;;  %v9300_v41 = vld [vmem:[#allocation9 + $0x2f8] sm:$0xf0] }
 0x2f3   : > { %v9611_v59 = vor.u32 %v10636_v63, %v9610_v37  ;;  %v9428_v37 = vld [vmem:[#allocation9 + $0x3f8] sm:$0xf0]  ;;  %v10618_v63 = vld [vmem:[#allocation9 + $0x8e4] sm:$0xf] }
 0x2f4   : > { %5533 = vmatmul.bf16.vlgmr.msrb.gmra.mxu2 %v11740_v28  ;;  %5547 = vmatmul.bf16.vlgmr.msrb.gmra.mxu3 %v11744_v19 }
 0x2f5   : > { %5581 = vmatpush.bf16.msra.mxu2 %v9299_v61  ;;  %5595 = vmatpush.bf16.msra.mxu3 %v9427_v26  ;;  %v9235_v26 = vor.u32 %v10413_v13, %v9234_v20  ;;  %v9434_v20 = vld [vmem:[#allocation9 + $0x800] sm:$0xf]  ;;  %v10592_v13 = vld [vmem:[#allocation9 + $0x80c] sm:$0xf0] }
 0x2f6   : > { %6462 = vmatpush.bf16.msra.mxu0 %v9547_v38  ;;  %6476 = vmatpush.bf16.msra.mxu1 %v9675_v14  ;;  %v10409_v38 = vld [vmem:[#allocation9 + $0x254] sm:$0xf0] }
 0x2f7   : > { %5617 = vmatmul.bf16.vlgmr.msrb.gmra.mxu0 %v11635_v4  ;;  %5631 = vmatmul.bf16.vlgmr.msrb.gmra.mxu1 %v11639_v47  ;;  %v4750_v4 = vpop.f32.mrf.mxu0  ;;  %v4764_v47 = vpop.f32.mrf.mxu1 }
 0x2f8   : > { %v11808_v42 = vadd.f32 %v4764_v47, %v4750_v4  ;;  %v4610_v58 = vpop.f32.mrf.mxu2  ;;  %v4624_v61 = vpop.f32.mrf.mxu3  ;;  %v10433_v4 = vld [vmem:[#allocation9 + $0x314] sm:$0xf0] }
 0x2f9   : > { %5582 = vmatpush.bf16.msra.mxu2 %v9283_v40  ;;  %5596 = vmatpush.bf16.msra.mxu3 %v9411_v21  ;;  %v4611_v14 = vadd.f32 %v4610_v58, %v11788_v55  ;;  %v9594_v40 = vld [vmem:[#allocation9 + $0x940] sm:$0xf]  ;;  %v10632_v21 = vld [vmem:[#allocation9 + $0x94c] sm:$0xf0] }
 0x2fa   : > { %6463 = vmatpush.bf16.msra.mxu0 %v9531_v18  ;;  %6477 = vmatpush.bf16.msra.mxu1 %v9659_v0  ;;  %v9219_v0 = vor.u32 %v10409_v38, %v9218_v16  ;;  %v9595_v32 = vor.u32 %v10632_v21, %v9594_v40  ;;  %v9435_v16 = vor.u32 %v10592_v13, %v9434_v20  ;;  %v9412_v40 = vld [vmem:[#allocation9 + $0x3d8] sm:$0xf0]  ;;  %v10614_v21 = vld [vmem:[#allocation9 + $0x8c4] sm:$0xf] }
 0x2fb   : > { %v11811_v35 = vadd.f32 %v4624_v61, %v4611_v14  ;;  %v9315_v61 = vor.u32 %v10433_v4, %v9314_v33  ;;  %v9303_v14 = vor.u32 %v10427_v2, %v9300_v41  ;;  %v10415_v33 = vld [vmem:[#allocation9 + $0x28c] sm:$0xf]  ;;  %v9252_v4 = vld [vmem:[#allocation9 + $0x298] sm:$0xf0]  ;;  %v10606_v13 = vld [vmem:[#allocation9 + $0x884] sm:$0xf] }
 0x2fc   : > { %v9380_v20 = vld [vmem:[#allocation9 + $0x398] sm:$0xf0]  ;;  %v9500_v2 = vld [vmem:[#allocation9 + $0x890] sm:$0xf0]  ;;  %v10638_v41 = vld [vmem:[#allocation9 + $0x984] sm:$0xf] }
 0x2fd   : > { %5583 = vmatpush.bf16.msra.mxu2 %v9267_v49  ;;  %5597 = vmatpush.bf16.msra.mxu3 %v9395_v39  ;;  %v10437_v49 = vld [vmem:[#allocation9 + $0x334] sm:$0xf0]  ;;  %v9450_v39 = vld [vmem:[#allocation9 + $0x820] sm:$0xf] }
 0x2fe   : > { %6464 = vmatpush.bf16.msra.mxu0 %v9515_v10  ;;  %6478 = vmatpush.bf16.msra.mxu1 %v9643_v15  ;;  %v10628_v10 = vld [vmem:[#allocation9 + $0x92c] sm:$0xf0]  ;;  %v9186_v15 = vld [vmem:[#allocation9 + $0x208] sm:$0xf]  ;;  %v9331_v9 = vor.u32 %v10437_v49, %v9330_v7  ;;  %v10419_v7 = vld [vmem:[#allocation9 + $0x2ac] sm:$0xf] }
 0x2ff   : > { %v4752_v23 = vpop.f32.mrf.mxu0  ;;  %v4766_v18 = vpop.f32.mrf.mxu1  ;;  %v9187_v58 = vor.u32 %v10401_v6, %v9186_v15  ;;  %v9268_v49 = vld [vmem:[#allocation9 + $0x2b8] sm:$0xf0] }
 0x300   : > { %v11813_v55 = vadd.f32 %v4766_v18, %v4752_v23  ;;  %v4612_v3 = vpop.f32.mrf.mxu2  ;;  %v4626_v8 = vpop.f32.mrf.mxu3  ;;  %v9396_v15 = vld [vmem:[#allocation9 + $0x3b8] sm:$0xf0] }
 0x301   : > { %5584 = vmatpush.bf16.msra.mxu2 %v9251_v12  ;;  %5598 = vmatpush.bf16.msra.mxu3 %v9379_v5  ;;  %v4613_v47 = vadd.f32 %v4612_v3, %v11790_v62  ;;  %v9451_v12 = vor.u32 %v10596_v44, %v9450_v39  ;;  %v9579_v5 = vor.u32 %v10628_v10, %v9578_v53  ;;  %v9676_v62 = vld [vmem:[#allocation9 + $0x9f0] sm:$0xf0]  ;;  %v10451_v10 = vld [vmem:[#allocation9 + $0x3ac] sm:$0xf]  ;;  %v10610_v3 = vld [vmem:[#allocation9 + $0x8a4] sm:$0xf] }
 0x302   : > { %6465 = vmatpush.bf16.msra.mxu0 %v9499_v50  ;;  %6479 = vmatpush.bf16.msra.mxu1 %v9627_v24  ;;  %v9562_v50 = vld [vmem:[#allocation9 + $0x900] sm:$0xf]  ;;  %v10624_v24 = vld [vmem:[#allocation9 + $0x90c] sm:$0xf0]  ;;  %v9399_v6 = vor.u32 %v10451_v10, %v9396_v15 }
 0x303   : > { %v11816_v36 = vadd.f32 %v4626_v8, %v4613_v47  ;;  %v9563_v38 = vor.u32 %v10624_v24, %v9562_v50  ;;  %v10642_v8 = vld [vmem:[#allocation9 + $0x9a4] sm:$0xf] }
 0x305   : > { %5585 = vmatpush.bf16.msra.mxu2 %v9235_v26  ;;  %5599 = vmatpush.bf16.msra.mxu3 %v9363_v34  ;;  %v9548_v26 = vld [vmem:[#allocation9 + $0x8f0] sm:$0xf0]  ;;  %v10650_v34 = vld [vmem:[#allocation9 + $0x9e4] sm:$0xf] }
 0x306   : > { %6466 = vmatpush.bf16.msra.mxu0 %v9483_v52  ;;  %6480 = vmatpush.bf16.msra.mxu1 %v9611_v59  ;;  %v9431_v52 = vor.u32 %v10459_v57, %v9428_v37  ;;  %v10423_v59 = vld [vmem:[#allocation9 + $0x2cc] sm:$0xf]  ;;  %v9551_v27 = vor.u32 %v10618_v63, %v9548_v26  ;;  %v9679_v60 = vor.u32 %v10650_v34, %v9676_v62  ;;  %v9628_v57 = vld [vmem:[#allocation9 + $0x990] sm:$0xf0] }
 0x307   : > { %v9255_v26 = vor.u32 %v10415_v33, %v9252_v4  ;;  %v10411_v62 = vld [vmem:[#allocation9 + $0x26c] sm:$0xf] }
 0x308   : > { %v4666_v23 = vpop.f32.mrf.mxu2  ;;  %v4680_v18 = vpop.f32.mrf.mxu3 }
 0x309   : > { %5586 = vmatpush.bf16.msra.mxu2 %v9219_v0  ;;  %5600 = vmatpush.bf16.msra.mxu3 %v9347_v22  ;;  %v9532_v0 = vld [vmem:[#allocation9 + $0x8d0] sm:$0xf0]  ;;  %v10646_v22 = vld [vmem:[#allocation9 + $0x9c4] sm:$0xf]  ;;  %v4667_v29 = vadd.f32 %v4666_v23, %v11792_v17  ;;  %v10407_v23 = vld [vmem:[#allocation9 + $0x24c] sm:$0xf] }
 0x30a   : > { %6467 = vmatpush.bf16.msra.mxu0 %v9467_v48  ;;  %6481 = vmatpush.bf16.msra.mxu1 %v9595_v32  ;;  %v9287_v48 = vor.u32 %v10423_v59, %v9284_v46  ;;  %v9415_v32 = vor.u32 %v10455_v31, %v9412_v40  ;;  %v9535_v44 = vor.u32 %v10614_v21, %v9532_v0  ;;  %v9516_v17 = vld [vmem:[#allocation9 + $0x8b0] sm:$0xf0]  ;;  %v10443_v59 = vld [vmem:[#allocation9 + $0x36c] sm:$0xf]  ;;  %v9364_v46 = vld [vmem:[#allocation9 + $0x378] sm:$0xf0] }
 0x30b   : > { %v11819_v39 = vadd.f32 %v4680_v18, %v4667_v29  ;;  %v9663_v53 = vor.u32 %v10646_v22, %v9660_v56  ;;  %v9519_v47 = vor.u32 %v10610_v3, %v9516_v17  ;;  %v10634_v31 = vld [vmem:[#allocation9 + $0x964] sm:$0xf]  ;;  %v9612_v40 = vld [vmem:[#allocation9 + $0x970] sm:$0xf0]  ;;  %v9367_v21 = vor.u32 %v10443_v59, %v9364_v46  ;;  %v9220_v18 = vld [vmem:[#allocation9 + $0x258] sm:$0xf0] }
 0x30c   : > { %v9615_v22 = vor.u32 %v10634_v31, %v9612_v40  ;;  %v10439_v56 = vld [vmem:[#allocation9 + $0x34c] sm:$0xf]  ;;  %v9348_v29 = vld [vmem:[#allocation9 + $0x358] sm:$0xf0]  ;;  %v9223_v17 = vor.u32 %v10407_v23, %v9220_v18  ;;  %v10684_v59 = vld [vmem:[#allocation9 + $0xaec] sm:$0xf0] }
 0x30d   : > { %5587 = vmatpush.bf16.msra.mxu2 %v9203_v54  ;;  %5601 = vmatpush.bf16.msra.mxu3 %v9331_v9  ;;  %v9644_v54 = vld [vmem:[#allocation9 + $0x9b0] sm:$0xf0]  ;;  %v9271_v9 = vor.u32 %v10419_v7, %v9268_v49  ;;  %v9554_v31 = vld [vmem:[#allocation9 + $0x8e8] sm:$0xf]  ;;  %v10621_v23 = vld [vmem:[#allocation9 + $0x8f4] sm:$0xf0] }
 0x30e   : > { %6468 = vmatpush.bf16.msra.mxu0 %v9451_v12  ;;  %6482 = vmatpush.bf16.msra.mxu1 %v9579_v5  ;;  %v9647_v12 = vor.u32 %v10642_v8, %v9644_v54  ;;  %v10447_v5 = vld [vmem:[#allocation9 + $0x38c] sm:$0xf]  ;;  %v9468_v49 = vld [vmem:[#allocation9 + $0x850] sm:$0xf0]  ;;  %v9351_v8 = vor.u32 %v10439_v56, %v9348_v29  ;;  %v9682_v18 = vld [vmem:[#allocation9 + $0x9e8] sm:$0xf] }
 0x30f   : > { %v9383_v34 = vor.u32 %v10447_v5, %v9380_v20  ;;  %v10403_v54 = vld [vmem:[#allocation9 + $0x22c] sm:$0xf]  ;;  %v9332_v5 = vld [vmem:[#allocation9 + $0x338] sm:$0xf0]  ;;  %v10594_v20 = vld [vmem:[#allocation9 + $0x824] sm:$0xf] }
 0x310   : > { %v4668_v50 = vpop.f32.mrf.mxu2  ;;  %v4682_v24 = vpop.f32.mrf.mxu3 }
 0x311   : > { %5588 = vmatpush.bf16.msra.mxu2 %v9187_v58  ;;  %5602 = vmatpush.bf16.msra.mxu3 %v9315_v61  ;;  %v4669_v37 = vadd.f32 %v4668_v50, %v11794_v11  ;;  %v10626_v50 = vld [vmem:[#allocation9 + $0x924] sm:$0xf] }
 0x312   : > { %6469 = vmatpush.bf16.msra.mxu0 %v9435_v16  ;;  %6483 = vmatpush.bf16.msra.mxu1 %v9563_v38  ;;  %v9236_v16 = vld [vmem:[#allocation9 + $0x278] sm:$0xf0] }
 0x313   : > { %v11827_v38 = vadd.f32 %v4682_v24, %v4669_v37  ;;  %v9580_v24 = vld [vmem:[#allocation9 + $0x930] sm:$0xf0]  ;;  %v10431_v37 = vld [vmem:[#allocation9 + $0x30c] sm:$0xf] }
 0x314   : > { %5589 = vmatmul.bf16.vlgmr.msra.gmra.mxu2 %v11740_v28  ;;  %5603 = vmatmul.bf16.vlgmr.msra.gmra.mxu3 %v11744_v19  ;;  %v5450_v63 = vpop.f32.mrf.mxu0  ;;  %v5464_v58 = vpop.f32.mrf.mxu1 }
 0x315   : > { %5637 = vmatpush.bf16.msrb.mxu2 %v9303_v14  ;;  %5651 = vmatpush.bf16.msrb.mxu3 %v9431_v52  ;;  %v5451_v61 = vadd.f32 %v5450_v63, %v11811_v35  ;;  %v9503_v14 = vor.u32 %v10606_v13, %v9500_v2  ;;  %v9631_v52 = vor.u32 %v10638_v41, %v9628_v57  ;;  %v9452_v13 = vld [vmem:[#allocation9 + $0x830] sm:$0xf0]  ;;  %v9188_v57 = vld [vmem:[#allocation9 + $0x218] sm:$0xf0] }
 0x316   : > { %6518 = vmatpush.bf16.msrb.mxu0 %v9551_v27  ;;  %6532 = vmatpush.bf16.msrb.mxu1 %v9679_v60  ;;  %v10602_v27 = vld [vmem:[#allocation9 + $0x864] sm:$0xf]  ;;  %v9484_v60 = vld [vmem:[#allocation9 + $0x870] sm:$0xf0]  ;;  %v9239_v35 = vor.u32 %v10411_v62, %v9236_v16  ;;  %v9316_v63 = vld [vmem:[#allocation9 + $0x318] sm:$0xf0] }
 0x317   : > { %6470 = vmatmul.bf16.vlgmr.msra.gmra.mxu0 %v11683_v30  ;;  %6484 = vmatmul.bf16.vlgmr.msra.gmra.mxu1 %v11697_v25  ;;  %v11829_v11 = vadd.f32 %v5464_v58, %v5451_v61  ;;  %v9487_v0 = vor.u32 %v10602_v27, %v9484_v60  ;;  %v9455_v58 = vor.u32 %v10594_v20, %v9452_v13  ;;  %v10622_v62 = vld [vmem:[#allocation9 + $0x904] sm:$0xf]  ;;  %v9930_v27 = vld [vmem:[#allocation9 + $0xbe0] sm:$0xf]  ;;  %v10716_v60 = vld [vmem:[#allocation9 + $0xbec] sm:$0xf0] }
 0x318   : > { %v4736_v7 = vpop.f32.mrf.mxu3  ;;  %v9583_v61 = vor.u32 %v10626_v50, %v9580_v24  ;;  %v10708_v20 = vld [vmem:[#allocation9 + $0xbac] sm:$0xf0]  ;;  %v9522_v13 = vld [vmem:[#allocation9 + $0x8a8] sm:$0xf]  ;;  %v10613_v50 = vld [vmem:[#allocation9 + $0x8b4] sm:$0xf0] }
 0x319   : > { %5638 = vmatpush.bf16.msrb.mxu2 %v9287_v48  ;;  %5652 = vmatpush.bf16.msrb.mxu3 %v9415_v32  ;;  %v10598_v48 = vld [vmem:[#allocation9 + $0x844] sm:$0xf]  ;;  %v4722_v32 = vpop.f32.mrf.mxu2  ;;  %v9650_v24 = vld [vmem:[#allocation9 + $0x9a8] sm:$0xf] }
 0x31a   : > { %6519 = vmatpush.bf16.msrb.mxu0 %v9535_v44  ;;  %6533 = vmatpush.bf16.msrb.mxu1 %v9663_v53  ;;  %v10630_v44 = vld [vmem:[#allocation9 + $0x944] sm:$0xf]  ;;  %v9596_v53 = vld [vmem:[#allocation9 + $0x950] sm:$0xf0]  ;;  %v4723_v10 = vadd.f32 %v4722_v32, %v11800_v51  ;;  %v9471_v4 = vor.u32 %v10598_v48, %v9468_v49  ;;  %v9931_v32 = vor.u32 %v10716_v60, %v9930_v27  ;;  %v10668_v27 = vld [vmem:[#allocation9 + $0xa6c] sm:$0xf0] }
 0x31b   : > { %v9555_v49 = vor.u32 %v10621_v23, %v9554_v31  ;;  %v9490_v23 = vld [vmem:[#allocation9 + $0x868] sm:$0xf] }
 0x31c   : > { %v5452_v15 = vpop.f32.mrf.mxu0  ;;  %v5466_v33 = vpop.f32.mrf.mxu1 }
 0x31d   : > { %5639 = vmatpush.bf16.msrb.mxu2 %v9271_v9  ;;  %5653 = vmatpush.bf16.msrb.mxu3 %v9399_v6  ;;  %v5453_v3 = vadd.f32 %v5452_v15, %v11816_v36  ;;  %v9204_v9 = vld [vmem:[#allocation9 + $0x238] sm:$0xf0]  ;;  %v11833_v6 = vadd.f32 %v4736_v7, %v4723_v10  ;;  %v10399_v36 = vld [vmem:[#allocation9 + $0x20c] sm:$0xf]  ;;  %v10680_v7 = vld [vmem:[#allocation9 + $0xacc] sm:$0xf0] }
 0x31e   : > { %6520 = vmatpush.bf16.msrb.mxu0 %v9519_v47  ;;  %6534 = vmatpush.bf16.msrb.mxu1 %v9647_v12  ;;  %v9599_v47 = vor.u32 %v10630_v44, %v9596_v53  ;;  %v10435_v12 = vld [vmem:[#allocation9 + $0x32c] sm:$0xf]  ;;  %v9207_v2 = vor.u32 %v10403_v54, %v9204_v9  ;;  %v9914_v53 = vld [vmem:[#allocation9 + $0xbc0] sm:$0xf]  ;;  %v10712_v10 = vld [vmem:[#allocation9 + $0xbcc] sm:$0xf0] }
 0x31f   : > { %v11835_v51 = vadd.f32 %v5466_v33, %v5453_v3  ;;  %v9335_v41 = vor.u32 %v10435_v12, %v9332_v5  ;;  %v9538_v15 = vld [vmem:[#allocation9 + $0x8c8] sm:$0xf]  ;;  %v10617_v3 = vld [vmem:[#allocation9 + $0x8d4] sm:$0xf0]  ;;  %v9915_v9 = vor.u32 %v10712_v10, %v9914_v53  ;;  %v9770_v33 = vld [vmem:[#allocation9 + $0xaa0] sm:$0xf] }
 0x320   : > { %v4738_v40 = vpop.f32.mrf.mxu3  ;;  %v9898_v5 = vld [vmem:[#allocation9 + $0xba0] sm:$0xf] }
 0x321   : > { %5640 = vmatpush.bf16.msrb.mxu2 %v9255_v26  ;;  %5654 = vmatpush.bf16.msrb.mxu3 %v9383_v34  ;;  %v10590_v26 = vld [vmem:[#allocation9 + $0x804] sm:$0xf]  ;;  %v9436_v34 = vld [vmem:[#allocation9 + $0x810] sm:$0xf0]  ;;  %v4724_v16 = vpop.f32.mrf.mxu2  ;;  %v9850_v10 = vld [vmem:[#allocation9 + $0xb40] sm:$0xf] }
 0x322   : > { %6521 = vmatpush.bf16.msrb.mxu0 %v9503_v14  ;;  %6535 = vmatpush.bf16.msrb.mxu1 %v9631_v52  ;;  %v9564_v14 = vld [vmem:[#allocation9 + $0x910] sm:$0xf0]  ;;  %v9802_v52 = vld [vmem:[#allocation9 + $0xae0] sm:$0xf]  ;;  %v4725_v46 = vadd.f32 %v4724_v16, %v11802_v43  ;;  %v9439_v56 = vor.u32 %v10590_v26, %v9436_v34  ;;  %v10609_v26 = vld [vmem:[#allocation9 + $0x894] sm:$0xf0] }
 0x323   : > { %v9567_v29 = vor.u32 %v10622_v62, %v9564_v14  ;;  %v9803_v48 = vor.u32 %v10684_v59, %v9802_v52  ;;  %v9786_v43 = vld [vmem:[#allocation9 + $0xac0] sm:$0xf]  ;;  %v9634_v34 = vld [vmem:[#allocation9 + $0x988] sm:$0xf]  ;;  %v10641_v62 = vld [vmem:[#allocation9 + $0x994] sm:$0xf0] }
 0x324   : > { %v9787_v54 = vor.u32 %v10680_v7, %v9786_v43  ;;  %v9722_v43 = vld [vmem:[#allocation9 + $0xa40] sm:$0xf]  ;;  %v10664_v7 = vld [vmem:[#allocation9 + $0xa4c] sm:$0xf0] }
 0x325   : > { %5641 = vmatpush.bf16.msrb.mxu2 %v9239_v35  ;;  %5655 = vmatpush.bf16.msrb.mxu3 %v9367_v21  ;;  %v9191_v35 = vor.u32 %v10399_v36, %v9188_v57  ;;  %v9319_v21 = vor.u32 %v10431_v37, %v9316_v63  ;;  %v10645_v36 = vld [vmem:[#allocation9 + $0x9b4] sm:$0xf0]  ;;  %v9754_v57 = vld [vmem:[#allocation9 + $0xa80] sm:$0xf]  ;;  %v10672_v37 = vld [vmem:[#allocation9 + $0xa8c] sm:$0xf0]  ;;  %v9523_v63 = vor.u32 %v10613_v50, %v9522_v13 }
 0x326   : > { %6522 = vmatpush.bf16.msrb.mxu0 %v9487_v0  ;;  %6536 = vmatpush.bf16.msrb.mxu1 %v9615_v22  ;;  %v10653_v0 = vld [vmem:[#allocation9 + $0x9f4] sm:$0xf0]  ;;  %v11838_v22 = vadd.f32 %v4738_v40, %v4725_v46  ;;  %v9755_v52 = vor.u32 %v10672_v37, %v9754_v57  ;;  %v9738_v46 = vld [vmem:[#allocation9 + $0xa60] sm:$0xf]  ;;  %v9635_v40 = vor.u32 %v10641_v62, %v9634_v34  ;;  %v9586_v37 = vld [vmem:[#allocation9 + $0x928] sm:$0xf] }
 0x327   : > { %v9683_v44 = vor.u32 %v10653_v0, %v9682_v18  ;;  %v10605_v18 = vld [vmem:[#allocation9 + $0x874] sm:$0xf0]  ;;  %v9618_v0 = vld [vmem:[#allocation9 + $0x968] sm:$0xf]  ;;  %v9818_v34 = vld [vmem:[#allocation9 + $0xb00] sm:$0xf] }
 0x328   : > { %v10597_v57 = vld [vmem:[#allocation9 + $0x834] sm:$0xf0]  ;;  %v10688_v62 = vld [vmem:[#allocation9 + $0xb0c] sm:$0xf0] }
 0x329   : > { %5642 = vmatpush.bf16.msrb.mxu2 %v9223_v17  ;;  %5656 = vmatpush.bf16.msrb.mxu3 %v9351_v8  ;;  %v9666_v17 = vld [vmem:[#allocation9 + $0x9c8] sm:$0xf]  ;;  %v10649_v8 = vld [vmem:[#allocation9 + $0x9d4] sm:$0xf0] }
 0x32a   : > { %6523 = vmatpush.bf16.msrb.mxu0 %v9471_v4  ;;  %6537 = vmatpush.bf16.msrb.mxu1 %v9599_v47  ;;  %v10676_v4 = vld [vmem:[#allocation9 + $0xaac] sm:$0xf0]  ;;  %v9539_v47 = vor.u32 %v10617_v3, %v9538_v15  ;;  %v9667_v12 = vor.u32 %v10649_v8, %v9666_v17  ;;  %v9474_v3 = vld [vmem:[#allocation9 + $0x848] sm:$0xf]  ;;  %v10601_v8 = vld [vmem:[#allocation9 + $0x854] sm:$0xf0] }
 0x32b   : > { %v10696_v15 = vld [vmem:[#allocation9 + $0xb4c] sm:$0xf0]  ;;  %v9475_v50 = vor.u32 %v10601_v8, %v9474_v3  ;;  %v9916_v8 = vld [vmem:[#allocation9 + $0xbd0] sm:$0xf0] }
 0x32d   : > { %5643 = vmatpush.bf16.msrb.mxu2 %v9207_v2  ;;  %5657 = vmatpush.bf16.msrb.mxu3 %v9335_v41  ;;  %v9771_v2 = vor.u32 %v10676_v4, %v9770_v33  ;;  %v9899_v41 = vor.u32 %v10708_v20, %v9898_v5  ;;  %v9706_v5 = vld [vmem:[#allocation9 + $0xa20] sm:$0xf]  ;;  %v10660_v20 = vld [vmem:[#allocation9 + $0xa2c] sm:$0xf0] }
 0x32e   : > { %6524 = vmatpush.bf16.msrb.mxu0 %v9455_v58  ;;  %6538 = vmatpush.bf16.msrb.mxu1 %v9583_v61  ;;  %v9651_v58 = vor.u32 %v10645_v36, %v9650_v24  ;;  %v10704_v61 = vld [vmem:[#allocation9 + $0xb8c] sm:$0xf0]  ;;  %v9834_v36 = vld [vmem:[#allocation9 + $0xb20] sm:$0xf] }
 0x331   : > { %5644 = vmatpush.bf16.msrb.mxu2 %v9191_v35  ;;  %5658 = vmatpush.bf16.msrb.mxu3 %v9319_v21  ;;  %v9866_v35 = vld [vmem:[#allocation9 + $0xb60] sm:$0xf]  ;;  %v10700_v21 = vld [vmem:[#allocation9 + $0xb6c] sm:$0xf0] }
 0x332   : > { %6525 = vmatpush.bf16.msrb.mxu0 %v9439_v56  ;;  %6539 = vmatpush.bf16.msrb.mxu1 %v9567_v29  ;;  %v10637_v56 = vld [vmem:[#allocation9 + $0x974] sm:$0xf0] }
 0x334   : > { %5645 = vmatmul.bf16.vlgmr.msrb.gmra.mxu2 %v11740_v28  ;;  %5659 = vmatmul.bf16.vlgmr.msrb.gmra.mxu3 %v11744_v19  ;;  %v9882_v28 = vld [vmem:[#allocation9 + $0xb80] sm:$0xf]  ;;  %v9506_v19 = vld [vmem:[#allocation9 + $0x888] sm:$0xf]  ;;  %v5506_v16 = vpop.f32.mrf.mxu0  ;;  %v5520_v14 = vpop.f32.mrf.mxu1 }
 0x335   : > { %6490 = vmatpush.bf16.msra.mxu2 %v9803_v48  ;;  %6504 = vmatpush.bf16.msra.mxu3 %v9931_v32  ;;  %v9883_v59 = vor.u32 %v10704_v61, %v9882_v28  ;;  %v5507_v60 = vadd.f32 %v5506_v16, %v11819_v39  ;;  %v9507_v31 = vor.u32 %v10609_v26, %v9506_v19  ;;  %v9690_v28 = vld [vmem:[#allocation9 + $0xa00] sm:$0xf]  ;;  %v10656_v26 = vld [vmem:[#allocation9 + $0xa0c] sm:$0xf0] }
 0x336   : > { %6574 = vmatpush.bf16.msra.mxu0 %v9555_v49  ;;  %6588 = vmatpush.bf16.msra.mxu1 %v9683_v44  ;;  %v9739_v48 = vor.u32 %v10668_v27, %v9738_v46  ;;  %v9867_v32 = vor.u32 %v10700_v21, %v9866_v35  ;;  %v9491_v49 = vor.u32 %v10605_v18, %v9490_v23  ;;  %v9570_v46 = vld [vmem:[#allocation9 + $0x908] sm:$0xf]  ;;  %v10714_v21 = vld [vmem:[#allocation9 + $0xbe4] sm:$0xf]  ;;  %v9932_v23 = vld [vmem:[#allocation9 + $0xbf0] sm:$0xf0] }
 0x337   : > { %6526 = vmatmul.bf16.vlgmr.msrb.gmra.mxu0 %v11683_v30  ;;  %6540 = vmatmul.bf16.vlgmr.msrb.gmra.mxu1 %v11697_v25  ;;  %v11845_v29 = vadd.f32 %v5520_v14, %v5507_v60  ;;  %v9619_v39 = vor.u32 %v10637_v56, %v9618_v0  ;;  %v4778_v44 = vpop.f32.mrf.mxu2  ;;  %v4792_v53 = vpop.f32.mrf.mxu3  ;;  %v9707_v61 = vor.u32 %v10660_v20, %v9706_v5  ;;  %v10625_v60 = vld [vmem:[#allocation9 + $0x914] sm:$0xf0]  ;;  %v10619_v18 = vld [vmem:[#allocation9 + $0x8ec] sm:$0xf]  ;;  %v10674_v20 = vld [vmem:[#allocation9 + $0xaa4] sm:$0xf] }
 0x338   : > { %v4779_v17 = vadd.f32 %v4778_v44, %v11808_v42  ;;  %v10692_v42 = vld [vmem:[#allocation9 + $0xb2c] sm:$0xf0]  ;;  %v9691_v56 = vor.u32 %v10656_v26, %v9690_v28  ;;  %v9935_v44 = vor.u32 %v10714_v21, %v9932_v23 }
 0x339   : > { %6491 = vmatpush.bf16.msra.mxu2 %v9787_v54  ;;  %6505 = vmatpush.bf16.msra.mxu3 %v9915_v9  ;;  %v9602_v54 = vld [vmem:[#allocation9 + $0x948] sm:$0xf]  ;;  %v10633_v9 = vld [vmem:[#allocation9 + $0x954] sm:$0xf0]  ;;  %v9835_v19 = vor.u32 %v10692_v42, %v9834_v36  ;;  %v10706_v36 = vld [vmem:[#allocation9 + $0xba4] sm:$0xf] }
 0x33a   : > { %6575 = vmatpush.bf16.msra.mxu0 %v9539_v47  ;;  %6589 = vmatpush.bf16.msra.mxu1 %v9667_v12  ;;  %v11848_v33 = vadd.f32 %v4792_v53, %v4779_v17  ;;  %v9723_v47 = vor.u32 %v10664_v7, %v9722_v43  ;;  %v9851_v12 = vor.u32 %v10696_v15, %v9850_v10  ;;  %v10651_v43 = vld [vmem:[#allocation9 + $0x9ec] sm:$0xf]  ;;  %v9684_v7 = vld [vmem:[#allocation9 + $0x9f8] sm:$0xf0]  ;;  %v10678_v53 = vld [vmem:[#allocation9 + $0xac4] sm:$0xf] }
 0x33b   : > { %v9603_v24 = vor.u32 %v10633_v9, %v9602_v54  ;;  %v9788_v10 = vld [vmem:[#allocation9 + $0xad0] sm:$0xf0]  ;;  %v9687_v3 = vor.u32 %v10651_v43, %v9684_v7  ;;  %v10710_v17 = vld [vmem:[#allocation9 + $0xbc4] sm:$0xf]  ;;  %v10615_v54 = vld [vmem:[#allocation9 + $0x8cc] sm:$0xf] }
 0x33c   : > { %v5508_v4 = vpop.f32.mrf.mxu0  ;;  %v9540_v9 = vld [vmem:[#allocation9 + $0x8d8] sm:$0xf0]  ;;  %v9919_v5 = vor.u32 %v10710_v17, %v9916_v8  ;;  %v9900_v42 = vld [vmem:[#allocation9 + $0xbb0] sm:$0xf0]  ;;  %v10635_v7 = vld [vmem:[#allocation9 + $0x96c] sm:$0xf] }
 0x33d   : > { %6492 = vmatpush.bf16.msra.mxu2 %v9771_v2  ;;  %6506 = vmatpush.bf16.msra.mxu3 %v9899_v41  ;;  %v5509_v13 = vadd.f32 %v5508_v4, %v11827_v38  ;;  %v9458_v2 = vld [vmem:[#allocation9 + $0x828] sm:$0xf]  ;;  %v5522_v41 = vpop.f32.mrf.mxu1  ;;  %v10647_v4 = vld [vmem:[#allocation9 + $0x9cc] sm:$0xf]  ;;  %v9903_v28 = vor.u32 %v10706_v36, %v9900_v42  ;;  %v9492_v43 = vld [vmem:[#allocation9 + $0x878] sm:$0xf0] }
 0x33e   : > { %6576 = vmatpush.bf16.msra.mxu0 %v9523_v63  ;;  %6590 = vmatpush.bf16.msra.mxu1 %v9651_v58  ;;  %v10629_v63 = vld [vmem:[#allocation9 + $0x934] sm:$0xf0]  ;;  %v9459_v38 = vor.u32 %v10597_v57, %v9458_v2  ;;  %v10611_v2 = vld [vmem:[#allocation9 + $0x8ac] sm:$0xf]  ;;  %v10694_v8 = vld [vmem:[#allocation9 + $0xb44] sm:$0xf] }
 0x33f   : > { %v11851_v58 = vadd.f32 %v5522_v41, %v5509_v13  ;;  %v9587_v16 = vor.u32 %v10629_v63, %v9586_v37  ;;  %v4780_v14 = vpop.f32.mrf.mxu2  ;;  %v4794_v35 = vpop.f32.mrf.mxu3  ;;  %v9772_v13 = vld [vmem:[#allocation9 + $0xab0] sm:$0xf0]  ;;  %v9524_v41 = vld [vmem:[#allocation9 + $0x8b8] sm:$0xf0]  ;;  %v10643_v57 = vld [vmem:[#allocation9 + $0x9ac] sm:$0xf] }
 0x340   : > { %v4781_v27 = vadd.f32 %v4780_v14, %v11813_v55  ;;  %v9571_v55 = vor.u32 %v10625_v60, %v9570_v46  ;;  %v9652_v37 = vld [vmem:[#allocation9 + $0x9b8] sm:$0xf0]  ;;  %v9775_v63 = vor.u32 %v10674_v20, %v9772_v13  ;;  %v9527_v26 = vor.u32 %v10611_v2, %v9524_v41  ;;  %v10658_v36 = vld [vmem:[#allocation9 + $0xa24] sm:$0xf]  ;;  %v9708_v42 = vld [vmem:[#allocation9 + $0xa30] sm:$0xf0] }
 0x341   : > { %6493 = vmatpush.bf16.msra.mxu2 %v9755_v52  ;;  %6507 = vmatpush.bf16.msra.mxu3 %v9883_v59  ;;  %v9442_v52 = vld [vmem:[#allocation9 + $0x808] sm:$0xf]  ;;  %v10593_v59 = vld [vmem:[#allocation9 + $0x814] sm:$0xf0]  ;;  %v9508_v14 = vld [vmem:[#allocation9 + $0x898] sm:$0xf0] }
 0x342   : > { %6577 = vmatpush.bf16.msra.mxu0 %v9507_v31  ;;  %6591 = vmatpush.bf16.msra.mxu1 %v9635_v40  ;;  %v10682_v31 = vld [vmem:[#allocation9 + $0xae4] sm:$0xf]  ;;  %v9804_v40 = vld [vmem:[#allocation9 + $0xaf0] sm:$0xf0]  ;;  %v11854_v0 = vadd.f32 %v4794_v35, %v4781_v27 }
 0x343   : > { %v9740_v35 = vld [vmem:[#allocation9 + $0xa70] sm:$0xf0] }
 0x345   : > { %6494 = vmatpush.bf16.msra.mxu2 %v9739_v48  ;;  %6508 = vmatpush.bf16.msra.mxu3 %v9867_v32  ;;  %v9819_v48 = vor.u32 %v10688_v62, %v9818_v34  ;;  %v9556_v32 = vld [vmem:[#allocation9 + $0x8f8] sm:$0xf0]  ;;  %v9655_v34 = vor.u32 %v10643_v57, %v9652_v37  ;;  %v10702_v62 = vld [vmem:[#allocation9 + $0xb84] sm:$0xf] }
 0x346   : > { %6578 = vmatpush.bf16.msra.mxu0 %v9491_v49  ;;  %6592 = vmatpush.bf16.msra.mxu1 %v9619_v39  ;;  %v9443_v49 = vor.u32 %v10593_v59, %v9442_v52  ;;  %v9807_v39 = vor.u32 %v10682_v31, %v9804_v40  ;;  %v9559_v15 = vor.u32 %v10619_v18, %v9556_v32  ;;  %v10639_v52 = vld [vmem:[#allocation9 + $0x98c] sm:$0xf]  ;;  %v9636_v59 = vld [vmem:[#allocation9 + $0x998] sm:$0xf0]  ;;  %v10666_v40 = vld [vmem:[#allocation9 + $0xa64] sm:$0xf] }
 0x347   : > { %v9639_v18 = vor.u32 %v10639_v52, %v9636_v59  ;;  %v10603_v32 = vld [vmem:[#allocation9 + $0x86c] sm:$0xf]  ;;  %v10690_v37 = vld [vmem:[#allocation9 + $0xb24] sm:$0xf] }
 0x348   : > { %v10686_v52 = vld [vmem:[#allocation9 + $0xb04] sm:$0xf] }
 0x349   : > { %6495 = vmatpush.bf16.msra.mxu2 %v9723_v47  ;;  %6509 = vmatpush.bf16.msra.mxu3 %v9851_v12  ;;  %v9668_v47 = vld [vmem:[#allocation9 + $0x9d8] sm:$0xf0]  ;;  %v9791_v12 = vor.u32 %v10678_v53, %v9788_v10  ;;  %v10662_v53 = vld [vmem:[#allocation9 + $0xa44] sm:$0xf]  ;;  %v9724_v10 = vld [vmem:[#allocation9 + $0xa50] sm:$0xf0] }
 0x34a   : > { %6579 = vmatpush.bf16.msra.mxu0 %v9475_v50  ;;  %6593 = vmatpush.bf16.msra.mxu1 %v9603_v24  ;;  %v9543_v50 = vor.u32 %v10615_v54, %v9540_v9  ;;  %v9671_v24 = vor.u32 %v10647_v4, %v9668_v47  ;;  %v9852_v54 = vld [vmem:[#allocation9 + $0xb50] sm:$0xf0]  ;;  %v10599_v9 = vld [vmem:[#allocation9 + $0x84c] sm:$0xf]  ;;  %v9476_v47 = vld [vmem:[#allocation9 + $0x858] sm:$0xf0] }
 0x34b   : > { %v9479_v41 = vor.u32 %v10599_v9, %v9476_v47  ;;  %v10677_v9 = vld [vmem:[#allocation9 + $0xab4] sm:$0xf0] }
 0x34c   : > { %v10709_v47 = vld [vmem:[#allocation9 + $0xbb4] sm:$0xf0] }
 0x34d   : > { %6496 = vmatpush.bf16.msra.mxu2 %v9707_v61  ;;  %6510 = vmatpush.bf16.msra.mxu3 %v9835_v19  ;;  %v10670_v61 = vld [vmem:[#allocation9 + $0xa84] sm:$0xf]  ;;  %v9756_v19 = vld [vmem:[#allocation9 + $0xa90] sm:$0xf0] }
 0x34e   : > { %6580 = vmatpush.bf16.msra.mxu0 %v9459_v38  ;;  %6594 = vmatpush.bf16.msra.mxu1 %v9587_v16  ;;  %v9884_v38 = vld [vmem:[#allocation9 + $0xb90] sm:$0xf0]  ;;  %v10607_v16 = vld [vmem:[#allocation9 + $0x88c] sm:$0xf]  ;;  %v9759_v60 = vor.u32 %v10670_v61, %v9756_v19  ;;  %v9460_v61 = vld [vmem:[#allocation9 + $0x838] sm:$0xf0] }
 0x34f   : > { %v9887_v31 = vor.u32 %v10702_v62, %v9884_v38  ;;  %v9511_v23 = vor.u32 %v10607_v16, %v9508_v14  ;;  %v10627_v19 = vld [vmem:[#allocation9 + $0x92c] sm:$0xf]  ;;  %v9711_v62 = vor.u32 %v10658_v36, %v9708_v42  ;;  %v10654_v16 = vld [vmem:[#allocation9 + $0xa04] sm:$0xf]  ;;  %v9692_v14 = vld [vmem:[#allocation9 + $0xa10] sm:$0xf0] }
 0x350   : > { %v10705_v36 = vld [vmem:[#allocation9 + $0xb94] sm:$0xf0] }
 0x351   : > { %6497 = vmatpush.bf16.msra.mxu2 %v9691_v56  ;;  %6511 = vmatpush.bf16.msra.mxu3 %v9819_v48  ;;  %v10698_v56 = vld [vmem:[#allocation9 + $0xb64] sm:$0xf]  ;;  %v9868_v48 = vld [vmem:[#allocation9 + $0xb70] sm:$0xf0] }
 0x352   : > { %6581 = vmatpush.bf16.msra.mxu0 %v9443_v49  ;;  %6595 = vmatpush.bf16.msra.mxu1 %v9571_v55  ;;  %v9620_v49 = vld [vmem:[#allocation9 + $0x978] sm:$0xf0] }
 0x354   : > { %6498 = vmatmul.bf16.vlgmr.msra.gmra.mxu2 %v11773_v45  ;;  %6512 = vmatmul.bf16.vlgmr.msra.gmra.mxu3 %v11776_v1  ;;  %v5562_v46 = vpop.f32.mrf.mxu0  ;;  %v5576_v27 = vpop.f32.mrf.mxu1 }
 0x355   : > { %6546 = vmatpush.bf16.msrb.mxu2 %v9807_v39  ;;  %6560 = vmatpush.bf16.msrb.mxu3 %v9935_v44  ;;  %v5563_v21 = vadd.f32 %v5562_v46, %v11833_v6  ;;  %v9743_v39 = vor.u32 %v10666_v40, %v9740_v35  ;;  %v9871_v44 = vor.u32 %v10698_v56, %v9868_v48  ;;  %v10623_v35 = vld [vmem:[#allocation9 + $0x90c] sm:$0xf]  ;;  %v10685_v56 = vld [vmem:[#allocation9 + $0xaf4] sm:$0xf0]  ;;  %v9938_v48 = vld [vmem:[#allocation9 + $0xbe8] sm:$0xf] }
 0x356   : > { %6630 = vmatpush.bf16.msrb.mxu0 %v9559_v15  ;;  %6644 = vmatpush.bf16.msrb.mxu1 %v9687_v3  ;;  %v9495_v15 = vor.u32 %v10603_v32, %v9492_v43  ;;  %v9623_v6 = vor.u32 %v10635_v7, %v9620_v49  ;;  %v10717_v32 = vld [vmem:[#allocation9 + $0xbf4] sm:$0xf0]  ;;  %v9695_v7 = vor.u32 %v10654_v16, %v9692_v14  ;;  %v9858_v14 = vld [vmem:[#allocation9 + $0xb48] sm:$0xf] }
 0x357   : > { %6582 = vmatmul.bf16.vlgmr.msra.gmra.mxu0 %v11683_v30  ;;  %6596 = vmatmul.bf16.vlgmr.msra.gmra.mxu1 %v11697_v25  ;;  %v11861_v55 = vadd.f32 %v5576_v27, %v5563_v21  ;;  %v5478_v3 = vpop.f32.mrf.mxu2  ;;  %v5492_v17 = vpop.f32.mrf.mxu3  ;;  %v9820_v27 = vld [vmem:[#allocation9 + $0xb10] sm:$0xf0]  ;;  %v9572_v21 = vld [vmem:[#allocation9 + $0x918] sm:$0xf0]  ;;  %v10665_v16 = vld [vmem:[#allocation9 + $0xa54] sm:$0xf0] }
 0x358   : > { %v5479_v4 = vadd.f32 %v5478_v3, %v11829_v11  ;;  %v9836_v11 = vld [vmem:[#allocation9 + $0xb30] sm:$0xf0]  ;;  %v9823_v49 = vor.u32 %v10686_v52, %v9820_v27  ;;  %v10713_v3 = vld [vmem:[#allocation9 + $0xbd4] sm:$0xf0] }
 0x359   : > { %6547 = vmatpush.bf16.msrb.mxu2 %v9791_v12  ;;  %6561 = vmatpush.bf16.msrb.mxu3 %v9919_v5  ;;  %v10631_v12 = vld [vmem:[#allocation9 + $0x94c] sm:$0xf]  ;;  %v9604_v5 = vld [vmem:[#allocation9 + $0x958] sm:$0xf0]  ;;  %v9839_v38 = vor.u32 %v10690_v37, %v9836_v11  ;;  %v9746_v37 = vld [vmem:[#allocation9 + $0xa68] sm:$0xf] }
 0x35a   : > { %6631 = vmatpush.bf16.msrb.mxu0 %v9543_v50  ;;  %6645 = vmatpush.bf16.msrb.mxu1 %v9671_v24  ;;  %v11864_v20 = vadd.f32 %v5492_v17, %v5479_v4  ;;  %v9727_v50 = vor.u32 %v10662_v53, %v9724_v10  ;;  %v9855_v24 = vor.u32 %v10694_v8, %v9852_v54  ;;  %v9778_v54 = vld [vmem:[#allocation9 + $0xaa8] sm:$0xf]  ;;  %v10697_v52 = vld [vmem:[#allocation9 + $0xb54] sm:$0xf0] }
 0x35b   : > { %v9607_v57 = vor.u32 %v10631_v12, %v9604_v5  ;;  %v9939_v10 = vor.u32 %v10717_v32, %v9938_v48  ;;  %v9906_v4 = vld [vmem:[#allocation9 + $0xba8] sm:$0xf]  ;;  %v9779_v12 = vor.u32 %v10677_v9, %v9778_v54  ;;  %v9859_v27 = vor.u32 %v10697_v52, %v9858_v14  ;;  %v10657_v32 = vld [vmem:[#allocation9 + $0xa14] sm:$0xf0]  ;;  %v10679_v9 = vld [vmem:[#allocation9 + $0xacc] sm:$0xf] }
 0x35c   : > { %v5564_v13 = vpop.f32.mrf.mxu0  ;;  %v9907_v5 = vor.u32 %v10709_v47, %v9906_v4  ;;  %v9698_v48 = vld [vmem:[#allocation9 + $0xa08] sm:$0xf]  ;;  %v9796_v4 = vld [vmem:[#allocation9 + $0xad8] sm:$0xf0]  ;;  %v10711_v47 = vld [vmem:[#allocation9 + $0xbcc] sm:$0xf] }
 0x35d   : > { %6548 = vmatpush.bf16.msrb.mxu2 %v9775_v63  ;;  %6562 = vmatpush.bf16.msrb.mxu3 %v9903_v28  ;;  %v5565_v2 = vadd.f32 %v5564_v13, %v11838_v22  ;;  %v10595_v63 = vld [vmem:[#allocation9 + $0x82c] sm:$0xf]  ;;  %v5578_v28 = vpop.f32.mrf.mxu1  ;;  %v9762_v13 = vld [vmem:[#allocation9 + $0xa88] sm:$0xf]  ;;  %v9732_v14 = vld [vmem:[#allocation9 + $0xa58] sm:$0xf0] }
 0x35e   : > { %6632 = vmatpush.bf16.msrb.mxu0 %v9527_v26  ;;  %6646 = vmatpush.bf16.msrb.mxu1 %v9655_v34  ;;  %v9588_v26 = vld [vmem:[#allocation9 + $0x938] sm:$0xf0]  ;;  %v9463_v22 = vor.u32 %v10595_v63, %v9460_v61  ;;  %v9874_v63 = vld [vmem:[#allocation9 + $0xb68] sm:$0xf]  ;;  %v10695_v52 = vld [vmem:[#allocation9 + $0xb4c] sm:$0xf] }
 0x35f   : > { %v11867_v34 = vadd.f32 %v5578_v28, %v5565_v2  ;;  %v9591_v59 = vor.u32 %v10627_v19, %v9588_v26  ;;  %v5480_v46 = vpop.f32.mrf.mxu2  ;;  %v9730_v26 = vld [vmem:[#allocation9 + $0xa48] sm:$0xf] }
 0x360   : > { %v5481_v40 = vadd.f32 %v5480_v46, %v11835_v51  ;;  %v9794_v51 = vld [vmem:[#allocation9 + $0xac8] sm:$0xf]  ;;  %v9731_v46 = vor.u32 %v10665_v16, %v9730_v26  ;;  %v9876_v26 = vld [vmem:[#allocation9 + $0xb78] sm:$0xf0]  ;;  %v10663_v16 = vld [vmem:[#allocation9 + $0xa4c] sm:$0xf] }
 0x361   : > { %6549 = vmatpush.bf16.msrb.mxu2 %v9759_v60  ;;  %6563 = vmatpush.bf16.msrb.mxu3 %v9887_v31  ;;  %v10591_v60 = vld [vmem:[#allocation9 + $0x80c] sm:$0xf]  ;;  %v9444_v31 = vld [vmem:[#allocation9 + $0x818] sm:$0xf0] }
 0x362   : > { %6633 = vmatpush.bf16.msrb.mxu0 %v9511_v23  ;;  %6647 = vmatpush.bf16.msrb.mxu1 %v9639_v18  ;;  %v9810_v23 = vld [vmem:[#allocation9 + $0xae8] sm:$0xf]  ;;  %v5494_v18 = vpop.f32.mrf.mxu3 }
 0x363   : > { %v11870_v43 = vadd.f32 %v5494_v18, %v5481_v40  ;;  %v9811_v53 = vor.u32 %v10685_v56, %v9810_v23  ;;  %v10661_v40 = vld [vmem:[#allocation9 + $0xa34] sm:$0xf0] }
 0x365   : > { %6550 = vmatpush.bf16.msrb.mxu2 %v9743_v39  ;;  %6564 = vmatpush.bf16.msrb.mxu3 %v9871_v44  ;;  %v9447_v39 = vor.u32 %v10591_v60, %v9444_v31  ;;  %v9575_v44 = vor.u32 %v10623_v35, %v9572_v21  ;;  %v9714_v60 = vld [vmem:[#allocation9 + $0xa28] sm:$0xf]  ;;  %v10693_v21 = vld [vmem:[#allocation9 + $0xb34] sm:$0xf0] }
 0x366   : > { %6634 = vmatpush.bf16.msrb.mxu0 %v9495_v15  ;;  %6648 = vmatpush.bf16.msrb.mxu1 %v9623_v6  ;;  %v10681_v15 = vld [vmem:[#allocation9 + $0xad4] sm:$0xf0]  ;;  %v9922_v6 = vld [vmem:[#allocation9 + $0xbc8] sm:$0xf]  ;;  %v9715_v56 = vor.u32 %v10661_v40, %v9714_v60  ;;  %v9735_v60 = vor.u32 %v10663_v16, %v9732_v14  ;;  %v10659_v40 = vld [vmem:[#allocation9 + $0xa2c] sm:$0xf] }
 0x367   : > { %v9795_v17 = vor.u32 %v10681_v15, %v9794_v51  ;;  %v9923_v8 = vor.u32 %v10713_v3, %v9922_v6  ;;  %v9842_v35 = vld [vmem:[#allocation9 + $0xb28] sm:$0xf]  ;;  %v9940_v51 = vld [vmem:[#allocation9 + $0xbf8] sm:$0xf0]  ;;  %v9699_v3 = vor.u32 %v10657_v32, %v9698_v48  ;;  %v10655_v32 = vld [vmem:[#allocation9 + $0xa0c] sm:$0xf] }
 0x369   : > { %6551 = vmatpush.bf16.msrb.mxu2 %v9727_v50  ;;  %6565 = vmatpush.bf16.msrb.mxu3 %v9855_v24  ;;  %v10673_v50 = vld [vmem:[#allocation9 + $0xa94] sm:$0xf0]  ;;  %v9890_v24 = vld [vmem:[#allocation9 + $0xb88] sm:$0xf] }
 0x36a   : > { %6635 = vmatpush.bf16.msrb.mxu0 %v9479_v41  ;;  %6649 = vmatpush.bf16.msrb.mxu1 %v9607_v57  ;;  %v9763_v41 = vor.u32 %v10673_v50, %v9762_v13  ;;  %v9891_v57 = vor.u32 %v10705_v36, %v9890_v24  ;;  %v10675_v13 = vld [vmem:[#allocation9 + $0xaac] sm:$0xf]  ;;  %v9780_v50 = vld [vmem:[#allocation9 + $0xab8] sm:$0xf0] }
 0x36b   : > { %v10707_v24 = vld [vmem:[#allocation9 + $0xbac] sm:$0xf]  ;;  %v9908_v36 = vld [vmem:[#allocation9 + $0xbb8] sm:$0xf0] }
 0x36d   : > { %6552 = vmatpush.bf16.msrb.mxu2 %v9711_v62  ;;  %6566 = vmatpush.bf16.msrb.mxu3 %v9839_v38 }
 0x36e   : > { %6636 = vmatpush.bf16.msrb.mxu0 %v9463_v22  ;;  %6650 = vmatpush.bf16.msrb.mxu1 %v9591_v59 }
 0x371   : > { %6553 = vmatpush.bf16.msrb.mxu2 %v9695_v7  ;;  %6567 = vmatpush.bf16.msrb.mxu3 %v9823_v49  ;;  %v9826_v49 = vld [vmem:[#allocation9 + $0xb08] sm:$0xf] }
 0x372   : > { %6637 = vmatpush.bf16.msrb.mxu0 %v9447_v39  ;;  %6651 = vmatpush.bf16.msrb.mxu1 %v9575_v44  ;;  %v10689_v39 = vld [vmem:[#allocation9 + $0xb14] sm:$0xf0]  ;;  %v10683_v44 = vld [vmem:[#allocation9 + $0xaec] sm:$0xf] }
 0x374   : > { %6554 = vmatmul.bf16.vlgmr.msrb.gmra.mxu2 %v11773_v45  ;;  %6568 = vmatmul.bf16.vlgmr.msrb.gmra.mxu3 %v11776_v1  ;;  %v5618_v42 = vpop.f32.mrf.mxu0  ;;  %v5632_v2 = vpop.f32.mrf.mxu1 }
 0x375   : > { %6602 = vmatpush.bf16.msra.mxu2 %v9811_v53  ;;  %6616 = vmatpush.bf16.msra.mxu3 %v9939_v10  ;;  %v5619_v11 = vadd.f32 %v5618_v42, %v11848_v33  ;;  %v9812_v10 = vld [vmem:[#allocation9 + $0xaf8] sm:$0xf0]  ;;  %v9783_v42 = vor.u32 %v10675_v13, %v9780_v50 }
 0x376   : > { %6638 = vmatmul.bf16.vlgmr.msrb.gmra.mxu0 %v11683_v30  ;;  %6652 = vmatmul.bf16.vlgmr.msrb.gmra.mxu1 %v11697_v25  ;;  %v10669_v30 = vld [vmem:[#allocation9 + $0xa74] sm:$0xf0] }
 0x377   : > { %v10701_v25 = vld [vmem:[#allocation9 + $0xb74] sm:$0xf0]  ;;  %v11877_v28 = vadd.f32 %v5632_v2, %v5619_v11  ;;  %v9747_v61 = vor.u32 %v10669_v30, %v9746_v37  ;;  %v5534_v62 = vpop.f32.mrf.mxu2  ;;  %v5548_v38 = vpop.f32.mrf.mxu3  ;;  %v9911_v2 = vor.u32 %v10707_v24, %v9908_v36  ;;  %v10703_v37 = vld [vmem:[#allocation9 + $0xb8c] sm:$0xf]  ;;  %v9892_v11 = vld [vmem:[#allocation9 + $0xb98] sm:$0xf0] }
 0x378   : > { %v9875_v19 = vor.u32 %v10701_v25, %v9874_v63  ;;  %v5535_v22 = vadd.f32 %v5534_v62, %v11845_v29  ;;  %v9843_v29 = vor.u32 %v10693_v21, %v9842_v35  ;;  %v9895_v63 = vor.u32 %v10703_v37, %v9892_v11  ;;  %v10667_v25 = vld [vmem:[#allocation9 + $0xa6c] sm:$0xf]  ;;  %v9716_v21 = vld [vmem:[#allocation9 + $0xa38] sm:$0xf0] }
 0x379   : > { %6603 = vmatpush.bf16.msra.mxu2 %v9795_v17  ;;  %6617 = vmatpush.bf16.msra.mxu3 %v9923_v8  ;;  %v9827_v17 = vor.u32 %v10689_v39, %v9826_v49  ;;  %v9815_v8 = vor.u32 %v10683_v44, %v9812_v10  ;;  %v10687_v49 = vld [vmem:[#allocation9 + $0xb0c] sm:$0xf]  ;;  %v9828_v39 = vld [vmem:[#allocation9 + $0xb18] sm:$0xf0] }
 0x37a   : > { %v11880_v33 = vadd.f32 %v5548_v38, %v5535_v22  ;;  %v9860_v22 = vld [vmem:[#allocation9 + $0xb58] sm:$0xf0] }
 0x37c   : > { %v5620_v59 = vpop.f32.mrf.mxu0  ;;  %v5634_v23 = vpop.f32.mrf.mxu1 }
 0x37d   : > { %6604 = vmatpush.bf16.msra.mxu2 %v9779_v12  ;;  %6618 = vmatpush.bf16.msra.mxu3 %v9907_v5  ;;  %v5621_v31 = vadd.f32 %v5620_v59, %v11854_v0  ;;  %v10715_v0 = vld [vmem:[#allocation9 + $0xbec] sm:$0xf]  ;;  %v9924_v12 = vld [vmem:[#allocation9 + $0xbd8] sm:$0xf0] }
 0x37e   : > { %v9943_v54 = vor.u32 %v10715_v0, %v9940_v51  ;;  %v9927_v5 = vor.u32 %v10711_v47, %v9924_v12  ;;  %v9831_v0 = vor.u32 %v10687_v49, %v9828_v39  ;;  %v10816_v49 = vld [vmem:[%s11207_s11 + $0x28] sm:$0xff] }
 0x37f   : > { %v11883_v18 = vadd.f32 %v5634_v23, %v5621_v31  ;;  %v5536_v7 = vpop.f32.mrf.mxu2  ;;  %v5550_v15 = vpop.f32.mrf.mxu3  ;;  %v9863_v31 = vor.u32 %v10695_v52, %v9860_v22  ;;  %v10691_v23 = vld [vmem:[#allocation9 + $0xb2c] sm:$0xf] }
 0x380   : > { %v5537_v53 = vadd.f32 %v5536_v7, %v11851_v58  ;;  %v9799_v58 = vor.u32 %v10679_v9, %v9796_v4  ;;  %v9700_v7 = vld [vmem:[#allocation9 + $0xa18] sm:$0xf0] }
 0x381   : > { %6605 = vmatpush.bf16.msra.mxu2 %v9763_v41  ;;  %6619 = vmatpush.bf16.msra.mxu3 %v9891_v57  ;;  %v10671_v41 = vld [vmem:[#allocation9 + $0xa8c] sm:$0xf]  ;;  %v9764_v57 = vld [vmem:[#allocation9 + $0xa98] sm:$0xf0]  ;;  %v9703_v10 = vor.u32 %v10655_v32, %v9700_v7 }
 0x382   : > { %v11886_v6 = vadd.f32 %v5550_v15, %v5537_v53  ;;  %v9767_v30 = vor.u32 %v10671_v41, %v9764_v57  ;;  %v10813_v57 = vld [vmem:[%s11207_s11] sm:$0xff] }
 0x385   : > { %6606 = vmatpush.bf16.msra.mxu2 %v9747_v61  ;;  %6620 = vmatpush.bf16.msra.mxu3 %v9875_v19  ;;  %v9748_v61 = vld [vmem:[#allocation9 + $0xa78] sm:$0xf0]  ;;  %v10699_v19 = vld [vmem:[#allocation9 + $0xb6c] sm:$0xf] }
 0x386   : > { %v9751_v62 = vor.u32 %v10667_v25, %v9748_v61  ;;  %v9879_v38 = vor.u32 %v10699_v19, %v9876_v26  ;;  %v10814_v19 = vld [vmem:[%s11207_s11 + $0x20] sm:$0xff] }
 0x389   : > { %6607 = vmatpush.bf16.msra.mxu2 %v9731_v46  ;;  %6621 = vmatpush.bf16.msra.mxu3 %v9859_v27 }
 0x38d   : > { %6608 = vmatpush.bf16.msra.mxu2 %v9715_v56  ;;  %6622 = vmatpush.bf16.msra.mxu3 %v9843_v29  ;;  %v9844_v56 = vld [vmem:[#allocation9 + $0xb38] sm:$0xf0]  ;;  %v9719_v29 = vor.u32 %v10659_v40, %v9716_v21  ;;  %v10815_v21 = vld [vmem:[%s11207_s11 + $0x8] sm:$0xff] }
 0x38e   : > { %v9847_v48 = vor.u32 %v10691_v23, %v9844_v56 }
 0x391   : > { %6609 = vmatpush.bf16.msra.mxu2 %v9699_v3  ;;  %6623 = vmatpush.bf16.msra.mxu3 %v9827_v17 }
 0x394   : > { %6610 = vmatmul.bf16.vlgmr.msra.gmra.mxu2 %v11773_v45  ;;  %6624 = vmatmul.bf16.vlgmr.msra.gmra.mxu3 %v11776_v1  ;;  %v6471_v47 = vpop.f32.mrf.mxu0  ;;  %v6485_v12 = vpop.f32.mrf.mxu1 }
 0x395   : > { %6658 = vmatpush.bf16.msrb.mxu2 %v9815_v8  ;;  %6672 = vmatpush.bf16.msrb.mxu3 %v9943_v54 }
 0x397   : > { %v5590_v59 = vpop.f32.mrf.mxu2  ;;  %v5604_v46 = vpop.f32.mrf.mxu3 }
 0x398   : > { %v5591_v27 = vadd.f32 %v5590_v59, %v11861_v55 }
 0x399   : > { %6659 = vmatpush.bf16.msrb.mxu2 %v9799_v58  ;;  %6673 = vmatpush.bf16.msrb.mxu3 %v9927_v5  ;;  %v6486_v58 = vadd.f32 %v6485_v12, %v6471_v47  ;;  %v10817_v12 = vld [vmem:[%s11207_s11 + $0x10] sm:$0xff] }
 0x39a   : > { %v11891_v35 = vadd.f32 %v5604_v46, %v5591_v27 }
 0x39c   : > { %v6473_v24 = vpop.f32.mrf.mxu0  ;;  %v6487_v36 = vpop.f32.mrf.mxu1 }
 0x39d   : > { %6660 = vmatpush.bf16.msrb.mxu2 %v9783_v42  ;;  %6674 = vmatpush.bf16.msrb.mxu3 %v9911_v2  ;;  %v6488_v42 = vadd.f32 %v6487_v36, %v6473_v24  ;;  %v10818_v24 = vld [vmem:[%s11207_s11 + $0x30] sm:$0xff] }
 0x39f   : > { %v5592_v44 = vpop.f32.mrf.mxu2  ;;  %v5606_v53 = vpop.f32.mrf.mxu3 }
 0x3a0   : > { %v5593_v55 = vadd.f32 %v5592_v44, %v11867_v34 }
 0x3a1   : > { %6661 = vmatpush.bf16.msrb.mxu2 %v9767_v30  ;;  %6675 = vmatpush.bf16.msrb.mxu3 %v9895_v63 }
 0x3a2   : > { %v11894_v51 = vadd.f32 %v5606_v53, %v5593_v55 }
 0x3a5   : > { %6662 = vmatpush.bf16.msrb.mxu2 %v9751_v62  ;;  %6676 = vmatpush.bf16.msrb.mxu3 %v9879_v38 }
 0x3a9   : > { %6663 = vmatpush.bf16.msrb.mxu2 %v9735_v60  ;;  %6677 = vmatpush.bf16.msrb.mxu3 %v9863_v31 }
 0x3ad   : > { %6664 = vmatpush.bf16.msrb.mxu2 %v9719_v29  ;;  %6678 = vmatpush.bf16.msrb.mxu3 %v9847_v48 }
 0x3b1   : > { %6665 = vmatpush.bf16.msrb.mxu2 %v9703_v10  ;;  %6679 = vmatpush.bf16.msrb.mxu3 %v9831_v0 }
 0x3b4   : > { %6666 = vmatmul.bf16.vlgmr.msrb.gmra.mxu2 %v11773_v45  ;;  %6680 = vmatmul.bf16.vlgmr.msrb.gmra.mxu3 %v11776_v1  ;;  %v11904_v1 = vld [vmem:[#allocation11] sm:$0xf]  ;;  %v6541_v62 = vpop.f32.mrf.mxu1 }
 0x3b5   : > { %v6697_v59 = vperm.slane %v11904_v1, 1 }
 0x3b7   : > { %v5646_v15 = vpop.f32.mrf.mxu2  ;;  %v5660_v3 = vpop.f32.mrf.mxu3 }
 0x3b8   : > { %v5647_v17 = vadd.f32 %v5646_v15, %v11877_v28  ;;  %v6696_v28 = vperm.slane %v11904_v1, 0 }
 0x3ba   : > { %v11899_v8 = vadd.f32 %v5660_v3, %v5647_v17  ;;  %v6698_v3 = vperm.slane %v11904_v1, 2 }
 0x3bc   : > { %v6543_v27 = vpop.f32.mrf.mxu1 }
 0x3bf   : > { %v5648_v34 = vpop.f32.mrf.mxu2  ;;  %v5662_v9 = vpop.f32.mrf.mxu3 }
 0x3c0   : > { %v5649_v54 = vadd.f32 %v5648_v34, %v11883_v18 }
 0x3c2   : > { %v11902_v4 = vadd.f32 %v5662_v9, %v5649_v54 }
 0x3d4   : > { %v6597_v55 = vpop.f32.mrf.mxu1 }
 0x3d7   : > { %v6499_v5 = vpop.f32.mrf.mxu2  ;;  %v6513_v45 = vpop.f32.mrf.mxu3 }
 0x3d8   : > { %v6500_v13 = vadd.f32 %v6499_v5, %v6486_v58 }
 0x3da   : > { %v6514_v50 = vadd.f32 %v6513_v45, %v6500_v13 }
 0x3dc   : > { %v6686_v18 = vadd.f32 %v6514_v50, %v11864_v20  ;;  %v6527_v20 = vpop.f32.mrf.mxu0  ;;  %v6599_v34 = vpop.f32.mrf.mxu1 }
 0x3dd   : > { %v6542_v38 = vadd.f32 %v6541_v62, %v6527_v20 }
 0x3de   : > { %v6704_v2 = vadd.f32 %v6696_v28, %v6686_v18 }
 0x3df   : > { %v6501_v41 = vpop.f32.mrf.mxu2  ;;  %v6515_v30 = vpop.f32.mrf.mxu3 }
 0x3e0   : > { %v6712_v37 = vadd.f32 %v10813_v57, %v6704_v2  ;;  %v6502_v11 = vadd.f32 %v6501_v41, %v6488_v42 }
 0x3e2   : > { %6720 = vst [vmem:[%s11911_s24] sm:$0xff] %v6712_v37  ;;  %v6516_v63 = vadd.f32 %v6515_v30, %v6502_v11  ;;  %v6699_v11 = vperm.slane %v11904_v1, 3 }
 0x3e4   : > { %v6690_v25 = vadd.f32 %v6516_v63, %v11870_v43  ;;  %v6529_v46 = vpop.f32.mrf.mxu0 }
 0x3e5   : > { %v6544_v60 = vadd.f32 %v6543_v27, %v6529_v46 }
 0x3e6   : > { %v6708_v61 = vadd.f32 %v6696_v28, %v6690_v25 }
 0x3e8   : > { %v6716_v26 = vadd.f32 %v10814_v19, %v6708_v61 }
 0x3ea   : > { %6724 = vst [vmem:[%s11911_s24 + $0x20] sm:$0xff] %v6716_v26  ;;  %v10819_v26 = vld [vmem:[%s11207_s11 + $0x18] sm:$0xff] }
 0x3ec   : > { %v6583_v44 = vpop.f32.mrf.mxu0 }
 0x3ed   : > { %v6598_v53 = vadd.f32 %v6597_v55, %v6583_v44 }
 0x3f3   : > { %v6653_v42 = vpop.f32.mrf.mxu1 }
 0x3f4   : > { %v6585_v17 = vpop.f32.mrf.mxu0 }
 0x3f5   : > { %v6600_v54 = vadd.f32 %v6599_v34, %v6585_v17 }
 0x3f7   : > { %v6555_v16 = vpop.f32.mrf.mxu2  ;;  %v6569_v14 = vpop.f32.mrf.mxu3 }
 0x3f8   : > { %v6556_v52 = vadd.f32 %v6555_v16, %v6542_v38 }
 0x3fa   : > { %v6570_v22 = vadd.f32 %v6569_v14, %v6556_v52  ;;  %v10820_v14 = vld [vmem:[%s11207_s11 + $0x38] sm:$0xff] }
 0x3fb   : > { %v6655_v63 = vpop.f32.mrf.mxu1 }
 0x3fc   : > { %v6687_v43 = vadd.f32 %v6570_v22, %v11880_v33  ;;  %v6639_v18 = vpop.f32.mrf.mxu0 }
 0x3fe   : > { %v6705_v31 = vadd.f32 %v6697_v59, %v6687_v43 }
 0x3ff   : > { %v6557_v40 = vpop.f32.mrf.mxu2  ;;  %v6571_v29 = vpop.f32.mrf.mxu3 }
 0x400   : > { %v6713_v23 = vadd.f32 %v10815_v21, %v6705_v31  ;;  %v6558_v56 = vadd.f32 %v6557_v40, %v6544_v60 }
 0x402   : > { %6721 = vst [vmem:[%s11911_s24 + $0x8] sm:$0xff] %v6713_v23  ;;  %v6572_v48 = vadd.f32 %v6571_v29, %v6558_v56 }
 0x404   : > { %v6691_v32 = vadd.f32 %v6572_v48, %v11886_v6  ;;  %v6641_v30 = vpop.f32.mrf.mxu0 }
 0x405   : > { %v6656_v25 = vadd.f32 %v6655_v63, %v6641_v30 }
 0x406   : > { %v6709_v7 = vadd.f32 %v6697_v59, %v6691_v32 }
 0x408   : > { %v6717_v39 = vadd.f32 %v10816_v49, %v6709_v7 }
 0x40a   : > { %6725 = vst [vmem:[%s11911_s24 + $0x28] sm:$0xff] %v6717_v39 }
 0x417   : > { %v6611_v33 = vpop.f32.mrf.mxu2  ;;  %v6625_v10 = vpop.f32.mrf.mxu3 }
 0x418   : > { %v6612_v0 = vadd.f32 %v6611_v33, %v6598_v53 }
 0x41a   : > { %v6626_v15 = vadd.f32 %v6625_v10, %v6612_v0 }
 0x41c   : > { %v6688_v6 = vadd.f32 %v6626_v15, %v11891_v35  ;;  %v6654_v35 = vadd.f32 %v6653_v42, %v6639_v18 }
 0x41e   : > { %v6706_v9 = vadd.f32 %v6698_v3, %v6688_v6 }
 0x41f   : > { %v6613_v47 = vpop.f32.mrf.mxu2  ;;  %v6627_v45 = vpop.f32.mrf.mxu3 }
 0x420   : > { %v6714_v58 = vadd.f32 %v10817_v12, %v6706_v9  ;;  %v6614_v5 = vadd.f32 %v6613_v47, %v6600_v54 }
 0x422   : > { %6722 = vst [vmem:[%s11911_s24 + $0x10] sm:$0xff] %v6714_v58  ;;  %v6628_v13 = vadd.f32 %v6627_v45, %v6614_v5 }
 0x424   : > { %v6692_v50 = vadd.f32 %v6628_v13, %v11894_v51 }
 0x426   : > { %v6710_v28 = vadd.f32 %v6698_v3, %v6692_v50 }
 0x428   : > { %v6718_v36 = vadd.f32 %v10818_v24, %v6710_v28 }
 0x42a   : > { %6726 = vst [vmem:[%s11911_s24 + $0x30] sm:$0xff] %v6718_v36 }
 0x437   : > { %v6667_v2 = vpop.f32.mrf.mxu2  ;;  %v6681_v41 = vpop.f32.mrf.mxu3 }
 0x438   : > { %v6668_v57 = vadd.f32 %v6667_v2, %v6654_v35 }
 0x43a   : > { %v6682_v37 = vadd.f32 %v6681_v41, %v6668_v57 }
 0x43c   : > { %v6689_v51 = vadd.f32 %v6682_v37, %v11899_v8 }
 0x43e   : > { %v6707_v61 = vadd.f32 %v6699_v11, %v6689_v51 }
 0x43f   : > { %v6669_v19 = vpop.f32.mrf.mxu2  ;;  %v6683_v38 = vpop.f32.mrf.mxu3 }
 0x440   : > { %v6715_v20 = vadd.f32 %v10819_v26, %v6707_v61  ;;  %v6670_v62 = vadd.f32 %v6669_v19, %v6656_v25 }
 0x442   : > { %6723 = vst [vmem:[%s11911_s24 + $0x18] sm:$0xff] %v6715_v20  ;;  %v6684_v1 = vadd.f32 %v6683_v38, %v6670_v62 }
 0x444   : > { %v6693_v8 = vadd.f32 %v6684_v1, %v11902_v4 }
 0x446   : > { %v6711_v16 = vadd.f32 %v6699_v11, %v6693_v8 }
 0x448   : > { %v6719_v52 = vadd.f32 %v10820_v14, %v6711_v16 }
 0x44a   : > { %6727 = vst [vmem:[%s11911_s24 + $0x38] sm:$0xff] %v6719_v52 }
 0x44b   : > { %10998 = shalt.err (!%p10995_p10)
}
 0x44c   : > { %s11055_s26 = smov 512   ;;  %s11056_s11 = smov 32  }
 0x44d   : > { %10737 = dma.vmem_to_hbm [thread:$0]  (%p11171_p3), %s6742_s6, 1024, %s6744_s7, %s6729_s22, %s11055_s26, %s11055_s26, %s11056_s11  }
 0x44e PF: > { %s6758_s24 = sand.u32 1, %s11033_s18   ;;  %p11996_p12 = scmp.ge.s32.totalorder %s11045_s21, 2 }
 0x44f   : > { %s6759_s29 = scalar_lea.sflag [#allocation5], %s6758_s24 }
 0x450   : > { %p10757_p13 = pnand %p11996_p12, %p11122_p6 }
 0x452   : > { %p10758_p0 = pneg %p10757_p13 }
 0x454   : > { %11028 = dma.done.wait (%p10758_p0), %s6759_s29, 1024  }
 0x455   : > { %11030 = vsyncadd (%p10758_p0), %s6759_s29, 4294966272  ;;  %p20_p5 = scmp.ge.s32.totalorder %s11161_s9, 4   ;;  %s11997_s18 = smov %s11037_s19 }
 0x456   : > { %s11998_s19 = smov %s11041_s20  ;;  %s11999_s20 = smov %s11177_s13 }
 0x457   : > { %s12000_s21 = smov %s11161_s9  ;;  %22 = sbr.rel (!%p20_p5) target bundleno = 7 (0x7), region = 105 }
 0x45c   :  { %6765 = vsyncpa [#allocation4], 1 }
 0x45d   :  { %6767 = vsyncpa [#allocation4 + $0x1], 1 }
 0x45e   :  { %6768 = vsyncpa [#allocation7], 1 }
 0x45f   :  { %6769 = vsyncpa [#allocation10], 1 }
 0x460   :  { %6770 = vsyncpa [#allocation5], 1 }
 0x461   :  { %6772 = vsyncpa [#allocation5 + $0x1], 1 }

</bundles_post_ra>
